<compile_context>
chip_gen: v7x
topology: tpu7x:2x2x1
jax: 0.10.0
libtpu: 0.0.40
codegen_flags: <defaults>
</compile_context>

<pallas_src>
import jax
import jax.numpy as jnp
from jax.experimental import pallas as pl
from jax.experimental.pallas import tpu as pltpu


LPAD = 16   # left pad on the W (sublane) axis of the padded scratch: multiple of 16 so
            # the interior bf16 store lands on a (16,128)-tile boundary.
RPAD = 16   # right pad; only 1 column is actually read, the rest keeps shapes tidy.


def _round_up(x, m):
    return (x + m - 1) // m * m


def _maxpool2x2(y, nb, h, w, c):
    """2x2 stride-2 max pool on (nb*h*w, c) f32 rows ordered (n, y, x)."""
    ho, wo = h // 2, w // 2
    y = y.reshape(nb * h * wo, 2, c)
    y = jnp.max(y, axis=1)                  # pool along W
    y = y.reshape(nb * ho, 2, wo, c)
    y = jnp.max(y, axis=1)                  # pool along H
    return y.reshape(nb * ho * wo, c)


def init_block_params(key, cin, cout, eps=1e-5):
    """Synthetic params mirroring PyTorch Conv2d(cin, cout, 3, padding=1) + BatchNorm2d.

    Conv weight is stored HWIO (3, 3, cin, cout).  BatchNorm uses PyTorch defaults
    (gamma=1, beta=0, running_mean=0, running_var=1), folded in eval mode.
    """
    kw, kb = jax.random.split(key, 2)
    fan_in = cin * 9
    bound = 1.0 / (fan_in ** 0.5)
    w = jax.random.uniform(kw, (3, 3, cin, cout), jnp.float32, -bound, bound)
    b = jax.random.uniform(kb, (cout,), jnp.float32, -bound, bound)
    gamma = jnp.ones((cout,), jnp.float32)
    beta = jnp.zeros((cout,), jnp.float32)
    running_mean = jnp.zeros((cout,), jnp.float32)
    running_var = jnp.ones((cout,), jnp.float32)
    # TODO(synk): training-mode BatchNorm (batch statistics) not implemented; eval-mode
    # BN is folded into the conv weight (scale) and bias (shift).
    scale = gamma / jnp.sqrt(running_var + eps)
    shift = (b - running_mean) * scale + beta
    return w, scale, shift


def _pack_params(params):
    """Fold the eval-mode BN scale into the conv weights and pack for the fused kernel."""
    (w1, s1, t1), (w2, s2, t2), (w3, s3, t3), (w4, s4, t4) = params
    cin1 = w1.shape[2]
    chans = {w1.shape[3], w2.shape[2], w2.shape[3], w3.shape[2], w3.shape[3],
             w4.shape[2], w4.shape[3]}
    assert len(chans) == 1, "fused kernel assumes hid_dim == z_dim (ProtoNet default)"
    c = w1.shape[3]

    # Layer 1: tight im2col rows (9*Cin) padded up to one 128-lane slot.
    k1 = 9 * cin1
    k1_lanes = _round_up(k1, 128)
    w1f = (w1 * s1).reshape(k1, c)
    w1p = jnp.zeros((k1_lanes, c), jnp.float32).at[:k1, :].set(w1f).astype(jnp.bfloat16)

    # Layers 2-4: tight (9*C = 576) rows, padded to 640 = 5*128 with zero rows.
    kc = 9 * c
    k_lanes = _round_up(kc, 128)

    def pack(w, s):
        wf = (w * s).reshape(kc, c)
        return jnp.zeros((k_lanes, c), jnp.float32).at[:kc, :].set(wf)

    w234 = jnp.stack([pack(w2, s2), pack(w3, s3), pack(w4, s4)]).astype(jnp.bfloat16)
    b = jnp.stack([t1, t2, t3, t4]).astype(jnp.float32)        # (4, C)
    return w1p, w234, b, (k1_lanes, k_lanes, c)


def protonet_forward(x_nchw, params, *, batch_block=8):
    """NCHW input -> (N, z_dim * (H//16) * (W//16)) features, PyTorch flatten order."""
    N, Cin, H, W = x_nchw.shape
    assert H % 16 == 0 and W % 16 == 0, "spatial dims must survive four 2x2 pools"
    # TODO(synk): PyTorch MaxPool2d floor-divides odd spatial sizes (e.g. the standard
    # 84x84 ProtoNet input); only even-at-every-stage sizes are handled here.

    w1p, w234p, shifts, (K1_LANES, K_LANES, C) = _pack_params(params)

    H2, W2 = H // 2, W // 2
    H3, W3 = H // 4, W // 4
    H4, W4 = H // 8, W // 8
    Hf, Wf = H // 16, W // 16

    # Batch chunk: largest divisor of N not exceeding `batch_block`.  Each chunk is
    # fully VMEM-resident; the leading grid axis over chunks is "parallel" so megacore
    # chips (v7x) split the batch across TensorCores and BlockSpec double-buffers the
    # per-chunk input DMA.
    NB = min(N, batch_block)
    while N % NB:
        NB -= 1

    M1 = NB * H * W
    M2 = NB * H2 * W2
    KC = 9 * C                               # 576 packed data lanes in the im2col buffer

    # ---- Layer-1 im2col (9*Cin = 36 lanes) built in the wrapper --------------------
    # Pure layout plumbing (input is ~8 KB); the conv itself (the matmul) runs in the
    # kernel.  Replaces nine K=4 dots that wasted >95% of MXU depth.
    x_nhwc = jnp.transpose(x_nchw, (0, 2, 3, 1)).astype(jnp.float32)
    xp = jnp.pad(x_nhwc, ((0, 0), (1, 1), (1, 1), (0, 0)))
    taps = [xp[:, dy:dy + H, dx:dx + W, :] for dy in range(3) for dx in range(3)]
    xcol = jnp.concatenate(taps, axis=-1)                      # (N, H, W, 9*Cin)
    xcol = jnp.pad(xcol, ((0, 0), (0, 0), (0, 0), (0, K1_LANES - 9 * Cin)))
    xcol = xcol.reshape(N, H * W, K1_LANES).astype(jnp.bfloat16)

    def kernel(xcol_ref, w1_ref, w234_ref, b_ref, o_ref, pad2, pad3, pad4, col_ref):
        # Zero only the 64 lane-padding columns of the im2col buffer (their weight rows
        # are zero, but stale VMEM could hold NaN/Inf).  The 576 data lanes are plain
        # overwrites below — no full-buffer memset.
        col_ref[0:M2, KC:K_LANES] = jnp.zeros((M2, K_LANES - KC), col_ref.dtype)

        # ---- block 1: Conv(Cin->C) as ONE im2col dot; pool, then bias+ReLU ---------
        y = jnp.dot(xcol_ref[...].reshape(M1, K1_LANES), w1_ref[...],
                    preferred_element_type=jnp.float32)        # (M1, C) f32
        y = _maxpool2x2(y, NB, H, W, C)                        # pool BEFORE epilogue
        y = jnp.maximum(y + b_ref[0:1, :], 0.0)                # (M2, C) f32

        # ---- blocks 2..4: Conv(C->C) via tightly packed im2col; pool; bias+ReLU ----
        def conv_block(act, pad_ref, w2d, bias_row, hi, wi):
            mi = NB * hi * wi
            # Zero only the 3x3-tap read window (interior + 1-wide halo columns/rows),
            # not the whole padded buffer, then overwrite the interior.
            pad_ref[:, :, LPAD - 1:LPAD + wi + 1, :] = jnp.zeros(
                (NB, hi + 2, wi + 2, C), pad_ref.dtype)
            pad_ref[:, 1:hi + 1, LPAD:LPAD + wi, :] = (
                act.reshape(NB, hi, wi, C).astype(pad_ref.dtype))
            # im2col: tap (dy, dx) -> lanes [(3*dy+dx)*C, +C) — tight, no zero slots.
            for k in range(9):
                dy, dx = divmod(k, 3)
                c0 = LPAD - 1 + dx
                patch = pad_ref[:, dy:dy + hi, c0:c0 + wi, :]
                col_ref[0:mi, k * C:(k + 1) * C] = patch.reshape(mi, C)
            yl = jnp.dot(col_ref[0:mi, :], w2d,
                         preferred_element_type=jnp.float32)   # (mi, C) f32
            yl = _maxpool2x2(yl, NB, hi, wi, C)                 # pool first (exact)
            return jnp.maximum(yl + bias_row, 0.0)

        y = conv_block(y, pad2, w234_ref[0], b_ref[1:2, :], H2, W2)
        y = conv_block(y, pad3, w234_ref[1], b_ref[2:3, :], H3, W3)
        y = conv_block(y, pad4, w234_ref[2], b_ref[3:4, :], H4, W4)

        # TODO(synk): for inputs where Hf*Wf > 1, a lane-dense (NB, Hf*Wf*C) output
        # layout would avoid masked partial stores (negligible at 1x1x64).
        o_ref[...] = y.reshape(NB, Hf, Wf, C).astype(o_ref.dtype)

    out_nhwc = pl.pallas_call(
        kernel,
        out_shape=jax.ShapeDtypeStruct((N, Hf, Wf, C), x_nchw.dtype),
        grid=(N // NB,),
        in_specs=[
            pl.BlockSpec((NB, H * W, K1_LANES), lambda b: (b, 0, 0)),   # layer-1 im2col
            pl.BlockSpec((K1_LANES, C), lambda b: (0, 0)),              # w1 (resident)
            pl.BlockSpec((3, K_LANES, C), lambda b: (0, 0, 0)),         # w2..w4 (resident)
            pl.BlockSpec((4, C), lambda b: (0, 0)),                     # folded BN shifts
        ],
        out_specs=pl.BlockSpec((NB, Hf, Wf, C), lambda b: (b, 0, 0, 0)),
        scratch_shapes=[
            pltpu.VMEM((NB, H2 + 2, LPAD + W2 + RPAD, C), jnp.bfloat16),  # pad2
            pltpu.VMEM((NB, H3 + 2, LPAD + W3 + RPAD, C), jnp.bfloat16),  # pad3
            pltpu.VMEM((NB, H4 + 2, LPAD + W4 + RPAD, C), jnp.bfloat16),  # pad4
            pltpu.VMEM((M2, K_LANES), jnp.bfloat16),                      # shared im2col
        ],
        compiler_params=pltpu.CompilerParams(
            # Parallel batch-chunk axis: uses both v7x TensorCores; harmless elsewhere.
            dimension_semantics=("parallel",),
            # ~1.5 MiB used at these shapes; raise toward the per-chip VMEM
            # (64 MiB v7x / 128 MiB v5e,v6e) together with `batch_block` for
            # real episode batch sizes.
            vmem_limit_bytes=32 * 1024 * 1024,
        ),
    )(xcol, w1p, w234p, shifts)

    # Match PyTorch's out.view(N, -1) on NCHW (free when the final spatial is 1x1).
    return jnp.transpose(out_nhwc, (0, 3, 1, 2)).reshape(N, -1)


if __name__ == "__main__":
    key = jax.random.PRNGKey(0)
    k_x, k1, k2, k3, k4 = jax.random.split(key, 5)

    # Small shapes consistent with the module: N=2, input_dim=4, 16x16 spatial.
    N, Cin, H, W = 2, 4, 16, 16
    hid_dim, z_dim = 64, 64
    x = jax.random.normal(k_x, (N, Cin, H, W), jnp.float32)

    params = [
        init_block_params(k1, Cin, hid_dim),
        init_block_params(k2, hid_dim, hid_dim),
        init_block_params(k3, hid_dim, hid_dim),
        init_block_params(k4, hid_dim, z_dim),
    ]

    fwd = jax.jit(protonet_forward)
    out = jax.block_until_ready(fwd(x, params))
    # 16x16 -> 8 -> 4 -> 2 -> 1 spatial, so flatten gives (N, z_dim).
    assert out.shape == (N, z_dim), out.shape
    print("KERNEL_OK")
</pallas_src>

<mosaic_0001>
module attributes {stable_mosaic.version = 11 : i64} {
  func.func @kernel(%arg0: i32, %arg1: memref<2x256x128xbf16, #tpu.memory_space<vmem>>, %arg2: memref<128x64xbf16, #tpu.memory_space<vmem>>, %arg3: memref<3x640x64xbf16, #tpu.memory_space<vmem>>, %arg4: memref<4x64xf32, #tpu.memory_space<vmem>>, %arg5: memref<2x1x1x64xf32, #tpu.memory_space<vmem>>, %arg6: memref<2x10x40x64xbf16, #tpu.memory_space<vmem>>, %arg7: memref<2x6x36x64xbf16, #tpu.memory_space<vmem>>, %arg8: memref<2x4x34x64xbf16, #tpu.memory_space<vmem>>, %arg9: memref<128x640xbf16, #tpu.memory_space<vmem>>) attributes {dimension_semantics = [#tpu.dimension_semantics<parallel>], iteration_bounds = array<i64: 1>, scalar_prefetch = 0 : i64, scratch_operands = 4 : i64, tpu.core_type = #tpu.core_type<tc>, window_params = [{transform_indices = @transform_0, window_bounds = array<i64: 2, 256, 128>}, {pipeline_mode = #tpu.pipeline_mode<synchronous>, transform_indices = @transform_1, window_bounds = array<i64: 128, 64>}, {pipeline_mode = #tpu.pipeline_mode<synchronous>, transform_indices = @transform_2, window_bounds = array<i64: 3, 640, 64>}, {pipeline_mode = #tpu.pipeline_mode<synchronous>, transform_indices = @transform_3, window_bounds = array<i64: 4, 64>}, {transform_indices = @transform_4, window_bounds = array<i64: 2, 1, 1, 64>}]} {
    %cst = arith.constant 0.000000e+00 : bf16
    %0 = vector.broadcast %cst : bf16 to vector<128x64xbf16>
    %c0 = arith.constant 0 : index
    %c576 = arith.constant 576 : index
    %1 = vector.load %arg9[%c0, %c576] : memref<128x640xbf16, #tpu.memory_space<vmem>>, vector<128x64xbf16>
    tpu.vector_store %arg9[%c0, %c576], %0 {strides = array<i32>} : memref<128x640xbf16, #tpu.memory_space<vmem>>, vector<128x64xbf16>,
    %c0_0 = arith.constant 0 : index
    %c0_1 = arith.constant 0 : index
    %c0_2 = arith.constant 0 : index
    %2 = vector.load %arg1[%c0_0, %c0_1, %c0_2] : memref<2x256x128xbf16, #tpu.memory_space<vmem>>, vector<2x256x128xbf16>
    %3 = vector.shape_cast %2 : vector<2x256x128xbf16> to vector<512x128xbf16>
    %c0_3 = arith.constant 0 : index
    %c0_4 = arith.constant 0 : index
    %4 = vector.load %arg2[%c0_3, %c0_4] : memref<128x64xbf16, #tpu.memory_space<vmem>>, vector<128x64xbf16>
    %cst_5 = arith.constant dense<0.000000e+00> : vector<512x64xf32>
    %5 = tpu.matmul %3, %4, %cst_5 {dimension_numbers = #tpu.dot_dimension_numbers<[1], [0], [0], [1], [0, 0, 1, 1], [], []>} : vector<512x128xbf16>, vector<128x64xbf16>, vector<512x64xf32> -> vector<512x64xf32>
    %6 = vector.shape_cast %5 : vector<512x64xf32> to vector<256x2x64xf32>
    %cst_6 = arith.constant dense<0xFF800000> : vector<256x64xf32>
    %7 = vector.multi_reduction <maximumf>, %6, %cst_6 [1] : vector<256x2x64xf32> to vector<256x64xf32>
    %8 = vector.shape_cast %7 : vector<256x64xf32> to vector<16x2x8x64xf32>
    %cst_7 = arith.constant dense<0xFF800000> : vector<16x8x64xf32>
    %9 = vector.multi_reduction <maximumf>, %8, %cst_7 [1] : vector<16x2x8x64xf32> to vector<16x8x64xf32>
    %10 = vector.shape_cast %9 : vector<16x8x64xf32> to vector<128x64xf32>
    %c0_8 = arith.constant 0 : index
    %c0_9 = arith.constant 0 : index
    %11 = vector.load %arg4[%c0_8, %c0_9] : memref<4x64xf32, #tpu.memory_space<vmem>>, vector<1x64xf32>
    %12 = vector.broadcast %11 : vector<1x64xf32> to vector<128x64xf32>
    %13 = arith.addf %10, %12 : vector<128x64xf32>
    %cst_10 = arith.constant 0.000000e+00 : f32
    %14 = vector.broadcast %cst_10 : f32 to vector<128x64xf32>
    %15 = arith.maximumf %13, %14 : vector<128x64xf32>
    %c0_11 = arith.constant 0 : index
    %c0_12 = arith.constant 0 : index
    %c0_13 = arith.constant 0 : index
    %16 = vector.load %arg3[%c0_11, %c0_12, %c0_13] : memref<3x640x64xbf16, #tpu.memory_space<vmem>>, vector<1x640x64xbf16>
    %17 = vector.shape_cast %16 : vector<1x640x64xbf16> to vector<640x64xbf16>
    %c1 = arith.constant 1 : index
    %c0_14 = arith.constant 0 : index
    %18 = vector.load %arg4[%c1, %c0_14] : memref<4x64xf32, #tpu.memory_space<vmem>>, vector<1x64xf32>
    %cst_15 = arith.constant 0.000000e+00 : bf16
    %19 = vector.broadcast %cst_15 : bf16 to vector<2x10x10x64xbf16>
    %c0_16 = arith.constant 0 : index
    %c0_17 = arith.constant 0 : index
    %c15 = arith.constant 15 : index
    %c0_18 = arith.constant 0 : index
    %20 = vector.load %arg6[%c0_16, %c0_17, %c15, %c0_18] : memref<2x10x40x64xbf16, #tpu.memory_space<vmem>>, vector<2x10x10x64xbf16>
    tpu.vector_store %arg6[%c0_16, %c0_17, %c15, %c0_18], %19 {strides = array<i32>} : memref<2x10x40x64xbf16, #tpu.memory_space<vmem>>, vector<2x10x10x64xbf16>,
    %21 = vector.shape_cast %15 : vector<128x64xf32> to vector<2x8x8x64xf32>
    %22 = arith.truncf %21 : vector<2x8x8x64xf32> to vector<2x8x8x64xbf16>
    %c0_19 = arith.constant 0 : index
    %c1_20 = arith.constant 1 : index
    %c16 = arith.constant 16 : index
    %c0_21 = arith.constant 0 : index
    %23 = vector.load %arg6[%c0_19, %c1_20, %c16, %c0_21] : memref<2x10x40x64xbf16, #tpu.memory_space<vmem>>, vector<2x8x8x64xbf16>
    tpu.vector_store %arg6[%c0_19, %c1_20, %c16, %c0_21], %22 {strides = array<i32>} : memref<2x10x40x64xbf16, #tpu.memory_space<vmem>>, vector<2x8x8x64xbf16>,
    %c0_22 = arith.constant 0 : index
    %c0_23 = arith.constant 0 : index
    %c15_24 = arith.constant 15 : index
    %c0_25 = arith.constant 0 : index
    %24 = vector.load %arg6[%c0_22, %c0_23, %c15_24, %c0_25] : memref<2x10x40x64xbf16, #tpu.memory_space<vmem>>, vector<2x8x8x64xbf16>
    %25 = vector.shape_cast %24 : vector<2x8x8x64xbf16> to vector<128x64xbf16>
    %c0_26 = arith.constant 0 : index
    %c0_27 = arith.constant 0 : index
    %26 = vector.load %arg9[%c0_26, %c0_27] : memref<128x640xbf16, #tpu.memory_space<vmem>>, vector<128x64xbf16>
    tpu.vector_store %arg9[%c0_26, %c0_27], %25 {strides = array<i32>} : memref<128x640xbf16, #tpu.memory_space<vmem>>, vector<128x64xbf16>,
    %c0_28 = arith.constant 0 : index
    %c0_29 = arith.constant 0 : index
    %c16_30 = arith.constant 16 : index
    %c0_31 = arith.constant 0 : index
    %27 = vector.load %arg6[%c0_28, %c0_29, %c16_30, %c0_31] : memref<2x10x40x64xbf16, #tpu.memory_space<vmem>>, vector<2x8x8x64xbf16>
    %28 = vector.shape_cast %27 : vector<2x8x8x64xbf16> to vector<128x64xbf16>
    %c0_32 = arith.constant 0 : index
    %c64 = arith.constant 64 : index
    %29 = vector.load %arg9[%c0_32, %c64] : memref<128x640xbf16, #tpu.memory_space<vmem>>, vector<128x64xbf16>
    tpu.vector_store %arg9[%c0_32, %c64], %28 {strides = array<i32>} : memref<128x640xbf16, #tpu.memory_space<vmem>>, vector<128x64xbf16>,
    %c0_33 = arith.constant 0 : index
    %c0_34 = arith.constant 0 : index
    %c17 = arith.constant 17 : index
    %c0_35 = arith.constant 0 : index
    %30 = vector.load %arg6[%c0_33, %c0_34, %c17, %c0_35] : memref<2x10x40x64xbf16, #tpu.memory_space<vmem>>, vector<2x8x8x64xbf16>
    %31 = vector.shape_cast %30 : vector<2x8x8x64xbf16> to vector<128x64xbf16>
    %c0_36 = arith.constant 0 : index
    %c128 = arith.constant 128 : index
    %32 = vector.load %arg9[%c0_36, %c128] : memref<128x640xbf16, #tpu.memory_space<vmem>>, vector<128x64xbf16>
    tpu.vector_store %arg9[%c0_36, %c128], %31 {strides = array<i32>} : memref<128x640xbf16, #tpu.memory_space<vmem>>, vector<128x64xbf16>,
    %c0_37 = arith.constant 0 : index
    %c1_38 = arith.constant 1 : index
    %c15_39 = arith.constant 15 : index
    %c0_40 = arith.constant 0 : index
    %33 = vector.load %arg6[%c0_37, %c1_38, %c15_39, %c0_40] : memref<2x10x40x64xbf16, #tpu.memory_space<vmem>>, vector<2x8x8x64xbf16>
    %34 = vector.shape_cast %33 : vector<2x8x8x64xbf16> to vector<128x64xbf16>
    %c0_41 = arith.constant 0 : index
    %c192 = arith.constant 192 : index
    %35 = vector.load %arg9[%c0_41, %c192] : memref<128x640xbf16, #tpu.memory_space<vmem>>, vector<128x64xbf16>
    tpu.vector_store %arg9[%c0_41, %c192], %34 {strides = array<i32>} : memref<128x640xbf16, #tpu.memory_space<vmem>>, vector<128x64xbf16>,
    %c0_42 = arith.constant 0 : index
    %c1_43 = arith.constant 1 : index
    %c16_44 = arith.constant 16 : index
    %c0_45 = arith.constant 0 : index
    %36 = vector.load %arg6[%c0_42, %c1_43, %c16_44, %c0_45] : memref<2x10x40x64xbf16, #tpu.memory_space<vmem>>, vector<2x8x8x64xbf16>
    %37 = vector.shape_cast %36 : vector<2x8x8x64xbf16> to vector<128x64xbf16>
    %c0_46 = arith.constant 0 : index
    %c256 = arith.constant 256 : index
    %38 = vector.load %arg9[%c0_46, %c256] : memref<128x640xbf16, #tpu.memory_space<vmem>>, vector<128x64xbf16>
    tpu.vector_store %arg9[%c0_46, %c256], %37 {strides = array<i32>} : memref<128x640xbf16, #tpu.memory_space<vmem>>, vector<128x64xbf16>,
    %c0_47 = arith.constant 0 : index
    %c1_48 = arith.constant 1 : index
    %c17_49 = arith.constant 17 : index
    %c0_50 = arith.constant 0 : index
    %39 = vector.load %arg6[%c0_47, %c1_48, %c17_49, %c0_50] : memref<2x10x40x64xbf16, #tpu.memory_space<vmem>>, vector<2x8x8x64xbf16>
    %40 = vector.shape_cast %39 : vector<2x8x8x64xbf16> to vector<128x64xbf16>
    %c0_51 = arith.constant 0 : index
    %c320 = arith.constant 320 : index
    %41 = vector.load %arg9[%c0_51, %c320] : memref<128x640xbf16, #tpu.memory_space<vmem>>, vector<128x64xbf16>
    tpu.vector_store %arg9[%c0_51, %c320], %40 {strides = array<i32>} : memref<128x640xbf16, #tpu.memory_space<vmem>>, vector<128x64xbf16>,
    %c0_52 = arith.constant 0 : index
    %c2 = arith.constant 2 : index
    %c15_53 = arith.constant 15 : index
    %c0_54 = arith.constant 0 : index
    %42 = vector.load %arg6[%c0_52, %c2, %c15_53, %c0_54] : memref<2x10x40x64xbf16, #tpu.memory_space<vmem>>, vector<2x8x8x64xbf16>
    %43 = vector.shape_cast %42 : vector<2x8x8x64xbf16> to vector<128x64xbf16>
    %c0_55 = arith.constant 0 : index
    %c384 = arith.constant 384 : index
    %44 = vector.load %arg9[%c0_55, %c384] : memref<128x640xbf16, #tpu.memory_space<vmem>>, vector<128x64xbf16>
    tpu.vector_store %arg9[%c0_55, %c384], %43 {strides = array<i32>} : memref<128x640xbf16, #tpu.memory_space<vmem>>, vector<128x64xbf16>,
    %c0_56 = arith.constant 0 : index
    %c2_57 = arith.constant 2 : index
    %c16_58 = arith.constant 16 : index
    %c0_59 = arith.constant 0 : index
    %45 = vector.load %arg6[%c0_56, %c2_57, %c16_58, %c0_59] : memref<2x10x40x64xbf16, #tpu.memory_space<vmem>>, vector<2x8x8x64xbf16>
    %46 = vector.shape_cast %45 : vector<2x8x8x64xbf16> to vector<128x64xbf16>
    %c0_60 = arith.constant 0 : index
    %c448 = arith.constant 448 : index
    %47 = vector.load %arg9[%c0_60, %c448] : memref<128x640xbf16, #tpu.memory_space<vmem>>, vector<128x64xbf16>
    tpu.vector_store %arg9[%c0_60, %c448], %46 {strides = array<i32>} : memref<128x640xbf16, #tpu.memory_space<vmem>>, vector<128x64xbf16>,
    %c0_61 = arith.constant 0 : index
    %c2_62 = arith.constant 2 : index
    %c17_63 = arith.constant 17 : index
    %c0_64 = arith.constant 0 : index
    %48 = vector.load %arg6[%c0_61, %c2_62, %c17_63, %c0_64] : memref<2x10x40x64xbf16, #tpu.memory_space<vmem>>, vector<2x8x8x64xbf16>
    %49 = vector.shape_cast %48 : vector<2x8x8x64xbf16> to vector<128x64xbf16>
    %c0_65 = arith.constant 0 : index
    %c512 = arith.constant 512 : index
    %50 = vector.load %arg9[%c0_65, %c512] : memref<128x640xbf16, #tpu.memory_space<vmem>>, vector<128x64xbf16>
    tpu.vector_store %arg9[%c0_65, %c512], %49 {strides = array<i32>} : memref<128x640xbf16, #tpu.memory_space<vmem>>, vector<128x64xbf16>,
    %c0_66 = arith.constant 0 : index
    %c0_67 = arith.constant 0 : index
    %51 = vector.load %arg9[%c0_66, %c0_67] : memref<128x640xbf16, #tpu.memory_space<vmem>>, vector<128x640xbf16>
    %cst_68 = arith.constant dense<0.000000e+00> : vector<128x64xf32>
    %52 = tpu.matmul %51, %17, %cst_68 {dimension_numbers = #tpu.dot_dimension_numbers<[1], [0], [0], [1], [0, 0, 1, 1], [], []>} : vector<128x640xbf16>, vector<640x64xbf16>, vector<128x64xf32> -> vector<128x64xf32>
    %53 = vector.shape_cast %52 : vector<128x64xf32> to vector<64x2x64xf32>
    %cst_69 = arith.constant dense<0xFF800000> : vector<64x64xf32>
    %54 = vector.multi_reduction <maximumf>, %53, %cst_69 [1] : vector<64x2x64xf32> to vector<64x64xf32>
    %55 = vector.shape_cast %54 : vector<64x64xf32> to vector<8x2x4x64xf32>
    %cst_70 = arith.constant dense<0xFF800000> : vector<8x4x64xf32>
    %56 = vector.multi_reduction <maximumf>, %55, %cst_70 [1] : vector<8x2x4x64xf32> to vector<8x4x64xf32>
    %57 = vector.shape_cast %56 : vector<8x4x64xf32> to vector<32x64xf32>
    %58 = vector.broadcast %18 : vector<1x64xf32> to vector<32x64xf32>
    %59 = arith.addf %57, %58 : vector<32x64xf32>
    %cst_71 = arith.constant 0.000000e+00 : f32
    %60 = vector.broadcast %cst_71 : f32 to vector<32x64xf32>
    %61 = arith.maximumf %59, %60 : vector<32x64xf32>
    %c1_72 = arith.constant 1 : index
    %c0_73 = arith.constant 0 : index
    %c0_74 = arith.constant 0 : index
    %62 = vector.load %arg3[%c1_72, %c0_73, %c0_74] : memref<3x640x64xbf16, #tpu.memory_space<vmem>>, vector<1x640x64xbf16>
    %63 = vector.shape_cast %62 : vector<1x640x64xbf16> to vector<640x64xbf16>
    %c2_75 = arith.constant 2 : index
    %c0_76 = arith.constant 0 : index
    %64 = vector.load %arg4[%c2_75, %c0_76] : memref<4x64xf32, #tpu.memory_space<vmem>>, vector<1x64xf32>
    %cst_77 = arith.constant 0.000000e+00 : bf16
    %65 = vector.broadcast %cst_77 : bf16 to vector<2x6x6x64xbf16>
    %c0_78 = arith.constant 0 : index
    %c0_79 = arith.constant 0 : index
    %c15_80 = arith.constant 15 : index
    %c0_81 = arith.constant 0 : index
    %66 = vector.load %arg7[%c0_78, %c0_79, %c15_80, %c0_81] : memref<2x6x36x64xbf16, #tpu.memory_space<vmem>>, vector<2x6x6x64xbf16>
    tpu.vector_store %arg7[%c0_78, %c0_79, %c15_80, %c0_81], %65 {strides = array<i32>} : memref<2x6x36x64xbf16, #tpu.memory_space<vmem>>, vector<2x6x6x64xbf16>,
    %67 = vector.shape_cast %61 : vector<32x64xf32> to vector<2x4x4x64xf32>
    %68 = arith.truncf %67 : vector<2x4x4x64xf32> to vector<2x4x4x64xbf16>
    %c0_82 = arith.constant 0 : index
    %c1_83 = arith.constant 1 : index
    %c16_84 = arith.constant 16 : index
    %c0_85 = arith.constant 0 : index
    %69 = vector.load %arg7[%c0_82, %c1_83, %c16_84, %c0_85] : memref<2x6x36x64xbf16, #tpu.memory_space<vmem>>, vector<2x4x4x64xbf16>
    tpu.vector_store %arg7[%c0_82, %c1_83, %c16_84, %c0_85], %68 {strides = array<i32>} : memref<2x6x36x64xbf16, #tpu.memory_space<vmem>>, vector<2x4x4x64xbf16>,
    %c0_86 = arith.constant 0 : index
    %c0_87 = arith.constant 0 : index
    %c15_88 = arith.constant 15 : index
    %c0_89 = arith.constant 0 : index
    %70 = vector.load %arg7[%c0_86, %c0_87, %c15_88, %c0_89] : memref<2x6x36x64xbf16, #tpu.memory_space<vmem>>, vector<2x4x4x64xbf16>
    %71 = vector.shape_cast %70 : vector<2x4x4x64xbf16> to vector<32x64xbf16>
    %c0_90 = arith.constant 0 : index
    %c0_91 = arith.constant 0 : index
    %72 = vector.load %arg9[%c0_90, %c0_91] : memref<128x640xbf16, #tpu.memory_space<vmem>>, vector<32x64xbf16>
    tpu.vector_store %arg9[%c0_90, %c0_91], %71 {strides = array<i32>} : memref<128x640xbf16, #tpu.memory_space<vmem>>, vector<32x64xbf16>,
    %c0_92 = arith.constant 0 : index
    %c0_93 = arith.constant 0 : index
    %c16_94 = arith.constant 16 : index
    %c0_95 = arith.constant 0 : index
    %73 = vector.load %arg7[%c0_92, %c0_93, %c16_94, %c0_95] : memref<2x6x36x64xbf16, #tpu.memory_space<vmem>>, vector<2x4x4x64xbf16>
    %74 = vector.shape_cast %73 : vector<2x4x4x64xbf16> to vector<32x64xbf16>
    %c0_96 = arith.constant 0 : index
    %c64_97 = arith.constant 64 : index
    %75 = vector.load %arg9[%c0_96, %c64_97] : memref<128x640xbf16, #tpu.memory_space<vmem>>, vector<32x64xbf16>
    tpu.vector_store %arg9[%c0_96, %c64_97], %74 {strides = array<i32>} : memref<128x640xbf16, #tpu.memory_space<vmem>>, vector<32x64xbf16>,
    %c0_98 = arith.constant 0 : index
    %c0_99 = arith.constant 0 : index
    %c17_100 = arith.constant 17 : index
    %c0_101 = arith.constant 0 : index
    %76 = vector.load %arg7[%c0_98, %c0_99, %c17_100, %c0_101] : memref<2x6x36x64xbf16, #tpu.memory_space<vmem>>, vector<2x4x4x64xbf16>
    %77 = vector.shape_cast %76 : vector<2x4x4x64xbf16> to vector<32x64xbf16>
    %c0_102 = arith.constant 0 : index
    %c128_103 = arith.constant 128 : index
    %78 = vector.load %arg9[%c0_102, %c128_103] : memref<128x640xbf16, #tpu.memory_space<vmem>>, vector<32x64xbf16>
    tpu.vector_store %arg9[%c0_102, %c128_103], %77 {strides = array<i32>} : memref<128x640xbf16, #tpu.memory_space<vmem>>, vector<32x64xbf16>,
    %c0_104 = arith.constant 0 : index
    %c1_105 = arith.constant 1 : index
    %c15_106 = arith.constant 15 : index
    %c0_107 = arith.constant 0 : index
    %79 = vector.load %arg7[%c0_104, %c1_105, %c15_106, %c0_107] : memref<2x6x36x64xbf16, #tpu.memory_space<vmem>>, vector<2x4x4x64xbf16>
    %80 = vector.shape_cast %79 : vector<2x4x4x64xbf16> to vector<32x64xbf16>
    %c0_108 = arith.constant 0 : index
    %c192_109 = arith.constant 192 : index
    %81 = vector.load %arg9[%c0_108, %c192_109] : memref<128x640xbf16, #tpu.memory_space<vmem>>, vector<32x64xbf16>
    tpu.vector_store %arg9[%c0_108, %c192_109], %80 {strides = array<i32>} : memref<128x640xbf16, #tpu.memory_space<vmem>>, vector<32x64xbf16>,
    %c0_110 = arith.constant 0 : index
    %c1_111 = arith.constant 1 : index
    %c16_112 = arith.constant 16 : index
    %c0_113 = arith.constant 0 : index
    %82 = vector.load %arg7[%c0_110, %c1_111, %c16_112, %c0_113] : memref<2x6x36x64xbf16, #tpu.memory_space<vmem>>, vector<2x4x4x64xbf16>
    %83 = vector.shape_cast %82 : vector<2x4x4x64xbf16> to vector<32x64xbf16>
    %c0_114 = arith.constant 0 : index
    %c256_115 = arith.constant 256 : index
    %84 = vector.load %arg9[%c0_114, %c256_115] : memref<128x640xbf16, #tpu.memory_space<vmem>>, vector<32x64xbf16>
    tpu.vector_store %arg9[%c0_114, %c256_115], %83 {strides = array<i32>} : memref<128x640xbf16, #tpu.memory_space<vmem>>, vector<32x64xbf16>,
    %c0_116 = arith.constant 0 : index
    %c1_117 = arith.constant 1 : index
    %c17_118 = arith.constant 17 : index
    %c0_119 = arith.constant 0 : index
    %85 = vector.load %arg7[%c0_116, %c1_117, %c17_118, %c0_119] : memref<2x6x36x64xbf16, #tpu.memory_space<vmem>>, vector<2x4x4x64xbf16>
    %86 = vector.shape_cast %85 : vector<2x4x4x64xbf16> to vector<32x64xbf16>
    %c0_120 = arith.constant 0 : index
    %c320_121 = arith.constant 320 : index
    %87 = vector.load %arg9[%c0_120, %c320_121] : memref<128x640xbf16, #tpu.memory_space<vmem>>, vector<32x64xbf16>
    tpu.vector_store %arg9[%c0_120, %c320_121], %86 {strides = array<i32>} : memref<128x640xbf16, #tpu.memory_space<vmem>>, vector<32x64xbf16>,
    %c0_122 = arith.constant 0 : index
    %c2_123 = arith.constant 2 : index
    %c15_124 = arith.constant 15 : index
    %c0_125 = arith.constant 0 : index
    %88 = vector.load %arg7[%c0_122, %c2_123, %c15_124, %c0_125] : memref<2x6x36x64xbf16, #tpu.memory_space<vmem>>, vector<2x4x4x64xbf16>
    %89 = vector.shape_cast %88 : vector<2x4x4x64xbf16> to vector<32x64xbf16>
    %c0_126 = arith.constant 0 : index
    %c384_127 = arith.constant 384 : index
    %90 = vector.load %arg9[%c0_126, %c384_127] : memref<128x640xbf16, #tpu.memory_space<vmem>>, vector<32x64xbf16>
    tpu.vector_store %arg9[%c0_126, %c384_127], %89 {strides = array<i32>} : memref<128x640xbf16, #tpu.memory_space<vmem>>, vector<32x64xbf16>,
    %c0_128 = arith.constant 0 : index
    %c2_129 = arith.constant 2 : index
    %c16_130 = arith.constant 16 : index
    %c0_131 = arith.constant 0 : index
    %91 = vector.load %arg7[%c0_128, %c2_129, %c16_130, %c0_131] : memref<2x6x36x64xbf16, #tpu.memory_space<vmem>>, vector<2x4x4x64xbf16>
    %92 = vector.shape_cast %91 : vector<2x4x4x64xbf16> to vector<32x64xbf16>
    %c0_132 = arith.constant 0 : index
    %c448_133 = arith.constant 448 : index
    %93 = vector.load %arg9[%c0_132, %c448_133] : memref<128x640xbf16, #tpu.memory_space<vmem>>, vector<32x64xbf16>
    tpu.vector_store %arg9[%c0_132, %c448_133], %92 {strides = array<i32>} : memref<128x640xbf16, #tpu.memory_space<vmem>>, vector<32x64xbf16>,
    %c0_134 = arith.constant 0 : index
    %c2_135 = arith.constant 2 : index
    %c17_136 = arith.constant 17 : index
    %c0_137 = arith.constant 0 : index
    %94 = vector.load %arg7[%c0_134, %c2_135, %c17_136, %c0_137] : memref<2x6x36x64xbf16, #tpu.memory_space<vmem>>, vector<2x4x4x64xbf16>
    %95 = vector.shape_cast %94 : vector<2x4x4x64xbf16> to vector<32x64xbf16>
    %c0_138 = arith.constant 0 : index
    %c512_139 = arith.constant 512 : index
    %96 = vector.load %arg9[%c0_138, %c512_139] : memref<128x640xbf16, #tpu.memory_space<vmem>>, vector<32x64xbf16>
    tpu.vector_store %arg9[%c0_138, %c512_139], %95 {strides = array<i32>} : memref<128x640xbf16, #tpu.memory_space<vmem>>, vector<32x64xbf16>,
    %c0_140 = arith.constant 0 : index
    %c0_141 = arith.constant 0 : index
    %97 = vector.load %arg9[%c0_140, %c0_141] : memref<128x640xbf16, #tpu.memory_space<vmem>>, vector<32x640xbf16>
    %cst_142 = arith.constant dense<0.000000e+00> : vector<32x64xf32>
    %98 = tpu.matmul %97, %63, %cst_142 {dimension_numbers = #tpu.dot_dimension_numbers<[1], [0], [0], [1], [0, 0, 1, 1], [], []>} : vector<32x640xbf16>, vector<640x64xbf16>, vector<32x64xf32> -> vector<32x64xf32>
    %99 = vector.shape_cast %98 : vector<32x64xf32> to vector<16x2x64xf32>
    %cst_143 = arith.constant dense<0xFF800000> : vector<16x64xf32>
    %100 = vector.multi_reduction <maximumf>, %99, %cst_143 [1] : vector<16x2x64xf32> to vector<16x64xf32>
    %101 = vector.shape_cast %100 : vector<16x64xf32> to vector<4x2x2x64xf32>
    %cst_144 = arith.constant dense<0xFF800000> : vector<4x2x64xf32>
    %102 = vector.multi_reduction <maximumf>, %101, %cst_144 [1] : vector<4x2x2x64xf32> to vector<4x2x64xf32>
    %103 = vector.shape_cast %102 : vector<4x2x64xf32> to vector<8x64xf32>
    %104 = vector.broadcast %64 : vector<1x64xf32> to vector<8x64xf32>
    %105 = arith.addf %103, %104 : vector<8x64xf32>
    %cst_145 = arith.constant 0.000000e+00 : f32
    %106 = vector.broadcast %cst_145 : f32 to vector<8x64xf32>
    %107 = arith.maximumf %105, %106 : vector<8x64xf32>
    %c2_146 = arith.constant 2 : index
    %c0_147 = arith.constant 0 : index
    %c0_148 = arith.constant 0 : index
    %108 = vector.load %arg3[%c2_146, %c0_147, %c0_148] : memref<3x640x64xbf16, #tpu.memory_space<vmem>>, vector<1x640x64xbf16>
    %109 = vector.shape_cast %108 : vector<1x640x64xbf16> to vector<640x64xbf16>
    %c3 = arith.constant 3 : index
    %c0_149 = arith.constant 0 : index
    %110 = vector.load %arg4[%c3, %c0_149] : memref<4x64xf32, #tpu.memory_space<vmem>>, vector<1x64xf32>
    %cst_150 = arith.constant 0.000000e+00 : bf16
    %111 = vector.broadcast %cst_150 : bf16 to vector<2x4x4x64xbf16>
    %c0_151 = arith.constant 0 : index
    %c0_152 = arith.constant 0 : index
    %c15_153 = arith.constant 15 : index
    %c0_154 = arith.constant 0 : index
    %112 = vector.load %arg8[%c0_151, %c0_152, %c15_153, %c0_154] : memref<2x4x34x64xbf16, #tpu.memory_space<vmem>>, vector<2x4x4x64xbf16>
    tpu.vector_store %arg8[%c0_151, %c0_152, %c15_153, %c0_154], %111 {strides = array<i32>} : memref<2x4x34x64xbf16, #tpu.memory_space<vmem>>, vector<2x4x4x64xbf16>,
    %113 = vector.shape_cast %107 : vector<8x64xf32> to vector<2x2x2x64xf32>
    %114 = arith.truncf %113 : vector<2x2x2x64xf32> to vector<2x2x2x64xbf16>
    %c0_155 = arith.constant 0 : index
    %c1_156 = arith.constant 1 : index
    %c16_157 = arith.constant 16 : index
    %c0_158 = arith.constant 0 : index
    %115 = vector.load %arg8[%c0_155, %c1_156, %c16_157, %c0_158] : memref<2x4x34x64xbf16, #tpu.memory_space<vmem>>, vector<2x2x2x64xbf16>
    tpu.vector_store %arg8[%c0_155, %c1_156, %c16_157, %c0_158], %114 {strides = array<i32>} : memref<2x4x34x64xbf16, #tpu.memory_space<vmem>>, vector<2x2x2x64xbf16>,
    %c0_159 = arith.constant 0 : index
    %c0_160 = arith.constant 0 : index
    %c15_161 = arith.constant 15 : index
    %c0_162 = arith.constant 0 : index
    %116 = vector.load %arg8[%c0_159, %c0_160, %c15_161, %c0_162] : memref<2x4x34x64xbf16, #tpu.memory_space<vmem>>, vector<2x2x2x64xbf16>
    %117 = vector.shape_cast %116 : vector<2x2x2x64xbf16> to vector<8x64xbf16>
    %c0_163 = arith.constant 0 : index
    %c0_164 = arith.constant 0 : index
    %118 = vector.load %arg9[%c0_163, %c0_164] : memref<128x640xbf16, #tpu.memory_space<vmem>>, vector<8x64xbf16>
    tpu.vector_store %arg9[%c0_163, %c0_164], %117 {strides = array<i32>} : memref<128x640xbf16, #tpu.memory_space<vmem>>, vector<8x64xbf16>,
    %c0_165 = arith.constant 0 : index
    %c0_166 = arith.constant 0 : index
    %c16_167 = arith.constant 16 : index
    %c0_168 = arith.constant 0 : index
    %119 = vector.load %arg8[%c0_165, %c0_166, %c16_167, %c0_168] : memref<2x4x34x64xbf16, #tpu.memory_space<vmem>>, vector<2x2x2x64xbf16>
    %120 = vector.shape_cast %119 : vector<2x2x2x64xbf16> to vector<8x64xbf16>
    %c0_169 = arith.constant 0 : index
    %c64_170 = arith.constant 64 : index
    %121 = vector.load %arg9[%c0_169, %c64_170] : memref<128x640xbf16, #tpu.memory_space<vmem>>, vector<8x64xbf16>
    tpu.vector_store %arg9[%c0_169, %c64_170], %120 {strides = array<i32>} : memref<128x640xbf16, #tpu.memory_space<vmem>>, vector<8x64xbf16>,
    %c0_171 = arith.constant 0 : index
    %c0_172 = arith.constant 0 : index
    %c17_173 = arith.constant 17 : index
    %c0_174 = arith.constant 0 : index
    %122 = vector.load %arg8[%c0_171, %c0_172, %c17_173, %c0_174] : memref<2x4x34x64xbf16, #tpu.memory_space<vmem>>, vector<2x2x2x64xbf16>
    %123 = vector.shape_cast %122 : vector<2x2x2x64xbf16> to vector<8x64xbf16>
    %c0_175 = arith.constant 0 : index
    %c128_176 = arith.constant 128 : index
    %124 = vector.load %arg9[%c0_175, %c128_176] : memref<128x640xbf16, #tpu.memory_space<vmem>>, vector<8x64xbf16>
    tpu.vector_store %arg9[%c0_175, %c128_176], %123 {strides = array<i32>} : memref<128x640xbf16, #tpu.memory_space<vmem>>, vector<8x64xbf16>,
    %c0_177 = arith.constant 0 : index
    %c1_178 = arith.constant 1 : index
    %c15_179 = arith.constant 15 : index
    %c0_180 = arith.constant 0 : index
    %125 = vector.load %arg8[%c0_177, %c1_178, %c15_179, %c0_180] : memref<2x4x34x64xbf16, #tpu.memory_space<vmem>>, vector<2x2x2x64xbf16>
    %126 = vector.shape_cast %125 : vector<2x2x2x64xbf16> to vector<8x64xbf16>
    %c0_181 = arith.constant 0 : index
    %c192_182 = arith.constant 192 : index
    %127 = vector.load %arg9[%c0_181, %c192_182] : memref<128x640xbf16, #tpu.memory_space<vmem>>, vector<8x64xbf16>
    tpu.vector_store %arg9[%c0_181, %c192_182], %126 {strides = array<i32>} : memref<128x640xbf16, #tpu.memory_space<vmem>>, vector<8x64xbf16>,
    %c0_183 = arith.constant 0 : index
    %c1_184 = arith.constant 1 : index
    %c16_185 = arith.constant 16 : index
    %c0_186 = arith.constant 0 : index
    %128 = vector.load %arg8[%c0_183, %c1_184, %c16_185, %c0_186] : memref<2x4x34x64xbf16, #tpu.memory_space<vmem>>, vector<2x2x2x64xbf16>
    %129 = vector.shape_cast %128 : vector<2x2x2x64xbf16> to vector<8x64xbf16>
    %c0_187 = arith.constant 0 : index
    %c256_188 = arith.constant 256 : index
    %130 = vector.load %arg9[%c0_187, %c256_188] : memref<128x640xbf16, #tpu.memory_space<vmem>>, vector<8x64xbf16>
    tpu.vector_store %arg9[%c0_187, %c256_188], %129 {strides = array<i32>} : memref<128x640xbf16, #tpu.memory_space<vmem>>, vector<8x64xbf16>,
    %c0_189 = arith.constant 0 : index
    %c1_190 = arith.constant 1 : index
    %c17_191 = arith.constant 17 : index
    %c0_192 = arith.constant 0 : index
    %131 = vector.load %arg8[%c0_189, %c1_190, %c17_191, %c0_192] : memref<2x4x34x64xbf16, #tpu.memory_space<vmem>>, vector<2x2x2x64xbf16>
    %132 = vector.shape_cast %131 : vector<2x2x2x64xbf16> to vector<8x64xbf16>
    %c0_193 = arith.constant 0 : index
    %c320_194 = arith.constant 320 : index
    %133 = vector.load %arg9[%c0_193, %c320_194] : memref<128x640xbf16, #tpu.memory_space<vmem>>, vector<8x64xbf16>
    tpu.vector_store %arg9[%c0_193, %c320_194], %132 {strides = array<i32>} : memref<128x640xbf16, #tpu.memory_space<vmem>>, vector<8x64xbf16>,
    %c0_195 = arith.constant 0 : index
    %c2_196 = arith.constant 2 : index
    %c15_197 = arith.constant 15 : index
    %c0_198 = arith.constant 0 : index
    %134 = vector.load %arg8[%c0_195, %c2_196, %c15_197, %c0_198] : memref<2x4x34x64xbf16, #tpu.memory_space<vmem>>, vector<2x2x2x64xbf16>
    %135 = vector.shape_cast %134 : vector<2x2x2x64xbf16> to vector<8x64xbf16>
    %c0_199 = arith.constant 0 : index
    %c384_200 = arith.constant 384 : index
    %136 = vector.load %arg9[%c0_199, %c384_200] : memref<128x640xbf16, #tpu.memory_space<vmem>>, vector<8x64xbf16>
    tpu.vector_store %arg9[%c0_199, %c384_200], %135 {strides = array<i32>} : memref<128x640xbf16, #tpu.memory_space<vmem>>, vector<8x64xbf16>,
    %c0_201 = arith.constant 0 : index
    %c2_202 = arith.constant 2 : index
    %c16_203 = arith.constant 16 : index
    %c0_204 = arith.constant 0 : index
    %137 = vector.load %arg8[%c0_201, %c2_202, %c16_203, %c0_204] : memref<2x4x34x64xbf16, #tpu.memory_space<vmem>>, vector<2x2x2x64xbf16>
    %138 = vector.shape_cast %137 : vector<2x2x2x64xbf16> to vector<8x64xbf16>
    %c0_205 = arith.constant 0 : index
    %c448_206 = arith.constant 448 : index
    %139 = vector.load %arg9[%c0_205, %c448_206] : memref<128x640xbf16, #tpu.memory_space<vmem>>, vector<8x64xbf16>
    tpu.vector_store %arg9[%c0_205, %c448_206], %138 {strides = array<i32>} : memref<128x640xbf16, #tpu.memory_space<vmem>>, vector<8x64xbf16>,
    %c0_207 = arith.constant 0 : index
    %c2_208 = arith.constant 2 : index
    %c17_209 = arith.constant 17 : index
    %c0_210 = arith.constant 0 : index
    %140 = vector.load %arg8[%c0_207, %c2_208, %c17_209, %c0_210] : memref<2x4x34x64xbf16, #tpu.memory_space<vmem>>, vector<2x2x2x64xbf16>
    %141 = vector.shape_cast %140 : vector<2x2x2x64xbf16> to vector<8x64xbf16>
    %c0_211 = arith.constant 0 : index
    %c512_212 = arith.constant 512 : index
    %142 = vector.load %arg9[%c0_211, %c512_212] : memref<128x640xbf16, #tpu.memory_space<vmem>>, vector<8x64xbf16>
    tpu.vector_store %arg9[%c0_211, %c512_212], %141 {strides = array<i32>} : memref<128x640xbf16, #tpu.memory_space<vmem>>, vector<8x64xbf16>,
    %c0_213 = arith.constant 0 : index
    %c0_214 = arith.constant 0 : index
    %143 = vector.load %arg9[%c0_213, %c0_214] : memref<128x640xbf16, #tpu.memory_space<vmem>>, vector<8x640xbf16>
    %cst_215 = arith.constant dense<0.000000e+00> : vector<8x64xf32>
    %144 = tpu.matmul %143, %109, %cst_215 {dimension_numbers = #tpu.dot_dimension_numbers<[1], [0], [0], [1], [0, 0, 1, 1], [], []>} : vector<8x640xbf16>, vector<640x64xbf16>, vector<8x64xf32> -> vector<8x64xf32>
    %145 = vector.shape_cast %144 : vector<8x64xf32> to vector<4x2x64xf32>
    %cst_216 = arith.constant dense<0xFF800000> : vector<4x64xf32>
    %146 = vector.multi_reduction <maximumf>, %145, %cst_216 [1] : vector<4x2x64xf32> to vector<4x64xf32>
    %147 = vector.shape_cast %146 : vector<4x64xf32> to vector<2x2x1x64xf32>
    %cst_217 = arith.constant dense<0xFF800000> : vector<2x1x64xf32>
    %148 = vector.multi_reduction <maximumf>, %147, %cst_217 [1] : vector<2x2x1x64xf32> to vector<2x1x64xf32>
    %149 = vector.shape_cast %148 : vector<2x1x64xf32> to vector<2x64xf32>
    %150 = vector.broadcast %110 : vector<1x64xf32> to vector<2x64xf32>
    %151 = arith.addf %149, %150 : vector<2x64xf32>
    %cst_218 = arith.constant 0.000000e+00 : f32
    %152 = vector.broadcast %cst_218 : f32 to vector<2x64xf32>
    %153 = arith.maximumf %151, %152 : vector<2x64xf32>
    %154 = vector.shape_cast %153 : vector<2x64xf32> to vector<2x1x1x64xf32>
    %c0_219 = arith.constant 0 : index
    %c0_220 = arith.constant 0 : index
    %c0_221 = arith.constant 0 : index
    %c0_222 = arith.constant 0 : index
    %155 = vector.load %arg5[%c0_219, %c0_220, %c0_221, %c0_222] : memref<2x1x1x64xf32, #tpu.memory_space<vmem>>, vector<2x1x1x64xf32>
    tpu.vector_store %arg5[%c0_219, %c0_220, %c0_221, %c0_222], %154 {strides = array<i32>} : memref<2x1x1x64xf32, #tpu.memory_space<vmem>>, vector<2x1x1x64xf32>,
    return
  }
  func.func @transform_0(%arg0: i32) -> (i32, i32, i32) {
    %c0_i32 = arith.constant 0 : i32
    %c0_i32_0 = arith.constant 0 : i32
    %c0_i32_1 = arith.constant 0 : i32
    return %arg0, %c0_i32, %c0_i32_0 : i32, i32, i32
  }
  func.func @transform_1(%arg0: i32) -> (i32, i32) {
    %c0_i32 = arith.constant 0 : i32
    %c0_i32_0 = arith.constant 0 : i32
    %c0_i32_1 = arith.constant 0 : i32
    return %c0_i32, %c0_i32_0 : i32, i32
  }
  func.func @transform_2(%arg0: i32) -> (i32, i32, i32) {
    %c0_i32 = arith.constant 0 : i32
    %c0_i32_0 = arith.constant 0 : i32
    %c0_i32_1 = arith.constant 0 : i32
    %c0_i32_2 = arith.constant 0 : i32
    return %c0_i32, %c0_i32_0, %c0_i32_1 : i32, i32, i32
  }
  func.func @transform_3(%arg0: i32) -> (i32, i32) {
    %c0_i32 = arith.constant 0 : i32
    %c0_i32_0 = arith.constant 0 : i32
    %c0_i32_1 = arith.constant 0 : i32
    return %c0_i32, %c0_i32_0 : i32, i32
  }
  func.func @transform_4(%arg0: i32) -> (i32, i32, i32, i32) {
    %c0_i32 = arith.constant 0 : i32
    %c0_i32_0 = arith.constant 0 : i32
    %c0_i32_1 = arith.constant 0 : i32
    %c0_i32_2 = arith.constant 0 : i32
    return %arg0, %c0_i32, %c0_i32_0, %c0_i32_1 : i32, i32, i32, i32
  }
}

</mosaic_0001>

<bundles_post_ra>
// kernel: protonet_forward.1
= control target key start
LH: loop header
LB: loop body
LE: loop exit
PB: predicated region body
PF: predicated region fallthrough
CT: control target
= control target key end

     0   :  { %s19347_s0 = inlined_call_operand.vmem [shape: bf16[2,256,128], index: 0, kind: input, shape index: {}]   ;;  %s19348_s1 = inlined_call_operand.vmem [shape: bf16[128,64], index: 1, kind: input, shape index: {}]   ;;  %s19349_s2 = inlined_call_operand.vmem [shape: bf16[3,640,64], index: 2, kind: input, shape index: {}]   ;;  %s19350_s3 = inlined_call_operand.vmem [shape: f32[4,64], index: 3, kind: input, shape index: {}]   ;;  %s19351_s4 = inlined_call_operand.hbm [shape: f32[2,1,1,64], index: 4, kind: output, shape index: {}]  }
   0x1   :  { %v15207_v0 = vld [vmem:[%s19348_s1] sm:$0xff]   ;;  %v15208_v1 = vld [vmem:[%s19348_s1 + $0x8] sm:$0xff]   ;;  %v15209_v2 = vld [vmem:[%s19348_s1 + $0x10] sm:$0xff]  }
   0x2   :  { %15046 = vmatprep.subr.bf16.mxu0 %v15207_v0  ;;  %v15210_v3 = vld [vmem:[%s19348_s1 + $0x18] sm:$0xff]   ;;  %v15215_v4 = vld [vmem:[%s19347_s0] sm:$0xff]   ;;  %v15212_v6 = vld [vmem:[%s19348_s1 + $0x28] sm:$0xff]  }
   0x3   :  { %15047 = vmatpush3.bf16.msra.mxu0 %v15207_v0  ;;  %15062 = vmatprep.mubr.bf16.mxu0 %v15215_v4  ;;  %v15211_v5 = vld [vmem:[%s19348_s1 + $0x20] sm:$0xff]   ;;  %v15213_v7 = vld [vmem:[%s19348_s1 + $0x30] sm:$0xff]   ;;  %v15214_v8 = vld [vmem:[%s19348_s1 + $0x38] sm:$0xff]  }
   0x4   :  { %15048 = vmatprep.subr.bf16.mxu0 %v15208_v1  ;;  %v15216_v9 = vld [vmem:[%s19347_s0 + $0x8] sm:$0xff]   ;;  %v15217_v10 = vld [vmem:[%s19347_s0 + $0x10] sm:$0xff]   ;;  %v15218_v11 = vld [vmem:[%s19347_s0 + $0x18] sm:$0xff]  }
   0x5   :  { %v15219_v12 = vld [vmem:[%s19347_s0 + $0x20] sm:$0xff]   ;;  %v15220_v13 = vld [vmem:[%s19347_s0 + $0x28] sm:$0xff]   ;;  %v15221_v14 = vld [vmem:[%s19347_s0 + $0x30] sm:$0xff]  }
   0x6   :  { %v15222_v15 = vld [vmem:[%s19347_s0 + $0x38] sm:$0xff]   ;;  %v15223_v16 = vld [vmem:[%s19347_s0 + $0x40] sm:$0xff]   ;;  %v15224_v17 = vld [vmem:[%s19347_s0 + $0x48] sm:$0xff]  }
   0x7   :  { %15049 = vmatpush3.bf16.msra.mxu0 %v15208_v1  ;;  %v15225_v18 = vld [vmem:[%s19347_s0 + $0x50] sm:$0xff]   ;;  %v15226_v19 = vld [vmem:[%s19347_s0 + $0x58] sm:$0xff]   ;;  %v15227_v20 = vld [vmem:[%s19347_s0 + $0x60] sm:$0xff]  }
   0x8   :  { %15050 = vmatprep.subr.bf16.mxu0 %v15209_v2  ;;  %v15228_v21 = vld [vmem:[%s19347_s0 + $0x68] sm:$0xff]   ;;  %v15229_v22 = vld [vmem:[%s19347_s0 + $0x70] sm:$0xff]   ;;  %v15230_v23 = vld [vmem:[%s19347_s0 + $0x78] sm:$0xff]  }
   0x9   :  { %v15231_v24 = vld [vmem:[%s19347_s0 + $0x80] sm:$0xff]   ;;  %v15232_v25 = vld [vmem:[%s19347_s0 + $0x88] sm:$0xff]   ;;  %v15233_v26 = vld [vmem:[%s19347_s0 + $0x90] sm:$0xff]  }
   0xa   :  { %v15234_v27 = vld [vmem:[%s19347_s0 + $0x98] sm:$0xff]   ;;  %v15235_v28 = vld [vmem:[%s19347_s0 + $0xa0] sm:$0xff]   ;;  %v15236_v29 = vld [vmem:[%s19347_s0 + $0xa8] sm:$0xff]  }
   0xb   :  { %15051 = vmatpush3.bf16.msra.mxu0 %v15209_v2  ;;  %v15237_v30 = vld [vmem:[%s19347_s0 + $0xb0] sm:$0xff]   ;;  %v15238_v31 = vld [vmem:[%s19347_s0 + $0xb8] sm:$0xff]   ;;  %v15239_v32 = vld [vmem:[%s19347_s0 + $0xc0] sm:$0xff]  }
   0xc   :  { %15052 = vmatprep.subr.bf16.mxu0 %v15210_v3 }
   0xf   :  { %15053 = vmatpush3.bf16.msra.mxu0 %v15210_v3 }
  0x10   :  { %15054 = vmatprep.subr.bf16.mxu0 %v15211_v5 }
  0x13   :  { %15055 = vmatpush3.bf16.msra.mxu0 %v15211_v5 }
  0x14   :  { %15056 = vmatprep.subr.bf16.mxu0 %v15212_v6 }
  0x17   :  { %15057 = vmatpush3.bf16.msra.mxu0 %v15212_v6 }
  0x18   :  { %15058 = vmatprep.subr.bf16.mxu0 %v15213_v7 }
  0x1b   :  { %15059 = vmatpush3.bf16.msra.mxu0 %v15213_v7 }
  0x1c   :  { %15060 = vmatprep.subr.bf16.mxu0 %v15214_v8 }
  0x1f   :  { %15061 = vmatpush3.bf16.msra.mxu0 %v15214_v8 }
  0x22   :  { %15063 = vmatmul.mubr.bf16.vlgmr.msra.gmra.mrb[0].mxu0 %v15216_v9 }
  0x23   :  { %15066 = vmatprep.mubr.bf16.mxu0 %v15217_v10 }
  0x2a   :  { %15067 = vmatmul.mubr.bf16.gmra.mrb[4].mxu0 %v15218_v11 }
  0x2b   :  { %15070 = vmatprep.mubr.bf16.mxu0 %v15219_v12 }
  0x32   :  { %15071 = vmatmul.mubr.bf16.gmra.mrb[8].mxu0 %v15220_v13 }
  0x33   :  { %15074 = vmatprep.mubr.bf16.mxu0 %v15221_v14 }
  0x3a   :  { %15075 = vmatmul.mubr.bf16.gmra.mrb[12].mxu0 %v15222_v15 }
  0x3b   :  { %15078 = vmatprep.mubr.bf16.mxu0 %v15223_v16 }
  0x42   :  { %15079 = vmatmul.mubr.bf16.gmra.mrb[16].mxu0 %v15224_v17 }
  0x43   :  { %15082 = vmatprep.mubr.bf16.mxu0 %v15225_v18 }
  0x4a   :  { %15083 = vmatmul.mubr.bf16.gmra.mrb[20].mxu0 %v15226_v19 }
  0x4b   :  { %15086 = vmatprep.mubr.bf16.mxu0 %v15227_v20 }
  0x52   :  { %15087 = vmatmul.mubr.bf16.gmra.mrb[24].mxu0 %v15228_v21 }
  0x53   :  { %15090 = vmatprep.mubr.bf16.mxu0 %v15229_v22 }
  0x5a   :  { %15091 = vmatmul.mubr.bf16.gmra.mrb[28].mxu0 %v15230_v23 }
  0x5b   :  { %15094 = vmatprep.mubr.bf16.mxu0 %v15231_v24 }
  0x62   :  { %15095 = vmatmul.mubr.bf16.gmra.mrb[32].mxu0 %v15232_v25 }
  0x63   :  { %15098 = vmatprep.mubr.bf16.mxu0 %v15233_v26 }
  0x6a   :  { %15099 = vmatmul.mubr.bf16.gmra.mrb[36].mxu0 %v15234_v27 }
  0x6b   :  { %15102 = vmatprep.mubr.bf16.mxu0 %v15235_v28 }
  0x72   :  { %15103 = vmatmul.mubr.bf16.gmra.mrb[40].mxu0 %v15236_v29 }
  0x73   :  { %15106 = vmatprep.mubr.bf16.mxu0 %v15237_v30 }
  0x74   :  { %9 = vsyncpa [#allocation7], 0  ;;  %v15240_v33 = vld [vmem:[%s19347_s0 + $0xc8] sm:$0xff]   ;;  %v15241_v34 = vld [vmem:[%s19347_s0 + $0xd0] sm:$0xff]   ;;  %vm19359_vm0 = vcmask 519168   ;;  %v15440_v40 = vmov 0   ;;  %v705_v43 = vlaneseq }
  0x75   :  { %v15242_v35 = vld [vmem:[%s19347_s0 + $0xd8] sm:$0xff]   ;;  %v15243_v36 = vld [vmem:[%s19347_s0 + $0xe0] sm:$0xff]   ;;  %v15244_v37 = vld [vmem:[%s19347_s0 + $0xe8] sm:$0xff]   ;;  %4582 = vst.msk [vmem:[#allocation2 + $0x1c] sm:$0xf] %vm19359_vm0, %v15440_v40  ;;  %vm19361_vm1 = vcmask 517120  }
  0x76   :  { %v15245_v38 = vld [vmem:[%s19347_s0 + $0xf0] sm:$0xff]   ;;  %v15246_v39 = vld [vmem:[%s19347_s0 + $0xf8] sm:$0xff]   ;;  %4572 = vst.msk [vmem:[#allocation2 + $0x8] sm:$0xf] %vm19359_vm0, %v15440_v40  ;;  %4589 = vst.msk [vmem:[#allocation2 + $0x30] sm:$0xf] %vm19359_vm0, %v15440_v40 }
  0x77   :  { %4596 = vst.msk [vmem:[#allocation2 + $0x44] sm:$0xf] %vm19359_vm0, %v15440_v40  ;;  %4603 = vst.msk [vmem:[#allocation2 + $0x58] sm:$0xf] %vm19359_vm0, %v15440_v40  ;;  %v15441_v41 = vmov 1983009808  }
  0x78   :  { %4610 = vst.msk [vmem:[#allocation2 + $0x6c] sm:$0xf] %vm19359_vm0, %v15440_v40  ;;  %4617 = vst.msk [vmem:[#allocation2 + $0x80] sm:$0xf] %vm19359_vm0, %v15440_v40  ;;  %v703_v42 = vunpack.c.l.s4 %v15441_v41  ;;  %v15634_v45 = vshrl.u32 %v705_v43, 7  ;;  %vm19360_vm2 = vcmask 523264  }
  0x79   :  { %4624 = vst.msk [vmem:[#allocation2 + $0x94] sm:$0xf] %vm19359_vm0, %v15440_v40  ;;  %4631 = vst.msk [vmem:[#allocation2 + $0xa8] sm:$0xf] %vm19359_vm0, %v15440_v40  ;;  %vm5353_vm3 = vcmask 1041409   ;;  %vm19364_vm4 = vcmask 1042434  }
  0x7a   :  { %15107 = vmatmul.mubr.bf16.gmra.mrb[44].mxu0 %v15238_v31  ;;  %4638 = vst.msk [vmem:[#allocation2 + $0xbc] sm:$0xf] %vm19359_vm0, %v15440_v40  ;;  %4645 = vst.msk [vmem:[#allocation2 + $0xd0] sm:$0xf] %vm19359_vm0, %v15440_v40  ;;  %v704_v44 = vunpack.c.0.s8 %v703_v42  ;;  %vm19363_vm5 = vcmask 1043459   ;;  %vm5362_vm6 = vcmask 1044484  }
  0x7b   :  { %15110 = vmatprep.mubr.bf16.mxu0 %v15239_v32  ;;  %4652 = vst.msk [vmem:[#allocation2 + $0xe4] sm:$0xf] %vm19359_vm0, %v15440_v40  ;;  %4659 = vst.msk [vmem:[#allocation2 + $0xf8] sm:$0xf] %vm19359_vm0, %v15440_v40  ;;  %vm5365_vm7 = vcmask 1045509   ;;  %vm5368_vm8 = vcmask 1046534  }
  0x7c   :  { %4666 = vst.msk [vmem:[#allocation2 + $0x10c] sm:$0xf] %vm19359_vm0, %v15440_v40  ;;  %4673 = vst.msk [vmem:[#allocation2 + $0x120] sm:$0xf] %vm19359_vm0, %v15440_v40  ;;  %v15637_v46 = vsub.s32 %v704_v44, %v15634_v45  ;;  %vm5371_vm9 = vcmask 1047559   ;;  %vm4565_vm10 = vcmask 519171  }
  0x7d   :  { %4680 = vst.msk [vmem:[#allocation2 + $0x134] sm:$0xf] %vm19359_vm0, %v15440_v40  ;;  %4687 = vst.msk [vmem:[#allocation2 + $0x148] sm:$0xf] %vm19359_vm0, %v15440_v40  ;;  %vm4566_vm11 = vsmask.f32 7950 }
  0x7e   :  { %4694 = vst.msk [vmem:[#allocation2 + $0x15c] sm:$0xf] %vm19359_vm0, %v15440_v40  ;;  %4701 = vst.msk [vmem:[#allocation2 + $0x170] sm:$0xf] %vm19359_vm0, %v15440_v40  ;;  %vm19352_vm13 = vsmask.f32 4368 }
  0x7f   :  { %4708 = vst.msk [vmem:[#allocation2 + $0x184] sm:$0xf] %vm19359_vm0, %v15440_v40  ;;  %19367 = vst [vmem:[#allocation9_spill] sm:$0xff] %v15634_v45  ;;  %vm19354_vm14 = vsmask.f32 256  ;;  %s15442_s5 = smov 64  }
  0x80   :  { %vm16621_vm12 = vmand %vm4565_vm10, %vm4566_vm11  ;;  %vm19355_vm10 = vcmask 1048064   ;;  %vm19353_vm11 = vcmask 516096   ;;  %s15446_s30 = smov [#allocation6]  }
  0x81   :  { %vm16660_vm15 = vmor %vm19354_vm14, %vm19352_vm13  ;;  %20 = vst.msk [vmem:[#allocation5 + $0x20] sm:$0xff] %vm19355_vm10, %v15440_v40  ;;  %s13796_s6 = sshll.u32 %s15446_s30, 4  ;;  %s13797_s6 = int_to_ptr.vmem [resolvable:$true] %s13796_s6 }
  0x82   :  { %15111 = vmatmul.mubr.bf16.gmra.mrb[48].mxu0 %v15240_v33  ;;  %vm16885_vm13 = vmand %vm19353_vm11, %vm19354_vm14  ;;  %21 = vst.msk [vmem:[#allocation5 + $0x48] sm:$0xff] %vm19355_vm10, %v15440_v40  ;;  %vm6034_vm11 = vsmask.f32 3328  ;;  %vm6035_vm14 = vsmask.f32 7440  ;;  %s15416_s7 = scalar_lea.vmem %s13797_s6, 32  ;;  %p15421_p1 = scmp.lt.s32.totalorder %s13797_s6, %s13797_s6 }
  0x83   :  { %15114 = vmatprep.mubr.bf16.mxu0 %v15241_v34  ;;  %22 = vst.msk [vmem:[#allocation5 + $0x70] sm:$0xff] %vm19355_vm10, %v15440_v40  ;;  %23 = vst.msk [vmem:[#allocation5 + $0x98] sm:$0xff] %vm19355_vm10, %v15440_v40  ;;  %p15417_p0 = scmp.ne.s32.totalorder %s13797_s6, %s15416_s7  ;;  %p15422_p2 = scmp.lt.s32.totalorder %s15416_s7, %s15416_s7 }
  0x84   :  { %24 = vst.msk [vmem:[#allocation5 + $0xc0] sm:$0xff] %vm19355_vm10, %v15440_v40  ;;  %25 = vst.msk [vmem:[#allocation5 + $0xe8] sm:$0xff] %vm19355_vm10, %v15440_v40 }
  0x85   :  { %26 = vst.msk [vmem:[#allocation5 + $0x110] sm:$0xff] %vm19355_vm10, %v15440_v40  ;;  %27 = vst.msk [vmem:[#allocation5 + $0x138] sm:$0xff] %vm19355_vm10, %v15440_v40  ;;  %p15423_p3 = por %p15422_p2, %p15421_p1 }
  0x86   :  { %vm16933_vm10 = vmor %vm6034_vm11, %vm6035_vm14 }
  0x87   :  { %p15424_p4 = pnand %p15423_p3, %p15417_p0 }
  0x8a   :  { %15115 = vmatmul.mubr.bf16.gmra.mrb[52].mxu0 %v15242_v35 }
  0x8b   :  { %15118 = vmatprep.mubr.bf16.mxu0 %v15243_v36 }
  0x92   :  { %15119 = vmatmul.mubr.bf16.gmra.mrb[56].mxu0 %v15244_v37 }
  0x93   :  { %15122 = vmatprep.mubr.bf16.mxu0 %v15245_v38 }
  0x9a   :  { %15123 = vmatmul.mubr.bf16.gmra.mrb[60].mxu0 %v15246_v39 }
  0xf5   :  { %v15064_v47 = vpop.f32.mrb[0].mxu0 }
  0xf6   :  { %v735_v48 = vcombine.high %v15064_v47, %v15064_v47  ;;  %v742_v49 = vrot.slane %v15064_v47, %v15637_v46  ;;  %v382_v50 = vpop.f32.mrb[1].mxu0 }
  0xf7   :  { %v701_v51 = vcombine.high %v382_v50, %v382_v50  ;;  %v708_v52 = vrot.slane %v382_v50, %v15637_v46  ;;  %v15641_v53 = vpop.f32.mrb[2].mxu0 }
  0xf8   :  { %v749_v54 = vrot.slane %v735_v48, %v15637_v46  ;;  %v750_v55 = vcombine.high %v742_v49, %v742_v49  ;;  %v2102_v56 = vsel %vm19361_vm1, %v742_v49, -inf  ;;  %v752_v57 = vcombine.high %v15641_v53, %v15641_v53  ;;  %v15647_v58 = vpop.f32.mrb[3].mxu0 }
  0xf9   :  { %v2103_v59 = vrot.slane %v2102_v56, 4  ;;  %v715_v60 = vrot.slane %v701_v51, %v15637_v46  ;;  %v716_v61 = vcombine.high %v708_v52, %v708_v52  ;;  %v2046_v62 = vsel %vm19361_vm1, %v708_v52, -inf }
  0xfa   :  { %v751_v63 = vcombine.high %v749_v54, %v749_v54  ;;  %v2109_v0 = vsel %vm19361_vm1, %v750_v55, -inf  ;;  %v2116_v1 = vsel %vm19361_vm1, %v749_v54, -inf  ;;  %v2047_v2 = vrot.slane %v2046_v62, 4 }
  0xfb   :  { %v2104_v3 = vmax.f32 %v2102_v56, %v2103_v59  ;;  %v2110_v4 = vrot.slane %v2109_v0, 4  ;;  %v2117_v5 = vrot.slane %v2116_v1, 4  ;;  %v717_v6 = vcombine.high %v715_v60, %v715_v60 }
  0xfc   :  { %v2123_v7 = vsel %vm19361_vm1, %v751_v63, -inf  ;;  %v2048_v8 = vmax.f32 %v2046_v62, %v2047_v2  ;;  %v2053_v9 = vsel %vm19361_vm1, %v716_v61, -inf  ;;  %v2060_v10 = vsel %vm19361_vm1, %v715_v60, -inf  ;;  %v15672_v62 = vld [vmem:[%s19350_s3] ss:$0 sm:$0xff] }
  0xfd   :  { %v2105_v11 = vrot.slane %v2104_v3, 2  ;;  %v2111_v12 = vmax.f32 %v2109_v0, %v2110_v4  ;;  %v2118_v13 = vmax.f32 %v2116_v1, %v2117_v5  ;;  %v2124_v14 = vrot.slane %v2123_v7, 4  ;;  %v15656_v15 = vpop.f32.mrb[4].mxu0 }
  0xfe   :  { %v2049_v16 = vrot.slane %v2048_v8, 2  ;;  %v2054_v17 = vrot.slane %v2053_v9, 4  ;;  %v2061_v18 = vrot.slane %v2060_v10, 4  ;;  %v2067_v19 = vsel %vm19361_vm1, %v717_v6, -inf  ;;  %v15659_v20 = vpop.f32.mrb[5].mxu0 }
  0xff   :  { %v2106_v21 = vmax.f32 %v2104_v3, %v2105_v11  ;;  %v2112_v22 = vrot.slane %v2111_v12, 2  ;;  %v2119_v23 = vrot.slane %v2118_v13, 2  ;;  %v2125_v24 = vmax.f32 %v2123_v7, %v2124_v14  ;;  %v15661_v25 = vpop.f32.mrb[6].mxu0 }
 0x100   :  { %v2050_v26 = vmax.f32 %v2048_v8, %v2049_v16  ;;  %v2055_v27 = vmax.f32 %v2053_v9, %v2054_v17  ;;  %v2062_v28 = vmax.f32 %v2060_v10, %v2061_v18  ;;  %v2068_v29 = vrot.slane %v2067_v19, 4  ;;  %v15663_v30 = vpop.f32.mrb[7].mxu0 }
 0x101   :  { %v2107_v31 = vrot.slane %v2106_v21, 1  ;;  %v2113_v32 = vmax.f32 %v2111_v12, %v2112_v22  ;;  %v2120_v33 = vmax.f32 %v2118_v13, %v2119_v23  ;;  %v2126_v34 = vrot.slane %v2125_v24, 2 }
 0x102   :  { %v2051_v35 = vrot.slane %v2050_v26, 1  ;;  %v2056_v36 = vrot.slane %v2055_v27, 2  ;;  %v2063_v37 = vrot.slane %v2062_v28, 2  ;;  %v2069_v38 = vmax.f32 %v2067_v19, %v2068_v29 }
 0x103   :  { %v2108_v39 = vmax.f32 %v2106_v21, %v2107_v31  ;;  %v2114_v41 = vrot.slane %v2113_v32, 1  ;;  %v2121_v42 = vrot.slane %v2120_v33, 1  ;;  %v2127_v43 = vmax.f32 %v2125_v24, %v2126_v34 }
 0x104   :  { %v2052_v44 = vmax.f32 %v2050_v26, %v2051_v35  ;;  %v2057_v47 = vmax.f32 %v2055_v27, %v2056_v36  ;;  %v2064_v48 = vmax.f32 %v2062_v28, %v2063_v37  ;;  %v2070_v49 = vrot.slane %v2069_v38, 2 }
 0x105   :  { %v2115_v50 = vmax.f32 %v2113_v32, %v2114_v41  ;;  %v2122_v51 = vmax.f32 %v2120_v33, %v2121_v42  ;;  %v2128_v52 = vrot.slane %v2127_v43, 1  ;;  %v3840_v54 = vsel %vm19360_vm2, %v2108_v39, -inf  ;;  %v15666_v55 = vpop.f32.mrb[8].mxu0 }
 0x106   :  { %v2058_v56 = vrot.slane %v2057_v47, 1  ;;  %v2065_v59 = vrot.slane %v2064_v48, 1  ;;  %v2071_v60 = vmax.f32 %v2069_v38, %v2070_v49  ;;  %v3839_v61 = vsel %vm19360_vm2, %v2052_v44, -inf  ;;  %v15674_v63 = vpop.f32.mrb[9].mxu0 }
 0x107   :  { %v2129_v0 = vmax.f32 %v2127_v43, %v2128_v52  ;;  %v3843_v1 = vsel %vm19360_vm2, %v2115_v50, -inf  ;;  %v3846_v2 = vsel %vm19360_vm2, %v2122_v51, -inf  ;;  %v3841_v3 = vmax.f32 %v3839_v61, %v3840_v54  ;;  %v15678_v4 = vpop.f32.mrb[10].mxu0 }
 0x108   :  { %v2059_v5 = vmax.f32 %v2057_v47, %v2058_v56  ;;  %v2066_v6 = vmax.f32 %v2064_v48, %v2065_v59  ;;  %v2072_v7 = vrot.slane %v2071_v60, 1  ;;  %v759_v8 = vrot.slane %v15641_v53, %v15637_v46  ;;  %v15682_v9 = vpop.f32.mrb[11].mxu0 }
 0x109   :  { %v3849_v10 = vsel %vm19360_vm2, %v2129_v0, -inf  ;;  %v4228_v11 = vadd.f32 %v15672_v62, %v3841_v3  ;;  %v766_v12 = vrot.slane %v752_v57, %v15637_v46  ;;  %v718_v13 = vcombine.high %v15647_v58, %v15647_v58 }
 0x10a   :  { %v2073_v14 = vmax.f32 %v2071_v60, %v2072_v7  ;;  %v3842_v16 = vsel %vm19360_vm2, %v2059_v5, -inf  ;;  %v3845_v17 = vsel %vm19360_vm2, %v2066_v6, -inf  ;;  %v767_v18 = vcombine.high %v759_v8, %v759_v8 }
 0x10b   :  { %v3844_v19 = vmax.f32 %v3842_v16, %v3843_v1  ;;  %v3847_v21 = vmax.f32 %v3845_v17, %v3846_v2  ;;  %v4356_v22 = vmax.f32 %v4228_v11, 0.0  ;;  %v768_v23 = vcombine.high %v766_v12, %v766_v12 }
 0x10c   :  { %v3848_v24 = vsel %vm19360_vm2, %v2073_v14, -inf  ;;  %v2130_v26 = vsel %vm19361_vm1, %v759_v8, -inf  ;;  %v2137_v53 = vsel %vm19361_vm1, %v767_v18, -inf  ;;  %v2144_v57 = vsel %vm19361_vm1, %v766_v12, -inf }
 0x10d   :  { %v3850_v27 = vmax.f32 %v3848_v24, %v3849_v10  ;;  %v4229_v28 = vadd.f32 %v15672_v62, %v3844_v19  ;;  %v4230_v29 = vadd.f32 %v15672_v62, %v3847_v21  ;;  %v14575_v31 = vpack.c.bf16 %v4356_v22, %v4356_v22  ;;  %v15700_v32 = vpop.f32.mrb[12].mxu0 }
 0x10e   :  { %v2131_v33 = vrot.slane %v2130_v26, 4  ;;  %v2138_v34 = vrot.slane %v2137_v53, 4  ;;  %v2145_v35 = vrot.slane %v2144_v57, 4  ;;  %v2151_v36 = vsel %vm19361_vm1, %v768_v23, -inf  ;;  %v15703_v37 = vpop.f32.mrb[13].mxu0 }
 0x10f   :  { %v4231_v38 = vadd.f32 %v15672_v62, %v3850_v27  ;;  %v4357_v39 = vmax.f32 %v4229_v28, 0.0  ;;  %v4358_v41 = vmax.f32 %v4230_v29, 0.0  ;;  %v5224_v42 = vunpack.c.l.b16 %v14575_v31  ;;  %v15709_v18 = vpop.f32.mrb[14].mxu0 }
 0x110   :  { %v2132_v43 = vmax.f32 %v2130_v26, %v2131_v33  ;;  %v2139_v44 = vmax.f32 %v2137_v53, %v2138_v34  ;;  %v2146_v47 = vmax.f32 %v2144_v57, %v2145_v35  ;;  %v2152_v48 = vrot.slane %v2151_v36, 4 }
 0x111   :  { %v4359_v49 = vmax.f32 %v4231_v38, 0.0  ;;  %v14576_v50 = vpack.c.bf16 %v4357_v39, %v4357_v39  ;;  %v14577_v51 = vpack.c.bf16 %v4358_v41, %v4358_v41  ;;  %v725_v52 = vrot.slane %v15647_v58, %v15637_v46 }
 0x112   :  { %v2133_v54 = vrot.slane %v2132_v43, 2  ;;  %v2140_v56 = vrot.slane %v2139_v44, 2  ;;  %v2147_v59 = vrot.slane %v2146_v47, 2  ;;  %v2153_v60 = vmax.f32 %v2151_v36, %v2152_v48 }
 0x113   :  { %v14578_v61 = vpack.c.bf16 %v4359_v49, %v4359_v49  ;;  %v5225_v0 = vunpack.c.l.b16 %v14576_v50  ;;  %v5226_v1 = vunpack.c.l.b16 %v14577_v51  ;;  %v732_v2 = vrot.slane %v718_v13, %v15637_v46 }
 0x114   :  { %v2134_v3 = vmax.f32 %v2132_v43, %v2133_v54  ;;  %v2141_v5 = vmax.f32 %v2139_v44, %v2140_v56  ;;  %v2148_v6 = vmax.f32 %v2146_v47, %v2147_v59  ;;  %v2154_v7 = vrot.slane %v2153_v60, 2 }
 0x115   :  { %v5227_v8 = vunpack.c.l.b16 %v14578_v61  ;;  %v5352_v10 = vrot.slane %v5225_v0, 7  ;;  %v5355_v11 = vrot.slane %v5226_v1, 6  ;;  %v733_v12 = vcombine.high %v725_v52, %v725_v52 }
 0x116   :  { %v2135_v14 = vrot.slane %v2134_v3, 1  ;;  %v2142_v58 = vrot.slane %v2141_v5, 1  ;;  %v2149_v16 = vrot.slane %v2148_v6, 1  ;;  %v2155_v17 = vmax.f32 %v2153_v60, %v2154_v7  ;;  %v15735_v60 = vpop.f32.mrb[15].mxu0 }
 0x117   :  { %v5354_v19 = vsel %vm5353_vm3, %v5352_v10, %v5224_v42  ;;  %v5358_v21 = vrot.slane %v5227_v8, 5  ;;  %v734_v22 = vcombine.high %v732_v2, %v732_v2  ;;  %v2074_v13 = vsel %vm19361_vm1, %v725_v52, -inf }
 0x118   :  { %v5357_v23 = vsel %vm19364_vm4, %v5355_v11, %v5354_v19  ;;  %v2136_v24 = vmax.f32 %v2134_v3, %v2135_v14  ;;  %v2143_v26 = vmax.f32 %v2141_v5, %v2142_v58  ;;  %v2150_v53 = vmax.f32 %v2148_v6, %v2149_v16 }
 0x119   :  { %v2156_v57 = vrot.slane %v2155_v17, 1  ;;  %v2075_v27 = vrot.slane %v2074_v13, 4  ;;  %v2081_v28 = vsel %vm19361_vm1, %v733_v12, -inf  ;;  %v2088_v29 = vsel %vm19361_vm1, %v732_v2, -inf }
 0x11a   :  { %v3852_v31 = vsel %vm19360_vm2, %v2136_v24, -inf  ;;  %v15718_v33 = vsel %vm19360_vm2, %v2143_v26, -inf  ;;  %v15721_v34 = vsel %vm19360_vm2, %v2150_v53, -inf  ;;  %v2082_v35 = vrot.slane %v2081_v28, 4 }
 0x11b   :  { %v2157_v36 = vmax.f32 %v2155_v17, %v2156_v57  ;;  %v2076_v38 = vmax.f32 %v2074_v13, %v2075_v27  ;;  %v2089_v39 = vrot.slane %v2088_v29, 4  ;;  %v2095_v41 = vsel %vm19361_vm1, %v734_v22, -inf }
 0x11c   :  { %v2083_v42 = vmax.f32 %v2081_v28, %v2082_v35  ;;  %v2096_v43 = vrot.slane %v2095_v41, 4  ;;  %v15725_v44 = vsel %vm19363_vm5, %v5358_v21, %v5357_v23  ;;  %v803_v47 = vcombine.high %v15656_v15, %v15656_v15 }
 0x11d   :  { %v3861_v48 = vsel %vm19360_vm2, %v2157_v36, -inf  ;;  %v2077_v49 = vrot.slane %v2076_v38, 2  ;;  %v2090_v50 = vmax.f32 %v2088_v29, %v2089_v39  ;;  %v810_v51 = vrot.slane %v15656_v15, %v15637_v46 }
 0x11e   :  { %v2084_v52 = vrot.slane %v2083_v42, 2  ;;  %v2097_v54 = vmax.f32 %v2095_v41, %v2096_v43  ;;  %v817_v56 = vrot.slane %v803_v47, %v15637_v46  ;;  %v769_v59 = vcombine.high %v15659_v20, %v15659_v20 }
 0x11f   :  { %v2078_v61 = vmax.f32 %v2076_v38, %v2077_v49  ;;  %v2091_v0 = vrot.slane %v2090_v50, 2  ;;  %v818_v1 = vcombine.high %v810_v51, %v810_v51  ;;  %v2214_v2 = vsel %vm19361_vm1, %v810_v51, -inf }
 0x120   :  { %v2085_v3 = vmax.f32 %v2083_v42, %v2084_v52  ;;  %v2098_v5 = vrot.slane %v2097_v54, 2  ;;  %v819_v6 = vcombine.high %v817_v56, %v817_v56  ;;  %v2215_v7 = vrot.slane %v2214_v2, 4 }
 0x121   :  { %v2079_v8 = vrot.slane %v2078_v61, 1  ;;  %v2092_v15 = vmax.f32 %v2090_v50, %v2091_v0  ;;  %v2221_v10 = vsel %vm19361_vm1, %v818_v1, -inf  ;;  %v2228_v11 = vsel %vm19361_vm1, %v817_v56, -inf }
 0x122   :  { %v2086_v12 = vrot.slane %v2085_v3, 1  ;;  %v2099_v14 = vmax.f32 %v2097_v54, %v2098_v5  ;;  %v2216_v58 = vmax.f32 %v2214_v2, %v2215_v7  ;;  %v2222_v16 = vrot.slane %v2221_v10, 4 }
 0x123   :  { %v2080_v17 = vmax.f32 %v2078_v61, %v2079_v8  ;;  %v2093_v19 = vrot.slane %v2092_v15, 1  ;;  %v2229_v21 = vrot.slane %v2228_v11, 4  ;;  %v2235_v22 = vsel %vm19361_vm1, %v819_v6, -inf }
 0x124   :  { %v2087_v13 = vmax.f32 %v2085_v3, %v2086_v12  ;;  %v2100_v23 = vrot.slane %v2099_v14, 1  ;;  %v2217_v24 = vrot.slane %v2216_v58, 2  ;;  %v2223_v26 = vmax.f32 %v2221_v10, %v2222_v16 }
 0x125   :  { %v2094_v53 = vmax.f32 %v2092_v15, %v2093_v19  ;;  %v3851_v57 = vsel %vm19360_vm2, %v2080_v17, -inf  ;;  %v2230_v27 = vmax.f32 %v2228_v11, %v2229_v21  ;;  %v2236_v28 = vrot.slane %v2235_v22, 4 }
 0x126   :  { %v2101_v29 = vmax.f32 %v2099_v14, %v2100_v23  ;;  %v3853_v35 = vmax.f32 %v3851_v57, %v3852_v31  ;;  %v3854_v36 = vsel %vm19360_vm2, %v2087_v13, -inf  ;;  %v2218_v38 = vmax.f32 %v2216_v58, %v2217_v24 }
 0x127   :  { %v3856_v39 = vmax.f32 %v3854_v36, %v15718_v33  ;;  %v3857_v41 = vsel %vm19360_vm2, %v2094_v53, -inf  ;;  %v2224_v42 = vrot.slane %v2223_v26, 2  ;;  %v2231_v43 = vrot.slane %v2230_v27, 2 }
 0x128   :  { %v3859_v47 = vmax.f32 %v3857_v41, %v15721_v34  ;;  %v3860_v49 = vsel %vm19360_vm2, %v2101_v29, -inf  ;;  %v4232_v50 = vadd.f32 %v15672_v62, %v3853_v35  ;;  %v2219_v51 = vrot.slane %v2218_v38, 1 }
 0x129   :  { %v3862_v52 = vmax.f32 %v3860_v49, %v3861_v48  ;;  %v4233_v31 = vadd.f32 %v15672_v62, %v3856_v39  ;;  %v2225_v54 = vmax.f32 %v2223_v26, %v2224_v42  ;;  %v2232_v56 = vmax.f32 %v2230_v27, %v2231_v43  ;;  %v15771_v49 = vpop.f32.mrb[16].mxu0 }
 0x12a   :  { %v4234_v33 = vadd.f32 %v15672_v62, %v3859_v47  ;;  %v4360_v61 = vmax.f32 %v4232_v50, 0.0  ;;  %v2220_v0 = vmax.f32 %v2218_v38, %v2219_v51  ;;  %v2237_v1 = vmax.f32 %v2235_v22, %v2236_v28 }
 0x12b   :  { %v4235_v34 = vadd.f32 %v15672_v62, %v3862_v52  ;;  %v4361_v2 = vmax.f32 %v4233_v31, 0.0  ;;  %v2226_v3 = vrot.slane %v2225_v54, 1  ;;  %v2233_v5 = vrot.slane %v2232_v56, 1 }
 0x12c   :  { %v4362_v6 = vmax.f32 %v4234_v33, 0.0  ;;  %v14579_v7 = vpack.c.bf16 %v4360_v61, %v4360_v61  ;;  %v2238_v8 = vrot.slane %v2237_v1, 2  ;;  %v15752_v48 = vsel %vm19360_vm2, %v2220_v0, -inf }
 0x12d   :  { %v4363_v15 = vmax.f32 %v4235_v34, 0.0  ;;  %v14580_v10 = vpack.c.bf16 %v4361_v2, %v4361_v2  ;;  %v2227_v11 = vmax.f32 %v2225_v54, %v2226_v3  ;;  %v2234_v12 = vmax.f32 %v2232_v56, %v2233_v5 }
 0x12e   :  { %v14581_v14 = vpack.c.bf16 %v4362_v6, %v4362_v6  ;;  %v5228_v58 = vunpack.c.l.b16 %v14579_v7  ;;  %v2239_v16 = vmax.f32 %v2237_v1, %v2238_v8  ;;  %v776_v17 = vrot.slane %v15659_v20, %v15637_v46 }
 0x12f   :  { %v14582_v19 = vpack.c.bf16 %v4363_v15, %v4363_v15  ;;  %v5229_v21 = vunpack.c.l.b16 %v14580_v10  ;;  %v15757_v22 = vsel %vm19360_vm2, %v2227_v11, -inf  ;;  %v15760_v13 = vsel %vm19360_vm2, %v2234_v12, -inf }
 0x130   :  { %v5230_v23 = vunpack.c.l.b16 %v14581_v14  ;;  %v5361_v24 = vrot.slane %v5228_v58, 4  ;;  %v2240_v26 = vrot.slane %v2239_v16, 1  ;;  %v783_v53 = vrot.slane %v769_v59, %v15637_v46  ;;  %v15793_v14 = vpop.f32.mrb[17].mxu0 }
 0x131   :  { %v5231_v57 = vunpack.c.l.b16 %v14582_v19  ;;  %v5364_v27 = vrot.slane %v5229_v21, 3  ;;  %v784_v28 = vcombine.high %v776_v17, %v776_v17  ;;  %v2158_v29 = vsel %vm19361_vm1, %v776_v17, -inf }
 0x132   :  { %v5363_v35 = vsel %vm5362_vm6, %v5361_v24, %v15725_v44  ;;  %v5367_v36 = vrot.slane %v5230_v23, 2  ;;  %v2241_v38 = vmax.f32 %v2239_v16, %v2240_v26  ;;  %v785_v39 = vcombine.high %v783_v53, %v783_v53 }
 0x133   :  { %v5366_v41 = vsel %vm5365_vm7, %v5364_v27, %v5363_v35  ;;  %v5370_v42 = vrot.slane %v5231_v57, 1  ;;  %v2159_v43 = vrot.slane %v2158_v29, 4  ;;  %v2165_v47 = vsel %vm19361_vm1, %v784_v28, -inf }
 0x134   :  { %v5369_v20 = vsel %vm5368_vm8, %v5367_v36, %v5366_v41  ;;  %v15775_v59 = vsel %vm19360_vm2, %v2241_v38, -inf  ;;  %v2166_v50 = vrot.slane %v2165_v47, 4  ;;  %v2172_v51 = vsel %vm19361_vm1, %v783_v53, -inf }
 0x135   :  { %v5372_v44 = vsel %vm5371_vm9, %v5370_v42, %v5369_v20  ;;  %v2160_v52 = vmax.f32 %v2158_v29, %v2159_v43  ;;  %v2173_v31 = vrot.slane %v2172_v51, 4  ;;  %v2179_v54 = vsel %vm19361_vm1, %v785_v39, -inf }
 0x136   :  { %v5583_v56 = vpack.c.b16 %v5372_v44, %v5372_v44  ;;  %v2167_v33 = vmax.f32 %v2165_v47, %v2166_v50  ;;  %v2180_v61 = vrot.slane %v2179_v54, 4  ;;  %v820_v0 = vcombine.high %v15661_v25, %v15661_v25 }
 0x137   :  { %v2161_v1 = vrot.slane %v2160_v52, 2  ;;  %v2174_v34 = vmax.f32 %v2172_v51, %v2173_v31  ;;  %v827_v2 = vrot.slane %v15661_v25, %v15637_v46  ;;  %v786_v3 = vcombine.high %v15663_v30, %v15663_v30 }
 0x138   :  { %5616 = vst.msk [vmem:[#allocation2 + $0x1c] sm:$0xf] %vm19359_vm0, %v5583_v56  ;;  %v2168_v5 = vrot.slane %v2167_v33, 2  ;;  %v2181_v6 = vmax.f32 %v2179_v54, %v2180_v61  ;;  %v834_v7 = vrot.slane %v820_v0, %v15637_v46  ;;  %v15790_v8 = vrot.slane %v15663_v30, %v15637_v46 }
 0x139   :  { %v2162_v15 = vmax.f32 %v2160_v52, %v2161_v1  ;;  %v2175_v10 = vrot.slane %v2174_v34, 2  ;;  %v835_v11 = vcombine.high %v827_v2, %v827_v2  ;;  %v2242_v12 = vsel %vm19361_vm1, %v827_v2, -inf }
 0x13a   :  { %v2169_v25 = vmax.f32 %v2167_v33, %v2168_v5  ;;  %v2182_v58 = vrot.slane %v2181_v6, 2  ;;  %v836_v16 = vcombine.high %v834_v7, %v834_v7  ;;  %v2243_v17 = vrot.slane %v2242_v12, 4 }
 0x13b   :  { %v2163_v19 = vrot.slane %v2162_v15, 1  ;;  %v2176_v21 = vmax.f32 %v2174_v34, %v2175_v10  ;;  %v2249_v23 = vsel %vm19361_vm1, %v835_v11, -inf  ;;  %v2256_v24 = vsel %vm19361_vm1, %v834_v7, -inf }
 0x13c   :  { %v2170_v26 = vrot.slane %v2169_v25, 1  ;;  %v2183_v53 = vmax.f32 %v2181_v6, %v2182_v58  ;;  %v2244_v57 = vmax.f32 %v2242_v12, %v2243_v17  ;;  %v2250_v27 = vrot.slane %v2249_v23, 4 }
 0x13d   :  { %v2164_v28 = vmax.f32 %v2162_v15, %v2163_v19  ;;  %v2177_v29 = vrot.slane %v2176_v21, 1  ;;  %v2257_v35 = vrot.slane %v2256_v24, 4  ;;  %v2263_v36 = vsel %vm19361_vm1, %v836_v16, -inf }
 0x13e   :  { %v2171_v38 = vmax.f32 %v2169_v25, %v2170_v26  ;;  %v2184_v39 = vrot.slane %v2183_v53, 1  ;;  %v2245_v41 = vrot.slane %v2244_v57, 2  ;;  %v2251_v42 = vmax.f32 %v2249_v23, %v2250_v27 }
 0x13f   :  { %v2178_v43 = vmax.f32 %v2176_v21, %v2177_v29  ;;  %v3863_v47 = vsel %vm19360_vm2, %v2164_v28, -inf  ;;  %v2258_v20 = vmax.f32 %v2256_v24, %v2257_v35  ;;  %v2264_v50 = vrot.slane %v2263_v36, 4  ;;  %v15817_v29 = vpop.f32.mrb[18].mxu0 }
 0x140   :  { %v2185_v51 = vmax.f32 %v2183_v53, %v2184_v39  ;;  %v3865_v44 = vmax.f32 %v3863_v47, %v15752_v48  ;;  %v3866_v52 = vsel %vm19360_vm2, %v2171_v38, -inf  ;;  %v2246_v31 = vmax.f32 %v2244_v57, %v2245_v41 }
 0x141   :  { %v3868_v54 = vmax.f32 %v3866_v52, %v15757_v22  ;;  %v3869_v56 = vsel %vm19360_vm2, %v2178_v43, -inf  ;;  %v2252_v33 = vrot.slane %v2251_v42, 2  ;;  %v2259_v61 = vrot.slane %v2258_v20, 2 }
 0x142   :  { %v3871_v0 = vmax.f32 %v3869_v56, %v15760_v13  ;;  %v3872_v1 = vsel %vm19360_vm2, %v2185_v51, -inf  ;;  %v4236_v34 = vadd.f32 %v15672_v62, %v3865_v44  ;;  %v2247_v2 = vrot.slane %v2246_v31, 1 }
 0x143   :  { %v3874_v5 = vmax.f32 %v3872_v1, %v15775_v59  ;;  %v4237_v48 = vadd.f32 %v15672_v62, %v3868_v54  ;;  %v2253_v6 = vmax.f32 %v2251_v42, %v2252_v33  ;;  %v2260_v7 = vmax.f32 %v2258_v20, %v2259_v61 }
 0x144   :  { %v4238_v15 = vadd.f32 %v15672_v62, %v3871_v0  ;;  %v4364_v22 = vmax.f32 %v4236_v34, 0.0  ;;  %v2248_v10 = vmax.f32 %v2246_v31, %v2247_v2  ;;  %v2265_v11 = vmax.f32 %v2263_v36, %v2264_v50 }
 0x145   :  { %v4239_v12 = vadd.f32 %v15672_v62, %v3874_v5  ;;  %v4365_v25 = vmax.f32 %v4237_v48, 0.0  ;;  %v2254_v13 = vrot.slane %v2253_v6, 1  ;;  %v2261_v58 = vrot.slane %v2260_v7, 1 }
 0x146   :  { %v4366_v16 = vmax.f32 %v4238_v15, 0.0  ;;  %v14583_v17 = vpack.c.bf16 %v4364_v22, %v4364_v22  ;;  %v2266_v19 = vrot.slane %v2265_v11, 2  ;;  %v15811_v21 = vsel %vm19360_vm2, %v2248_v10, -inf }
 0x147   :  { %v4367_v59 = vmax.f32 %v4239_v12, 0.0  ;;  %v14584_v23 = vpack.c.bf16 %v4365_v25, %v4365_v25  ;;  %v2255_v24 = vmax.f32 %v2253_v6, %v2254_v13  ;;  %v2262_v26 = vmax.f32 %v2260_v7, %v2261_v58 }
 0x148   :  { %v14585_v53 = vpack.c.bf16 %v4366_v16, %v4366_v16  ;;  %v5232_v57 = vunpack.c.l.b16 %v14583_v17  ;;  %v2267_v27 = vmax.f32 %v2265_v11, %v2266_v19  ;;  %v800_v28 = vrot.slane %v786_v3, %v15637_v46 }
 0x149   :  { %v14586_v35 = vpack.c.bf16 %v4367_v59, %v4367_v59  ;;  %v5233_v36 = vunpack.c.l.b16 %v14584_v23  ;;  %v15820_v38 = vsel %vm19360_vm2, %v2255_v24, -inf  ;;  %v15823_v39 = vsel %vm19360_vm2, %v2262_v26, -inf  ;;  %v15852_v26 = vpop.f32.mrb[19].mxu0 }
 0x14a   :  { %v5234_v41 = vunpack.c.l.b16 %v14585_v53  ;;  %v2268_v42 = vrot.slane %v2267_v27, 1  ;;  %v801_v43 = vcombine.high %v15790_v8, %v15790_v8  ;;  %v802_v47 = vcombine.high %v800_v28, %v800_v28 }
 0x14b   :  { %v5235_v20 = vunpack.c.l.b16 %v14586_v35  ;;  %v5373_v50 = vrot.slane %v5233_v36, 7  ;;  %v2186_v30 = vsel %vm19361_vm1, %v15790_v8, -inf  ;;  %v2200_v3 = vsel %vm19361_vm1, %v800_v28, -inf }
 0x14c   :  { %v5375_v51 = vrot.slane %v5234_v41, 6  ;;  %v2269_v44 = vmax.f32 %v2267_v27, %v2268_v42  ;;  %v2187_v52 = vrot.slane %v2186_v30, 4  ;;  %v2193_v31 = vsel %vm19361_vm1, %v801_v43, -inf }
 0x14d   :  { %v5374_v54 = vsel %vm5353_vm3, %v5373_v50, %v5232_v57  ;;  %v5377_v56 = vrot.slane %v5235_v20, 5  ;;  %v2194_v33 = vrot.slane %v2193_v31, 4  ;;  %v2201_v61 = vrot.slane %v2200_v3, 4 }
 0x14e   :  { %v5376_v0 = vsel %vm19364_vm4, %v5375_v51, %v5374_v54  ;;  %v15834_v1 = vsel %vm19360_vm2, %v2269_v44, -inf  ;;  %v2188_v34 = vmax.f32 %v2186_v30, %v2187_v52  ;;  %v2207_v8 = vsel %vm19361_vm1, %v802_v47, -inf }
 0x14f   :  { %v2195_v2 = vmax.f32 %v2193_v31, %v2194_v33  ;;  %v2202_v5 = vmax.f32 %v2200_v3, %v2201_v61  ;;  %v2208_v48 = vrot.slane %v2207_v8, 4  ;;  %v15838_v6 = vsel %vm19363_vm5, %v5377_v56, %v5376_v0 }
 0x150   :  { %v2189_v7 = vrot.slane %v2188_v34, 2  ;;  %v871_v15 = vcombine.high %v15666_v55, %v15666_v55  ;;  %v878_v22 = vrot.slane %v15666_v55, %v15637_v46  ;;  %v837_v10 = vcombine.high %v15674_v63, %v15674_v63 }
 0x151   :  { %v2196_v11 = vrot.slane %v2195_v2, 2  ;;  %v2203_v12 = vrot.slane %v2202_v5, 2  ;;  %v2209_v25 = vmax.f32 %v2207_v8, %v2208_v48  ;;  %v15848_v13 = vrot.slane %v15674_v63, %v15637_v46 }
 0x152   :  { %v2190_v58 = vmax.f32 %v2188_v34, %v2189_v7  ;;  %v885_v16 = vrot.slane %v871_v15, %v15637_v46  ;;  %v886_v17 = vcombine.high %v878_v22, %v878_v22  ;;  %v2326_v19 = vsel %vm19361_vm1, %v878_v22, -inf }
 0x153   :  { %v2197_v59 = vmax.f32 %v2195_v2, %v2196_v11  ;;  %v2204_v23 = vmax.f32 %v2202_v5, %v2203_v12  ;;  %v2210_v24 = vrot.slane %v2209_v25, 2  ;;  %v2327_v55 = vrot.slane %v2326_v19, 4 }
 0x154   :  { %v2191_v53 = vrot.slane %v2190_v58, 1  ;;  %v887_v57 = vcombine.high %v885_v16, %v885_v16  ;;  %v2333_v27 = vsel %vm19361_vm1, %v886_v17, -inf  ;;  %v2340_v28 = vsel %vm19361_vm1, %v885_v16, -inf }
 0x155   :  { %v2198_v35 = vrot.slane %v2197_v59, 1  ;;  %v2205_v36 = vrot.slane %v2204_v23, 1  ;;  %v2211_v41 = vmax.f32 %v2209_v25, %v2210_v24  ;;  %v2328_v42 = vmax.f32 %v2326_v19, %v2327_v55 }
 0x156   :  { %v2192_v43 = vmax.f32 %v2190_v58, %v2191_v53  ;;  %v2334_v47 = vrot.slane %v2333_v27, 4  ;;  %v2341_v20 = vrot.slane %v2340_v28, 4  ;;  %v2347_v50 = vsel %vm19361_vm1, %v887_v57, -inf }
 0x157   :  { %v2199_v30 = vmax.f32 %v2197_v59, %v2198_v35  ;;  %v2206_v3 = vmax.f32 %v2204_v23, %v2205_v36  ;;  %v2212_v51 = vrot.slane %v2211_v41, 1  ;;  %v2329_v44 = vrot.slane %v2328_v42, 2 }
 0x158   :  { %v3875_v52 = vsel %vm19360_vm2, %v2192_v43, -inf  ;;  %v2335_v31 = vmax.f32 %v2333_v27, %v2334_v47  ;;  %v2342_v54 = vmax.f32 %v2340_v28, %v2341_v20  ;;  %v2348_v56 = vrot.slane %v2347_v50, 4 }
 0x159   :  { %v2213_v33 = vmax.f32 %v2211_v41, %v2212_v51  ;;  %v3877_v61 = vmax.f32 %v3875_v52, %v15811_v21  ;;  %v3878_v0 = vsel %vm19360_vm2, %v2199_v30, -inf  ;;  %v3881_v34 = vsel %vm19360_vm2, %v2206_v3, -inf }
 0x15a   :  { %v3880_v8 = vmax.f32 %v3878_v0, %v15820_v38  ;;  %v3883_v2 = vmax.f32 %v3881_v34, %v15823_v39  ;;  %v2330_v5 = vmax.f32 %v2328_v42, %v2329_v44  ;;  %v2336_v48 = vrot.slane %v2335_v31, 2 }
 0x15b   :  { %v3884_v7 = vsel %vm19360_vm2, %v2213_v33, -inf  ;;  %v4240_v15 = vadd.f32 %v15672_v62, %v3877_v61  ;;  %v2343_v22 = vrot.slane %v2342_v54, 2  ;;  %v2349_v11 = vmax.f32 %v2347_v50, %v2348_v56 }
 0x15c   :  { %v3886_v12 = vmax.f32 %v3884_v7, %v15834_v1  ;;  %v4241_v21 = vadd.f32 %v15672_v62, %v3880_v8  ;;  %v4242_v25 = vadd.f32 %v15672_v62, %v3883_v2  ;;  %v2331_v58 = vrot.slane %v2330_v5, 1  ;;  %v15893_v7 = vpop.f32.mrb[20].mxu0 }
 0x15d   :  { %v4368_v16 = vmax.f32 %v4240_v15, 0.0  ;;  %v2337_v17 = vmax.f32 %v2335_v31, %v2336_v48  ;;  %v2344_v38 = vmax.f32 %v2342_v54, %v2343_v22  ;;  %v2350_v19 = vrot.slane %v2349_v11, 2 }
 0x15e   :  { %v4243_v39 = vadd.f32 %v15672_v62, %v3886_v12  ;;  %v4369_v59 = vmax.f32 %v4241_v21, 0.0  ;;  %v4370_v23 = vmax.f32 %v4242_v25, 0.0  ;;  %v2332_v24 = vmax.f32 %v2330_v5, %v2331_v58 }
 0x15f   :  { %v14587_v55 = vpack.c.bf16 %v4368_v16, %v4368_v16  ;;  %v2338_v53 = vrot.slane %v2337_v17, 1  ;;  %v2345_v57 = vrot.slane %v2344_v38, 1  ;;  %v2351_v27 = vmax.f32 %v2349_v11, %v2350_v19 }
 0x160   :  { %v4371_v28 = vmax.f32 %v4243_v39, 0.0  ;;  %v14588_v1 = vpack.c.bf16 %v4369_v59, %v4369_v59  ;;  %v14589_v35 = vpack.c.bf16 %v4370_v23, %v4370_v23  ;;  %v15870_v36 = vsel %vm19360_vm2, %v2332_v24, -inf }
 0x161   :  { %v5236_v41 = vunpack.c.l.b16 %v14587_v55  ;;  %v2339_v42 = vmax.f32 %v2337_v17, %v2338_v53  ;;  %v2346_v43 = vmax.f32 %v2344_v38, %v2345_v57  ;;  %v2352_v47 = vrot.slane %v2351_v27, 1 }
 0x162   :  { %v14590_v20 = vpack.c.bf16 %v4371_v28, %v4371_v28  ;;  %v5237_v50 = vunpack.c.l.b16 %v14588_v1  ;;  %v5238_v30 = vunpack.c.l.b16 %v14589_v35  ;;  %v851_v3 = vrot.slane %v837_v10, %v15637_v46 }
 0x163   :  { %v5379_v51 = vrot.slane %v5236_v41, 4  ;;  %v2353_v44 = vmax.f32 %v2351_v27, %v2352_v47  ;;  %v15877_v52 = vsel %vm19360_vm2, %v2339_v42, -inf  ;;  %v15880_v31 = vsel %vm19360_vm2, %v2346_v43, -inf  ;;  %v15908_v27 = vpop.f32.mrb[21].mxu0 }
 0x164   :  { %v5239_v54 = vunpack.c.l.b16 %v14590_v20  ;;  %v5381_v56 = vrot.slane %v5237_v50, 3  ;;  %v5383_v33 = vrot.slane %v5238_v30, 2  ;;  %v852_v61 = vcombine.high %v15848_v13, %v15848_v13 }
 0x165   :  { %v5380_v0 = vsel %vm5362_vm6, %v5379_v51, %v15838_v6  ;;  %v15887_v63 = vsel %vm19360_vm2, %v2353_v44, -inf  ;;  %v853_v10 = vcombine.high %v851_v3, %v851_v3  ;;  %v2270_v34 = vsel %vm19361_vm1, %v15848_v13, -inf }
 0x166   :  { %v5382_v8 = vsel %vm5365_vm7, %v5381_v56, %v5380_v0  ;;  %v5385_v2 = vrot.slane %v5239_v54, 1  ;;  %v2271_v5 = vrot.slane %v2270_v34, 4  ;;  %v2277_v48 = vsel %vm19361_vm1, %v852_v61, -inf }
 0x167   :  { %v5384_v15 = vsel %vm5368_vm8, %v5383_v33, %v5382_v8  ;;  %v2278_v22 = vrot.slane %v2277_v48, 4  ;;  %v2284_v6 = vsel %vm19361_vm1, %v851_v3, -inf  ;;  %v2291_v11 = vsel %vm19361_vm1, %v853_v10, -inf }
 0x168   :  { %v5386_v12 = vsel %vm5371_vm9, %v5385_v2, %v5384_v15  ;;  %v2272_v21 = vmax.f32 %v2270_v34, %v2271_v5  ;;  %v2285_v25 = vrot.slane %v2284_v6, 4  ;;  %v2292_v13 = vrot.slane %v2291_v11, 4 }
 0x169   :  { %v5584_v58 = vpack.c.b16 %v5386_v12, %v5386_v12  ;;  %v2279_v16 = vmax.f32 %v2277_v48, %v2278_v22  ;;  %v888_v17 = vcombine.high %v15678_v4, %v15678_v4  ;;  %v895_v38 = vrot.slane %v15678_v4, %v15637_v46 }
 0x16a   :  { %v2273_v19 = vrot.slane %v2272_v21, 2  ;;  %v2286_v39 = vmax.f32 %v2284_v6, %v2285_v25  ;;  %v2293_v59 = vmax.f32 %v2291_v11, %v2292_v13  ;;  %v854_v23 = vcombine.high %v15682_v9, %v15682_v9 }
 0x16b   :  { %5617 = vst.msk [vmem:[#allocation2 + $0x30] sm:$0xf] %vm19359_vm0, %v5584_v58  ;;  %v2280_v24 = vrot.slane %v2279_v16, 2  ;;  %v902_v55 = vrot.slane %v888_v17, %v15637_v46  ;;  %v903_v53 = vcombine.high %v895_v38, %v895_v38  ;;  %v2354_v57 = vsel %vm19361_vm1, %v895_v38, -inf }
 0x16c   :  { %v2274_v28 = vmax.f32 %v2272_v21, %v2273_v19  ;;  %v2287_v1 = vrot.slane %v2286_v39, 2  ;;  %v2294_v35 = vrot.slane %v2293_v59, 2  ;;  %v2355_v4 = vrot.slane %v2354_v57, 4 }
 0x16d   :  { %v2281_v41 = vmax.f32 %v2279_v16, %v2280_v24  ;;  %v904_v42 = vcombine.high %v902_v55, %v902_v55  ;;  %v2361_v43 = vsel %vm19361_vm1, %v903_v53, -inf  ;;  %v2368_v47 = vsel %vm19361_vm1, %v902_v55, -inf }
 0x16e   :  { %v2275_v20 = vrot.slane %v2274_v28, 1  ;;  %v2288_v50 = vmax.f32 %v2286_v39, %v2287_v1  ;;  %v2295_v30 = vmax.f32 %v2293_v59, %v2294_v35  ;;  %v2356_v3 = vmax.f32 %v2354_v57, %v2355_v4 }
 0x16f   :  { %v2282_v51 = vrot.slane %v2281_v41, 1  ;;  %v2362_v44 = vrot.slane %v2361_v43, 4  ;;  %v2369_v54 = vrot.slane %v2368_v47, 4  ;;  %v2375_v56 = vsel %vm19361_vm1, %v904_v42, -inf }
 0x170   :  { %v2276_v33 = vmax.f32 %v2274_v28, %v2275_v20  ;;  %v2289_v61 = vrot.slane %v2288_v50, 1  ;;  %v2296_v0 = vrot.slane %v2295_v30, 1  ;;  %v2357_v10 = vrot.slane %v2356_v3, 2 }
 0x171   :  { %v2283_v34 = vmax.f32 %v2281_v41, %v2282_v51  ;;  %v2363_v8 = vmax.f32 %v2361_v43, %v2362_v44  ;;  %v2370_v2 = vmax.f32 %v2368_v47, %v2369_v54  ;;  %v2376_v5 = vrot.slane %v2375_v56, 4 }
 0x172   :  { %v2290_v48 = vmax.f32 %v2288_v50, %v2289_v61  ;;  %v2297_v15 = vmax.f32 %v2295_v30, %v2296_v0  ;;  %v3887_v22 = vsel %vm19360_vm2, %v2276_v33, -inf  ;;  %v2358_v6 = vmax.f32 %v2356_v3, %v2357_v10 }
 0x173   :  { %v3889_v11 = vmax.f32 %v3887_v22, %v15870_v36  ;;  %v3890_v12 = vsel %vm19360_vm2, %v2283_v34, -inf  ;;  %v2364_v21 = vrot.slane %v2363_v8, 2  ;;  %v2371_v25 = vrot.slane %v2370_v2, 2 }
 0x174   :  { %v3892_v13 = vmax.f32 %v3890_v12, %v15877_v52  ;;  %v3893_v58 = vsel %vm19360_vm2, %v2290_v48, -inf  ;;  %v3896_v16 = vsel %vm19360_vm2, %v2297_v15, -inf  ;;  %v2359_v17 = vrot.slane %v2358_v6, 1 }
 0x175   :  { %v3895_v38 = vmax.f32 %v3893_v58, %v15880_v31  ;;  %v3898_v19 = vmax.f32 %v3896_v16, %v15887_v63  ;;  %v4244_v39 = vadd.f32 %v15672_v62, %v3889_v11  ;;  %v2365_v59 = vmax.f32 %v2363_v8, %v2364_v21 }
 0x176   :  { %v4245_v36 = vadd.f32 %v15672_v62, %v3892_v13  ;;  %v2360_v24 = vmax.f32 %v2358_v6, %v2359_v17  ;;  %v2372_v55 = vmax.f32 %v2370_v2, %v2371_v25  ;;  %v2377_v53 = vmax.f32 %v2375_v56, %v2376_v5  ;;  %v15933_v56 = vpop.f32.mrb[22].mxu0 }
 0x177   :  { %v4246_v57 = vadd.f32 %v15672_v62, %v3895_v38  ;;  %v4247_v52 = vadd.f32 %v15672_v62, %v3898_v19  ;;  %v4372_v28 = vmax.f32 %v4244_v39, 0.0  ;;  %v2366_v1 = vrot.slane %v2365_v59, 1 }
 0x178   :  { %v4373_v35 = vmax.f32 %v4245_v36, 0.0  ;;  %v2373_v4 = vrot.slane %v2372_v55, 1  ;;  %v2378_v41 = vrot.slane %v2377_v53, 2  ;;  %v15926_v31 = vsel %vm19360_vm2, %v2360_v24, -inf }
 0x179   :  { %v4374_v63 = vmax.f32 %v4246_v57, 0.0  ;;  %v4375_v42 = vmax.f32 %v4247_v52, 0.0  ;;  %v14591_v43 = vpack.c.bf16 %v4372_v28, %v4372_v28  ;;  %v2367_v47 = vmax.f32 %v2365_v59, %v2366_v1 }
 0x17a   :  { %v14592_v20 = vpack.c.bf16 %v4373_v35, %v4373_v35  ;;  %v2374_v50 = vmax.f32 %v2372_v55, %v2373_v4  ;;  %v2379_v30 = vmax.f32 %v2377_v53, %v2378_v41  ;;  %v861_v3 = vrot.slane %v15682_v9, %v15637_v46  ;;  %v15965_v41 = vpop.f32.mrb[23].mxu0 }
 0x17b   :  { %v14593_v51 = vpack.c.bf16 %v4374_v63, %v4374_v63  ;;  %v14594_v62 = vpack.c.bf16 %v4375_v42, %v4375_v42  ;;  %v5240_v44 = vunpack.c.l.b16 %v14591_v43  ;;  %v15931_v54 = vsel %vm19360_vm2, %v2367_v47, -inf }
 0x17c   :  { %v5241_v33 = vunpack.c.l.b16 %v14592_v20  ;;  %v2380_v61 = vrot.slane %v2379_v30, 1  ;;  %v15936_v0 = vsel %vm19360_vm2, %v2374_v50, -inf  ;;  %v868_v10 = vrot.slane %v854_v23, %v15637_v46 }
 0x17d   :  { %v5242_v34 = vunpack.c.l.b16 %v14593_v51  ;;  %v5243_v8 = vunpack.c.l.b16 %v14594_v62  ;;  %v869_v2 = vcombine.high %v861_v3, %v861_v3  ;;  %v2298_v5 = vsel %vm19361_vm1, %v861_v3, -inf }
 0x17e   :  { %v5387_v48 = vrot.slane %v5241_v33, 7  ;;  %v2381_v15 = vmax.f32 %v2379_v30, %v2380_v61  ;;  %v870_v22 = vcombine.high %v868_v10, %v868_v10  ;;  %v2299_v6 = vrot.slane %v2298_v5, 4 }
 0x17f   :  { %v5389_v11 = vrot.slane %v5242_v34, 6  ;;  %v5391_v12 = vrot.slane %v5243_v8, 5  ;;  %v2305_v21 = vsel %vm19361_vm1, %v869_v2, -inf  ;;  %v2312_v25 = vsel %vm19361_vm1, %v868_v10, -inf }
 0x180   :  { %v5388_v13 = vsel %vm5353_vm3, %v5387_v48, %v5240_v44  ;;  %v15947_v9 = vsel %vm19360_vm2, %v2381_v15, -inf  ;;  %v2300_v23 = vmax.f32 %v2298_v5, %v2299_v6  ;;  %v2306_v58 = vrot.slane %v2305_v21, 4 }
 0x181   :  { %v5390_v16 = vsel %vm19364_vm4, %v5389_v11, %v5388_v13  ;;  %v2313_v17 = vrot.slane %v2312_v25, 4  ;;  %v2319_v38 = vsel %vm19361_vm1, %v870_v22, -inf  ;;  %v939_v19 = vcombine.high %v15700_v32, %v15700_v32 }
 0x182   :  { %v2301_v39 = vrot.slane %v2300_v23, 2  ;;  %v2307_v59 = vmax.f32 %v2305_v21, %v2306_v58  ;;  %v2320_v36 = vrot.slane %v2319_v38, 4  ;;  %v15954_v24 = vsel %vm19363_vm5, %v5391_v12, %v5390_v16 }
 0x183   :  { %v2314_v55 = vmax.f32 %v2312_v25, %v2313_v17  ;;  %v946_v53 = vrot.slane %v15700_v32, %v15637_v46  ;;  %v953_v57 = vrot.slane %v939_v19, %v15637_v46  ;;  %v905_v52 = vcombine.high %v15703_v37, %v15703_v37 }
 0x184   :  { %v2302_v28 = vmax.f32 %v2300_v23, %v2301_v39  ;;  %v2308_v1 = vrot.slane %v2307_v59, 2  ;;  %v2321_v35 = vmax.f32 %v2319_v38, %v2320_v36  ;;  %v15963_v4 = vrot.slane %v15703_v37, %v15637_v46  ;;  %v15979_v39 = vld [vmem:[%s19350_s3] ss:$0 sm:$0xff] }
 0x185   :  { %v2315_v63 = vrot.slane %v2314_v55, 2  ;;  %v954_v42 = vcombine.high %v946_v53, %v946_v53  ;;  %v955_v43 = vcombine.high %v953_v57, %v953_v57  ;;  %v2438_v47 = vsel %vm19361_vm1, %v946_v53, -inf }
 0x186   :  { %v2303_v32 = vrot.slane %v2302_v28, 1  ;;  %v2309_v20 = vmax.f32 %v2307_v59, %v2308_v1  ;;  %v2322_v50 = vrot.slane %v2321_v35, 2  ;;  %v2439_v30 = vrot.slane %v2438_v47, 4 }
 0x187   :  { %v2316_v3 = vmax.f32 %v2314_v55, %v2315_v63  ;;  %v2445_v51 = vsel %vm19361_vm1, %v954_v42, -inf  ;;  %v2452_v62 = vsel %vm19361_vm1, %v953_v57, -inf  ;;  %v2459_v44 = vsel %vm19361_vm1, %v955_v43, -inf }
 0x188   :  { %v2304_v33 = vmax.f32 %v2302_v28, %v2303_v32  ;;  %v2310_v61 = vrot.slane %v2309_v20, 1  ;;  %v2323_v10 = vmax.f32 %v2321_v35, %v2322_v50  ;;  %v2440_v34 = vmax.f32 %v2438_v47, %v2439_v30 }
 0x189   :  { %v2317_v8 = vrot.slane %v2316_v3, 1  ;;  %v2446_v2 = vrot.slane %v2445_v51, 4  ;;  %v2453_v5 = vrot.slane %v2452_v62, 4  ;;  %v2460_v48 = vrot.slane %v2459_v44, 4 }
 0x18a   :  { %v2311_v15 = vmax.f32 %v2309_v20, %v2310_v61  ;;  %v2324_v22 = vrot.slane %v2323_v10, 1  ;;  %v3899_v6 = vsel %vm19360_vm2, %v2304_v33, -inf  ;;  %v2441_v11 = vrot.slane %v2440_v34, 2 }
 0x18b   :  { %v2318_v12 = vmax.f32 %v2316_v3, %v2317_v8  ;;  %v3901_v21 = vmax.f32 %v3899_v6, %v15926_v31  ;;  %v2447_v25 = vmax.f32 %v2445_v51, %v2446_v2  ;;  %v2454_v13 = vmax.f32 %v2452_v62, %v2453_v5 }
 0x18c   :  { %v2325_v23 = vmax.f32 %v2323_v10, %v2324_v22  ;;  %v3902_v58 = vsel %vm19360_vm2, %v2311_v15, -inf  ;;  %v2442_v16 = vmax.f32 %v2440_v34, %v2441_v11  ;;  %v2461_v17 = vmax.f32 %v2459_v44, %v2460_v48 }
 0x18d   :  { %v3904_v38 = vmax.f32 %v3902_v58, %v15931_v54  ;;  %v3905_v19 = vsel %vm19360_vm2, %v2318_v12, -inf  ;;  %v4248_v59 = vadd.f32 %v15979_v39, %v3901_v21  ;;  %v2448_v36 = vrot.slane %v2447_v25, 2 }
 0x18e   :  { %v3907_v31 = vmax.f32 %v3905_v19, %v15936_v0  ;;  %v3908_v55 = vsel %vm19360_vm2, %v2325_v23, -inf  ;;  %v2443_v53 = vrot.slane %v2442_v16, 1  ;;  %v2455_v57 = vrot.slane %v2454_v13, 2 }
 0x18f   :  { %v3910_v28 = vmax.f32 %v3908_v55, %v15947_v9  ;;  %v4249_v54 = vadd.f32 %v15979_v39, %v3904_v38  ;;  %v4376_v1 = vmax.f32 %v4248_v59, 0.0  ;;  %v2449_v35 = vmax.f32 %v2447_v25, %v2448_v36  ;;  %v16011_v38 = vpop.f32.mrb[24].mxu0 }
 0x190   :  { %v4250_v63 = vadd.f32 %v15979_v39, %v3907_v31  ;;  %v2444_v42 = vmax.f32 %v2442_v16, %v2443_v53  ;;  %v2456_v43 = vmax.f32 %v2454_v13, %v2455_v57  ;;  %v2462_v47 = vrot.slane %v2461_v17, 2 }
 0x191   :  { %v4251_v32 = vadd.f32 %v15979_v39, %v3910_v28  ;;  %v4377_v20 = vmax.f32 %v4249_v54, 0.0  ;;  %v14595_v50 = vpack.c.bf16 %v4376_v1, %v4376_v1  ;;  %v2450_v0 = vrot.slane %v2449_v35, 1 }
 0x192   :  { %v4378_v30 = vmax.f32 %v4250_v63, 0.0  ;;  %v2457_v3 = vrot.slane %v2456_v43, 1  ;;  %v2463_v51 = vmax.f32 %v2461_v17, %v2462_v47  ;;  %v15989_v62 = vsel %vm19360_vm2, %v2444_v42, -inf }
 0x193   :  { %v4379_v9 = vmax.f32 %v4251_v32, 0.0  ;;  %v14596_v44 = vpack.c.bf16 %v4377_v20, %v4377_v20  ;;  %v5244_v33 = vunpack.c.l.b16 %v14595_v50  ;;  %v2451_v61 = vmax.f32 %v2449_v35, %v2450_v0 }
 0x194   :  { %v14597_v10 = vpack.c.bf16 %v4378_v30, %v4378_v30  ;;  %v2458_v34 = vmax.f32 %v2456_v43, %v2457_v3  ;;  %v2464_v8 = vrot.slane %v2463_v51, 1  ;;  %v919_v2 = vrot.slane %v905_v52, %v15637_v46 }
 0x195   :  { %v14598_v5 = vpack.c.bf16 %v4379_v9, %v4379_v9  ;;  %v5245_v48 = vunpack.c.l.b16 %v14596_v44  ;;  %v5393_v15 = vrot.slane %v5244_v33, 4  ;;  %v15996_v22 = vsel %vm19360_vm2, %v2451_v61, -inf }
 0x196   :  { %v5246_v6 = vunpack.c.l.b16 %v14597_v10  ;;  %v2465_v11 = vmax.f32 %v2463_v51, %v2464_v8  ;;  %v15999_v12 = vsel %vm19360_vm2, %v2458_v34, -inf  ;;  %v920_v21 = vcombine.high %v15963_v4, %v15963_v4 }
 0x197   :  { %v5247_v25 = vunpack.c.l.b16 %v14598_v5  ;;  %v5394_v13 = vsel %vm5362_vm6, %v5393_v15, %v15954_v24  ;;  %v5395_v37 = vrot.slane %v5245_v48, 3  ;;  %v921_v52 = vcombine.high %v919_v2, %v919_v2 }
 0x198   :  { %v5397_v23 = vrot.slane %v5246_v6, 2  ;;  %v16006_v58 = vsel %vm19360_vm2, %v2465_v11, -inf  ;;  %v2382_v16 = vsel %vm19361_vm1, %v15963_v4, -inf  ;;  %v2389_v17 = vsel %vm19361_vm1, %v920_v21, -inf }
 0x199   :  { %v5396_v19 = vsel %vm5365_vm7, %v5395_v37, %v5394_v13  ;;  %v5399_v59 = vrot.slane %v5247_v25, 1  ;;  %v2383_v36 = vrot.slane %v2382_v16, 4  ;;  %v2390_v31 = vrot.slane %v2389_v17, 4 }
 0x19a   :  { %v5398_v24 = vsel %vm5368_vm8, %v5397_v23, %v5396_v19  ;;  %v2396_v55 = vsel %vm19361_vm1, %v919_v2, -inf  ;;  %v2403_v53 = vsel %vm19361_vm1, %v921_v52, -inf  ;;  %v956_v57 = vcombine.high %v15709_v18, %v15709_v18 }
 0x19b   :  { %v5400_v4 = vsel %vm5371_vm9, %v5399_v59, %v5398_v24  ;;  %v2384_v28 = vmax.f32 %v2382_v16, %v2383_v36  ;;  %v2391_v54 = vmax.f32 %v2389_v17, %v2390_v31  ;;  %v2397_v1 = vrot.slane %v2396_v55, 4 }
 0x19c   :  { %v5585_v35 = vpack.c.b16 %v5400_v4, %v5400_v4  ;;  %v2404_v63 = vrot.slane %v2403_v53, 4  ;;  %v963_v42 = vrot.slane %v15709_v18, %v15637_v46  ;;  %v970_v43 = vrot.slane %v956_v57, %v15637_v46  ;;  %v16027_v18 = vpop.f32.mrb[25].mxu0 }
 0x19d   :  { %v2385_v47 = vrot.slane %v2384_v28, 2  ;;  %v2392_v32 = vrot.slane %v2391_v54, 2  ;;  %v2398_v20 = vmax.f32 %v2396_v55, %v2397_v1  ;;  %v922_v50 = vcombine.high %v15735_v60, %v15735_v60 }
 0x19e   :  { %5618 = vst.msk [vmem:[#allocation2 + $0x44] sm:$0xf] %vm19359_vm0, %v5585_v35  ;;  %v2405_v0 = vmax.f32 %v2403_v53, %v2404_v63  ;;  %v971_v30 = vcombine.high %v963_v42, %v963_v42  ;;  %v972_v3 = vcombine.high %v970_v43, %v970_v43  ;;  %v2466_v51 = vsel %vm19361_vm1, %v963_v42, -inf }
 0x19f   :  { %v2386_v9 = vmax.f32 %v2384_v28, %v2385_v47  ;;  %v2393_v44 = vmax.f32 %v2391_v54, %v2392_v32  ;;  %v2399_v33 = vrot.slane %v2398_v20, 2  ;;  %v2467_v61 = vrot.slane %v2466_v51, 4 }
 0x1a0   :  { %v2406_v10 = vrot.slane %v2405_v0, 2  ;;  %v2473_v34 = vsel %vm19361_vm1, %v971_v30, -inf  ;;  %v2480_v8 = vsel %vm19361_vm1, %v970_v43, -inf  ;;  %v2487_v2 = vsel %vm19361_vm1, %v972_v3, -inf }
 0x1a1   :  { %v2387_v5 = vrot.slane %v2386_v9, 1  ;;  %v2394_v48 = vrot.slane %v2393_v44, 1  ;;  %v2400_v15 = vmax.f32 %v2398_v20, %v2399_v33  ;;  %v2468_v6 = vmax.f32 %v2466_v51, %v2467_v61 }
 0x1a2   :  { %v2407_v11 = vmax.f32 %v2405_v0, %v2406_v10  ;;  %v2474_v21 = vrot.slane %v2473_v34, 4  ;;  %v2481_v25 = vrot.slane %v2480_v8, 4  ;;  %v2488_v13 = vrot.slane %v2487_v2, 4 }
 0x1a3   :  { %v2388_v37 = vmax.f32 %v2386_v9, %v2387_v5  ;;  %v2395_v52 = vmax.f32 %v2393_v44, %v2394_v48  ;;  %v2401_v23 = vrot.slane %v2400_v15, 1  ;;  %v2469_v16 = vrot.slane %v2468_v6, 2 }
 0x1a4   :  { %v2408_v17 = vrot.slane %v2407_v11, 1  ;;  %v2475_v19 = vmax.f32 %v2473_v34, %v2474_v21  ;;  %v2482_v59 = vmax.f32 %v2480_v8, %v2481_v25  ;;  %v2489_v36 = vmax.f32 %v2487_v2, %v2488_v13 }
 0x1a5   :  { %v2402_v31 = vmax.f32 %v2400_v15, %v2401_v23  ;;  %v3911_v24 = vsel %vm19360_vm2, %v2388_v37, -inf  ;;  %v3914_v55 = vsel %vm19360_vm2, %v2395_v52, -inf  ;;  %v2470_v53 = vmax.f32 %v2468_v6, %v2469_v16  ;;  %v16049_v37 = vpop.f32.mrb[26].mxu0 }
 0x1a6   :  { %v2409_v57 = vmax.f32 %v2407_v11, %v2408_v17  ;;  %v3913_v4 = vmax.f32 %v3911_v24, %v15989_v62  ;;  %v3916_v28 = vmax.f32 %v3914_v55, %v15996_v22  ;;  %v2476_v54 = vrot.slane %v2475_v19, 2 }
 0x1a7   :  { %v3917_v1 = vsel %vm19360_vm2, %v2402_v31, -inf  ;;  %v2471_v35 = vrot.slane %v2470_v53, 1  ;;  %v2483_v63 = vrot.slane %v2482_v59, 2  ;;  %v2490_v42 = vrot.slane %v2489_v36, 2 }
 0x1a8   :  { %v3919_v43 = vmax.f32 %v3917_v1, %v15999_v12  ;;  %v3920_v47 = vsel %vm19360_vm2, %v2409_v57, -inf  ;;  %v4252_v32 = vadd.f32 %v15979_v39, %v3913_v4  ;;  %v4253_v20 = vadd.f32 %v15979_v39, %v3916_v28 }
 0x1a9   :  { %v3922_v0 = vmax.f32 %v3920_v47, %v16006_v58  ;;  %v2472_v30 = vmax.f32 %v2470_v53, %v2471_v35  ;;  %v2477_v62 = vmax.f32 %v2475_v19, %v2476_v54  ;;  %v2484_v3 = vmax.f32 %v2482_v59, %v2483_v63 }
 0x1aa   :  { %v4254_v22 = vadd.f32 %v15979_v39, %v3919_v43  ;;  %v4380_v51 = vmax.f32 %v4252_v32, 0.0  ;;  %v4381_v9 = vmax.f32 %v4253_v20, 0.0  ;;  %v2491_v44 = vmax.f32 %v2489_v36, %v2490_v42 }
 0x1ab   :  { %v4255_v33 = vadd.f32 %v15979_v39, %v3922_v0  ;;  %v2478_v61 = vrot.slane %v2477_v62, 1  ;;  %v2485_v12 = vrot.slane %v2484_v3, 1  ;;  %v16045_v10 = vsel %vm19360_vm2, %v2472_v30, -inf }
 0x1ac   :  { %v4382_v34 = vmax.f32 %v4254_v22, 0.0  ;;  %v14599_v8 = vpack.c.bf16 %v4380_v51, %v4380_v51  ;;  %v14600_v2 = vpack.c.bf16 %v4381_v9, %v4381_v9  ;;  %v2492_v5 = vrot.slane %v2491_v44, 1 }
 0x1ad   :  { %v4383_v58 = vmax.f32 %v4255_v33, 0.0  ;;  %v2479_v48 = vmax.f32 %v2477_v62, %v2478_v61  ;;  %v2486_v15 = vmax.f32 %v2484_v3, %v2485_v12  ;;  %v929_v6 = vrot.slane %v15735_v60, %v15637_v46 }
 0x1ae   :  { %v14601_v11 = vpack.c.bf16 %v4382_v34, %v4382_v34  ;;  %v5248_v21 = vunpack.c.l.b16 %v14599_v8  ;;  %v5249_v25 = vunpack.c.l.b16 %v14600_v2  ;;  %v2493_v13 = vmax.f32 %v2491_v44, %v2492_v5  ;;  %v16081_v34 = vpop.f32.mrb[27].mxu0 }
 0x1af   :  { %v14602_v52 = vpack.c.bf16 %v4383_v58, %v4383_v58  ;;  %v16052_v23 = vsel %vm19360_vm2, %v2479_v48, -inf  ;;  %v16055_v16 = vsel %vm19360_vm2, %v2486_v15, -inf  ;;  %v936_v17 = vrot.slane %v922_v50, %v15637_v46 }
 0x1b0   :  { %v5250_v19 = vunpack.c.l.b16 %v14601_v11  ;;  %v5401_v59 = vrot.slane %v5249_v25, 7  ;;  %v16062_v36 = vsel %vm19360_vm2, %v2493_v13, -inf  ;;  %v937_v31 = vcombine.high %v929_v6, %v929_v6 }
 0x1b1   :  { %v5251_v24 = vunpack.c.l.b16 %v14602_v52  ;;  %v938_v55 = vcombine.high %v936_v17, %v936_v17  ;;  %v2410_v53 = vsel %vm19361_vm1, %v929_v6, -inf  ;;  %v2424_v57 = vsel %vm19361_vm1, %v936_v17, -inf }
 0x1b2   :  { %v5402_v4 = vsel %vm5353_vm3, %v5401_v59, %v5248_v21  ;;  %v5403_v28 = vrot.slane %v5250_v19, 6  ;;  %v2411_v54 = vrot.slane %v2410_v53, 4  ;;  %v2417_v1 = vsel %vm19361_vm1, %v937_v31, -inf }
 0x1b3   :  { %v5405_v60 = vrot.slane %v5251_v24, 5  ;;  %v2418_v50 = vrot.slane %v2417_v1, 4  ;;  %v2425_v35 = vrot.slane %v2424_v57, 4  ;;  %v2431_v63 = vsel %vm19361_vm1, %v938_v55, -inf }
 0x1b4   :  { %v5404_v42 = vsel %vm19364_vm4, %v5403_v28, %v5402_v4  ;;  %v2412_v43 = vmax.f32 %v2410_v53, %v2411_v54  ;;  %v2432_v47 = vrot.slane %v2431_v63, 4  ;;  %v1007_v32 = vcombine.high %v15771_v49, %v15771_v49 }
 0x1b5   :  { %v2419_v20 = vmax.f32 %v2417_v1, %v2418_v50  ;;  %v2426_v0 = vmax.f32 %v2424_v57, %v2425_v35  ;;  %v16073_v30 = vsel %vm19363_vm5, %v5405_v60, %v5404_v42  ;;  %v1014_v62 = vrot.slane %v15771_v49, %v15637_v46 }
 0x1b6   :  { %v2413_v3 = vrot.slane %v2412_v43, 2  ;;  %v2433_v22 = vmax.f32 %v2431_v63, %v2432_v47  ;;  %v1021_v51 = vrot.slane %v1007_v32, %v15637_v46  ;;  %v973_v9 = vcombine.high %v15793_v14, %v15793_v14 }
 0x1b7   :  { %v2420_v44 = vrot.slane %v2419_v20, 2  ;;  %v2427_v33 = vrot.slane %v2426_v0, 2  ;;  %v1022_v61 = vcombine.high %v1014_v62, %v1014_v62  ;;  %v2550_v12 = vsel %vm19361_vm1, %v1014_v62, -inf }
 0x1b8   :  { %v2414_v8 = vmax.f32 %v2412_v43, %v2413_v3  ;;  %v2434_v2 = vrot.slane %v2433_v22, 2  ;;  %v1023_v5 = vcombine.high %v1021_v51, %v1021_v51  ;;  %v2551_v58 = vrot.slane %v2550_v12, 4 }
 0x1b9   :  { %v2421_v48 = vmax.f32 %v2419_v20, %v2420_v44  ;;  %v2428_v49 = vmax.f32 %v2426_v0, %v2427_v33  ;;  %v2557_v15 = vsel %vm19361_vm1, %v1022_v61, -inf  ;;  %v2564_v6 = vsel %vm19361_vm1, %v1021_v51, -inf }
 0x1ba   :  { %v2415_v11 = vrot.slane %v2414_v8, 1  ;;  %v2435_v21 = vmax.f32 %v2433_v22, %v2434_v2  ;;  %v2552_v25 = vmax.f32 %v2550_v12, %v2551_v58  ;;  %v2558_v13 = vrot.slane %v2557_v15, 4 }
 0x1bb   :  { %v2422_v52 = vrot.slane %v2421_v48, 1  ;;  %v2429_v17 = vrot.slane %v2428_v49, 1  ;;  %v2565_v19 = vrot.slane %v2564_v6, 4  ;;  %v2571_v59 = vsel %vm19361_vm1, %v1023_v5, -inf }
 0x1bc   :  { %v2416_v31 = vmax.f32 %v2414_v8, %v2415_v11  ;;  %v2436_v24 = vrot.slane %v2435_v21, 1  ;;  %v2553_v55 = vrot.slane %v2552_v25, 2  ;;  %v2559_v53 = vmax.f32 %v2557_v15, %v2558_v13 }
 0x1bd   :  { %v2423_v57 = vmax.f32 %v2421_v48, %v2422_v52  ;;  %v2430_v4 = vmax.f32 %v2428_v49, %v2429_v17  ;;  %v2566_v28 = vmax.f32 %v2564_v6, %v2565_v19  ;;  %v2572_v54 = vrot.slane %v2571_v59, 4 }
 0x1be   :  { %v2437_v1 = vmax.f32 %v2435_v21, %v2436_v24  ;;  %v3923_v60 = vsel %vm19360_vm2, %v2416_v31, -inf  ;;  %v2554_v50 = vmax.f32 %v2552_v25, %v2553_v55  ;;  %v2560_v35 = vrot.slane %v2559_v53, 2 }
 0x1bf   :  { %v3925_v63 = vmax.f32 %v3923_v60, %v16045_v10  ;;  %v3926_v42 = vsel %vm19360_vm2, %v2423_v57, -inf  ;;  %v3929_v43 = vsel %vm19360_vm2, %v2430_v4, -inf  ;;  %v2567_v47 = vrot.slane %v2566_v28, 2 }
 0x1c0   :  { %v3928_v32 = vmax.f32 %v3926_v42, %v16052_v23  ;;  %v3931_v20 = vmax.f32 %v3929_v43, %v16055_v16  ;;  %v3932_v0 = vsel %vm19360_vm2, %v2437_v1, -inf  ;;  %v2555_v62 = vrot.slane %v2554_v50, 1 }
 0x1c1   :  { %v3934_v3 = vmax.f32 %v3932_v0, %v16062_v36  ;;  %v4256_v22 = vadd.f32 %v15979_v39, %v3925_v63  ;;  %v2561_v51 = vmax.f32 %v2559_v53, %v2560_v35  ;;  %v2568_v44 = vmax.f32 %v2566_v28, %v2567_v47 }
 0x1c2   :  { %v4257_v10 = vadd.f32 %v15979_v39, %v3928_v32  ;;  %v4258_v33 = vadd.f32 %v15979_v39, %v3931_v20  ;;  %v2556_v61 = vmax.f32 %v2554_v50, %v2555_v62  ;;  %v2573_v12 = vmax.f32 %v2571_v59, %v2572_v54  ;;  %v16117_v20 = vpop.f32.mrb[28].mxu0 }
 0x1c3   :  { %v4259_v8 = vadd.f32 %v15979_v39, %v3934_v3  ;;  %v4384_v23 = vmax.f32 %v4256_v22, 0.0  ;;  %v2562_v2 = vrot.slane %v2561_v51, 1  ;;  %v2569_v16 = vrot.slane %v2568_v44, 1 }
 0x1c4   :  { %v4385_v5 = vmax.f32 %v4257_v10, 0.0  ;;  %v4386_v58 = vmax.f32 %v4258_v33, 0.0  ;;  %v2574_v48 = vrot.slane %v2573_v12, 2  ;;  %v16099_v36 = vsel %vm19360_vm2, %v2556_v61, -inf }
 0x1c5   :  { %v4387_v49 = vmax.f32 %v4259_v8, 0.0  ;;  %v14603_v15 = vpack.c.bf16 %v4384_v23, %v4384_v23  ;;  %v2563_v6 = vmax.f32 %v2561_v51, %v2562_v2  ;;  %v2570_v11 = vmax.f32 %v2568_v44, %v2569_v16 }
 0x1c6   :  { %v14604_v21 = vpack.c.bf16 %v4385_v5, %v4385_v5  ;;  %v14605_v25 = vpack.c.bf16 %v4386_v58, %v4386_v58  ;;  %v2575_v13 = vmax.f32 %v2573_v12, %v2574_v48  ;;  %v980_v52 = vrot.slane %v15793_v14, %v15637_v46 }
 0x1c7   :  { %v14606_v17 = vpack.c.bf16 %v4387_v49, %v4387_v49  ;;  %v5252_v19 = vunpack.c.l.b16 %v14603_v15  ;;  %v16104_v59 = vsel %vm19360_vm2, %v2563_v6, -inf  ;;  %v16107_v31 = vsel %vm19360_vm2, %v2570_v11, -inf  ;;  %v16134_v49 = vpop.f32.mrb[29].mxu0 }
 0x1c8   :  { %v5253_v24 = vunpack.c.l.b16 %v14604_v21  ;;  %v5254_v55 = vunpack.c.l.b16 %v14605_v25  ;;  %v2576_v53 = vrot.slane %v2575_v13, 1  ;;  %v987_v57 = vrot.slane %v973_v9, %v15637_v46 }
 0x1c9   :  { %v5255_v4 = vunpack.c.l.b16 %v14606_v17  ;;  %v5407_v28 = vrot.slane %v5252_v19, 4  ;;  %v988_v54 = vcombine.high %v980_v52, %v980_v52  ;;  %v2494_v1 = vsel %vm19361_vm1, %v980_v52, -inf }
 0x1ca   :  { %v5409_v60 = vrot.slane %v5253_v24, 3  ;;  %v5411_v50 = vrot.slane %v5254_v55, 2  ;;  %v2577_v35 = vmax.f32 %v2575_v13, %v2576_v53  ;;  %v989_v63 = vcombine.high %v987_v57, %v987_v57 }
 0x1cb   :  { %v5408_v42 = vsel %vm5362_vm6, %v5407_v28, %v16073_v30  ;;  %v5413_v43 = vrot.slane %v5255_v4, 1  ;;  %v2495_v47 = vrot.slane %v2494_v1, 4  ;;  %v2501_v32 = vsel %vm19361_vm1, %v988_v54, -inf }
 0x1cc   :  { %v5410_v14 = vsel %vm5365_vm7, %v5409_v60, %v5408_v42  ;;  %v16121_v9 = vsel %vm19360_vm2, %v2577_v35, -inf  ;;  %v2502_v0 = vrot.slane %v2501_v32, 4  ;;  %v2508_v62 = vsel %vm19361_vm1, %v987_v57, -inf }
 0x1cd   :  { %v5412_v3 = vsel %vm5368_vm8, %v5411_v50, %v5410_v14  ;;  %v2496_v22 = vmax.f32 %v2494_v1, %v2495_v47  ;;  %v2509_v51 = vrot.slane %v2508_v62, 4  ;;  %v2515_v30 = vsel %vm19361_vm1, %v989_v63, -inf }
 0x1ce   :  { %v5414_v44 = vsel %vm5371_vm9, %v5413_v43, %v5412_v3  ;;  %v2503_v10 = vmax.f32 %v2501_v32, %v2502_v0  ;;  %v2516_v33 = vrot.slane %v2515_v30, 4  ;;  %v1024_v61 = vcombine.high %v15817_v29, %v15817_v29 }
 0x1cf   :  { %v5586_v12 = vpack.c.b16 %v5414_v44, %v5414_v44  ;;  %v2497_v8 = vrot.slane %v2496_v22, 2  ;;  %v2510_v23 = vmax.f32 %v2508_v62, %v2509_v51  ;;  %v1031_v2 = vrot.slane %v15817_v29, %v15637_v46 }
 0x1d0   :  { %v2504_v16 = vrot.slane %v2503_v10, 2  ;;  %v2517_v5 = vmax.f32 %v2515_v30, %v2516_v33  ;;  %v1038_v58 = vrot.slane %v1024_v61, %v15637_v46  ;;  %v990_v48 = vcombine.high %v15852_v26, %v15852_v26 }
 0x1d1   :  { %5619 = vst.msk [vmem:[#allocation2 + $0x58] sm:$0xf] %vm19359_vm0, %v5586_v12  ;;  %v2498_v15 = vmax.f32 %v2496_v22, %v2497_v8  ;;  %v2511_v6 = vrot.slane %v2510_v23, 2  ;;  %v1039_v11 = vcombine.high %v1031_v2, %v1031_v2  ;;  %v2578_v21 = vsel %vm19361_vm1, %v1031_v2, -inf }
 0x1d2   :  { %v2505_v25 = vmax.f32 %v2503_v10, %v2504_v16  ;;  %v2518_v13 = vrot.slane %v2517_v5, 2  ;;  %v1040_v52 = vcombine.high %v1038_v58, %v1038_v58  ;;  %v2579_v29 = vrot.slane %v2578_v21, 4 }
 0x1d3   :  { %v2499_v17 = vrot.slane %v2498_v15, 1  ;;  %v2512_v19 = vmax.f32 %v2510_v23, %v2511_v6  ;;  %v2585_v24 = vsel %vm19361_vm1, %v1039_v11, -inf  ;;  %v2592_v55 = vsel %vm19361_vm1, %v1038_v58, -inf }
 0x1d4   :  { %v2506_v53 = vrot.slane %v2505_v25, 1  ;;  %v2519_v57 = vmax.f32 %v2517_v5, %v2518_v13  ;;  %v2580_v4 = vmax.f32 %v2578_v21, %v2579_v29  ;;  %v2586_v28 = vrot.slane %v2585_v24, 4 }
 0x1d5   :  { %v2500_v54 = vmax.f32 %v2498_v15, %v2499_v17  ;;  %v2513_v1 = vrot.slane %v2512_v19, 1  ;;  %v2593_v60 = vrot.slane %v2592_v55, 4  ;;  %v2599_v50 = vsel %vm19361_vm1, %v1040_v52, -inf }
 0x1d6   :  { %v2507_v35 = vmax.f32 %v2505_v25, %v2506_v53  ;;  %v2520_v63 = vrot.slane %v2519_v57, 1  ;;  %v2581_v42 = vrot.slane %v2580_v4, 2  ;;  %v2587_v43 = vmax.f32 %v2585_v24, %v2586_v28 }
 0x1d7   :  { %v2514_v47 = vmax.f32 %v2512_v19, %v2513_v1  ;;  %v3935_v32 = vsel %vm19360_vm2, %v2500_v54, -inf  ;;  %v2594_v14 = vmax.f32 %v2592_v55, %v2593_v60  ;;  %v2600_v0 = vrot.slane %v2599_v50, 4 }
 0x1d8   :  { %v2521_v62 = vmax.f32 %v2519_v57, %v2520_v63  ;;  %v3937_v3 = vmax.f32 %v3935_v32, %v16099_v36  ;;  %v3938_v22 = vsel %vm19360_vm2, %v2507_v35, -inf  ;;  %v2582_v51 = vmax.f32 %v2580_v4, %v2581_v42  ;;  %v16164_v35 = vpop.f32.mrb[30].mxu0 }
 0x1d9   :  { %v3940_v30 = vmax.f32 %v3938_v22, %v16104_v59  ;;  %v3941_v44 = vsel %vm19360_vm2, %v2514_v47, -inf  ;;  %v2588_v10 = vrot.slane %v2587_v43, 2  ;;  %v2595_v33 = vrot.slane %v2594_v14, 2 }
 0x1da   :  { %v3943_v61 = vmax.f32 %v3941_v44, %v16107_v31  ;;  %v3944_v12 = vsel %vm19360_vm2, %v2521_v62, -inf  ;;  %v4260_v8 = vadd.f32 %v15979_v39, %v3937_v3  ;;  %v2583_v23 = vrot.slane %v2582_v51, 1 }
 0x1db   :  { %v3946_v2 = vmax.f32 %v3944_v12, %v16121_v9  ;;  %v4261_v36 = vadd.f32 %v15979_v39, %v3940_v30  ;;  %v2589_v16 = vmax.f32 %v2587_v43, %v2588_v10  ;;  %v2596_v5 = vmax.f32 %v2594_v14, %v2595_v33 }
 0x1dc   :  { %v4262_v58 = vadd.f32 %v15979_v39, %v3943_v61  ;;  %v4388_v59 = vmax.f32 %v4260_v8, 0.0  ;;  %v2584_v15 = vmax.f32 %v2582_v51, %v2583_v23  ;;  %v2601_v6 = vmax.f32 %v2599_v50, %v2600_v0 }
 0x1dd   :  { %v4263_v11 = vadd.f32 %v15979_v39, %v3946_v2  ;;  %v4389_v21 = vmax.f32 %v4261_v36, 0.0  ;;  %v2590_v31 = vrot.slane %v2589_v16, 1  ;;  %v2597_v25 = vrot.slane %v2596_v5, 1 }
 0x1de   :  { %v4390_v13 = vmax.f32 %v4262_v58, 0.0  ;;  %v14607_v52 = vpack.c.bf16 %v4388_v59, %v4388_v59  ;;  %v2602_v29 = vrot.slane %v2601_v6, 2  ;;  %v16154_v17 = vsel %vm19360_vm2, %v2584_v15, -inf }
 0x1df   :  { %v4391_v9 = vmax.f32 %v4263_v11, 0.0  ;;  %v14608_v19 = vpack.c.bf16 %v4389_v21, %v4389_v21  ;;  %v2591_v24 = vmax.f32 %v2589_v16, %v2590_v31  ;;  %v2598_v55 = vmax.f32 %v2596_v5, %v2597_v25 }
 0x1e0   :  { %v14609_v53 = vpack.c.bf16 %v4390_v13, %v4390_v13  ;;  %v5256_v57 = vunpack.c.l.b16 %v14607_v52  ;;  %v2603_v4 = vmax.f32 %v2601_v6, %v2602_v29  ;;  %v997_v28 = vrot.slane %v15852_v26, %v15637_v46  ;;  %v16187_v6 = vpop.f32.mrb[31].mxu0 }
 0x1e1   :  { %v14610_v54 = vpack.c.bf16 %v4391_v9, %v4391_v9  ;;  %v5257_v1 = vunpack.c.l.b16 %v14608_v19  ;;  %v16159_v60 = vsel %vm19360_vm2, %v2591_v24, -inf  ;;  %v16162_v50 = vsel %vm19360_vm2, %v2598_v55, -inf }
 0x1e2   :  { %v5258_v63 = vunpack.c.l.b16 %v14609_v53  ;;  %v2604_v42 = vrot.slane %v2603_v4, 1  ;;  %v1004_v43 = vrot.slane %v990_v48, %v15637_v46  ;;  %v1005_v47 = vcombine.high %v997_v28, %v997_v28 }
 0x1e3   :  { %v5259_v32 = vunpack.c.l.b16 %v14610_v54  ;;  %v5415_v14 = vrot.slane %v5257_v1, 7  ;;  %v2522_v0 = vsel %vm19361_vm1, %v997_v28, -inf  ;;  %v1075_v62 = vcombine.high %v15893_v7, %v15893_v7 }
 0x1e4   :  { %v5417_v3 = vrot.slane %v5258_v63, 6  ;;  %v2605_v22 = vmax.f32 %v2603_v4, %v2604_v42  ;;  %v1006_v51 = vcombine.high %v1004_v43, %v1004_v43  ;;  %v2523_v30 = vrot.slane %v2522_v0, 4 }
 0x1e5   :  { %v5416_v44 = vsel %vm5353_vm3, %v5415_v14, %v5256_v57  ;;  %v5419_v10 = vrot.slane %v5259_v32, 5  ;;  %v2529_v33 = vsel %vm19361_vm1, %v1005_v47, -inf  ;;  %v2536_v26 = vsel %vm19361_vm1, %v1004_v43, -inf }
 0x1e6   :  { %v5418_v48 = vsel %vm19364_vm4, %v5417_v3, %v5416_v44  ;;  %v16178_v61 = vsel %vm19360_vm2, %v2605_v22, -inf  ;;  %v2524_v12 = vmax.f32 %v2522_v0, %v2523_v30  ;;  %v2530_v8 = vrot.slane %v2529_v33, 4 }
 0x1e7   :  { %v2537_v23 = vrot.slane %v2536_v26, 4  ;;  %v2543_v2 = vsel %vm19361_vm1, %v1006_v51, -inf  ;;  %v16182_v36 = vsel %vm19363_vm5, %v5419_v10, %v5418_v48  ;;  %v1082_v16 = vrot.slane %v15893_v7, %v15637_v46 }
 0x1e8   :  { %v2525_v5 = vrot.slane %v2524_v12, 2  ;;  %v2531_v58 = vmax.f32 %v2529_v33, %v2530_v8  ;;  %v2544_v59 = vrot.slane %v2543_v2, 4  ;;  %v1089_v15 = vrot.slane %v1075_v62, %v15637_v46 }
 0x1e9   :  { %v2538_v11 = vmax.f32 %v2536_v26, %v2537_v23  ;;  %v1090_v21 = vcombine.high %v1082_v16, %v1082_v16  ;;  %v2662_v31 = vsel %vm19361_vm1, %v1082_v16, -inf  ;;  %v1041_v25 = vcombine.high %v15908_v27, %v15908_v27 }
 0x1ea   :  { %v2526_v13 = vmax.f32 %v2524_v12, %v2525_v5  ;;  %v2532_v52 = vrot.slane %v2531_v58, 2  ;;  %v2545_v29 = vmax.f32 %v2543_v2, %v2544_v59  ;;  %v1091_v9 = vcombine.high %v1089_v15, %v1089_v15 }
 0x1eb   :  { %v2539_v19 = vrot.slane %v2538_v11, 2  ;;  %v2663_v7 = vrot.slane %v2662_v31, 4  ;;  %v2669_v24 = vsel %vm19361_vm1, %v1090_v21, -inf  ;;  %v2676_v55 = vsel %vm19361_vm1, %v1089_v15, -inf }
 0x1ec   :  { %v2527_v53 = vrot.slane %v2526_v13, 1  ;;  %v2533_v57 = vmax.f32 %v2531_v58, %v2532_v52  ;;  %v2546_v4 = vrot.slane %v2545_v29, 2  ;;  %v2670_v28 = vrot.slane %v2669_v24, 4 }
 0x1ed   :  { %v2540_v54 = vmax.f32 %v2538_v11, %v2539_v19  ;;  %v2664_v1 = vmax.f32 %v2662_v31, %v2663_v7  ;;  %v2677_v63 = vrot.slane %v2676_v55, 4  ;;  %v2683_v42 = vsel %vm19361_vm1, %v1091_v9, -inf }
 0x1ee   :  { %v2528_v43 = vmax.f32 %v2526_v13, %v2527_v53  ;;  %v2534_v47 = vrot.slane %v2533_v57, 1  ;;  %v2547_v32 = vmax.f32 %v2545_v29, %v2546_v4  ;;  %v2671_v14 = vmax.f32 %v2669_v24, %v2670_v28 }
 0x1ef   :  { %v2541_v0 = vrot.slane %v2540_v54, 1  ;;  %v2665_v62 = vrot.slane %v2664_v1, 2  ;;  %v2678_v3 = vmax.f32 %v2676_v55, %v2677_v63  ;;  %v2684_v22 = vrot.slane %v2683_v42, 4 }
 0x1f0   :  { %v2535_v51 = vmax.f32 %v2533_v57, %v2534_v47  ;;  %v2548_v30 = vrot.slane %v2547_v32, 1  ;;  %v3947_v44 = vsel %vm19360_vm2, %v2528_v43, -inf  ;;  %v2672_v10 = vrot.slane %v2671_v14, 2 }
 0x1f1   :  { %v2542_v33 = vmax.f32 %v2540_v54, %v2541_v0  ;;  %v3949_v26 = vmax.f32 %v3947_v44, %v16154_v17  ;;  %v2666_v48 = vmax.f32 %v2664_v1, %v2665_v62  ;;  %v2679_v12 = vrot.slane %v2678_v3, 2 }
 0x1f2   :  { %v2549_v8 = vmax.f32 %v2547_v32, %v2548_v30  ;;  %v3950_v23 = vsel %vm19360_vm2, %v2535_v51, -inf  ;;  %v2673_v2 = vmax.f32 %v2671_v14, %v2672_v10  ;;  %v2685_v16 = vmax.f32 %v2683_v42, %v2684_v22 }
 0x1f3   :  { %v3952_v5 = vmax.f32 %v3950_v23, %v16159_v60  ;;  %v3953_v58 = vsel %vm19360_vm2, %v2542_v33, -inf  ;;  %v4264_v59 = vadd.f32 %v15979_v39, %v3949_v26  ;;  %v2667_v15 = vrot.slane %v2666_v48, 1 }
 0x1f4   :  { %v3955_v11 = vmax.f32 %v3953_v58, %v16162_v50  ;;  %v3956_v21 = vsel %vm19360_vm2, %v2549_v8, -inf  ;;  %v2674_v31 = vrot.slane %v2673_v2, 1  ;;  %v2680_v17 = vmax.f32 %v2678_v3, %v2679_v12 }
 0x1f5   :  { %v3958_v13 = vmax.f32 %v3956_v21, %v16178_v61  ;;  %v4265_v52 = vadd.f32 %v15979_v39, %v3952_v5  ;;  %v4392_v29 = vmax.f32 %v4264_v59, 0.0  ;;  %v2668_v9 = vmax.f32 %v2666_v48, %v2667_v15  ;;  %v16231_v59 = vpop.f32.mrb[32].mxu0 }
 0x1f6   :  { %v4266_v19 = vadd.f32 %v15979_v39, %v3955_v11  ;;  %v2675_v60 = vmax.f32 %v2673_v2, %v2674_v31  ;;  %v2681_v7 = vrot.slane %v2680_v17, 1  ;;  %v2686_v24 = vrot.slane %v2685_v16, 2 }
 0x1f7   :  { %v4267_v55 = vadd.f32 %v15979_v39, %v3958_v13  ;;  %v4393_v53 = vmax.f32 %v4265_v52, 0.0  ;;  %v14611_v57 = vpack.c.bf16 %v4392_v29, %v4392_v29  ;;  %v16208_v50 = vsel %vm19360_vm2, %v2668_v9, -inf  ;;  %v16238_v29 = vpop.f32.mrb[33].mxu0 }
 0x1f8   :  { %v4394_v4 = vmax.f32 %v4266_v19, 0.0  ;;  %v2682_v28 = vmax.f32 %v2680_v17, %v2681_v7  ;;  %v2687_v54 = vmax.f32 %v2685_v16, %v2686_v24  ;;  %v16211_v61 = vsel %vm19360_vm2, %v2675_v60, -inf }
 0x1f9   :  { %v4395_v1 = vmax.f32 %v4267_v55, 0.0  ;;  %v14612_v63 = vpack.c.bf16 %v4393_v53, %v4393_v53  ;;  %v5260_v42 = vunpack.c.l.b16 %v14611_v57  ;;  %v1048_v43 = vrot.slane %v15908_v27, %v15637_v46 }
 0x1fa   :  { %v14613_v47 = vpack.c.bf16 %v4394_v4, %v4394_v4  ;;  %v2688_v32 = vrot.slane %v2687_v54, 1  ;;  %v16216_v39 = vsel %vm19360_vm2, %v2682_v28, -inf  ;;  %v1055_v14 = vrot.slane %v1041_v25, %v15637_v46 }
 0x1fb   :  { %v14614_v0 = vpack.c.bf16 %v4395_v1, %v4395_v1  ;;  %v5261_v62 = vunpack.c.l.b16 %v14612_v63  ;;  %v5421_v3 = vrot.slane %v5260_v42, 4  ;;  %v1056_v22 = vcombine.high %v1048_v43, %v1048_v43 }
 0x1fc   :  { %v5262_v51 = vunpack.c.l.b16 %v14613_v47  ;;  %v2689_v30 = vmax.f32 %v2687_v54, %v2688_v32  ;;  %v1057_v44 = vcombine.high %v1055_v14, %v1055_v14  ;;  %v2606_v10 = vsel %vm19361_vm1, %v1048_v43, -inf }
 0x1fd   :  { %v5263_v33 = vunpack.c.l.b16 %v14614_v0  ;;  %v5422_v26 = vsel %vm5362_vm6, %v5421_v3, %v16182_v36  ;;  %v5423_v48 = vrot.slane %v5261_v62, 3  ;;  %v2607_v12 = vrot.slane %v2606_v10, 4 }
 0x1fe   :  { %v5425_v8 = vrot.slane %v5262_v51, 2  ;;  %v16226_v23 = vsel %vm19360_vm2, %v2689_v30, -inf  ;;  %v2613_v27 = vsel %vm19361_vm1, %v1056_v22, -inf  ;;  %v2620_v25 = vsel %vm19361_vm1, %v1055_v14, -inf }
 0x1ff   :  { %v5424_v2 = vsel %vm5365_vm7, %v5423_v48, %v5422_v26  ;;  %v5427_v16 = vrot.slane %v5263_v33, 1  ;;  %v2608_v5 = vmax.f32 %v2606_v10, %v2607_v12  ;;  %v2614_v58 = vrot.slane %v2613_v27, 4 }
 0x200   :  { %v5426_v15 = vsel %vm5368_vm8, %v5425_v8, %v5424_v2  ;;  %v2621_v36 = vrot.slane %v2620_v25, 4  ;;  %v2627_v11 = vsel %vm19361_vm1, %v1057_v44, -inf  ;;  %v1092_v21 = vcombine.high %v15933_v56, %v15933_v56 }
 0x201   :  { %v5428_v31 = vsel %vm5371_vm9, %v5427_v16, %v5426_v15  ;;  %v2609_v17 = vrot.slane %v2608_v5, 2  ;;  %v2615_v13 = vmax.f32 %v2613_v27, %v2614_v58  ;;  %v2628_v52 = vrot.slane %v2627_v11, 4 }
 0x202   :  { %v5587_v9 = vpack.c.b16 %v5428_v31, %v5428_v31  ;;  %v2622_v19 = vmax.f32 %v2620_v25, %v2621_v36  ;;  %v1099_v60 = vrot.slane %v15933_v56, %v15637_v46  ;;  %v1106_v7 = vrot.slane %v1092_v21, %v15637_v46  ;;  %v16258_v31 = vld [vmem:[%s19350_s3] ss:$0 sm:$0xff] }
 0x203   :  { %v2610_v24 = vmax.f32 %v2608_v5, %v2609_v17  ;;  %v2616_v55 = vrot.slane %v2615_v13, 2  ;;  %v2629_v53 = vmax.f32 %v2627_v11, %v2628_v52  ;;  %v1058_v57 = vcombine.high %v15965_v41, %v15965_v41 }
 0x204   :  { %5620 = vst.msk [vmem:[#allocation2 + $0x6c] sm:$0xf] %vm19359_vm0, %v5587_v9  ;;  %v2623_v4 = vrot.slane %v2622_v19, 2  ;;  %v1107_v28 = vcombine.high %v1099_v60, %v1099_v60  ;;  %v1108_v54 = vcombine.high %v1106_v7, %v1106_v7  ;;  %v2690_v1 = vsel %vm19361_vm1, %v1099_v60, -inf }
 0x205   :  { %v2611_v63 = vrot.slane %v2610_v24, 1  ;;  %v2617_v42 = vmax.f32 %v2615_v13, %v2616_v55  ;;  %v2630_v43 = vrot.slane %v2629_v53, 2  ;;  %v2691_v47 = vrot.slane %v2690_v1, 4 }
 0x206   :  { %v2624_v56 = vmax.f32 %v2622_v19, %v2623_v4  ;;  %v2697_v32 = vsel %vm19361_vm1, %v1107_v28, -inf  ;;  %v2704_v14 = vsel %vm19361_vm1, %v1106_v7, -inf  ;;  %v2711_v0 = vsel %vm19361_vm1, %v1108_v54, -inf }
 0x207   :  { %v2612_v62 = vmax.f32 %v2610_v24, %v2611_v63  ;;  %v2618_v3 = vrot.slane %v2617_v42, 1  ;;  %v2631_v22 = vmax.f32 %v2629_v53, %v2630_v43  ;;  %v2692_v51 = vmax.f32 %v2690_v1, %v2691_v47 }
 0x208   :  { %v2625_v30 = vrot.slane %v2624_v56, 1  ;;  %v2698_v44 = vrot.slane %v2697_v32, 4  ;;  %v2705_v10 = vrot.slane %v2704_v14, 4  ;;  %v2712_v33 = vrot.slane %v2711_v0, 4 }
 0x209   :  { %v2619_v26 = vmax.f32 %v2617_v42, %v2618_v3  ;;  %v2632_v48 = vrot.slane %v2631_v22, 1  ;;  %v3959_v12 = vsel %vm19360_vm2, %v2612_v62, -inf  ;;  %v2693_v8 = vrot.slane %v2692_v51, 2 }
 0x20a   :  { %v2626_v27 = vmax.f32 %v2624_v56, %v2625_v30  ;;  %v3961_v25 = vmax.f32 %v3959_v12, %v16208_v50  ;;  %v2699_v2 = vmax.f32 %v2697_v32, %v2698_v44  ;;  %v2706_v16 = vmax.f32 %v2704_v14, %v2705_v10  ;;  %v16272_v30 = vpop.f32.mrb[34].mxu0 }
 0x20b   :  { %v2633_v5 = vmax.f32 %v2631_v22, %v2632_v48  ;;  %v3962_v58 = vsel %vm19360_vm2, %v2619_v26, -inf  ;;  %v2694_v15 = vmax.f32 %v2692_v51, %v2693_v8  ;;  %v2713_v36 = vmax.f32 %v2711_v0, %v2712_v33 }
 0x20c   :  { %v3964_v11 = vmax.f32 %v3962_v58, %v16211_v61  ;;  %v3965_v21 = vsel %vm19360_vm2, %v2626_v27, -inf  ;;  %v4268_v17 = vadd.f32 %v16258_v31, %v3961_v25  ;;  %v2700_v13 = vrot.slane %v2699_v2, 2 }
 0x20d   :  { %v3967_v50 = vmax.f32 %v3965_v21, %v16216_v39  ;;  %v3968_v52 = vsel %vm19360_vm2, %v2633_v5, -inf  ;;  %v2695_v9 = vrot.slane %v2694_v15, 1  ;;  %v2707_v19 = vrot.slane %v2706_v16, 2 }
 0x20e   :  { %v3970_v60 = vmax.f32 %v3968_v52, %v16226_v23  ;;  %v4269_v61 = vadd.f32 %v16258_v31, %v3964_v11  ;;  %v4396_v7 = vmax.f32 %v4268_v17, 0.0  ;;  %v2701_v24 = vmax.f32 %v2699_v2, %v2700_v13 }
 0x20f   :  { %v4270_v55 = vadd.f32 %v16258_v31, %v3967_v50  ;;  %v2696_v53 = vmax.f32 %v2694_v15, %v2695_v9  ;;  %v2708_v4 = vmax.f32 %v2706_v16, %v2707_v19  ;;  %v2714_v28 = vrot.slane %v2713_v36, 2 }
 0x210   :  { %v4271_v54 = vadd.f32 %v16258_v31, %v3970_v60  ;;  %v4397_v1 = vmax.f32 %v4269_v61, 0.0  ;;  %v14615_v63 = vpack.c.bf16 %v4396_v7, %v4396_v7  ;;  %v2702_v39 = vrot.slane %v2701_v24, 1 }
 0x211   :  { %v4398_v42 = vmax.f32 %v4270_v55, 0.0  ;;  %v2709_v43 = vrot.slane %v2708_v4, 1  ;;  %v2715_v47 = vmax.f32 %v2713_v36, %v2714_v28  ;;  %v16268_v56 = vsel %vm19360_vm2, %v2696_v53, -inf }
 0x212   :  { %v4399_v23 = vmax.f32 %v4271_v54, 0.0  ;;  %v14616_v32 = vpack.c.bf16 %v4397_v1, %v4397_v1  ;;  %v5264_v14 = vunpack.c.l.b16 %v14615_v63  ;;  %v2703_v0 = vmax.f32 %v2701_v24, %v2702_v39 }
 0x213   :  { %v14617_v62 = vpack.c.bf16 %v4398_v42, %v4398_v42  ;;  %v2710_v3 = vmax.f32 %v2708_v4, %v2709_v43  ;;  %v2716_v22 = vrot.slane %v2715_v47, 1  ;;  %v1065_v51 = vrot.slane %v15965_v41, %v15637_v46 }
 0x214   :  { %v14618_v44 = vpack.c.bf16 %v4399_v23, %v4399_v23  ;;  %v5265_v10 = vunpack.c.l.b16 %v14616_v32  ;;  %v16275_v33 = vsel %vm19360_vm2, %v2703_v0, -inf  ;;  %v1072_v26 = vrot.slane %v1058_v57, %v15637_v46 }
 0x215   :  { %v5266_v48 = vunpack.c.l.b16 %v14617_v62  ;;  %v2717_v12 = vmax.f32 %v2715_v47, %v2716_v22  ;;  %v16282_v8 = vsel %vm19360_vm2, %v2710_v3, -inf  ;;  %v1073_v27 = vcombine.high %v1065_v51, %v1065_v51 }
 0x216   :  { %v5267_v25 = vunpack.c.l.b16 %v14618_v44  ;;  %v5429_v2 = vrot.slane %v5265_v10, 7  ;;  %v1074_v16 = vcombine.high %v1072_v26, %v1072_v26  ;;  %v2634_v5 = vsel %vm19361_vm1, %v1065_v51, -inf }
 0x217   :  { %v5431_v58 = vrot.slane %v5266_v48, 6  ;;  %v16286_v15 = vsel %vm19360_vm2, %v2717_v12, -inf  ;;  %v2635_v36 = vrot.slane %v2634_v5, 4  ;;  %v2641_v11 = vsel %vm19361_vm1, %v1073_v27, -inf }
 0x218   :  { %v5430_v41 = vsel %vm5353_vm3, %v5429_v2, %v5264_v14  ;;  %v5433_v57 = vrot.slane %v5267_v25, 5  ;;  %v2642_v21 = vrot.slane %v2641_v11, 4  ;;  %v2648_v17 = vsel %vm19361_vm1, %v1072_v26, -inf }
 0x219   :  { %v5432_v13 = vsel %vm19364_vm4, %v5431_v58, %v5430_v41  ;;  %v2636_v50 = vmax.f32 %v2634_v5, %v2635_v36  ;;  %v2649_v52 = vrot.slane %v2648_v17, 4  ;;  %v2655_v9 = vsel %vm19361_vm1, %v1074_v16, -inf }
 0x21a   :  { %v2643_v19 = vmax.f32 %v2641_v11, %v2642_v21  ;;  %v2656_v60 = vrot.slane %v2655_v9, 4  ;;  %v16294_v61 = vsel %vm19363_vm5, %v5433_v57, %v5432_v13  ;;  %v1143_v7 = vcombine.high %v16011_v38, %v16011_v38 }
 0x21b   :  { %v2637_v24 = vrot.slane %v2636_v50, 2  ;;  %v2650_v55 = vmax.f32 %v2648_v17, %v2649_v52  ;;  %v1150_v53 = vrot.slane %v16011_v38, %v15637_v46  ;;  %v1109_v4 = vcombine.high %v16027_v18, %v16027_v18 }
 0x21c   :  { %v2644_v28 = vrot.slane %v2643_v19, 2  ;;  %v2657_v54 = vmax.f32 %v2655_v9, %v2656_v60  ;;  %v1157_v1 = vrot.slane %v1143_v7, %v15637_v46  ;;  %v16305_v63 = vrot.slane %v16027_v18, %v15637_v46 }
 0x21d   :  { %v2638_v39 = vmax.f32 %v2636_v50, %v2637_v24  ;;  %v2651_v42 = vrot.slane %v2650_v55, 2  ;;  %v1158_v43 = vcombine.high %v1150_v53, %v1150_v53  ;;  %v2774_v47 = vsel %vm19361_vm1, %v1150_v53, -inf }
 0x21e   :  { %v2645_v23 = vmax.f32 %v2643_v19, %v2644_v28  ;;  %v2658_v32 = vrot.slane %v2657_v54, 2  ;;  %v1159_v14 = vcombine.high %v1157_v1, %v1157_v1  ;;  %v2775_v38 = vrot.slane %v2774_v47, 4 }
 0x21f   :  { %v2639_v0 = vrot.slane %v2638_v39, 1  ;;  %v2652_v62 = vmax.f32 %v2650_v55, %v2651_v42  ;;  %v2781_v3 = vsel %vm19361_vm1, %v1158_v43, -inf  ;;  %v2788_v22 = vsel %vm19361_vm1, %v1157_v1, -inf }
 0x220   :  { %v2646_v51 = vrot.slane %v2645_v23, 1  ;;  %v2659_v44 = vmax.f32 %v2657_v54, %v2658_v32  ;;  %v2776_v10 = vmax.f32 %v2774_v47, %v2775_v38  ;;  %v2782_v26 = vrot.slane %v2781_v3, 4 }
 0x221   :  { %v2640_v48 = vmax.f32 %v2638_v39, %v2639_v0  ;;  %v2653_v12 = vrot.slane %v2652_v62, 1  ;;  %v2789_v27 = vrot.slane %v2788_v22, 4  ;;  %v2795_v25 = vsel %vm19361_vm1, %v1159_v14, -inf }
 0x222   :  { %v2647_v2 = vmax.f32 %v2645_v23, %v2646_v51  ;;  %v2660_v16 = vrot.slane %v2659_v44, 1  ;;  %v2777_v5 = vrot.slane %v2776_v10, 2  ;;  %v2783_v58 = vmax.f32 %v2781_v3, %v2782_v26 }
 0x223   :  { %v2654_v36 = vmax.f32 %v2652_v62, %v2653_v12  ;;  %v3971_v11 = vsel %vm19360_vm2, %v2640_v48, -inf  ;;  %v2790_v41 = vmax.f32 %v2788_v22, %v2789_v27  ;;  %v2796_v57 = vrot.slane %v2795_v25, 4 }
 0x224   :  { %v2661_v21 = vmax.f32 %v2659_v44, %v2660_v16  ;;  %v3973_v17 = vmax.f32 %v3971_v11, %v16268_v56  ;;  %v3974_v13 = vsel %vm19360_vm2, %v2647_v2, -inf  ;;  %v2778_v50 = vmax.f32 %v2776_v10, %v2777_v5 }
 0x225   :  { %v3976_v52 = vmax.f32 %v3974_v13, %v16275_v33  ;;  %v3977_v9 = vsel %vm19360_vm2, %v2654_v36, -inf  ;;  %v2784_v19 = vrot.slane %v2783_v58, 2  ;;  %v2791_v60 = vrot.slane %v2790_v41, 2 }
 0x226   :  { %v3979_v7 = vmax.f32 %v3977_v9, %v16282_v8  ;;  %v3980_v24 = vsel %vm19360_vm2, %v2661_v21, -inf  ;;  %v4272_v55 = vadd.f32 %v16258_v31, %v3973_v17  ;;  %v2779_v53 = vrot.slane %v2778_v50, 1 }
 0x227   :  { %v3982_v28 = vmax.f32 %v3980_v24, %v16286_v15  ;;  %v4273_v56 = vadd.f32 %v16258_v31, %v3976_v52  ;;  %v2785_v54 = vmax.f32 %v2783_v58, %v2784_v19  ;;  %v2792_v1 = vmax.f32 %v2790_v41, %v2791_v60 }
 0x228   :  { %v4274_v39 = vadd.f32 %v16258_v31, %v3979_v7  ;;  %v4400_v33 = vmax.f32 %v4272_v55, 0.0  ;;  %v2780_v42 = vmax.f32 %v2778_v50, %v2779_v53  ;;  %v2797_v43 = vmax.f32 %v2795_v25, %v2796_v57 }
 0x229   :  { %v4275_v47 = vadd.f32 %v16258_v31, %v3982_v28  ;;  %v4401_v23 = vmax.f32 %v4273_v56, 0.0  ;;  %v2786_v8 = vrot.slane %v2785_v54, 1  ;;  %v2793_v32 = vrot.slane %v2792_v1, 1 }
 0x22a   :  { %v4402_v14 = vmax.f32 %v4274_v39, 0.0  ;;  %v14619_v38 = vpack.c.bf16 %v4400_v33, %v4400_v33  ;;  %v2798_v0 = vrot.slane %v2797_v43, 2  ;;  %v16324_v62 = vsel %vm19360_vm2, %v2780_v42, -inf }
 0x22b   :  { %v4403_v15 = vmax.f32 %v4275_v47, 0.0  ;;  %v14620_v3 = vpack.c.bf16 %v4401_v23, %v4401_v23  ;;  %v2787_v22 = vmax.f32 %v2785_v54, %v2786_v8  ;;  %v2794_v51 = vmax.f32 %v2792_v1, %v2793_v32 }
 0x22c   :  { %v14621_v44 = vpack.c.bf16 %v4402_v14, %v4402_v14  ;;  %v5268_v10 = vunpack.c.l.b16 %v14619_v38  ;;  %v2799_v26 = vmax.f32 %v2797_v43, %v2798_v0  ;;  %v1123_v48 = vrot.slane %v1109_v4, %v15637_v46 }
 0x22d   :  { %v14622_v12 = vpack.c.bf16 %v4403_v15, %v4403_v15  ;;  %v5269_v27 = vunpack.c.l.b16 %v14620_v3  ;;  %v16331_v25 = vsel %vm19360_vm2, %v2787_v22, -inf  ;;  %v16334_v2 = vsel %vm19360_vm2, %v2794_v51, -inf }
 0x22e   :  { %v5270_v16 = vunpack.c.l.b16 %v14621_v44  ;;  %v5435_v5 = vrot.slane %v5268_v10, 4  ;;  %v2800_v58 = vrot.slane %v2799_v26, 1  ;;  %v1124_v36 = vcombine.high %v16305_v63, %v16305_v63 }
 0x22f   :  { %v5271_v11 = vunpack.c.l.b16 %v14622_v12  ;;  %v5437_v41 = vrot.slane %v5269_v27, 3  ;;  %v1125_v57 = vcombine.high %v1123_v48, %v1123_v48  ;;  %v2718_v18 = vsel %vm19361_vm1, %v16305_v63, -inf }
 0x230   :  { %v5436_v4 = vsel %vm5362_vm6, %v5435_v5, %v16294_v61  ;;  %v5439_v21 = vrot.slane %v5270_v16, 2  ;;  %v2801_v17 = vmax.f32 %v2799_v26, %v2800_v58  ;;  %v2719_v13 = vrot.slane %v2718_v18, 4 }
 0x231   :  { %v5438_v50 = vsel %vm5365_vm7, %v5437_v41, %v5436_v4  ;;  %v5441_v52 = vrot.slane %v5271_v11, 1  ;;  %v2725_v9 = vsel %vm19361_vm1, %v1124_v36, -inf  ;;  %v2732_v19 = vsel %vm19361_vm1, %v1123_v48, -inf }
 0x232   :  { %v5440_v60 = vsel %vm5368_vm8, %v5439_v21, %v5438_v50  ;;  %v16347_v7 = vsel %vm19360_vm2, %v2801_v17, -inf  ;;  %v2720_v24 = vmax.f32 %v2718_v18, %v2719_v13  ;;  %v2726_v63 = vrot.slane %v2725_v9, 4 }
 0x233   :  { %v5442_v55 = vsel %vm5371_vm9, %v5441_v52, %v5440_v60  ;;  %v2733_v61 = vrot.slane %v2732_v19, 4  ;;  %v2739_v53 = vsel %vm19361_vm1, %v1125_v57, -inf  ;;  %v1160_v28 = vcombine.high %v16049_v37, %v16049_v37 }
 0x234   :  { %v5588_v56 = vpack.c.b16 %v5442_v55, %v5442_v55  ;;  %v2721_v54 = vrot.slane %v2720_v24, 2  ;;  %v2727_v1 = vmax.f32 %v2725_v9, %v2726_v63  ;;  %v2740_v39 = vrot.slane %v2739_v53, 4 }
 0x235   :  { %v2734_v33 = vmax.f32 %v2732_v19, %v2733_v61  ;;  %v1167_v42 = vrot.slane %v16049_v37, %v15637_v46  ;;  %v1174_v43 = vrot.slane %v1160_v28, %v15637_v46  ;;  %v1126_v47 = vcombine.high %v16081_v34, %v16081_v34 }
 0x236   :  { %5621 = vst.msk [vmem:[#allocation2 + $0x80] sm:$0xf] %vm19359_vm0, %v5588_v56  ;;  %v2722_v23 = vmax.f32 %v2720_v24, %v2721_v54  ;;  %v2728_v8 = vrot.slane %v2727_v1, 2  ;;  %v2741_v32 = vmax.f32 %v2739_v53, %v2740_v39  ;;  %v16361_v14 = vrot.slane %v16081_v34, %v15637_v46  ;;  %v16373_v56 = vpop.f32.mrb[35].mxu0 }
 0x237   :  { %v2735_v38 = vrot.slane %v2734_v33, 2  ;;  %v1175_v0 = vcombine.high %v1167_v42, %v1167_v42  ;;  %v1176_v15 = vcombine.high %v1174_v43, %v1174_v43  ;;  %v2802_v3 = vsel %vm19361_vm1, %v1167_v42, -inf }
 0x238   :  { %v2723_v37 = vrot.slane %v2722_v23, 1  ;;  %v2729_v22 = vmax.f32 %v2727_v1, %v2728_v8  ;;  %v2742_v51 = vrot.slane %v2741_v32, 2  ;;  %v2803_v44 = vrot.slane %v2802_v3, 4 }
 0x239   :  { %v2736_v10 = vmax.f32 %v2734_v33, %v2735_v38  ;;  %v2809_v26 = vsel %vm19361_vm1, %v1175_v0, -inf  ;;  %v2816_v48 = vsel %vm19361_vm1, %v1174_v43, -inf  ;;  %v2823_v12 = vsel %vm19361_vm1, %v1176_v15, -inf }
 0x23a   :  { %v2724_v27 = vmax.f32 %v2722_v23, %v2723_v37  ;;  %v2730_v16 = vrot.slane %v2729_v22, 1  ;;  %v2743_v5 = vmax.f32 %v2741_v32, %v2742_v51  ;;  %v2804_v58 = vmax.f32 %v2802_v3, %v2803_v44 }
 0x23b   :  { %v2737_v36 = vrot.slane %v2736_v10, 1  ;;  %v2810_v11 = vrot.slane %v2809_v26, 4  ;;  %v2817_v41 = vrot.slane %v2816_v48, 4  ;;  %v2824_v57 = vrot.slane %v2823_v12, 4 }
 0x23c   :  { %v2731_v18 = vmax.f32 %v2729_v22, %v2730_v16  ;;  %v2744_v4 = vrot.slane %v2743_v5, 1  ;;  %v3983_v21 = vsel %vm19360_vm2, %v2724_v27, -inf  ;;  %v2805_v17 = vrot.slane %v2804_v58, 2 }
 0x23d   :  { %v2738_v13 = vmax.f32 %v2736_v10, %v2737_v36  ;;  %v3985_v50 = vmax.f32 %v3983_v21, %v16324_v62  ;;  %v2811_v52 = vmax.f32 %v2809_v26, %v2810_v11  ;;  %v2818_v9 = vmax.f32 %v2816_v48, %v2817_v41 }
 0x23e   :  { %v2745_v19 = vmax.f32 %v2743_v5, %v2744_v4  ;;  %v3986_v60 = vsel %vm19360_vm2, %v2731_v18, -inf  ;;  %v2806_v24 = vmax.f32 %v2804_v58, %v2805_v17  ;;  %v2825_v63 = vmax.f32 %v2823_v12, %v2824_v57  ;;  %v15247_v57 = vld [vmem:[%s19349_s2 + $0x100] sm:$0xff]  }
 0x23f   :  { %v3988_v55 = vmax.f32 %v3986_v60, %v16331_v25  ;;  %v3989_v61 = vsel %vm19360_vm2, %v2738_v13, -inf  ;;  %v4276_v53 = vadd.f32 %v16258_v31, %v3985_v50  ;;  %v2812_v28 = vrot.slane %v2811_v52, 2  ;;  %15126 = vmatprep.subr.bf16.mxu0 %v15247_v57 }
 0x240   :  { %v3991_v54 = vmax.f32 %v3989_v61, %v16334_v2  ;;  %v3992_v62 = vsel %vm19360_vm2, %v2745_v19, -inf  ;;  %v2807_v1 = vrot.slane %v2806_v24, 1  ;;  %v2819_v39 = vrot.slane %v2818_v9, 2  ;;  %15127 = vmatpush3.bf16.msra.mxu0 %v15247_v57 }
 0x241   :  { %v3994_v33 = vmax.f32 %v3992_v62, %v16347_v7  ;;  %v4277_v42 = vadd.f32 %v16258_v31, %v3988_v55  ;;  %v4404_v43 = vmax.f32 %v4276_v53, 0.0  ;;  %v2813_v23 = vmax.f32 %v2811_v52, %v2812_v28 }
 0x242   :  { %v4278_v25 = vadd.f32 %v16258_v31, %v3991_v54  ;;  %v2808_v8 = vmax.f32 %v2806_v24, %v2807_v1  ;;  %v2820_v32 = vmax.f32 %v2818_v9, %v2819_v39  ;;  %v2826_v38 = vrot.slane %v2825_v63, 2 }
 0x243   :  { %v4279_v0 = vadd.f32 %v16258_v31, %v3994_v33  ;;  %v4405_v15 = vmax.f32 %v4277_v42, 0.0  ;;  %v14623_v3 = vpack.c.bf16 %v4404_v43, %v4404_v43  ;;  %v2814_v2 = vrot.slane %v2813_v23, 1  ;;  %v16419_v43 = vpop.f32.mrb[36].mxu0 }
 0x244   :  { %v4406_v37 = vmax.f32 %v4278_v25, 0.0  ;;  %v2821_v22 = vrot.slane %v2820_v32, 1  ;;  %v2827_v51 = vmax.f32 %v2825_v63, %v2826_v38  ;;  %v16382_v44 = vsel %vm19360_vm2, %v2808_v8, -inf  ;;  %v16423_v38 = vpop.f32.mrb[37].mxu0 }
 0x245   :  { %v4407_v7 = vmax.f32 %v4279_v0, 0.0  ;;  %v14624_v10 = vpack.c.bf16 %v4405_v15, %v4405_v15  ;;  %v5272_v26 = vunpack.c.l.b16 %v14623_v3  ;;  %v2815_v48 = vmax.f32 %v2813_v23, %v2814_v2 }
 0x246   :  { %v14625_v12 = vpack.c.bf16 %v4406_v37, %v4406_v37  ;;  %v2822_v27 = vmax.f32 %v2820_v32, %v2821_v22  ;;  %v2828_v16 = vrot.slane %v2827_v51, 1  ;;  %v1140_v5 = vrot.slane %v1126_v47, %v15637_v46  ;;  %v16427_v37 = vpop.f32.mrb[38].mxu0 }
 0x247   :  { %v14626_v58 = vpack.c.bf16 %v4407_v7, %v4407_v7  ;;  %v5273_v36 = vunpack.c.l.b16 %v14624_v10  ;;  %v16389_v11 = vsel %vm19360_vm2, %v2815_v48, -inf  ;;  %v1141_v41 = vcombine.high %v16361_v14, %v16361_v14 }
 0x248   :  { %v5274_v18 = vunpack.c.l.b16 %v14625_v12  ;;  %v2829_v4 = vmax.f32 %v2827_v51, %v2828_v16  ;;  %v16397_v21 = vsel %vm19360_vm2, %v2822_v27, -inf  ;;  %v1142_v17 = vcombine.high %v1140_v5, %v1140_v5 }
 0x249   :  { %v5275_v34 = vunpack.c.l.b16 %v14626_v58  ;;  %v5443_v47 = vrot.slane %v5273_v36, 7  ;;  %v2746_v13 = vsel %vm19361_vm1, %v16361_v14, -inf  ;;  %v2753_v50 = vsel %vm19361_vm1, %v1141_v41, -inf  ;;  %v15249_v14 = vld [vmem:[%s19349_s2 + $0x108] sm:$0xff]  }
 0x24a   :  { %v5445_v52 = vrot.slane %v5274_v18, 6  ;;  %v16403_v9 = vsel %vm19360_vm2, %v2829_v4, -inf  ;;  %v2747_v19 = vrot.slane %v2746_v13, 4  ;;  %v2754_v60 = vrot.slane %v2753_v50, 4  ;;  %15128 = vmatprep.subr.bf16.mxu0 %v15249_v14 }
 0x24b   :  { %v5444_v24 = vsel %vm5353_vm3, %v5443_v47, %v5272_v26  ;;  %v5447_v63 = vrot.slane %v5275_v34, 5  ;;  %v2760_v55 = vsel %vm19361_vm1, %v1140_v5, -inf  ;;  %v2767_v61 = vsel %vm19361_vm1, %v1142_v17, -inf  ;;  %15129 = vmatpush3.bf16.msra.mxu0 %v15249_v14 }
 0x24c   :  { %v5446_v53 = vsel %vm19364_vm4, %v5445_v52, %v5444_v24  ;;  %v2748_v28 = vmax.f32 %v2746_v13, %v2747_v19  ;;  %v2755_v54 = vmax.f32 %v2753_v50, %v2754_v60  ;;  %v2761_v62 = vrot.slane %v2760_v55, 4 }
 0x24d   :  { %v2768_v1 = vrot.slane %v2767_v61, 4  ;;  %v16413_v39 = vsel %vm19363_vm5, %v5447_v63, %v5446_v53  ;;  %v1211_v33 = vcombine.high %v16117_v20, %v16117_v20  ;;  %v1218_v42 = vrot.slane %v16117_v20, %v15637_v46 }
 0x24e   :  { %v2749_v23 = vrot.slane %v2748_v28, 2  ;;  %v2756_v25 = vrot.slane %v2755_v54, 2  ;;  %v2762_v8 = vmax.f32 %v2760_v55, %v2761_v62  ;;  %v1177_v32 = vcombine.high %v16134_v49, %v16134_v49 }
 0x24f   :  { %v2769_v0 = vmax.f32 %v2767_v61, %v2768_v1  ;;  %v1225_v15 = vrot.slane %v1211_v33, %v15637_v46  ;;  %v1226_v3 = vcombine.high %v1218_v42, %v1218_v42  ;;  %v2886_v2 = vsel %vm19361_vm1, %v1218_v42, -inf }
 0x250   :  { %v2750_v20 = vmax.f32 %v2748_v28, %v2749_v23  ;;  %v2757_v22 = vmax.f32 %v2755_v54, %v2756_v25  ;;  %v2763_v51 = vrot.slane %v2762_v8, 2  ;;  %v2887_v7 = vrot.slane %v2886_v2, 4  ;;  %v16436_v54 = vpop.f32.mrb[39].mxu0 }
 0x251   :  { %v2770_v10 = vrot.slane %v2769_v0, 2  ;;  %v1227_v26 = vcombine.high %v1225_v15, %v1225_v15  ;;  %v2893_v48 = vsel %vm19361_vm1, %v1226_v3, -inf  ;;  %v2900_v12 = vsel %vm19361_vm1, %v1225_v15, -inf }
 0x252   :  { %v2751_v27 = vrot.slane %v2750_v20, 1  ;;  %v2758_v16 = vrot.slane %v2757_v22, 1  ;;  %v2764_v5 = vmax.f32 %v2762_v8, %v2763_v51  ;;  %v2888_v58 = vmax.f32 %v2886_v2, %v2887_v7 }
 0x253   :  { %v2771_v36 = vmax.f32 %v2769_v0, %v2770_v10  ;;  %v2894_v41 = vrot.slane %v2893_v48, 4  ;;  %v2901_v57 = vrot.slane %v2900_v12, 4  ;;  %v2907_v18 = vsel %vm19361_vm1, %v1227_v26, -inf }
 0x254   :  { %v2752_v4 = vmax.f32 %v2750_v20, %v2751_v27  ;;  %v2759_v17 = vmax.f32 %v2757_v22, %v2758_v16  ;;  %v2765_v34 = vrot.slane %v2764_v5, 1  ;;  %v2889_v47 = vrot.slane %v2888_v58, 2 }
 0x255   :  { %v2772_v13 = vrot.slane %v2771_v36, 1  ;;  %v2895_v50 = vmax.f32 %v2893_v48, %v2894_v41  ;;  %v2902_v52 = vmax.f32 %v2900_v12, %v2901_v57  ;;  %v2908_v19 = vrot.slane %v2907_v18, 4 }
 0x256   :  { %v2766_v60 = vmax.f32 %v2764_v5, %v2765_v34  ;;  %v3995_v24 = vsel %vm19360_vm2, %v2752_v4, -inf  ;;  %v3998_v63 = vsel %vm19360_vm2, %v2759_v17, -inf  ;;  %v2890_v55 = vmax.f32 %v2888_v58, %v2889_v47 }
 0x257   :  { %v2773_v61 = vmax.f32 %v2771_v36, %v2772_v13  ;;  %v3997_v14 = vmax.f32 %v3995_v24, %v16382_v44  ;;  %v4000_v53 = vmax.f32 %v3998_v63, %v16389_v11  ;;  %v2896_v28 = vrot.slane %v2895_v50, 2 }
 0x258   :  { %v4001_v62 = vsel %vm19360_vm2, %v2766_v60, -inf  ;;  %v2891_v1 = vrot.slane %v2890_v55, 1  ;;  %v2903_v33 = vrot.slane %v2902_v52, 2  ;;  %v2909_v42 = vmax.f32 %v2907_v18, %v2908_v19 }
 0x259   :  { %v4003_v23 = vmax.f32 %v4001_v62, %v16397_v21  ;;  %v4004_v25 = vsel %vm19360_vm2, %v2773_v61, -inf  ;;  %v4280_v8 = vadd.f32 %v16258_v31, %v3997_v14  ;;  %v4281_v0 = vadd.f32 %v16258_v31, %v4000_v53  ;;  %v15250_v14 = vld [vmem:[%s19349_s2 + $0x110] sm:$0xff]  }
 0x25a   :  { %v4006_v44 = vmax.f32 %v4004_v25, %v16403_v9  ;;  %v2892_v15 = vmax.f32 %v2890_v55, %v2891_v1  ;;  %v2897_v11 = vmax.f32 %v2895_v50, %v2896_v28  ;;  %v2904_v3 = vmax.f32 %v2902_v52, %v2903_v33  ;;  %15130 = vmatprep.subr.bf16.mxu0 %v15250_v14 }
 0x25b   :  { %v4282_v2 = vadd.f32 %v16258_v31, %v4003_v23  ;;  %v4408_v20 = vmax.f32 %v4280_v8, 0.0  ;;  %v4409_v22 = vmax.f32 %v4281_v0, 0.0  ;;  %v2910_v51 = vrot.slane %v2909_v42, 2  ;;  %15131 = vmatpush3.bf16.msra.mxu0 %v15250_v14 }
 0x25c   :  { %v4283_v7 = vadd.f32 %v16258_v31, %v4006_v44  ;;  %v2898_v10 = vrot.slane %v2897_v11, 1  ;;  %v2905_v21 = vrot.slane %v2904_v3, 1  ;;  %v16447_v26 = vsel %vm19360_vm2, %v2892_v15, -inf }
 0x25d   :  { %v4410_v48 = vmax.f32 %v4282_v2, 0.0  ;;  %v14627_v12 = vpack.c.bf16 %v4408_v20, %v4408_v20  ;;  %v14628_v27 = vpack.c.bf16 %v4409_v22, %v4409_v22  ;;  %v2911_v16 = vmax.f32 %v2909_v42, %v2910_v51 }
 0x25e   :  { %v4411_v9 = vmax.f32 %v4283_v7, 0.0  ;;  %v2899_v5 = vmax.f32 %v2897_v11, %v2898_v10  ;;  %v2906_v58 = vmax.f32 %v2904_v3, %v2905_v21  ;;  %v1184_v36 = vrot.slane %v16134_v49, %v15637_v46 }
 0x25f   :  { %v14629_v41 = vpack.c.bf16 %v4410_v48, %v4410_v48  ;;  %v5276_v57 = vunpack.c.l.b16 %v14627_v12  ;;  %v5277_v18 = vunpack.c.l.b16 %v14628_v27  ;;  %v2912_v4 = vrot.slane %v2911_v16, 1  ;;  %v16482_v48 = vpop.f32.mrb[40].mxu0 }
 0x260   :  { %v14630_v17 = vpack.c.bf16 %v4411_v9, %v4411_v9  ;;  %v16452_v34 = vsel %vm19360_vm2, %v2899_v5, -inf  ;;  %v16455_v47 = vsel %vm19360_vm2, %v2906_v58, -inf  ;;  %v1191_v13 = vrot.slane %v1177_v32, %v15637_v46 }
 0x261   :  { %v5278_v50 = vunpack.c.l.b16 %v14629_v41  ;;  %v5449_v52 = vrot.slane %v5276_v57, 4  ;;  %v5451_v19 = vrot.slane %v5277_v18, 3  ;;  %v2913_v60 = vmax.f32 %v2911_v16, %v2912_v4 }
 0x262   :  { %v5279_v24 = vunpack.c.l.b16 %v14630_v17  ;;  %v1192_v63 = vcombine.high %v1184_v36, %v1184_v36  ;;  %v1193_v55 = vcombine.high %v1191_v13, %v1191_v13  ;;  %v2830_v61 = vsel %vm19361_vm1, %v1184_v36, -inf }
 0x263   :  { %v5450_v53 = vsel %vm5362_vm6, %v5449_v52, %v16413_v39  ;;  %v5453_v28 = vrot.slane %v5278_v50, 2  ;;  %v16468_v49 = vsel %vm19360_vm2, %v2913_v60, -inf  ;;  %v2831_v32 = vrot.slane %v2830_v61, 4  ;;  %v16491_v60 = vpop.f32.mrb[41].mxu0 }
 0x264   :  { %v5452_v62 = vsel %vm5365_vm7, %v5451_v19, %v5450_v53  ;;  %v5455_v1 = vrot.slane %v5279_v24, 1  ;;  %v2837_v33 = vsel %vm19361_vm1, %v1192_v63, -inf  ;;  %v2844_v42 = vsel %vm19361_vm1, %v1191_v13, -inf }
 0x265   :  { %v5454_v23 = vsel %vm5368_vm8, %v5453_v28, %v5452_v62  ;;  %v2832_v25 = vmax.f32 %v2830_v61, %v2831_v32  ;;  %v2838_v8 = vrot.slane %v2837_v33, 4  ;;  %v2845_v0 = vrot.slane %v2844_v42, 4 }
 0x266   :  { %v5456_v39 = vsel %vm5371_vm9, %v5455_v1, %v5454_v23  ;;  %v2851_v44 = vsel %vm19361_vm1, %v1193_v55, -inf  ;;  %v1228_v15 = vcombine.high %v16164_v35, %v16164_v35  ;;  %v1235_v11 = vrot.slane %v16164_v35, %v15637_v46  ;;  %v15251_v35 = vld [vmem:[%s19349_s2 + $0x118] sm:$0xff]  }
 0x267   :  { %v5589_v3 = vpack.c.b16 %v5456_v39, %v5456_v39  ;;  %v2833_v2 = vrot.slane %v2832_v25, 2  ;;  %v2839_v20 = vmax.f32 %v2837_v33, %v2838_v8  ;;  %v2846_v22 = vmax.f32 %v2844_v42, %v2845_v0  ;;  %15132 = vmatprep.subr.bf16.mxu0 %v15251_v35 }
 0x268   :  { %v2852_v51 = vrot.slane %v2851_v44, 4  ;;  %v1242_v7 = vrot.slane %v1228_v15, %v15637_v46  ;;  %v1243_v10 = vcombine.high %v1235_v11, %v1235_v11  ;;  %v2914_v21 = vsel %vm19361_vm1, %v1235_v11, -inf  ;;  %15133 = vmatpush3.bf16.msra.mxu0 %v15251_v35 }
 0x269   :  { %5622 = vst.msk [vmem:[#allocation2 + $0x94] sm:$0xf] %vm19359_vm0, %v5589_v3  ;;  %v2834_v12 = vmax.f32 %v2832_v25, %v2833_v2  ;;  %v2840_v27 = vrot.slane %v2839_v20, 2  ;;  %v2847_v16 = vrot.slane %v2846_v22, 2  ;;  %v2915_v9 = vrot.slane %v2914_v21, 4 }
 0x26a   :  { %v2853_v5 = vmax.f32 %v2851_v44, %v2852_v51  ;;  %v1244_v58 = vcombine.high %v1242_v7, %v1242_v7  ;;  %v2921_v36 = vsel %vm19361_vm1, %v1243_v10, -inf  ;;  %v2928_v41 = vsel %vm19361_vm1, %v1242_v7, -inf }
 0x26b   :  { %v2835_v57 = vrot.slane %v2834_v12, 1  ;;  %v2841_v18 = vmax.f32 %v2839_v20, %v2840_v27  ;;  %v2848_v4 = vmax.f32 %v2846_v22, %v2847_v16  ;;  %v2916_v17 = vmax.f32 %v2914_v21, %v2915_v9 }
 0x26c   :  { %v2854_v13 = vrot.slane %v2853_v5, 2  ;;  %v2922_v50 = vrot.slane %v2921_v36, 4  ;;  %v2929_v52 = vrot.slane %v2928_v41, 4  ;;  %v2935_v19 = vsel %vm19361_vm1, %v1244_v58, -inf }
 0x26d   :  { %v2836_v24 = vmax.f32 %v2834_v12, %v2835_v57  ;;  %v2842_v63 = vrot.slane %v2841_v18, 1  ;;  %v2849_v55 = vrot.slane %v2848_v4, 1  ;;  %v2917_v61 = vrot.slane %v2916_v17, 2 }
 0x26e   :  { %v2855_v14 = vmax.f32 %v2853_v5, %v2854_v13  ;;  %v2923_v53 = vmax.f32 %v2921_v36, %v2922_v50  ;;  %v2930_v28 = vmax.f32 %v2928_v41, %v2929_v52  ;;  %v2936_v32 = vrot.slane %v2935_v19, 4 }
 0x26f   :  { %v2843_v62 = vmax.f32 %v2841_v18, %v2842_v63  ;;  %v2850_v1 = vmax.f32 %v2848_v4, %v2849_v55  ;;  %v4007_v33 = vsel %vm19360_vm2, %v2836_v24, -inf  ;;  %v2918_v42 = vmax.f32 %v2916_v17, %v2917_v61 }
 0x270   :  { %v2856_v23 = vrot.slane %v2855_v14, 1  ;;  %v4009_v25 = vmax.f32 %v4007_v33, %v16447_v26  ;;  %v2924_v8 = vrot.slane %v2923_v53, 2  ;;  %v2931_v0 = vrot.slane %v2930_v28, 2 }
 0x271   :  { %v4010_v39 = vsel %vm19360_vm2, %v2843_v62, -inf  ;;  %v4013_v44 = vsel %vm19360_vm2, %v2850_v1, -inf  ;;  %v2919_v15 = vrot.slane %v2918_v42, 1  ;;  %v2937_v11 = vmax.f32 %v2935_v19, %v2936_v32 }
 0x272   :  { %v2857_v3 = vmax.f32 %v2855_v14, %v2856_v23  ;;  %v4012_v2 = vmax.f32 %v4010_v39, %v16452_v34  ;;  %v4015_v20 = vmax.f32 %v4013_v44, %v16455_v47  ;;  %v4284_v22 = vadd.f32 %v16258_v31, %v4009_v25 }
 0x273   :  { %v2920_v51 = vmax.f32 %v2918_v42, %v2919_v15  ;;  %v2925_v7 = vmax.f32 %v2923_v53, %v2924_v8  ;;  %v2932_v10 = vmax.f32 %v2930_v28, %v2931_v0  ;;  %v2938_v21 = vrot.slane %v2937_v11, 2 }
 0x274   :  { %v4016_v26 = vsel %vm19360_vm2, %v2857_v3, -inf  ;;  %v4285_v12 = vadd.f32 %v16258_v31, %v4012_v2  ;;  %v4286_v27 = vadd.f32 %v16258_v31, %v4015_v20  ;;  %v4412_v16 = vmax.f32 %v4284_v22, 0.0 }
 0x275   :  { %v4018_v9 = vmax.f32 %v4016_v26, %v16468_v49  ;;  %v2926_v35 = vrot.slane %v2925_v7, 1  ;;  %v2933_v5 = vrot.slane %v2932_v10, 1  ;;  %v2939_v34 = vmax.f32 %v2937_v11, %v2938_v21 }
 0x276   :  { %v4413_v58 = vmax.f32 %v4285_v12, 0.0  ;;  %v4414_v47 = vmax.f32 %v4286_v27, 0.0  ;;  %v14631_v36 = vpack.c.bf16 %v4412_v16, %v4412_v16  ;;  %v16505_v41 = vsel %vm19360_vm2, %v2920_v51, -inf  ;;  %v16533_v51 = vpop.f32.mrb[42].mxu0 }
 0x277   :  { %v4287_v57 = vadd.f32 %v16258_v31, %v4018_v9  ;;  %v2927_v18 = vmax.f32 %v2925_v7, %v2926_v35  ;;  %v2934_v4 = vmax.f32 %v2932_v10, %v2933_v5  ;;  %v2940_v17 = vrot.slane %v2939_v34, 1 }
 0x278   :  { %v14632_v13 = vpack.c.bf16 %v4413_v58, %v4413_v58  ;;  %v14633_v50 = vpack.c.bf16 %v4414_v47, %v4414_v47  ;;  %v5280_v52 = vunpack.c.l.b16 %v14631_v36  ;;  %v1194_v49 = vcombine.high %v16187_v6, %v16187_v6 }
 0x279   :  { %v4415_v19 = vmax.f32 %v4287_v57, 0.0  ;;  %v2941_v24 = vmax.f32 %v2939_v34, %v2940_v17  ;;  %v16511_v63 = vsel %vm19360_vm2, %v2927_v18, -inf  ;;  %v16514_v55 = vsel %vm19360_vm2, %v2934_v4, -inf }
 0x27a   :  { %v5281_v61 = vunpack.c.l.b16 %v14632_v13  ;;  %v5282_v14 = vunpack.c.l.b16 %v14633_v50  ;;  %v1201_v31 = vrot.slane %v16187_v6, %v15637_v46  ;;  %v1208_v53 = vrot.slane %v1194_v49, %v15637_v46 }
 0x27b   :  { %v14634_v28 = vpack.c.bf16 %v4415_v19, %v4415_v19  ;;  %v16520_v32 = vsel %vm19360_vm2, %v2941_v24, -inf  ;;  %v1279_v62 = vcombine.high %v16231_v59, %v16231_v59  ;;  %v1286_v1 = vrot.slane %v16231_v59, %v15637_v46 }
 0x27c   :  { %v5457_v33 = vrot.slane %v5281_v61, 7  ;;  %v5459_v42 = vrot.slane %v5282_v14, 6  ;;  %v1209_v23 = vcombine.high %v1201_v31, %v1201_v31  ;;  %v1210_v25 = vcombine.high %v1208_v53, %v1208_v53 }
 0x27d   :  { %v5283_v8 = vunpack.c.l.b16 %v14634_v28  ;;  %v2858_v0 = vsel %vm19361_vm1, %v1201_v31, -inf  ;;  %v2872_v6 = vsel %vm19361_vm1, %v1208_v53, -inf  ;;  %v1293_v39 = vrot.slane %v1279_v62, %v15637_v46 }
 0x27e   :  { %v5458_v44 = vsel %vm5353_vm3, %v5457_v33, %v5280_v52  ;;  %v2859_v15 = vrot.slane %v2858_v0, 4  ;;  %v2865_v11 = vsel %vm19361_vm1, %v1209_v23, -inf  ;;  %v2873_v3 = vrot.slane %v2872_v6, 4 }
 0x27f   :  { %v5460_v2 = vsel %vm19364_vm4, %v5459_v42, %v5458_v44  ;;  %v5461_v59 = vrot.slane %v5283_v8, 5  ;;  %v2866_v20 = vrot.slane %v2865_v11, 4  ;;  %v2879_v22 = vsel %vm19361_vm1, %v1210_v25, -inf }
 0x280   :  { %v2860_v7 = vmax.f32 %v2858_v0, %v2859_v15  ;;  %v2874_v10 = vmax.f32 %v2872_v6, %v2873_v3  ;;  %v2880_v21 = vrot.slane %v2879_v22, 4  ;;  %v1294_v26 = vcombine.high %v1286_v1, %v1286_v1 }
 0x281   :  { %v2867_v12 = vmax.f32 %v2865_v11, %v2866_v20  ;;  %v16536_v27 = vsel %vm19363_vm5, %v5461_v59, %v5460_v2  ;;  %v1295_v16 = vcombine.high %v1293_v39, %v1293_v39  ;;  %v2998_v9 = vsel %vm19361_vm1, %v1286_v1, -inf }
 0x282   :  { %v2861_v35 = vrot.slane %v2860_v7, 2  ;;  %v2875_v5 = vrot.slane %v2874_v10, 2  ;;  %v2881_v34 = vmax.f32 %v2879_v22, %v2880_v21  ;;  %v2999_v58 = vrot.slane %v2998_v9, 4 }
 0x283   :  { %v2868_v47 = vrot.slane %v2867_v12, 2  ;;  %v3005_v36 = vsel %vm19361_vm1, %v1294_v26, -inf  ;;  %v3012_v57 = vsel %vm19361_vm1, %v1293_v39, -inf  ;;  %v3019_v18 = vsel %vm19361_vm1, %v1295_v16, -inf }
 0x284   :  { %v2862_v4 = vmax.f32 %v2860_v7, %v2861_v35  ;;  %v2876_v17 = vmax.f32 %v2874_v10, %v2875_v5  ;;  %v2882_v13 = vrot.slane %v2881_v34, 2  ;;  %v3000_v50 = vmax.f32 %v2998_v9, %v2999_v58  ;;  %v16553_v9 = vld [vmem:[%s19350_s3] ss:$0 sm:$0xff] }
 0x285   :  { %v2869_v52 = vmax.f32 %v2867_v12, %v2868_v47  ;;  %v3006_v49 = vrot.slane %v3005_v36, 4  ;;  %v3013_v19 = vrot.slane %v3012_v57, 4  ;;  %v3020_v24 = vrot.slane %v3019_v18, 4 }
 0x286   :  { %v2863_v61 = vrot.slane %v2862_v4, 1  ;;  %v2877_v14 = vrot.slane %v2876_v17, 1  ;;  %v2883_v31 = vmax.f32 %v2881_v34, %v2882_v13  ;;  %v3001_v53 = vrot.slane %v3000_v50, 2 }
 0x287   :  { %v2870_v28 = vrot.slane %v2869_v52, 1  ;;  %v3007_v62 = vmax.f32 %v3005_v36, %v3006_v49  ;;  %v3014_v1 = vmax.f32 %v3012_v57, %v3013_v19  ;;  %v3021_v33 = vmax.f32 %v3019_v18, %v3020_v24 }
 0x288   :  { %v2864_v42 = vmax.f32 %v2862_v4, %v2863_v61  ;;  %v2878_v23 = vmax.f32 %v2876_v17, %v2877_v14  ;;  %v2884_v25 = vrot.slane %v2883_v31, 1  ;;  %v3002_v8 = vmax.f32 %v3000_v50, %v3001_v53 }
 0x289   :  { %v2871_v0 = vmax.f32 %v2869_v52, %v2870_v28  ;;  %v3008_v6 = vrot.slane %v3007_v62, 2  ;;  %v3015_v39 = vrot.slane %v3014_v1, 2  ;;  %v3022_v44 = vrot.slane %v3021_v33, 2 }
 0x28a   :  { %v2885_v15 = vmax.f32 %v2883_v31, %v2884_v25  ;;  %v4019_v11 = vsel %vm19360_vm2, %v2864_v42, -inf  ;;  %v4025_v3 = vsel %vm19360_vm2, %v2878_v23, -inf  ;;  %v3003_v2 = vrot.slane %v3002_v8, 1 }
 0x28b   :  { %v4021_v59 = vmax.f32 %v4019_v11, %v16505_v41  ;;  %v4022_v20 = vsel %vm19360_vm2, %v2871_v0, -inf  ;;  %v4027_v22 = vmax.f32 %v4025_v3, %v16514_v55  ;;  %v3009_v7 = vmax.f32 %v3007_v62, %v3008_v6 }
 0x28c   :  { %v4024_v10 = vmax.f32 %v4022_v20, %v16511_v63  ;;  %v4028_v21 = vsel %vm19360_vm2, %v2885_v15, -inf  ;;  %v3004_v26 = vmax.f32 %v3002_v8, %v3003_v2  ;;  %v3016_v12 = vmax.f32 %v3014_v1, %v3015_v39 }
 0x28d   :  { %v4030_v16 = vmax.f32 %v4028_v21, %v16520_v32  ;;  %v4288_v41 = vadd.f32 %v16553_v9, %v4021_v59  ;;  %v4290_v35 = vadd.f32 %v16553_v9, %v4027_v22  ;;  %v3010_v5 = vrot.slane %v3009_v7, 1 }
 0x28e   :  { %v4289_v55 = vadd.f32 %v16553_v9, %v4024_v10  ;;  %v3017_v34 = vrot.slane %v3016_v12, 1  ;;  %v3023_v63 = vmax.f32 %v3021_v33, %v3022_v44  ;;  %v16559_v58 = vsel %vm19360_vm2, %v3004_v26, -inf }
 0x28f   :  { %v4291_v47 = vadd.f32 %v16553_v9, %v4030_v16  ;;  %v4416_v32 = vmax.f32 %v4288_v41, 0.0  ;;  %v4418_v36 = vmax.f32 %v4290_v35, 0.0  ;;  %v3011_v57 = vmax.f32 %v3009_v7, %v3010_v5 }
 0x290   :  { %v4417_v18 = vmax.f32 %v4289_v55, 0.0  ;;  %v3018_v4 = vmax.f32 %v3016_v12, %v3017_v34  ;;  %v3024_v17 = vrot.slane %v3023_v63, 1  ;;  %v1245_v13 = vcombine.high %v16238_v29, %v16238_v29 }
 0x291   :  { %v4419_v50 = vmax.f32 %v4291_v47, 0.0  ;;  %v14635_v52 = vpack.c.bf16 %v4416_v32, %v4416_v32  ;;  %v14637_v49 = vpack.c.bf16 %v4418_v36, %v4418_v36  ;;  %v16565_v19 = vsel %vm19360_vm2, %v3011_v57, -inf }
 0x292   :  { %v14636_v24 = vpack.c.bf16 %v4417_v18, %v4417_v18  ;;  %v3025_v61 = vmax.f32 %v3023_v63, %v3024_v17  ;;  %v16568_v14 = vsel %vm19360_vm2, %v3018_v4, -inf  ;;  %v1252_v31 = vrot.slane %v16238_v29, %v15637_v46 }
 0x293   :  { %v14638_v53 = vpack.c.bf16 %v4419_v50, %v4419_v50  ;;  %v5284_v28 = vunpack.c.l.b16 %v14635_v52  ;;  %v5286_v62 = vunpack.c.l.b16 %v14637_v49  ;;  %v1259_v1 = vrot.slane %v1245_v13, %v15637_v46 }
 0x294   :  { %v5285_v33 = vunpack.c.l.b16 %v14636_v24  ;;  %v16574_v42 = vsel %vm19360_vm2, %v3025_v61, -inf  ;;  %v1260_v23 = vcombine.high %v1252_v31, %v1252_v31  ;;  %v2942_v25 = vsel %vm19361_vm1, %v1252_v31, -inf }
 0x295   :  { %v5287_v8 = vunpack.c.l.b16 %v14638_v53  ;;  %v5463_v0 = vrot.slane %v5284_v28, 4  ;;  %v5467_v6 = vrot.slane %v5286_v62, 2  ;;  %v1261_v39 = vcombine.high %v1259_v1, %v1259_v1 }
 0x296   :  { %v5465_v44 = vrot.slane %v5285_v33, 3  ;;  %v2943_v15 = vrot.slane %v2942_v25, 4  ;;  %v2949_v29 = vsel %vm19361_vm1, %v1260_v23, -inf  ;;  %v2956_v11 = vsel %vm19361_vm1, %v1259_v1, -inf }
 0x297   :  { %v5464_v3 = vsel %vm5362_vm6, %v5463_v0, %v16536_v27  ;;  %v5469_v2 = vrot.slane %v5287_v8, 1  ;;  %v2950_v59 = vrot.slane %v2949_v29, 4  ;;  %v2957_v20 = vrot.slane %v2956_v11, 4 }
 0x298   :  { %v5466_v22 = vsel %vm5365_vm7, %v5465_v44, %v5464_v3  ;;  %v2944_v7 = vmax.f32 %v2942_v25, %v2943_v15  ;;  %v2963_v10 = vsel %vm19361_vm1, %v1261_v39, -inf  ;;  %v1296_v21 = vcombine.high %v16272_v30, %v16272_v30 }
 0x299   :  { %v5468_v26 = vsel %vm5368_vm8, %v5467_v6, %v5466_v22  ;;  %v2951_v12 = vmax.f32 %v2949_v29, %v2950_v59  ;;  %v2958_v16 = vmax.f32 %v2956_v11, %v2957_v20  ;;  %v2964_v41 = vrot.slane %v2963_v10, 4 }
 0x29a   :  { %v5470_v35 = vsel %vm5371_vm9, %v5469_v2, %v5468_v26  ;;  %v2945_v5 = vrot.slane %v2944_v7, 2  ;;  %v1303_v27 = vrot.slane %v16272_v30, %v15637_v46  ;;  %v1310_v55 = vrot.slane %v1296_v21, %v15637_v46 }
 0x29b   :  { %v5590_v34 = vpack.c.b16 %v5470_v35, %v5470_v35  ;;  %v2952_v63 = vrot.slane %v2951_v12, 2  ;;  %v2959_v47 = vrot.slane %v2958_v16, 2  ;;  %v2965_v32 = vmax.f32 %v2963_v10, %v2964_v41 }
 0x29c   :  { %v2946_v36 = vmax.f32 %v2944_v7, %v2945_v5  ;;  %v1311_v57 = vcombine.high %v1303_v27, %v1303_v27  ;;  %v1312_v18 = vcombine.high %v1310_v55, %v1310_v55  ;;  %v3026_v4 = vsel %vm19361_vm1, %v1303_v27, -inf }
 0x29d   :  { %5623 = vst.msk [vmem:[#allocation2 + $0xa8] sm:$0xf] %vm19359_vm0, %v5590_v34  ;;  %v2953_v17 = vmax.f32 %v2951_v12, %v2952_v63  ;;  %v2960_v13 = vmax.f32 %v2958_v16, %v2959_v47  ;;  %v2966_v50 = vrot.slane %v2965_v32, 2  ;;  %v3027_v52 = vrot.slane %v3026_v4, 4 }
 0x29e   :  { %v2947_v49 = vrot.slane %v2946_v36, 1  ;;  %v3033_v30 = vsel %vm19361_vm1, %v1311_v57, -inf  ;;  %v3040_v24 = vsel %vm19361_vm1, %v1310_v55, -inf  ;;  %v3047_v61 = vsel %vm19361_vm1, %v1312_v18, -inf  ;;  %v16606_v55 = vpop.f32.mrb[43].mxu0 }
 0x29f   :  { %v2954_v31 = vrot.slane %v2953_v17, 1  ;;  %v2961_v53 = vrot.slane %v2960_v13, 1  ;;  %v2967_v28 = vmax.f32 %v2965_v32, %v2966_v50  ;;  %v3028_v62 = vmax.f32 %v3026_v4, %v3027_v52 }
 0x2a0   :  { %v2948_v1 = vmax.f32 %v2946_v36, %v2947_v49  ;;  %v3034_v33 = vrot.slane %v3033_v30, 4  ;;  %v3041_v23 = vrot.slane %v3040_v24, 4  ;;  %v3048_v25 = vrot.slane %v3047_v61, 4 }
 0x2a1   :  { %v2955_v8 = vmax.f32 %v2953_v17, %v2954_v31  ;;  %v2962_v0 = vmax.f32 %v2960_v13, %v2961_v53  ;;  %v2968_v6 = vrot.slane %v2967_v28, 1  ;;  %v3029_v39 = vrot.slane %v3028_v62, 2  ;;  %v4579_v31 = vld [vmem:[#allocation2 + $0x18] sm:$0x8] }
 0x2a2   :  { %v4031_v44 = vsel %vm19360_vm2, %v2948_v1, -inf  ;;  %v3035_v15 = vmax.f32 %v3033_v30, %v3034_v33  ;;  %v3042_v29 = vmax.f32 %v3040_v24, %v3041_v23  ;;  %v3049_v11 = vmax.f32 %v3047_v61, %v3048_v25  ;;  %v4586_v1 = vld [vmem:[#allocation2 + $0x2c] sm:$0x8]  ;;  %v6302_v33 = vld [vmem:[#allocation2 + $0x1c] sm:$0xf] }
 0x2a3   :  { %v2969_v3 = vmax.f32 %v2967_v28, %v2968_v6  ;;  %v4033_v2 = vmax.f32 %v4031_v44, %v16559_v58  ;;  %v4034_v59 = vsel %vm19360_vm2, %v2955_v8, -inf  ;;  %v4037_v20 = vsel %vm19360_vm2, %v2962_v0, -inf  ;;  %v6304_v0 = vld [vmem:[#allocation2 + $0x30] sm:$0xf] }
 0x2a4   :  { %v4036_v22 = vmax.f32 %v4034_v59, %v16565_v19  ;;  %v4039_v7 = vmax.f32 %v4037_v20, %v16568_v14  ;;  %v3030_v10 = vmax.f32 %v3028_v62, %v3029_v39  ;;  %v3036_v21 = vrot.slane %v3035_v15, 2 }
 0x2a5   :  { %v4040_v26 = vsel %vm19360_vm2, %v2969_v3, -inf  ;;  %v4292_v12 = vadd.f32 %v16553_v9, %v4033_v2  ;;  %v3043_v16 = vrot.slane %v3042_v29, 2  ;;  %v3050_v41 = vrot.slane %v3049_v11, 2 }
 0x2a6   :  { %v4042_v35 = vmax.f32 %v4040_v26, %v16574_v42  ;;  %v4293_v58 = vadd.f32 %v16553_v9, %v4036_v22  ;;  %v4294_v5 = vadd.f32 %v16553_v9, %v4039_v7  ;;  %v3031_v27 = vrot.slane %v3030_v10, 1 }
 0x2a7   :  { %v4420_v19 = vmax.f32 %v4292_v12, 0.0  ;;  %v3037_v34 = vmax.f32 %v3035_v15, %v3036_v21  ;;  %v3044_v14 = vmax.f32 %v3042_v29, %v3043_v16  ;;  %v3051_v63 = vmax.f32 %v3049_v11, %v3050_v41  ;;  %v15252_v11 = vld [vmem:[%s19349_s2 + $0x120] sm:$0xff]  }
 0x2a8   :  { %v4295_v47 = vadd.f32 %v16553_v9, %v4042_v35  ;;  %v4421_v32 = vmax.f32 %v4293_v58, 0.0  ;;  %v4422_v36 = vmax.f32 %v4294_v5, 0.0  ;;  %v3032_v57 = vmax.f32 %v3030_v10, %v3031_v27  ;;  %15134 = vmatprep.subr.bf16.mxu0 %v15252_v11 }
 0x2a9   :  { %v14639_v18 = vpack.c.bf16 %v4420_v19, %v4420_v19  ;;  %v3038_v4 = vrot.slane %v3037_v34, 1  ;;  %v3045_v17 = vrot.slane %v3044_v14, 1  ;;  %v3052_v42 = vrot.slane %v3051_v63, 1  ;;  %15135 = vmatpush3.bf16.msra.mxu0 %v15252_v11 }
 0x2aa   :  { %v4423_v13 = vmax.f32 %v4295_v47, 0.0  ;;  %v14640_v50 = vpack.c.bf16 %v4421_v32, %v4421_v32  ;;  %v14641_v52 = vpack.c.bf16 %v4422_v36, %v4422_v36  ;;  %v16610_v61 = vsel %vm19360_vm2, %v3032_v57, -inf }
 0x2ab   :  { %v3039_v49 = vmax.f32 %v3037_v34, %v3038_v4  ;;  %v3046_v30 = vmax.f32 %v3044_v14, %v3045_v17  ;;  %v3053_v24 = vmax.f32 %v3051_v63, %v3052_v42  ;;  %v5288_v23 = vunpack.c.l.b16 %v14639_v18 }
 0x2ac   :  { %v14642_v53 = vpack.c.bf16 %v4423_v13, %v4423_v13  ;;  %v5289_v28 = vunpack.c.l.b16 %v14640_v50  ;;  %v5290_v62 = vunpack.c.l.b16 %v14641_v52  ;;  %v19368_v29 = vmov 0 }
 0x2ad   :  { %v16613_v25 = vsel %vm19360_vm2, %v3039_v49, -inf  ;;  %v16616_v8 = vsel %vm19360_vm2, %v3046_v30, -inf  ;;  %v16619_v15 = vsel %vm19360_vm2, %v3053_v24, -inf  ;;  %v19369_v29 = vsel %vm16621_vm12, 4294967295, %v19368_v29 }
 0x2ae   :  { %v5291_v6 = vunpack.c.l.b16 %v14642_v53  ;;  %v5471_v39 = vrot.slane %v5289_v28, 7  ;;  %v5473_v44 = vrot.slane %v5290_v62, 6  ;;  %19370 = vst [vmem:[#allocation10_spill] sm:$0xff] %v19369_v29  ;;  %v4580_v3 = vsel %vm16621_vm12, 0, %v4579_v31 }
 0x2af   :  { %v4587_v2 = vsel %vm16621_vm12, 0, %v4586_v1  ;;  %v6339_v59 = vshrl.u32 %v6302_v33, 16  ;;  %4581 = vst [vmem:[#allocation2 + $0x18] sm:$0x8] %v4580_v3  ;;  %v6342_v7 = vshll.u32 %v6302_v33, 16  ;;  %v6352_v10 = vshrl.u32 %v6304_v0, 16 }
 0x2b0   :  { %v5472_v20 = vsel %vm5353_vm3, %v5471_v39, %v5288_v23  ;;  %v5475_v22 = vrot.slane %v5291_v6, 5  ;;  %4588 = vst [vmem:[#allocation2 + $0x2c] sm:$0x8] %v4587_v2  ;;  %v6355_v12 = vshll.u32 %v6304_v0, 16  ;;  %v1262_v16 = vcombine.high %v16373_v56, %v16373_v56 }
 0x2b1   :  { %v5474_v21 = vsel %vm19364_vm4, %v5473_v44, %v5472_v20  ;;  %v6341_v26 = vrot.slane %v6339_v59, 7  ;;  %v6354_v41 = vrot.slane %v6352_v10, 7  ;;  %v1269_v35 = vrot.slane %v16373_v56, %v15637_v46 }
 0x2b2   :  { %v16639_v58 = vsel %vm19363_vm5, %v5475_v22, %v5474_v21  ;;  %v1347_v5 = vcombine.high %v16419_v43, %v16419_v43  ;;  %v1276_v19 = vrot.slane %v1262_v16, %v15637_v46  ;;  %v1354_v34 = vrot.slane %v16419_v43, %v15637_v46 }
 0x2b3   :  { %v6344_v27 = vor.u32 %v6342_v7, %v6341_v26  ;;  %v1313_v14 = vcombine.high %v16423_v38, %v16423_v38  ;;  %v6357_v63 = vor.u32 %v6355_v12, %v6354_v41  ;;  %v1277_v47 = vcombine.high %v1269_v35, %v1269_v35 }
 0x2b4   :  { %v2970_v32 = vsel %vm19361_vm1, %v1269_v35, -inf  ;;  %v1361_v56 = vrot.slane %v1347_v5, %v15637_v46  ;;  %v1278_v36 = vcombine.high %v1276_v19, %v1276_v19  ;;  %v2984_v18 = vsel %vm19361_vm1, %v1276_v19, -inf }
 0x2b5   :  { %v2971_v57 = vrot.slane %v2970_v32, 4  ;;  %v1362_v4 = vcombine.high %v1354_v34, %v1354_v34  ;;  %v2977_v17 = vsel %vm19361_vm1, %v1277_v47, -inf  ;;  %v2985_v42 = vrot.slane %v2984_v18, 4 }
 0x2b6   :  { %v1363_v13 = vcombine.high %v1361_v56, %v1361_v56  ;;  %v3110_v43 = vsel %vm19361_vm1, %v1354_v34, -inf  ;;  %v6301_v50 = vld [vmem:[#allocation2 + $0x18] sm:$0x8]  ;;  %v2978_v30 = vrot.slane %v2977_v17, 4  ;;  %v2991_v24 = vsel %vm19361_vm1, %v1278_v36, -inf  ;;  %v16670_v36 = vpop.f32.mrb[44].mxu0 }
 0x2b7   :  { %v6303_v52 = vld [vmem:[#allocation2 + $0x2c] sm:$0x8]  ;;  %v2972_v49 = vmax.f32 %v2970_v32, %v2971_v57  ;;  %v16656_v31 = vrot.slane %v16423_v38, %v15637_v46  ;;  %v6334_v53 = vshrl.u32 %v6301_v50, 16  ;;  %v2986_v62 = vmax.f32 %v2984_v18, %v2985_v42 }
 0x2b8   :  { %v6347_v28 = vshrl.u32 %v6303_v52, 16  ;;  %v2992_v1 = vrot.slane %v2991_v24, 4  ;;  %v2979_v0 = vmax.f32 %v2977_v17, %v2978_v30  ;;  %v3111_v6 = vrot.slane %v3110_v43, 4 }
 0x2b9   :  { %v2973_v23 = vrot.slane %v2972_v49, 2  ;;  %v3117_v39 = vsel %vm19361_vm1, %v1362_v4, -inf  ;;  %v14016_v44 = vrot.slane %v6334_v53, 11  ;;  %v2987_v3 = vrot.slane %v2986_v62, 2 }
 0x2ba   :  { %v14017_v11 = vrot.slane %v6347_v28, 11  ;;  %v2993_v2 = vmax.f32 %v2991_v24, %v2992_v1  ;;  %v2980_v20 = vrot.slane %v2979_v0, 2  ;;  %v3112_v22 = vmax.f32 %v3110_v43, %v3111_v6 }
 0x2bb   :  { %v2974_v59 = vmax.f32 %v2972_v49, %v2973_v23  ;;  %v3118_v7 = vrot.slane %v3117_v39, 4  ;;  %v6345_v10 = vsel %vm16660_vm15, %v14016_v44, %v6344_v27  ;;  %v2988_v26 = vmax.f32 %v2986_v62, %v2987_v3  ;;  %v15248_v49 = vld [vmem:[#allocation2 + $0x8] ss:$20 sps:$4 sm:$0xff]   ;;  %v16686_v3 = vpop.f32.mrb[45].mxu0 }
 0x2bc   :  { %v6358_v21 = vsel %vm16660_vm15, %v14017_v11, %v6357_v63  ;;  %v2994_v12 = vrot.slane %v2993_v2, 2  ;;  %v2981_v35 = vmax.f32 %v2979_v0, %v2980_v20  ;;  %v3113_v5 = vrot.slane %v3112_v22, 2 }
 0x2bd   :  { %v14032_v16 = vcombine.low %v6345_v10, %v6358_v21  ;;  %v2975_v41 = vrot.slane %v2974_v59, 1  ;;  %v2989_v19 = vrot.slane %v2988_v26, 1  ;;  %v3119_v47 = vmax.f32 %v3117_v39, %v3118_v7 }
 0x2be   :  { %v2995_v34 = vmax.f32 %v2993_v2, %v2994_v12  ;;  %v3124_v32 = vsel %vm19361_vm1, %v1361_v56, -inf  ;;  %v2982_v57 = vrot.slane %v2981_v35, 1  ;;  %v3114_v18 = vmax.f32 %v3112_v22, %v3113_v5 }
 0x2bf   :  { %6565 = vrot.lane.b32.xlu0 %v14032_v16, %s15442_s5  ;;  %v2976_v27 = vmax.f32 %v2974_v59, %v2975_v41  ;;  %v3125_v63 = vrot.slane %v3124_v32, 4  ;;  %v2990_v4 = vmax.f32 %v2988_v26, %v2989_v19  ;;  %v3120_v42 = vrot.slane %v3119_v47, 2 }
 0x2c0   :  { %v2996_v17 = vrot.slane %v2995_v34, 1  ;;  %v3131_v43 = vsel %vm19361_vm1, %v1363_v13, -inf  ;;  %v2983_v50 = vmax.f32 %v2981_v35, %v2982_v57  ;;  %v3115_v30 = vrot.slane %v3114_v18, 1 }
 0x2c1   :  { %v4043_v52 = vsel %vm19360_vm2, %v2976_v27, -inf  ;;  %v3126_v56 = vmax.f32 %v3124_v32, %v3125_v63  ;;  %v4049_v28 = vsel %vm19360_vm2, %v2990_v4, -inf  ;;  %v3121_v62 = vmax.f32 %v3119_v47, %v3120_v42 }
 0x2c2   :  { %v2997_v24 = vmax.f32 %v2995_v34, %v2996_v17  ;;  %v4045_v53 = vmax.f32 %v4043_v52, %v16610_v61  ;;  %v4046_v1 = vsel %vm19360_vm2, %v2983_v50, -inf  ;;  %v4051_v23 = vmax.f32 %v4049_v28, %v16616_v8  ;;  %v15254_v61 = vld [vmem:[%s19349_s2 + $0x128] sm:$0xff]   ;;  %v16707_v50 = vpop.f32.mrb[46].mxu0 }
 0x2c3   :  { %5970 = vrot.lane.b32.xlu0 %v15248_v49, %s15442_s5  ;;  %v3116_v0 = vmax.f32 %v3114_v18, %v3115_v30  ;;  %v3127_v13 = vrot.slane %v3126_v56, 2  ;;  %v4048_v6 = vmax.f32 %v4046_v1, %v16613_v25  ;;  %v3122_v11 = vrot.slane %v3121_v62, 1  ;;  %15136 = vmatprep.subr.bf16.mxu0 %v15254_v61  ;;  %v16712_v30 = vpop.f32.mrb[47].mxu0 }
 0x2c4   :  { %v4052_v39 = vsel %vm19360_vm2, %v2997_v24, -inf  ;;  %v4296_v44 = vadd.f32 %v16553_v9, %v4045_v53  ;;  %v4298_v8 = vadd.f32 %v16553_v9, %v4051_v23  ;;  %v3132_v20 = vrot.slane %v3131_v43, 4  ;;  %15137 = vmatpush3.bf16.msra.mxu0 %v15254_v61 }
 0x2c5   :  { %v4054_v2 = vmax.f32 %v4052_v39, %v16619_v15  ;;  %v3128_v59 = vmax.f32 %v3126_v56, %v3127_v13  ;;  %v4297_v22 = vadd.f32 %v16553_v9, %v4048_v6  ;;  %v3123_v7 = vmax.f32 %v3121_v62, %v3122_v11 }
 0x2c6   :  { %v4424_v25 = vmax.f32 %v4296_v44, 0.0  ;;  %v16692_v10 = vsel %vm19360_vm2, %v3116_v0, -inf  ;;  %v4426_v26 = vmax.f32 %v4298_v8, 0.0  ;;  %v3133_v16 = vmax.f32 %v3131_v43, %v3132_v20 }
 0x2c7   :  { %v4299_v21 = vadd.f32 %v16553_v9, %v4054_v2  ;;  %v3129_v12 = vrot.slane %v3128_v59, 1  ;;  %v4425_v41 = vmax.f32 %v4297_v22, 0.0  ;;  %v16696_v35 = vsel %vm19360_vm2, %v3123_v7, -inf }
 0x2c8   :  { %v14643_v15 = vpack.c.bf16 %v4424_v25, %v4424_v25  ;;  %v1327_v5 = vrot.slane %v1313_v14, %v15637_v46  ;;  %v14645_v34 = vpack.c.bf16 %v4426_v26, %v4426_v26  ;;  %v3134_v32 = vrot.slane %v3133_v16, 2 }
 0x2c9   :  { %v4427_v19 = vmax.f32 %v4299_v21, 0.0  ;;  %v3130_v47 = vmax.f32 %v3128_v59, %v3129_v12  ;;  %v14644_v27 = vpack.c.bf16 %v4425_v41, %v4425_v41  ;;  %v1328_v18 = vcombine.high %v16656_v31, %v16656_v31 }
 0x2ca   :  { %v5292_v57 = vunpack.c.l.b16 %v14643_v15  ;;  %v1329_v63 = vcombine.high %v1327_v5, %v1327_v5  ;;  %v5294_v17 = vunpack.c.l.b16 %v14645_v34  ;;  %v3135_v42 = vmax.f32 %v3133_v16, %v3134_v32  ;;  %v15256_v15 = vld [vmem:[%s19349_s2 + $0x130] sm:$0xff]  }
 0x2cb   :  { %v14646_v4 = vpack.c.bf16 %v4427_v19, %v4427_v19  ;;  %v16705_v43 = vsel %vm19360_vm2, %v3130_v47, -inf  ;;  %v5293_v38 = vunpack.c.l.b16 %v14644_v27  ;;  %v3054_v52 = vsel %vm19361_vm1, %v16656_v31, -inf  ;;  %15138 = vmatprep.subr.bf16.mxu0 %v15256_v15 }
 0x2cc   :  { %v5477_v14 = vrot.slane %v5292_v57, 4  ;;  %v3061_v49 = vsel %vm19361_vm1, %v1328_v18, -inf  ;;  %v5481_v24 = vrot.slane %v5294_v17, 2  ;;  %v3136_v53 = vrot.slane %v3135_v42, 1  ;;  %15139 = vmatpush3.bf16.msra.mxu0 %v15256_v15 }
 0x2cd   :  { %v5295_v56 = vunpack.c.l.b16 %v14646_v4  ;;  %v3055_v28 = vrot.slane %v3054_v52, 4  ;;  %v5479_v1 = vrot.slane %v5293_v38, 3  ;;  %v3062_v23 = vrot.slane %v3061_v49, 4 }
 0x2ce   :  { %v5478_v62 = vsel %vm5362_vm6, %v5477_v14, %v16639_v58  ;;  %v3068_v0 = vsel %vm19361_vm1, %v1327_v5, -inf  ;;  %v3137_v6 = vmax.f32 %v3135_v42, %v3136_v53  ;;  %v3075_v61 = vsel %vm19361_vm1, %v1329_v63, -inf }
 0x2cf   :  { %v5483_v13 = vrot.slane %v5295_v56, 1  ;;  %v3056_v39 = vmax.f32 %v3054_v52, %v3055_v28  ;;  %v3069_v44 = vrot.slane %v3068_v0, 4  ;;  %v5480_v31 = vsel %vm5365_vm7, %v5479_v1, %v5478_v62  ;;  %v15257_v28 = vld [vmem:[%s19349_s2 + $0x138] sm:$0xff]  }
 0x2d0   :  { %v3063_v11 = vmax.f32 %v3061_v49, %v3062_v23  ;;  %v1364_v2 = vcombine.high %v16427_v37, %v16427_v37  ;;  %v5482_v8 = vsel %vm5368_vm8, %v5481_v24, %v5480_v31  ;;  %v16723_v58 = vsel %vm19360_vm2, %v3137_v6, -inf  ;;  %15140 = vmatprep.subr.bf16.mxu0 %v15257_v28 }
 0x2d1   :  { %v3057_v59 = vrot.slane %v3056_v39, 2  ;;  %v3070_v20 = vmax.f32 %v3068_v0, %v3069_v44  ;;  %v5484_v22 = vsel %vm5371_vm9, %v5483_v13, %v5482_v8  ;;  %v3076_v7 = vrot.slane %v3075_v61, 4  ;;  %v16741_v13 = vpop.f32.mrb[48].mxu0  ;;  %15141 = vmatpush3.bf16.msra.mxu0 %v15257_v28 }
 0x2d2   :  { %v3064_v25 = vrot.slane %v3063_v11, 2  ;;  %v1371_v21 = vrot.slane %v16427_v37, %v15637_v46  ;;  %v5591_v26 = vpack.c.b16 %v5484_v22, %v5484_v22  ;;  %v1378_v41 = vrot.slane %v1364_v2, %v15637_v46 }
 0x2d3   :  { %v3058_v12 = vmax.f32 %v3056_v39, %v3057_v59  ;;  %v3071_v16 = vrot.slane %v3070_v20, 2  ;;  %v3077_v19 = vmax.f32 %v3075_v61, %v3076_v7  ;;  %v16747_v59 = vpop.f32.mrb[49].mxu0 }
 0x2d4   :  { %v3065_v5 = vmax.f32 %v3063_v11, %v3064_v25  ;;  %v1379_v34 = vcombine.high %v1371_v21, %v1371_v21  ;;  %v3138_v47 = vsel %vm19361_vm1, %v1371_v21, -inf  ;;  %5624 = vst.msk [vmem:[#allocation2 + $0xe4] sm:$0xf] %vm19359_vm0, %v5591_v26  ;;  %v1380_v57 = vcombine.high %v1378_v41, %v1378_v41 }
 0x2d5   :  { %v3059_v32 = vrot.slane %v3058_v12, 1  ;;  %v3072_v27 = vmax.f32 %v3070_v20, %v3071_v16  ;;  %v3139_v37 = vrot.slane %v3138_v47, 4  ;;  %v3078_v63 = vrot.slane %v3077_v19, 2 }
 0x2d6   :  { %v3066_v18 = vrot.slane %v3065_v5, 1  ;;  %v3145_v4 = vsel %vm19361_vm1, %v1379_v34, -inf  ;;  %v3152_v17 = vsel %vm19361_vm1, %v1378_v41, -inf  ;;  %v3159_v53 = vsel %vm19361_vm1, %v1380_v57, -inf }
 0x2d7   :  { %v3060_v42 = vmax.f32 %v3058_v12, %v3059_v32  ;;  %v3073_v38 = vrot.slane %v3072_v27, 1  ;;  %v3140_v14 = vmax.f32 %v3138_v47, %v3139_v37  ;;  %v3146_v52 = vrot.slane %v3145_v4, 4 }
 0x2d8   :  { %v3067_v49 = vmax.f32 %v3065_v5, %v3066_v18  ;;  %v3079_v56 = vmax.f32 %v3077_v19, %v3078_v63  ;;  %v3153_v24 = vrot.slane %v3152_v17, 4  ;;  %v3160_v12 = vrot.slane %v3159_v53, 4 }
 0x2d9   :  { %v3074_v62 = vmax.f32 %v3072_v27, %v3073_v38  ;;  %v4055_v1 = vsel %vm19360_vm2, %v3060_v42, -inf  ;;  %v3141_v23 = vrot.slane %v3140_v14, 2  ;;  %v3147_v0 = vmax.f32 %v3145_v4, %v3146_v52 }
 0x2da   :  { %v3080_v6 = vrot.slane %v3079_v56, 1  ;;  %v4057_v39 = vmax.f32 %v4055_v1, %v16692_v10  ;;  %v4058_v44 = vsel %vm19360_vm2, %v3067_v49, -inf  ;;  %v3154_v31 = vmax.f32 %v3152_v17, %v3153_v24 }
 0x2db   :  { %v4060_v11 = vmax.f32 %v4058_v44, %v16696_v35  ;;  %v4061_v61 = vsel %vm19360_vm2, %v3074_v62, -inf  ;;  %v3142_v2 = vmax.f32 %v3140_v14, %v3141_v23  ;;  %v3148_v8 = vrot.slane %v3147_v0, 2 }
 0x2dc   :  { %v3081_v20 = vmax.f32 %v3079_v56, %v3080_v6  ;;  %v4063_v22 = vmax.f32 %v4061_v61, %v16705_v43  ;;  %v4300_v25 = vadd.f32 %v16553_v9, %v4057_v39  ;;  %v3155_v7 = vrot.slane %v3154_v31, 2 }
 0x2dd   :  { %v4301_v10 = vadd.f32 %v16553_v9, %v4060_v11  ;;  %v3143_v21 = vrot.slane %v3142_v2, 1  ;;  %v3149_v26 = vmax.f32 %v3147_v0, %v3148_v8  ;;  %v3161_v57 = vmax.f32 %v3159_v53, %v3160_v12 }
 0x2de   :  { %v4064_v35 = vsel %vm19360_vm2, %v3081_v20, -inf  ;;  %v4302_v16 = vadd.f32 %v16553_v9, %v4063_v22  ;;  %v4428_v41 = vmax.f32 %v4300_v25, 0.0  ;;  %v3156_v15 = vmax.f32 %v3154_v31, %v3155_v7 }
 0x2df   :  { %v4066_v5 = vmax.f32 %v4064_v35, %v16723_v58  ;;  %v4429_v19 = vmax.f32 %v4301_v10, 0.0  ;;  %v3144_v34 = vmax.f32 %v3142_v2, %v3143_v21  ;;  %v3150_v47 = vrot.slane %v3149_v26, 1 }
 0x2e0   :  { %v4430_v43 = vmax.f32 %v4302_v16, 0.0  ;;  %v14647_v32 = vpack.c.bf16 %v4428_v41, %v4428_v41  ;;  %v3157_v27 = vrot.slane %v3156_v15, 1  ;;  %v3162_v14 = vrot.slane %v3161_v57, 2 }
 0x2e1   :  { %v4303_v37 = vadd.f32 %v16553_v9, %v4066_v5  ;;  %v14648_v18 = vpack.c.bf16 %v4429_v19, %v4429_v19  ;;  %v3151_v63 = vmax.f32 %v3149_v26, %v3150_v47  ;;  %v16757_v4 = vsel %vm19360_vm2, %v3144_v34, -inf }
 0x2e2   :  { %v14649_v17 = vpack.c.bf16 %v4430_v43, %v4430_v43  ;;  %v5296_v42 = vunpack.c.l.b16 %v14647_v32  ;;  %v3158_v38 = vmax.f32 %v3156_v15, %v3157_v27  ;;  %v1330_v56 = vcombine.high %v16436_v54, %v16436_v54 }
 0x2e3   :  { %v4431_v52 = vmax.f32 %v4303_v37, 0.0  ;;  %v5297_v58 = vunpack.c.l.b16 %v14648_v18  ;;  %v16760_v49 = vsel %vm19360_vm2, %v3151_v63, -inf  ;;  %v3163_v53 = vmax.f32 %v3161_v57, %v3162_v14 }
 0x2e4   :  { %v5298_v24 = vunpack.c.l.b16 %v14649_v17  ;;  %v16765_v28 = vsel %vm19360_vm2, %v3158_v38, -inf  ;;  %v1337_v62 = vrot.slane %v16436_v54, %v15637_v46  ;;  %v1344_v0 = vrot.slane %v1330_v56, %v15637_v46 }
 0x2e5   :  { %v14650_v1 = vpack.c.bf16 %v4431_v52, %v4431_v52  ;;  %v5485_v23 = vrot.slane %v5297_v58, 7  ;;  %v1415_v6 = vcombine.high %v16482_v48, %v16482_v48  ;;  %v3164_v44 = vrot.slane %v3163_v53, 1 }
 0x2e6   :  { %v5487_v39 = vrot.slane %v5298_v24, 6  ;;  %v1345_v31 = vcombine.high %v1337_v62, %v1337_v62  ;;  %v3082_v11 = vsel %vm19361_vm1, %v1337_v62, -inf  ;;  %v1346_v8 = vcombine.high %v1344_v0, %v1344_v0 }
 0x2e7   :  { %v5299_v61 = vunpack.c.l.b16 %v14650_v1  ;;  %v5486_v2 = vsel %vm5353_vm3, %v5485_v23, %v5296_v42  ;;  %v3083_v20 = vrot.slane %v3082_v11, 4  ;;  %v3165_v54 = vmax.f32 %v3163_v53, %v3164_v44  ;;  %v16791_v53 = vpop.f32.mrb[50].mxu0 }
 0x2e8   :  { %v5488_v22 = vsel %vm19364_vm4, %v5487_v39, %v5486_v2  ;;  %v3089_v25 = vsel %vm19361_vm1, %v1345_v31, -inf  ;;  %v3096_v7 = vsel %vm19361_vm1, %v1344_v0, -inf  ;;  %v3103_v16 = vsel %vm19361_vm1, %v1346_v8, -inf }
 0x2e9   :  { %v5489_v10 = vrot.slane %v5299_v61, 5  ;;  %v3084_v21 = vmax.f32 %v3082_v11, %v3083_v20  ;;  %v3090_v26 = vrot.slane %v3089_v25, 4  ;;  %v3097_v12 = vrot.slane %v3096_v7, 4 }
 0x2ea   :  { %v16778_v35 = vsel %vm19360_vm2, %v3165_v54, -inf  ;;  %v1422_v41 = vrot.slane %v16482_v48, %v15637_v46  ;;  %v1429_v15 = vrot.slane %v1415_v6, %v15637_v46  ;;  %v3104_v47 = vrot.slane %v3103_v16, 4 }
 0x2eb   :  { %v3085_v5 = vrot.slane %v3084_v21, 2  ;;  %v3091_v19 = vmax.f32 %v3089_v25, %v3090_v26  ;;  %v3098_v34 = vmax.f32 %v3096_v7, %v3097_v12  ;;  %v16785_v43 = vsel %vm19363_vm5, %v5489_v10, %v5488_v22 }
 0x2ec   :  { %v1430_v32 = vcombine.high %v1422_v41, %v1422_v41  ;;  %v1431_v27 = vcombine.high %v1429_v15, %v1429_v15  ;;  %v3222_v57 = vsel %vm19361_vm1, %v1422_v41, -inf  ;;  %v3105_v17 = vmax.f32 %v3103_v16, %v3104_v47 }
 0x2ed   :  { %v3086_v37 = vmax.f32 %v3084_v21, %v3085_v5  ;;  %v3092_v18 = vrot.slane %v3091_v19, 2  ;;  %v3099_v63 = vrot.slane %v3098_v34, 2  ;;  %v3223_v42 = vrot.slane %v3222_v57, 4 }
 0x2ee   :  { %v3229_v48 = vsel %vm19361_vm1, %v1430_v32, -inf  ;;  %v3236_v38 = vsel %vm19361_vm1, %v1429_v15, -inf  ;;  %v3243_v14 = vsel %vm19361_vm1, %v1431_v27, -inf  ;;  %v3106_v24 = vrot.slane %v3105_v17, 2 }
 0x2ef   :  { %v3087_v52 = vrot.slane %v3086_v37, 1  ;;  %v3093_v58 = vmax.f32 %v3091_v19, %v3092_v18  ;;  %v3100_v56 = vmax.f32 %v3098_v34, %v3099_v63  ;;  %v3224_v62 = vmax.f32 %v3222_v57, %v3223_v42 }
 0x2f0   :  { %v3230_v1 = vrot.slane %v3229_v48, 4  ;;  %v3237_v23 = vrot.slane %v3236_v38, 4  ;;  %v3244_v0 = vrot.slane %v3243_v14, 4  ;;  %v3107_v31 = vmax.f32 %v3105_v17, %v3106_v24 }
 0x2f1   :  { %v3088_v6 = vmax.f32 %v3086_v37, %v3087_v52  ;;  %v3094_v39 = vrot.slane %v3093_v58, 1  ;;  %v3101_v44 = vrot.slane %v3100_v56, 1  ;;  %v3225_v11 = vrot.slane %v3224_v62, 2 }
 0x2f2   :  { %v3231_v61 = vmax.f32 %v3229_v48, %v3230_v1  ;;  %v3238_v2 = vmax.f32 %v3236_v38, %v3237_v23  ;;  %v3245_v8 = vmax.f32 %v3243_v14, %v3244_v0  ;;  %v3108_v54 = vrot.slane %v3107_v31, 1 }
 0x2f3   :  { %v3095_v20 = vmax.f32 %v3093_v58, %v3094_v39  ;;  %v3102_v22 = vmax.f32 %v3100_v56, %v3101_v44  ;;  %v4067_v25 = vsel %vm19360_vm2, %v3088_v6, -inf  ;;  %v3226_v10 = vmax.f32 %v3224_v62, %v3225_v11 }
 0x2f4   :  { %v4069_v7 = vmax.f32 %v4067_v25, %v16757_v4  ;;  %v3232_v21 = vrot.slane %v3231_v61, 2  ;;  %v3239_v26 = vrot.slane %v3238_v2, 2  ;;  %v3109_v12 = vmax.f32 %v3107_v31, %v3108_v54 }
 0x2f5   :  { %v4070_v16 = vsel %vm19360_vm2, %v3095_v20, -inf  ;;  %v4073_v41 = vsel %vm19360_vm2, %v3102_v22, -inf  ;;  %v3246_v15 = vrot.slane %v3245_v8, 2  ;;  %v3227_v47 = vrot.slane %v3226_v10, 1 }
 0x2f6   :  { %v4072_v5 = vmax.f32 %v4070_v16, %v16760_v49  ;;  %v4075_v19 = vmax.f32 %v4073_v41, %v16765_v28  ;;  %v4304_v34 = vadd.f32 %v16553_v9, %v4069_v7  ;;  %v4076_v32 = vsel %vm19360_vm2, %v3109_v12, -inf }
 0x2f7   :  { %v3233_v27 = vmax.f32 %v3231_v61, %v3232_v21  ;;  %v3240_v4 = vmax.f32 %v3238_v2, %v3239_v26  ;;  %v3247_v57 = vmax.f32 %v3245_v8, %v3246_v15  ;;  %v4078_v37 = vmax.f32 %v4076_v32, %v16778_v35 }
 0x2f8   :  { %v4305_v18 = vadd.f32 %v16553_v9, %v4072_v5  ;;  %v4306_v63 = vadd.f32 %v16553_v9, %v4075_v19  ;;  %v4432_v17 = vmax.f32 %v4304_v34, 0.0  ;;  %v3228_v42 = vmax.f32 %v3226_v10, %v3227_v47 }
 0x2f9   :  { %v3234_v48 = vrot.slane %v3233_v27, 1  ;;  %v3241_v49 = vrot.slane %v3240_v4, 1  ;;  %v3248_v38 = vrot.slane %v3247_v57, 1  ;;  %v4307_v28 = vadd.f32 %v16553_v9, %v4078_v37 }
 0x2fa   :  { %v4433_v14 = vmax.f32 %v4305_v18, 0.0  ;;  %v4434_v52 = vmax.f32 %v4306_v63, 0.0  ;;  %v14651_v58 = vpack.c.bf16 %v4432_v17, %v4432_v17  ;;  %v16806_v1 = vsel %vm19360_vm2, %v3228_v42, -inf }
 0x2fb   :  { %v3235_v56 = vmax.f32 %v3233_v27, %v3234_v48  ;;  %v3242_v24 = vmax.f32 %v3240_v4, %v3241_v49  ;;  %v3249_v62 = vmax.f32 %v3247_v57, %v3248_v38  ;;  %v4435_v35 = vmax.f32 %v4307_v28, 0.0 }
 0x2fc   :  { %v14652_v23 = vpack.c.bf16 %v4433_v14, %v4433_v14  ;;  %v14653_v0 = vpack.c.bf16 %v4434_v52, %v4434_v52  ;;  %v5300_v6 = vunpack.c.l.b16 %v14651_v58  ;;  %v1381_v31 = vcombine.high %v16491_v60, %v16491_v60 }
 0x2fd   :  { %v16809_v39 = vsel %vm19360_vm2, %v3235_v56, -inf  ;;  %v16812_v44 = vsel %vm19360_vm2, %v3242_v24, -inf  ;;  %v16815_v9 = vsel %vm19360_vm2, %v3249_v62, -inf  ;;  %v14654_v11 = vpack.c.bf16 %v4435_v35, %v4435_v35 }
 0x2fe   :  { %v5301_v61 = vunpack.c.l.b16 %v14652_v23  ;;  %v5302_v2 = vunpack.c.l.b16 %v14653_v0  ;;  %v5491_v8 = vrot.slane %v5300_v6, 4  ;;  %v1388_v20 = vrot.slane %v16491_v60, %v15637_v46 }
 0x2ff   :  { %v1395_v22 = vrot.slane %v1381_v31, %v15637_v46  ;;  %v1432_v54 = vcombine.high %v16533_v51, %v16533_v51  ;;  %v1439_v25 = vrot.slane %v16533_v51, %v15637_v46  ;;  %v5303_v7 = vunpack.c.l.b16 %v14654_v11 }
 0x300   :  { %v5492_v10 = vsel %vm5362_vm6, %v5491_v8, %v16785_v43  ;;  %v5493_v21 = vrot.slane %v5301_v61, 3  ;;  %v5495_v26 = vrot.slane %v5302_v2, 2  ;;  %v1396_v12 = vcombine.high %v1388_v20, %v1388_v20 }
 0x301   :  { %v1397_v16 = vcombine.high %v1395_v22, %v1395_v22  ;;  %v3166_v41 = vsel %vm19361_vm1, %v1388_v20, -inf  ;;  %v3180_v60 = vsel %vm19361_vm1, %v1395_v22, -inf  ;;  %v5497_v5 = vrot.slane %v5303_v7, 1 }
 0x302   :  { %v5494_v15 = vsel %vm5365_vm7, %v5493_v21, %v5492_v10  ;;  %v3167_v19 = vrot.slane %v3166_v41, 4  ;;  %v3181_v34 = vrot.slane %v3180_v60, 4  ;;  %v3173_v51 = vsel %vm19361_vm1, %v1396_v12, -inf }
 0x303   :  { %v5496_v47 = vsel %vm5368_vm8, %v5495_v26, %v5494_v15  ;;  %v3187_v32 = vsel %vm19361_vm1, %v1397_v16, -inf  ;;  %v1446_v43 = vrot.slane %v1432_v54, %v15637_v46  ;;  %v3174_v57 = vrot.slane %v3173_v51, 4 }
 0x304   :  { %v5498_v27 = vsel %vm5371_vm9, %v5497_v5, %v5496_v47  ;;  %v3168_v4 = vmax.f32 %v3166_v41, %v3167_v19  ;;  %v3182_v37 = vmax.f32 %v3180_v60, %v3181_v34  ;;  %v3188_v63 = vrot.slane %v3187_v32, 4 }
 0x305   :  { %v5592_v18 = vpack.c.b16 %v5498_v27, %v5498_v27  ;;  %v1447_v17 = vcombine.high %v1439_v25, %v1439_v25  ;;  %v1448_v42 = vcombine.high %v1446_v43, %v1446_v43  ;;  %v3175_v49 = vmax.f32 %v3173_v51, %v3174_v57 }
 0x306   :  { %v3169_v48 = vrot.slane %v3168_v4, 2  ;;  %v3183_v38 = vrot.slane %v3182_v37, 2  ;;  %v3250_v28 = vsel %vm19361_vm1, %v1439_v25, -inf  ;;  %v3189_v14 = vmax.f32 %v3187_v32, %v3188_v63 }
 0x307   :  { %5625 = vst.msk [vmem:[#allocation2 + $0xf8] sm:$0xf] %vm19359_vm0, %v5592_v18  ;;  %v3251_v52 = vrot.slane %v3250_v28, 4  ;;  %v3257_v58 = vsel %vm19361_vm1, %v1447_v17, -inf  ;;  %v3264_v56 = vsel %vm19361_vm1, %v1446_v43, -inf  ;;  %v3176_v62 = vrot.slane %v3175_v49, 2 }
 0x308   :  { %v3170_v24 = vmax.f32 %v3168_v4, %v3169_v48  ;;  %v3184_v35 = vmax.f32 %v3182_v37, %v3183_v38  ;;  %v3258_v23 = vrot.slane %v3257_v58, 4  ;;  %v3190_v0 = vrot.slane %v3189_v14, 2 }
 0x309   :  { %v3252_v6 = vmax.f32 %v3250_v28, %v3251_v52  ;;  %v3265_v31 = vrot.slane %v3264_v56, 4  ;;  %v3271_v11 = vsel %vm19361_vm1, %v1448_v42, -inf  ;;  %v3177_v2 = vmax.f32 %v3175_v49, %v3176_v62  ;;  %v16851_v42 = vld [vmem:[%s19350_s3] ss:$0 sm:$0xff] }
 0x30a   :  { %v3171_v61 = vrot.slane %v3170_v24, 1  ;;  %v3185_v8 = vrot.slane %v3184_v35, 1  ;;  %v3259_v20 = vmax.f32 %v3257_v58, %v3258_v23  ;;  %v3191_v22 = vmax.f32 %v3189_v14, %v3190_v0 }
 0x30b   :  { %v3253_v54 = vrot.slane %v3252_v6, 2  ;;  %v3266_v25 = vmax.f32 %v3264_v56, %v3265_v31  ;;  %v3272_v7 = vrot.slane %v3271_v11, 4  ;;  %v3178_v21 = vrot.slane %v3177_v2, 1  ;;  %v4593_v56 = vld [vmem:[#allocation2 + $0x40] sm:$0x8] }
 0x30c   :  { %v3172_v10 = vmax.f32 %v3170_v24, %v3171_v61  ;;  %v3186_v26 = vmax.f32 %v3184_v35, %v3185_v8  ;;  %v3260_v12 = vrot.slane %v3259_v20, 2  ;;  %v3192_v16 = vrot.slane %v3191_v22, 1  ;;  %v4600_v24 = vld [vmem:[#allocation2 + $0x54] sm:$0x8]  ;;  %v6306_v61 = vld [vmem:[#allocation2 + $0x44] sm:$0xf] }
 0x30d   :  { %v3254_v41 = vmax.f32 %v3252_v6, %v3253_v54  ;;  %v3267_v60 = vrot.slane %v3266_v25, 2  ;;  %v3273_v15 = vmax.f32 %v3271_v11, %v3272_v7  ;;  %v3179_v5 = vmax.f32 %v3177_v2, %v3178_v21  ;;  %v6308_v2 = vld [vmem:[#allocation2 + $0x58] sm:$0xf] }
 0x30e   :  { %v4079_v19 = vsel %vm19360_vm2, %v3172_v10, -inf  ;;  %v4085_v34 = vsel %vm19360_vm2, %v3186_v26, -inf  ;;  %v3261_v47 = vmax.f32 %v3259_v20, %v3260_v12  ;;  %v3193_v51 = vmax.f32 %v3191_v22, %v3192_v16 }
 0x30f   :  { %v4081_v32 = vmax.f32 %v4079_v19, %v16806_v1  ;;  %v4087_v43 = vmax.f32 %v4085_v34, %v16812_v44  ;;  %v3255_v27 = vrot.slane %v3254_v41, 1  ;;  %v4082_v4 = vsel %vm19360_vm2, %v3179_v5, -inf }
 0x310   :  { %v3262_v57 = vrot.slane %v3261_v47, 1  ;;  %v3268_v37 = vmax.f32 %v3266_v25, %v3267_v60  ;;  %v3274_v18 = vrot.slane %v3273_v15, 2  ;;  %v4084_v63 = vmax.f32 %v4082_v4, %v16809_v39  ;;  %v16871_v25 = vpop.f32.mrb[51].mxu0 }
 0x311   :  { %v4088_v17 = vsel %vm19360_vm2, %v3193_v51, -inf  ;;  %v4308_v48 = vadd.f32 %v16851_v42, %v4081_v32  ;;  %v4310_v1 = vadd.f32 %v16851_v42, %v4087_v43  ;;  %v3256_v49 = vmax.f32 %v3254_v41, %v3255_v27  ;;  %v4590_v27 = vld [vmem:[#allocation2 + $0x34] sm:$0x1] }
 0x312   :  { %v4090_v44 = vmax.f32 %v4088_v17, %v16815_v9  ;;  %v3263_v38 = vmax.f32 %v3261_v47, %v3262_v57  ;;  %v3269_v28 = vrot.slane %v3268_v37, 1  ;;  %v4309_v14 = vadd.f32 %v16851_v42, %v4084_v63 }
 0x313   :  { %v4436_v52 = vmax.f32 %v4308_v48, 0.0  ;;  %v4438_v39 = vmax.f32 %v4310_v1, 0.0  ;;  %v3275_v58 = vmax.f32 %v3273_v15, %v3274_v18  ;;  %v16859_v23 = vsel %vm19360_vm2, %v3256_v49, -inf }
 0x314   :  { %v4311_v62 = vadd.f32 %v16851_v42, %v4090_v44  ;;  %v3270_v35 = vmax.f32 %v3268_v37, %v3269_v28  ;;  %v16862_v0 = vsel %vm19360_vm2, %v3263_v38, -inf  ;;  %v4437_v9 = vmax.f32 %v4309_v14, 0.0 }
 0x315   :  { %v14655_v6 = vpack.c.bf16 %v4436_v52, %v4436_v52  ;;  %v14657_v31 = vpack.c.bf16 %v4438_v39, %v4438_v39  ;;  %v3276_v11 = vrot.slane %v3275_v58, 1  ;;  %v4594_v22 = vsel %vm16621_vm12, 0, %v4593_v56 }
 0x316   :  { %v4439_v8 = vmax.f32 %v4311_v62, 0.0  ;;  %v16865_v20 = vsel %vm19360_vm2, %v3270_v35, -inf  ;;  %v4601_v54 = vsel %vm16621_vm12, 0, %v4600_v24  ;;  %v14656_v7 = vpack.c.bf16 %v4437_v9, %v4437_v9  ;;  %4595 = vst [vmem:[#allocation2 + $0x40] sm:$0x8] %v4594_v22 }
 0x317   :  { %v5304_v10 = vunpack.c.l.b16 %v14655_v6  ;;  %v5306_v21 = vunpack.c.l.b16 %v14657_v31  ;;  %v3277_v26 = vmax.f32 %v3275_v58, %v3276_v11  ;;  %4602 = vst [vmem:[#allocation2 + $0x54] sm:$0x8] %v4601_v54  ;;  %v6365_v16 = vshrl.u32 %v6306_v61, 16  ;;  %v4597_v35 = vld [vmem:[#allocation2 + $0x48] sm:$0x1] }
 0x318   :  { %v14658_v12 = vpack.c.bf16 %v4439_v8, %v4439_v8  ;;  %v6368_v41 = vshll.u32 %v6306_v61, 16  ;;  %v6378_v60 = vshrl.u32 %v6308_v2, 16  ;;  %v5305_v15 = vunpack.c.l.b16 %v14656_v7 }
 0x319   :  { %v5501_v5 = vrot.slane %v5306_v21, 6  ;;  %v16874_v19 = vsel %vm19360_vm2, %v3277_v26, -inf  ;;  %v6381_v34 = vshll.u32 %v6308_v2, 16  ;;  %v6367_v51 = vrot.slane %v6365_v16, 7  ;;  %v7350_v21 = vld [vmem:[#allocation2 + $0x30] sm:$0xf] }
 0x31a   :  { %v5307_v47 = vunpack.c.l.b16 %v14658_v12  ;;  %v6380_v32 = vrot.slane %v6378_v60, 7  ;;  %v1398_v43 = vcombine.high %v16606_v55, %v16606_v55  ;;  %v5499_v4 = vrot.slane %v5305_v15, 7  ;;  %v7352_v60 = vld [vmem:[#allocation2 + $0x44] sm:$0xf] }
 0x31b   :  { %v1405_v57 = vrot.slane %v16606_v55, %v15637_v46  ;;  %v6370_v18 = vor.u32 %v6368_v41, %v6367_v51  ;;  %v4591_v49 = vsel %vm16885_vm13, 0, %v4590_v27  ;;  %v7386_v27 = vshll.u32 %v7350_v21, 16 }
 0x31c   :  { %v5503_v37 = vrot.slane %v5307_v47, 5  ;;  %v6383_v63 = vor.u32 %v6381_v34, %v6380_v32  ;;  %v1412_v17 = vrot.slane %v1398_v43, %v15637_v46  ;;  %v5500_v55 = vsel %vm5353_vm3, %v5499_v4, %v5304_v10  ;;  %4592 = vst [vmem:[#allocation2 + $0x34] sm:$0x1] %v4591_v49 }
 0x31d   :  { %v1413_v1 = vcombine.high %v1405_v57, %v1405_v57  ;;  %v3194_v44 = vsel %vm19361_vm1, %v1405_v57, -inf  ;;  %v5502_v38 = vsel %vm19364_vm4, %v5501_v5, %v5500_v55  ;;  %v6305_v28 = vld [vmem:[#allocation2 + $0x40] sm:$0x8]  ;;  %v4598_v10 = vsel %vm16885_vm13, 0, %v4597_v35 }
 0x31e   :  { %v6307_v14 = vld [vmem:[#allocation2 + $0x54] sm:$0x8]  ;;  %v1414_v52 = vcombine.high %v1412_v17, %v1412_v17  ;;  %v3195_v39 = vrot.slane %v3194_v44, 4  ;;  %v3208_v58 = vsel %vm19361_vm1, %v1412_v17, -inf  ;;  %v6360_v56 = vshrl.u32 %v6305_v28, 16 }
 0x31f   :  { %v6373_v24 = vshrl.u32 %v6307_v14, 16  ;;  %v3201_v40 = vsel %vm19361_vm1, %v1413_v1, -inf  ;;  %v3209_v62 = vrot.slane %v3208_v58, 4  ;;  %v16912_v11 = vsel %vm19363_vm5, %v5503_v37, %v5502_v38  ;;  %4599 = vst [vmem:[#allocation2 + $0x48] sm:$0x1] %v4598_v10 }
 0x320   :  { %v3196_v9 = vmax.f32 %v3194_v44, %v3195_v39  ;;  %v3202_v6 = vrot.slane %v3201_v40, 4  ;;  %v3215_v31 = vsel %vm19361_vm1, %v1414_v52, -inf  ;;  %v14018_v61 = vrot.slane %v6360_v56, 11  ;;  %v15253_v14 = vld [vmem:[#allocation2 + $0x30] ss:$20 sps:$4 sm:$0xff]  }
 0x321   :  { %v14019_v2 = vrot.slane %v6373_v24, 11  ;;  %v3210_v8 = vmax.f32 %v3208_v58, %v3209_v62  ;;  %v3216_v22 = vrot.slane %v3215_v31, 4  ;;  %v7383_v43 = vshrl.u32 %v7350_v21, 16  ;;  %v15255_v21 = vld [vmem:[#allocation2 + $0x58] ss:$20 sps:$4 sm:$0xff]  }
 0x322   :  { %v3197_v54 = vrot.slane %v3196_v9, 2  ;;  %v3203_v7 = vmax.f32 %v3201_v40, %v3202_v6  ;;  %v6371_v26 = vsel %vm16660_vm15, %v14018_v61, %v6370_v18  ;;  %v7397_v18 = vshrl.u32 %v7352_v60, 16 }
 0x323   :  { %v6384_v12 = vsel %vm16660_vm15, %v14019_v2, %v6383_v63  ;;  %v3211_v16 = vrot.slane %v3210_v8, 2  ;;  %v3217_v41 = vmax.f32 %v3215_v31, %v3216_v22  ;;  %v7351_v32 = vld [vmem:[#allocation2 + $0x34] sm:$0x1]  ;;  %v7385_v55 = vrot.slane %v7383_v43, 4 }
 0x324   :  { %v14033_v15 = vcombine.low %v6371_v26, %v6384_v12  ;;  %v3198_v5 = vmax.f32 %v3196_v9, %v3197_v54  ;;  %v3204_v34 = vrot.slane %v3203_v7, 2  ;;  %v7392_v37 = vshll.u32 %v7351_v32, 16 }
 0x325   :  { %v3212_v47 = vmax.f32 %v3210_v8, %v3211_v16  ;;  %v3218_v51 = vrot.slane %v3217_v41, 2  ;;  %v7388_v1 = vrot.slane %v7386_v27, 5  ;;  %v7399_v28 = vrot.slane %v7397_v18, 4 }
 0x326   :  { %6567 = vrot.lane.b32.xlu1 %v14033_v15, %s15442_s5  ;;  %v3199_v4 = vrot.slane %v3198_v5, 1  ;;  %v3205_v57 = vmax.f32 %v3203_v7, %v3204_v34  ;;  %v7394_v38 = vrot.slane %v7392_v37, 5  ;;  %v7400_v56 = vshll.u32 %v7352_v60, 16  ;;  %v7353_v62 = vld [vmem:[#allocation2 + $0x48] sm:$0x1] }
 0x327   :  { %v3213_v63 = vrot.slane %v3212_v47, 1  ;;  %v3219_v17 = vmax.f32 %v3217_v41, %v3218_v51  ;;  %v7389_v58 = vor.u32 %v7388_v1, %v7385_v55  ;;  %v1483_v35 = vcombine.high %v16670_v36, %v16670_v36  ;;  %v15258_v15 = vld [vmem:[#allocation2 + $0x80] ss:$20 sps:$4 sm:$0xff]  }
 0x328   :  { %v3200_v44 = vmax.f32 %v3198_v5, %v3199_v4  ;;  %v3206_v49 = vrot.slane %v3205_v57, 1  ;;  %v1490_v9 = vrot.slane %v16670_v36, %v15637_v46  ;;  %v7402_v7 = vrot.slane %v7400_v56, 5 }
 0x329   :  { %v3214_v52 = vmax.f32 %v3212_v47, %v3213_v63  ;;  %v3220_v39 = vrot.slane %v3219_v17, 1  ;;  %v7390_v2 = vrot.slane %v7389_v58, 4  ;;  %v7406_v10 = vshll.u32 %v7353_v62, 16 }
 0x32a   :  { %v3207_v24 = vmax.f32 %v3205_v57, %v3206_v49  ;;  %v4091_v40 = vsel %vm19360_vm2, %v3200_v44, -inf  ;;  %5972 = vrot.lane.b32.xlu1 %v15253_v14, %s15442_s5  ;;  %v7403_v41 = vor.u32 %v7402_v7, %v7399_v28  ;;  %v1498_v47 = vcombine.high %v1490_v9, %v1490_v9 }
 0x32b   :  { %v3221_v6 = vmax.f32 %v3219_v17, %v3220_v39  ;;  %v4093_v31 = vmax.f32 %v4091_v40, %v16859_v23  ;;  %v4097_v61 = vsel %vm19360_vm2, %v3214_v52, -inf  ;;  %v7395_v12 = vsel %vm16933_vm10, %v7390_v2, %v7394_v38 }
 0x32c   :  { %v4094_v8 = vsel %vm19360_vm2, %v3207_v24, -inf  ;;  %v4099_v22 = vmax.f32 %v4097_v61, %v16865_v20  ;;  %v7408_v60 = vrot.slane %v7406_v10, 5  ;;  %v7404_v43 = vrot.slane %v7403_v41, 4 }
 0x32d   :  { %v4096_v36 = vmax.f32 %v4094_v8, %v16862_v0  ;;  %v4100_v23 = vsel %vm19360_vm2, %v3221_v6, -inf  ;;  %v4312_v26 = vadd.f32 %v16851_v42, %v4093_v31  ;;  %v1497_v0 = vrot.slane %v1483_v35, %v15637_v46 }
 0x32e   :  { %v4102_v20 = vmax.f32 %v4100_v23, %v16874_v19  ;;  %v4314_v16 = vadd.f32 %v16851_v42, %v4099_v22  ;;  %5974 = vrot.lane.b32.xlu1 %v15255_v21, %s15442_s5  ;;  %v3334_v27 = vsel %vm19361_vm1, %v1490_v9, -inf  ;;  %v16949_v19 = vpop.f32.mrb[52].mxu0  ;;  %v7409_v1 = vsel %vm16933_vm10, %v7404_v43, %v7408_v60 }
 0x32f   :  { %v4313_v5 = vadd.f32 %v16851_v42, %v4096_v36  ;;  %v4440_v34 = vmax.f32 %v4312_v26, 0.0  ;;  %v1499_v37 = vcombine.high %v1497_v0, %v1497_v0  ;;  %v3335_v18 = vrot.slane %v3334_v27, 4  ;;  %v16951_v63 = vpop.f32.mrb[53].mxu0 }
 0x330   :  { %v4315_v51 = vadd.f32 %v16851_v42, %v4102_v20  ;;  %v4442_v32 = vmax.f32 %v4314_v16, 0.0  ;;  %v3341_v44 = vsel %vm19361_vm1, %v1498_v47, -inf  ;;  %v16957_v49 = vpop.f32.mrb[54].mxu0  ;;  %v14088_v14 = vcombine.low %v7395_v12, %v7409_v1 }
 0x331   :  { %v4441_v4 = vmax.f32 %v4313_v5, 0.0  ;;  %v14659_v57 = vpack.c.bf16 %v4440_v34, %v4440_v34  ;;  %v3336_v52 = vmax.f32 %v3334_v27, %v3335_v18  ;;  %v16959_v39 = vpop.f32.mrb[55].mxu0  ;;  %v3342_v24 = vrot.slane %v3341_v44, 4 }
 0x332   :  { %v4443_v17 = vmax.f32 %v4315_v51, 0.0  ;;  %v14661_v55 = vpack.c.bf16 %v4442_v32, %v4442_v32  ;;  %5976 = vrot.lane.b32.xlu1 %v15258_v15, %s15442_s5  ;;  %v3348_v40 = vsel %vm19361_vm1, %v1497_v0, -inf  ;;  %7638 = vst.msk [vmem:[#allocation5 + $0x20] sm:$0xff] %vm19360_vm2, %v14088_v14  ;;  %v3355_v8 = vsel %vm19361_vm1, %v1499_v37, -inf }
 0x333   :  { %v14660_v38 = vpack.c.bf16 %v4441_v4, %v4441_v4  ;;  %v5308_v28 = vunpack.c.l.b16 %v14659_v57  ;;  %v3337_v9 = vrot.slane %v3336_v52, 2  ;;  %v3349_v6 = vrot.slane %v3348_v40, 4 }
 0x334   :  { %v14662_v58 = vpack.c.bf16 %v4443_v17, %v4443_v17  ;;  %v5310_v56 = vunpack.c.l.b16 %v14661_v55  ;;  %v3343_v2 = vmax.f32 %v3341_v44, %v3342_v24  ;;  %v3356_v26 = vrot.slane %v3355_v8, 4 }
 0x335   :  { %v5309_v62 = vunpack.c.l.b16 %v14660_v38  ;;  %v5505_v35 = vrot.slane %v5308_v28, 4  ;;  %v3338_v10 = vmax.f32 %v3336_v52, %v3337_v9  ;;  %v3350_v21 = vmax.f32 %v3348_v40, %v3349_v6 }
 0x336   :  { %v5311_v31 = vunpack.c.l.b16 %v14662_v58  ;;  %v5509_v61 = vrot.slane %v5310_v56, 2  ;;  %v3344_v23 = vrot.slane %v3343_v2, 2  ;;  %v1449_v12 = vcombine.high %v16686_v3, %v16686_v3 }
 0x337   :  { %v5506_v22 = vsel %vm5362_vm6, %v5505_v35, %v16912_v11  ;;  %v5507_v7 = vrot.slane %v5309_v62, 3  ;;  %v3339_v16 = vrot.slane %v3338_v10, 1  ;;  %v3351_v41 = vrot.slane %v3350_v21, 2 }
 0x338   :  { %v5511_v36 = vrot.slane %v5311_v31, 1  ;;  %v1456_v60 = vrot.slane %v16686_v3, %v15637_v46  ;;  %v3345_v5 = vmax.f32 %v3343_v2, %v3344_v23  ;;  %v3357_v11 = vmax.f32 %v3355_v8, %v3356_v26 }
 0x339   :  { %v5508_v20 = vsel %vm5365_vm7, %v5507_v7, %v5506_v22  ;;  %v1463_v34 = vrot.slane %v1449_v12, %v15637_v46  ;;  %v3340_v47 = vmax.f32 %v3338_v10, %v3339_v16  ;;  %v3352_v51 = vmax.f32 %v3350_v21, %v3351_v41  ;;  %v7650_v27 = vld [vmem:[#allocation5 + $0x20] sm:$0xff] }
 0x33a   :  { %v5510_v15 = vsel %vm5368_vm8, %v5509_v61, %v5508_v20  ;;  %v1464_v32 = vcombine.high %v1456_v60, %v1456_v60  ;;  %v3346_v4 = vrot.slane %v3345_v5, 1  ;;  %v3358_v57 = vrot.slane %v3357_v11, 2  ;;  %15142 = vmatprep.mubr.bf16.mxu0 %v7650_v27  ;;  %v16995_v27 = vpop.f32.mrb[56].mxu0 }
 0x33b   :  { %v5512_v0 = vsel %vm5371_vm9, %v5511_v36, %v5510_v15  ;;  %v1465_v37 = vcombine.high %v1463_v34, %v1463_v34  ;;  %v3353_v18 = vrot.slane %v3352_v51, 1  ;;  %v16975_v3 = vsel %vm19360_vm2, %v3340_v47, -inf }
 0x33c   :  { %v5593_v43 = vpack.c.b16 %v5512_v0, %v5512_v0  ;;  %v3278_v17 = vsel %vm19361_vm1, %v1456_v60, -inf  ;;  %v3285_v55 = vsel %vm19361_vm1, %v1464_v32, -inf  ;;  %v3347_v1 = vmax.f32 %v3345_v5, %v3346_v4 }
 0x33d   :  { %v3359_v44 = vmax.f32 %v3357_v11, %v3358_v57  ;;  %v3279_v38 = vrot.slane %v3278_v17, 4  ;;  %v3286_v28 = vrot.slane %v3285_v55, 4  ;;  %v3354_v14 = vmax.f32 %v3352_v51, %v3353_v18 }
 0x33e   :  { %5626 = vst.msk [vmem:[#allocation2 + $0x10c] sm:$0xf] %vm19359_vm0, %v5593_v43  ;;  %v3292_v52 = vsel %vm19361_vm1, %v1463_v34, -inf  ;;  %v3299_v58 = vsel %vm19361_vm1, %v1465_v37, -inf  ;;  %v1500_v56 = vcombine.high %v16707_v50, %v16707_v50  ;;  %v4107_v40 = vsel %vm19360_vm2, %v3347_v1, -inf }
 0x33f   :  { %v3360_v24 = vrot.slane %v3359_v44, 1  ;;  %v3280_v62 = vmax.f32 %v3278_v17, %v3279_v38  ;;  %v3287_v35 = vmax.f32 %v3285_v55, %v3286_v28  ;;  %v16986_v9 = vsel %vm19360_vm2, %v3354_v14, -inf }
 0x340   :  { %v3293_v6 = vrot.slane %v3292_v52, 4  ;;  %v3300_v31 = vrot.slane %v3299_v58, 4  ;;  %v1507_v61 = vrot.slane %v16707_v50, %v15637_v46  ;;  %v1514_v7 = vrot.slane %v1500_v56, %v15637_v46 }
 0x341   :  { %v3361_v2 = vmax.f32 %v3359_v44, %v3360_v24  ;;  %v3281_v8 = vrot.slane %v3280_v62, 2  ;;  %v3288_v22 = vrot.slane %v3287_v35, 2 }
 0x342   :  { %v3294_v10 = vmax.f32 %v3292_v52, %v3293_v6  ;;  %v3301_v21 = vmax.f32 %v3299_v58, %v3300_v31  ;;  %v1515_v36 = vcombine.high %v1507_v61, %v1507_v61  ;;  %v3362_v23 = vsel %vm19361_vm1, %v1507_v61, -inf }
 0x343   :  { %v4113_v26 = vsel %vm19360_vm2, %v3361_v2, -inf  ;;  %v3282_v12 = vmax.f32 %v3280_v62, %v3281_v8  ;;  %v3289_v20 = vmax.f32 %v3287_v35, %v3288_v22  ;;  %v1516_v16 = vcombine.high %v1514_v7, %v1514_v7  ;;  %v17001_v2 = vpop.f32.mrb[57].mxu0 }
 0x344   :  { %v3295_v41 = vrot.slane %v3294_v10, 2  ;;  %v3302_v60 = vrot.slane %v3301_v21, 2  ;;  %v3363_v15 = vrot.slane %v3362_v23, 4  ;;  %v3369_v50 = vsel %vm19361_vm1, %v1515_v36, -inf }
 0x345   :  { %v3283_v5 = vrot.slane %v3282_v12, 1  ;;  %v3290_v11 = vrot.slane %v3289_v20, 1  ;;  %v3370_v34 = vrot.slane %v3369_v50, 4  ;;  %v3376_v0 = vsel %vm19361_vm1, %v1514_v7, -inf  ;;  %v5655_v48 = vld [vmem:[#allocation2 + $0x10c] sm:$0xf] }
 0x346   :  { %v3296_v47 = vmax.f32 %v3294_v10, %v3295_v41  ;;  %v3303_v51 = vmax.f32 %v3301_v21, %v3302_v60  ;;  %v3364_v32 = vmax.f32 %v3362_v23, %v3363_v15  ;;  %v3377_v43 = vrot.slane %v3376_v0, 4 }
 0x347   :  { %v3284_v4 = vmax.f32 %v3282_v12, %v3283_v5  ;;  %v3291_v57 = vmax.f32 %v3289_v20, %v3290_v11  ;;  %v3371_v37 = vmax.f32 %v3369_v50, %v3370_v34  ;;  %v3383_v18 = vsel %vm19361_vm1, %v1516_v16, -inf }
 0x348   :  { %v3297_v17 = vrot.slane %v3296_v47, 1  ;;  %v3304_v55 = vrot.slane %v3303_v51, 1  ;;  %v3365_v1 = vrot.slane %v3364_v32, 2  ;;  %v3378_v44 = vmax.f32 %v3376_v0, %v3377_v43 }
 0x349   :  { %v4103_v38 = vsel %vm19360_vm2, %v3284_v4, -inf  ;;  %v4106_v28 = vsel %vm19360_vm2, %v3291_v57, -inf  ;;  %v3372_v14 = vrot.slane %v3371_v37, 2  ;;  %v3384_v52 = vrot.slane %v3383_v18, 4 }
 0x34a   :  { %v3298_v58 = vmax.f32 %v3296_v47, %v3297_v17  ;;  %v3305_v56 = vmax.f32 %v3303_v51, %v3304_v55  ;;  %v4105_v24 = vmax.f32 %v4103_v38, %v16975_v3  ;;  %v4108_v62 = vmax.f32 %v4106_v28, %v4107_v40 }
 0x34b   :  { %v3366_v35 = vmax.f32 %v3364_v32, %v3365_v1  ;;  %v3373_v6 = vmax.f32 %v3371_v37, %v3372_v14  ;;  %v3379_v31 = vrot.slane %v3378_v44, 2  ;;  %v3385_v61 = vmax.f32 %v3383_v18, %v3384_v52 }
 0x34c   :  { %v4109_v8 = vsel %vm19360_vm2, %v3298_v58, -inf  ;;  %v4112_v22 = vsel %vm19360_vm2, %v3305_v56, -inf  ;;  %v4316_v7 = vadd.f32 %v16851_v42, %v4105_v24  ;;  %v4317_v10 = vadd.f32 %v16851_v42, %v4108_v62 }
 0x34d   :  { %v4111_v21 = vmax.f32 %v4109_v8, %v16986_v9  ;;  %v4114_v36 = vmax.f32 %v4112_v22, %v4113_v26  ;;  %v3367_v23 = vrot.slane %v3366_v35, 1  ;;  %v3374_v3 = vrot.slane %v3373_v6, 1 }
 0x34e   :  { %v4444_v40 = vmax.f32 %v4316_v7, 0.0  ;;  %v4445_v12 = vmax.f32 %v4317_v10, 0.0  ;;  %v3380_v20 = vmax.f32 %v3378_v44, %v3379_v31  ;;  %v3386_v16 = vrot.slane %v3385_v61, 2 }
 0x34f   :  { %v4318_v41 = vadd.f32 %v16851_v42, %v4111_v21  ;;  %v4319_v60 = vadd.f32 %v16851_v42, %v4114_v36  ;;  %v3368_v15 = vmax.f32 %v3366_v35, %v3367_v23  ;;  %v3375_v50 = vmax.f32 %v3373_v6, %v3374_v3 }
 0x350   :  { %v14663_v5 = vpack.c.bf16 %v4444_v40, %v4444_v40  ;;  %v14664_v11 = vpack.c.bf16 %v4445_v12, %v4445_v12  ;;  %v3381_v34 = vrot.slane %v3380_v20, 1  ;;  %v3387_v0 = vmax.f32 %v3385_v61, %v3386_v16 }
 0x351   :  { %v4446_v47 = vmax.f32 %v4318_v41, 0.0  ;;  %v4447_v51 = vmax.f32 %v4319_v60, 0.0  ;;  %v17011_v9 = vsel %vm19360_vm2, %v3368_v15, -inf  ;;  %v17014_v26 = vsel %vm19360_vm2, %v3375_v50, -inf }
 0x352   :  { %v5312_v32 = vunpack.c.l.b16 %v14663_v5  ;;  %v5313_v43 = vunpack.c.l.b16 %v14664_v11  ;;  %v3382_v4 = vmax.f32 %v3380_v20, %v3381_v34  ;;  %v3388_v57 = vrot.slane %v3387_v0, 1 }
 0x353   :  { %v14665_v37 = vpack.c.bf16 %v4446_v47, %v4446_v47  ;;  %v14666_v18 = vpack.c.bf16 %v4447_v51, %v4447_v51  ;;  %v1466_v17 = vcombine.high %v16712_v30, %v16712_v30  ;;  %v1473_v55 = vrot.slane %v16712_v30, %v15637_v46 }
 0x354   :  { %v5513_v1 = vrot.slane %v5313_v43, 7  ;;  %v3389_v44 = vmax.f32 %v3387_v0, %v3388_v57  ;;  %v17021_v38 = vsel %vm19360_vm2, %v3382_v4, -inf  ;;  %v1551_v28 = vcombine.high %v16741_v13, %v16741_v13  ;;  %v17045_v4 = vpop.f32.mrb[58].mxu0 }
 0x355   :  { %v5314_v14 = vunpack.c.l.b16 %v14665_v37  ;;  %v5315_v52 = vunpack.c.l.b16 %v14666_v18  ;;  %v1480_v58 = vrot.slane %v1466_v17, %v15637_v46  ;;  %v1481_v56 = vcombine.high %v1473_v55, %v1473_v55 }
 0x356   :  { %v5514_v24 = vsel %vm5353_vm3, %v5513_v1, %v5312_v32  ;;  %v17028_v62 = vsel %vm19360_vm2, %v3389_v44, -inf  ;;  %v3306_v30 = vsel %vm19361_vm1, %v1473_v55, -inf  ;;  %v1558_v35 = vrot.slane %v16741_v13, %v15637_v46 }
 0x357   :  { %v5515_v6 = vrot.slane %v5314_v14, 6  ;;  %v5517_v31 = vrot.slane %v5315_v52, 5  ;;  %v1482_v61 = vcombine.high %v1480_v58, %v1480_v58  ;;  %v3307_v8 = vrot.slane %v3306_v30, 4 }
 0x358   :  { %v3313_v22 = vsel %vm19361_vm1, %v1481_v56, -inf  ;;  %v3320_v7 = vsel %vm19361_vm1, %v1480_v58, -inf  ;;  %v1565_v10 = vrot.slane %v1551_v28, %v15637_v46  ;;  %v1566_v21 = vcombine.high %v1558_v35, %v1558_v35 }
 0x359   :  { %v5516_v36 = vsel %vm19364_vm4, %v5515_v6, %v5514_v24  ;;  %v3308_v23 = vmax.f32 %v3306_v30, %v3307_v8  ;;  %v3314_v3 = vrot.slane %v3313_v22, 4  ;;  %v3321_v40 = vrot.slane %v3320_v7, 4 }
 0x35a   :  { %v3327_v12 = vsel %vm19361_vm1, %v1482_v61, -inf  ;;  %v17039_v13 = vsel %vm19363_vm5, %v5517_v31, %v5516_v36  ;;  %v1567_v20 = vcombine.high %v1565_v10, %v1565_v10  ;;  %v3446_v16 = vsel %vm19361_vm1, %v1558_v35, -inf }
 0x35b   :  { %v3309_v41 = vrot.slane %v3308_v23, 2  ;;  %v3315_v60 = vmax.f32 %v3313_v22, %v3314_v3  ;;  %v3322_v15 = vmax.f32 %v3320_v7, %v3321_v40  ;;  %v3328_v50 = vrot.slane %v3327_v12, 4 }
 0x35c   :  { %v3447_v5 = vrot.slane %v3446_v16, 4  ;;  %v3453_v11 = vsel %vm19361_vm1, %v1566_v21, -inf  ;;  %v3460_v34 = vsel %vm19361_vm1, %v1565_v10, -inf  ;;  %v3467_v0 = vsel %vm19361_vm1, %v1567_v20, -inf }
 0x35d   :  { %v3310_v47 = vmax.f32 %v3308_v23, %v3309_v41  ;;  %v3316_v51 = vrot.slane %v3315_v60, 2  ;;  %v3323_v32 = vrot.slane %v3322_v15, 2  ;;  %v3329_v43 = vmax.f32 %v3327_v12, %v3328_v50 }
 0x35e   :  { %v3448_v57 = vmax.f32 %v3446_v16, %v3447_v5  ;;  %v3454_v37 = vrot.slane %v3453_v11, 4  ;;  %v3461_v18 = vrot.slane %v3460_v34, 4  ;;  %v3468_v17 = vrot.slane %v3467_v0, 4 }
 0x35f   :  { %v3311_v55 = vrot.slane %v3310_v47, 1  ;;  %v3317_v1 = vmax.f32 %v3315_v60, %v3316_v51  ;;  %v3324_v44 = vmax.f32 %v3322_v15, %v3323_v32  ;;  %v3330_v28 = vrot.slane %v3329_v43, 2 }
 0x360   :  { %v3449_v14 = vrot.slane %v3448_v57, 2  ;;  %v3455_v52 = vmax.f32 %v3453_v11, %v3454_v37  ;;  %v3462_v58 = vmax.f32 %v3460_v34, %v3461_v18  ;;  %v3469_v56 = vmax.f32 %v3467_v0, %v3468_v17 }
 0x361   :  { %v3312_v24 = vmax.f32 %v3310_v47, %v3311_v55  ;;  %v3318_v30 = vrot.slane %v3317_v1, 1  ;;  %v3325_v35 = vrot.slane %v3324_v44, 1  ;;  %v3331_v6 = vmax.f32 %v3329_v43, %v3330_v28 }
 0x362   :  { %v3450_v31 = vmax.f32 %v3448_v57, %v3449_v14  ;;  %v3456_v61 = vrot.slane %v3455_v52, 2  ;;  %v3463_v8 = vrot.slane %v3462_v58, 2  ;;  %v3470_v22 = vrot.slane %v3469_v56, 2 }
 0x363   :  { %v3319_v7 = vmax.f32 %v3317_v1, %v3318_v30  ;;  %v3326_v10 = vmax.f32 %v3324_v44, %v3325_v35  ;;  %v3332_v21 = vrot.slane %v3331_v6, 1  ;;  %v4115_v36 = vsel %vm19360_vm2, %v3312_v24, -inf }
 0x364   :  { %v4117_v23 = vmax.f32 %v4115_v36, %v17011_v9  ;;  %v3451_v3 = vrot.slane %v3450_v31, 1  ;;  %v3457_v40 = vmax.f32 %v3455_v52, %v3456_v61  ;;  %v3464_v12 = vmax.f32 %v3462_v58, %v3463_v8 }
 0x365   :  { %v3333_v20 = vmax.f32 %v3331_v6, %v3332_v21  ;;  %v4118_v16 = vsel %vm19360_vm2, %v3319_v7, -inf  ;;  %v4121_v41 = vsel %vm19360_vm2, %v3326_v10, -inf  ;;  %v3471_v60 = vmax.f32 %v3469_v56, %v3470_v22 }
 0x366   :  { %v4120_v15 = vmax.f32 %v4118_v16, %v17014_v26  ;;  %v4123_v50 = vmax.f32 %v4121_v41, %v17021_v38  ;;  %v4320_v5 = vadd.f32 %v16851_v42, %v4117_v23  ;;  %v3452_v11 = vmax.f32 %v3450_v31, %v3451_v3 }
 0x367   :  { %v4124_v34 = vsel %vm19360_vm2, %v3333_v20, -inf  ;;  %v3458_v0 = vrot.slane %v3457_v40, 1  ;;  %v3465_v9 = vrot.slane %v3464_v12, 1  ;;  %v3472_v47 = vrot.slane %v3471_v60, 1 }
 0x368   :  { %v4126_v51 = vmax.f32 %v4124_v34, %v17028_v62  ;;  %v4321_v32 = vadd.f32 %v16851_v42, %v4120_v15  ;;  %v4322_v43 = vadd.f32 %v16851_v42, %v4123_v50  ;;  %v4448_v57 = vmax.f32 %v4320_v5, 0.0 }
 0x369   :  { %v3459_v37 = vmax.f32 %v3457_v40, %v3458_v0  ;;  %v3466_v18 = vmax.f32 %v3464_v12, %v3465_v9  ;;  %v3473_v26 = vmax.f32 %v3471_v60, %v3472_v47  ;;  %v17059_v38 = vsel %vm19360_vm2, %v3452_v11, -inf }
 0x36a   :  { %v4323_v17 = vadd.f32 %v16851_v42, %v4126_v51  ;;  %v4449_v55 = vmax.f32 %v4321_v32, 0.0  ;;  %v4450_v1 = vmax.f32 %v4322_v43, 0.0  ;;  %v14667_v44 = vpack.c.bf16 %v4448_v57, %v4448_v57 }
 0x36b   :  { %v17063_v28 = vsel %vm19360_vm2, %v3459_v37, -inf  ;;  %v17066_v62 = vsel %vm19360_vm2, %v3466_v18, -inf  ;;  %v17069_v14 = vsel %vm19360_vm2, %v3473_v26, -inf  ;;  %v1517_v52 = vcombine.high %v16747_v59, %v16747_v59 }
 0x36c   :  { %v4451_v58 = vmax.f32 %v4323_v17, 0.0  ;;  %v14668_v56 = vpack.c.bf16 %v4449_v55, %v4449_v55  ;;  %v14669_v24 = vpack.c.bf16 %v4450_v1, %v4450_v1  ;;  %v5316_v30 = vunpack.c.l.b16 %v14667_v44 }
 0x36d   :  { %v1524_v35 = vrot.slane %v16747_v59, %v15637_v46  ;;  %v1531_v6 = vrot.slane %v1517_v52, %v15637_v46  ;;  %v1568_v31 = vcombine.high %v16791_v53, %v16791_v53  ;;  %v1575_v61 = vrot.slane %v16791_v53, %v15637_v46 }
 0x36e   :  { %v14670_v8 = vpack.c.bf16 %v4451_v58, %v4451_v58  ;;  %v5317_v22 = vunpack.c.l.b16 %v14668_v56  ;;  %v5318_v7 = vunpack.c.l.b16 %v14669_v24  ;;  %v5519_v10 = vrot.slane %v5316_v30, 4 }
 0x36f   :  { %v1532_v21 = vcombine.high %v1524_v35, %v1524_v35  ;;  %v1533_v36 = vcombine.high %v1531_v6, %v1531_v6  ;;  %v3390_v23 = vsel %vm19361_vm1, %v1524_v35, -inf  ;;  %v3404_v3 = vsel %vm19361_vm1, %v1531_v6, -inf }
 0x370   :  { %v5319_v40 = vunpack.c.l.b16 %v14670_v8  ;;  %v5520_v59 = vsel %vm5362_vm6, %v5519_v10, %v17039_v13  ;;  %v5521_v12 = vrot.slane %v5317_v22, 3  ;;  %v5523_v20 = vrot.slane %v5318_v7, 2 }
 0x371   :  { %v3391_v16 = vrot.slane %v3390_v23, 4  ;;  %v3397_v41 = vsel %vm19361_vm1, %v1532_v21, -inf  ;;  %v3405_v53 = vrot.slane %v3404_v3, 4  ;;  %v3411_v60 = vsel %vm19361_vm1, %v1533_v36, -inf }
 0x372   :  { %v5522_v15 = vsel %vm5365_vm7, %v5521_v12, %v5520_v59  ;;  %v5525_v50 = vrot.slane %v5319_v40, 1  ;;  %v3398_v5 = vrot.slane %v3397_v41, 4  ;;  %v3412_v11 = vrot.slane %v3411_v60, 4 }
 0x373   :  { %v5524_v34 = vsel %vm5368_vm8, %v5523_v20, %v5522_v15  ;;  %v3392_v0 = vmax.f32 %v3390_v23, %v3391_v16  ;;  %v3406_v9 = vmax.f32 %v3404_v3, %v3405_v53  ;;  %v1582_v47 = vrot.slane %v1568_v31, %v15637_v46 }
 0x374   :  { %v5526_v13 = vsel %vm5371_vm9, %v5525_v50, %v5524_v34  ;;  %v3399_v51 = vmax.f32 %v3397_v41, %v3398_v5  ;;  %v3413_v32 = vmax.f32 %v3411_v60, %v3412_v11  ;;  %v1583_v43 = vcombine.high %v1575_v61, %v1575_v61 }
 0x375   :  { %v5594_v57 = vpack.c.b16 %v5526_v13, %v5526_v13  ;;  %v3393_v37 = vrot.slane %v3392_v0, 2  ;;  %v3407_v18 = vrot.slane %v3406_v9, 2  ;;  %v1584_v26 = vcombine.high %v1582_v47, %v1582_v47 }
 0x376   :  { %v3400_v17 = vrot.slane %v3399_v51, 2  ;;  %v3414_v55 = vrot.slane %v3413_v32, 2  ;;  %v3474_v1 = vsel %vm19361_vm1, %v1575_v61, -inf  ;;  %v3481_v44 = vsel %vm19361_vm1, %v1583_v43, -inf }
 0x377   :  { %5627 = vst.msk [vmem:[#allocation2 + $0x120] sm:$0xf] %vm19359_vm0, %v5594_v57  ;;  %v3394_v52 = vmax.f32 %v3392_v0, %v3393_v37  ;;  %v3408_v58 = vmax.f32 %v3406_v9, %v3407_v18  ;;  %v3475_v56 = vrot.slane %v3474_v1, 4  ;;  %v3482_v24 = vrot.slane %v3481_v44, 4 }
 0x378   :  { %v3401_v30 = vmax.f32 %v3399_v51, %v3400_v17  ;;  %v3415_v35 = vmax.f32 %v3413_v32, %v3414_v55  ;;  %v3488_v6 = vsel %vm19361_vm1, %v1582_v47, -inf  ;;  %v3495_v31 = vsel %vm19361_vm1, %v1584_v26, -inf }
 0x379   :  { %v3395_v8 = vrot.slane %v3394_v52, 1  ;;  %v3409_v22 = vrot.slane %v3408_v58, 1  ;;  %v3476_v7 = vmax.f32 %v3474_v1, %v3475_v56  ;;  %v3483_v10 = vmax.f32 %v3481_v44, %v3482_v24 }
 0x37a   :  { %v3402_v21 = vrot.slane %v3401_v30, 1  ;;  %v3416_v61 = vrot.slane %v3415_v35, 1  ;;  %v3489_v36 = vrot.slane %v3488_v6, 4  ;;  %v3496_v23 = vrot.slane %v3495_v31, 4 }
 0x37b   :  { %v3396_v3 = vmax.f32 %v3394_v52, %v3395_v8  ;;  %v3410_v40 = vmax.f32 %v3408_v58, %v3409_v22  ;;  %v3477_v59 = vrot.slane %v3476_v7, 2  ;;  %v3484_v12 = vrot.slane %v3483_v10, 2  ;;  %v4607_v52 = vld [vmem:[#allocation2 + $0x68] sm:$0x8]  ;;  %v6310_v8 = vld [vmem:[#allocation2 + $0x6c] sm:$0xf] }
 0x37c   :  { %v3403_v20 = vmax.f32 %v3401_v30, %v3402_v21  ;;  %v3417_v16 = vmax.f32 %v3415_v35, %v3416_v61  ;;  %v3490_v41 = vmax.f32 %v3488_v6, %v3489_v36  ;;  %v3497_v53 = vmax.f32 %v3495_v31, %v3496_v23  ;;  %v17113_v22 = vpop.f32.mrb[59].mxu0  ;;  %v6312_v36 = vld [vmem:[#allocation2 + $0x80] sm:$0xf] }
 0x37d   :  { %v4127_v60 = vsel %vm19360_vm2, %v3396_v3, -inf  ;;  %v4133_v15 = vsel %vm19360_vm2, %v3410_v40, -inf  ;;  %v3478_v50 = vmax.f32 %v3476_v7, %v3477_v59  ;;  %v3485_v5 = vmax.f32 %v3483_v10, %v3484_v12 }
 0x37e   :  { %v4129_v11 = vmax.f32 %v4127_v60, %v17059_v38  ;;  %v4130_v34 = vsel %vm19360_vm2, %v3403_v20, -inf  ;;  %v4135_v0 = vmax.f32 %v4133_v15, %v17066_v62  ;;  %v4136_v9 = vsel %vm19360_vm2, %v3417_v16, -inf  ;;  %v7354_v60 = vld [vmem:[#allocation2 + $0x58] sm:$0xf] }
 0x37f   :  { %v4132_v47 = vmax.f32 %v4130_v34, %v17063_v28  ;;  %v4138_v13 = vmax.f32 %v4136_v9, %v17069_v14  ;;  %v3479_v51 = vrot.slane %v3478_v50, 1  ;;  %v3486_v32 = vrot.slane %v3485_v5, 1  ;;  %v4614_v14 = vld [vmem:[#allocation2 + $0x7c] sm:$0x8]  ;;  %v4611_v34 = vld [vmem:[#allocation2 + $0x70] sm:$0x1] }
 0x380   :  { %v4324_v43 = vadd.f32 %v16851_v42, %v4129_v11  ;;  %v4326_v57 = vadd.f32 %v16851_v42, %v4135_v0  ;;  %v3491_v37 = vrot.slane %v3490_v41, 2  ;;  %v3498_v18 = vrot.slane %v3497_v53, 2 }
 0x381   :  { %v4325_v38 = vadd.f32 %v16851_v42, %v4132_v47  ;;  %v4327_v26 = vadd.f32 %v16851_v42, %v4138_v13  ;;  %v3480_v17 = vmax.f32 %v3478_v50, %v3479_v51  ;;  %v3487_v62 = vmax.f32 %v3485_v5, %v3486_v32  ;;  %v15259_v51 = vld [vmem:[#allocation2 + $0xd0] ss:$20 sps:$4 sm:$0xff]  }
 0x382   :  { %v4452_v55 = vmax.f32 %v4324_v43, 0.0  ;;  %v4454_v1 = vmax.f32 %v4326_v57, 0.0  ;;  %v3492_v44 = vmax.f32 %v3490_v41, %v3491_v37  ;;  %v3499_v28 = vmax.f32 %v3497_v53, %v3498_v18  ;;  %v4604_v53 = vld [vmem:[#allocation2 + $0x5c] sm:$0x1]  ;;  %5978 = vrot.lane.b32.xlu1 %v15259_v51, %s15442_s5 }
 0x383   :  { %v4453_v58 = vmax.f32 %v4325_v38, 0.0  ;;  %v4455_v56 = vmax.f32 %v4327_v26, 0.0  ;;  %v17108_v24 = vsel %vm19360_vm2, %v3480_v17, -inf  ;;  %v17111_v30 = vsel %vm19360_vm2, %v3487_v62, -inf }
 0x384   :  { %v14671_v35 = vpack.c.bf16 %v4452_v55, %v4452_v55  ;;  %v14673_v6 = vpack.c.bf16 %v4454_v1, %v4454_v1  ;;  %v3493_v31 = vrot.slane %v3492_v44, 1  ;;  %v3500_v42 = vrot.slane %v3499_v28, 1 }
 0x385   :  { %v14672_v7 = vpack.c.bf16 %v4453_v58, %v4453_v58  ;;  %v14674_v10 = vpack.c.bf16 %v4455_v56, %v4455_v56  ;;  %v4608_v21 = vsel %vm16621_vm12, 0, %v4607_v52  ;;  %v4615_v61 = vsel %vm16621_vm12, 0, %v4614_v14 }
 0x386   :  { %v5320_v23 = vunpack.c.l.b16 %v14671_v35  ;;  %v5322_v3 = vunpack.c.l.b16 %v14673_v6  ;;  %v3494_v40 = vmax.f32 %v3492_v44, %v3493_v31  ;;  %v3501_v59 = vmax.f32 %v3499_v28, %v3500_v42  ;;  %4609 = vst [vmem:[#allocation2 + $0x68] sm:$0x8] %v4608_v21  ;;  %4616 = vst [vmem:[#allocation2 + $0x7c] sm:$0x8] %v4615_v61 }
 0x387   :  { %v5321_v12 = vunpack.c.l.b16 %v14672_v7  ;;  %v5323_v20 = vunpack.c.l.b16 %v14674_v10  ;;  %v6391_v16 = vshrl.u32 %v6310_v8, 16  ;;  %v6394_v41 = vshll.u32 %v6310_v8, 16 }
 0x388   :  { %v5529_v15 = vrot.slane %v5322_v3, 6  ;;  %v17120_v50 = vsel %vm19360_vm2, %v3494_v40, -inf  ;;  %v17123_v5 = vsel %vm19360_vm2, %v3501_v59, -inf  ;;  %v6404_v11 = vshrl.u32 %v6312_v36, 16 }
 0x389   :  { %v5527_v0 = vrot.slane %v5321_v12, 7  ;;  %v5531_v9 = vrot.slane %v5323_v20, 5  ;;  %v6393_v47 = vrot.slane %v6391_v16, 7  ;;  %v6407_v13 = vshll.u32 %v6312_v36, 16 }
 0x38a   :  { %v6406_v32 = vrot.slane %v6404_v11, 7  ;;  %v1534_v43 = vcombine.high %v16871_v25, %v16871_v25  ;;  %v1541_v57 = vrot.slane %v16871_v25, %v15637_v46  ;;  %v4605_v37 = vsel %vm16885_vm13, 0, %v4604_v53  ;;  %v7356_v25 = vld [vmem:[#allocation2 + $0x6c] sm:$0xf] }
 0x38b   :  { %v5528_v18 = vsel %vm5353_vm3, %v5527_v0, %v5320_v23  ;;  %v6396_v38 = vor.u32 %v6394_v41, %v6393_v47  ;;  %4606 = vst [vmem:[#allocation2 + $0x5c] sm:$0x1] %v4605_v37  ;;  %v4612_v26 = vsel %vm16885_vm13, 0, %v4611_v34  ;;  %v7411_v17 = vshrl.u32 %v7354_v60, 16 }
 0x38c   :  { %v5530_v62 = vsel %vm19364_vm4, %v5529_v15, %v5528_v18  ;;  %v6409_v55 = vor.u32 %v6407_v13, %v6406_v32  ;;  %v1548_v1 = vrot.slane %v1534_v43, %v15637_v46  ;;  %v1549_v44 = vcombine.high %v1541_v57, %v1541_v57  ;;  %4613 = vst [vmem:[#allocation2 + $0x70] sm:$0x1] %v4612_v26 }
 0x38d   :  { %v6309_v28 = vld [vmem:[#allocation2 + $0x68] sm:$0x8]  ;;  %v6311_v52 = vld [vmem:[#allocation2 + $0x7c] sm:$0x8]  ;;  %v3418_v14 = vsel %vm19361_vm1, %v1541_v57, -inf  ;;  %v17139_v58 = vsel %vm19363_vm5, %v5531_v9, %v5530_v62  ;;  %v7413_v56 = vrot.slane %v7411_v17, 4  ;;  %v1619_v35 = vcombine.high %v16949_v19, %v16949_v19 }
 0x38e   :  { %v6386_v6 = vshrl.u32 %v6309_v28, 16  ;;  %v6399_v31 = vshrl.u32 %v6311_v52, 16  ;;  %v1550_v42 = vcombine.high %v1548_v1, %v1548_v1  ;;  %v3419_v8 = vrot.slane %v3418_v14, 4 }
 0x38f   :  { %v3425_v7 = vsel %vm19361_vm1, %v1549_v44, -inf  ;;  %v3432_v10 = vsel %vm19361_vm1, %v1548_v1, -inf  ;;  %v7414_v21 = vshll.u32 %v7354_v60, 16  ;;  %v7425_v61 = vshrl.u32 %v7356_v25, 16 }
 0x390   :  { %v14020_v36 = vrot.slane %v6386_v6, 11  ;;  %v14021_v23 = vrot.slane %v6399_v31, 11  ;;  %v3420_v3 = vmax.f32 %v3418_v14, %v3419_v8  ;;  %v3426_v40 = vrot.slane %v3425_v7, 4 }
 0x391   :  { %v3433_v59 = vrot.slane %v3432_v10, 4  ;;  %v3439_v12 = vsel %vm19361_vm1, %v1550_v42, -inf  ;;  %v7416_v20 = vrot.slane %v7414_v21, 5  ;;  %v7427_v16 = vrot.slane %v7425_v61, 4 }
 0x392   :  { %v6397_v41 = vsel %vm16660_vm15, %v14020_v36, %v6396_v38  ;;  %v6410_v53 = vsel %vm16660_vm15, %v14021_v23, %v6409_v55  ;;  %v3421_v15 = vrot.slane %v3420_v3, 2  ;;  %v3427_v11 = vmax.f32 %v3425_v7, %v3426_v40  ;;  %v7355_v34 = vld [vmem:[#allocation2 + $0x5c] sm:$0x1] }
 0x393   :  { %v14034_v60 = vcombine.low %v6397_v41, %v6410_v53  ;;  %v3434_v0 = vmax.f32 %v3432_v10, %v3433_v59  ;;  %v3440_v9 = vrot.slane %v3439_v12, 4  ;;  %v7357_v47 = vld [vmem:[#allocation2 + $0x70] sm:$0x1]  ;;  %v7417_v13 = vor.u32 %v7416_v20, %v7413_v56  ;;  %v17163_v41 = vpop.f32.mrb[60].mxu0 }
 0x394   :  { %v3422_v51 = vmax.f32 %v3420_v3, %v3421_v15  ;;  %v3428_v32 = vrot.slane %v3427_v11, 2  ;;  %v7420_v43 = vshll.u32 %v7355_v34, 16  ;;  %v7428_v57 = vshll.u32 %v7356_v25, 16 }
 0x395   :  { %6569 = vrot.lane.b32.xlu0 %v14034_v60, %s15442_s5  ;;  %v3435_v37 = vrot.slane %v3434_v0, 2  ;;  %v3441_v18 = vmax.f32 %v3439_v12, %v3440_v9  ;;  %v7418_v38 = vrot.slane %v7417_v13, 4  ;;  %v7434_v26 = vshll.u32 %v7357_v47, 16  ;;  %v17174_v13 = vpop.f32.mrb[61].mxu0 }
 0x396   :  { %v3423_v17 = vrot.slane %v3422_v51, 1  ;;  %v3429_v62 = vmax.f32 %v3427_v11, %v3428_v32  ;;  %v7422_v55 = vrot.slane %v7420_v43, 5  ;;  %v7430_v1 = vrot.slane %v7428_v57, 5 }
 0x397   :  { %v3436_v44 = vmax.f32 %v3434_v0, %v3435_v37  ;;  %v3442_v28 = vrot.slane %v3441_v18, 2  ;;  %v7436_v52 = vrot.slane %v7434_v26, 5  ;;  %v1626_v14 = vrot.slane %v16949_v19, %v15637_v46 }
 0x398   :  { %v3424_v56 = vmax.f32 %v3422_v51, %v3423_v17  ;;  %v3430_v6 = vrot.slane %v3429_v62, 1  ;;  %v7423_v25 = vsel %vm16933_vm10, %v7418_v38, %v7422_v55  ;;  %v7431_v31 = vor.u32 %v7430_v1, %v7427_v16 }
 0x399   :  { %v3437_v42 = vrot.slane %v3436_v44, 1  ;;  %v3443_v8 = vmax.f32 %v3441_v18, %v3442_v28  ;;  %v1633_v7 = vrot.slane %v1619_v35, %v15637_v46  ;;  %v1634_v10 = vcombine.high %v1626_v14, %v1626_v14 }
 0x39a   :  { %v3431_v21 = vmax.f32 %v3429_v62, %v3430_v6  ;;  %v4139_v61 = vsel %vm19360_vm2, %v3424_v56, -inf  ;;  %v7432_v36 = vrot.slane %v7431_v31, 4  ;;  %v3558_v23 = vsel %vm19361_vm1, %v1626_v14, -inf }
 0x39b   :  { %v3438_v3 = vmax.f32 %v3436_v44, %v3437_v42  ;;  %v3444_v40 = vrot.slane %v3443_v8, 1  ;;  %v4141_v19 = vmax.f32 %v4139_v61, %v17108_v24  ;;  %v1635_v59 = vcombine.high %v1633_v7, %v1633_v7  ;;  %v17170_v24 = vld [vmem:[%s19350_s3] ss:$0 sm:$0xff] }
 0x39c   :  { %v4142_v12 = vsel %vm19360_vm2, %v3431_v21, -inf  ;;  %v7437_v20 = vsel %vm16933_vm10, %v7432_v36, %v7436_v52  ;;  %v3559_v16 = vrot.slane %v3558_v23, 4  ;;  %v3565_v35 = vsel %vm19361_vm1, %v1634_v10, -inf  ;;  %v17184_v52 = vpop.f32.mrb[62].mxu0 }
 0x39d   :  { %v3445_v53 = vmax.f32 %v3443_v8, %v3444_v40  ;;  %v4144_v15 = vmax.f32 %v4142_v12, %v17111_v30  ;;  %v4145_v11 = vsel %vm19360_vm2, %v3438_v3, -inf  ;;  %v4328_v34 = vadd.f32 %v17170_v24, %v4141_v19 }
 0x39e   :  { %v4147_v60 = vmax.f32 %v4145_v11, %v17120_v50  ;;  %v14089_v0 = vcombine.low %v7423_v25, %v7437_v20  ;;  %v3560_v9 = vmax.f32 %v3558_v23, %v3559_v16  ;;  %v3566_v47 = vrot.slane %v3565_v35, 4  ;;  %v17186_v25 = vpop.f32.mrb[63].mxu0 }
 0x39f   :  { %v4148_v51 = vsel %vm19360_vm2, %v3445_v53, -inf  ;;  %v4329_v30 = vadd.f32 %v17170_v24, %v4144_v15  ;;  %v4456_v32 = vmax.f32 %v4328_v34, 0.0  ;;  %v3572_v43 = vsel %vm19361_vm1, %v1633_v7, -inf }
 0x3a0   :  { %v4150_v57 = vmax.f32 %v4148_v51, %v17123_v5  ;;  %v4330_v37 = vadd.f32 %v17170_v24, %v4147_v60  ;;  %7639 = vst.msk [vmem:[#allocation5 + $0x48] sm:$0xff] %vm19360_vm2, %v14089_v0  ;;  %v3561_v18 = vrot.slane %v3560_v9, 2  ;;  %v3567_v50 = vmax.f32 %v3565_v35, %v3566_v47 }
 0x3a1   :  { %v4457_v38 = vmax.f32 %v4329_v30, 0.0  ;;  %v14675_v26 = vpack.c.bf16 %v4456_v32, %v4456_v32  ;;  %v3573_v17 = vrot.slane %v3572_v43, 4  ;;  %v3579_v62 = vsel %vm19361_vm1, %v1635_v59, -inf }
 0x3a2   :  { %v4331_v55 = vadd.f32 %v17170_v24, %v4150_v57  ;;  %v4458_v1 = vmax.f32 %v4330_v37, 0.0  ;;  %v3562_v44 = vmax.f32 %v3560_v9, %v3561_v18  ;;  %v3568_v28 = vrot.slane %v3567_v50, 2 }
 0x3a3   :  { %v14676_v14 = vpack.c.bf16 %v4457_v38, %v4457_v38  ;;  %v5324_v5 = vunpack.c.l.b16 %v14675_v26  ;;  %v3574_v56 = vmax.f32 %v3572_v43, %v3573_v17  ;;  %v3580_v6 = vrot.slane %v3579_v62, 4 }
 0x3a4   :  { %v4459_v31 = vmax.f32 %v4331_v55, 0.0  ;;  %v14677_v42 = vpack.c.bf16 %v4458_v1, %v4458_v1  ;;  %v3563_v8 = vrot.slane %v3562_v44, 1  ;;  %v3569_v7 = vmax.f32 %v3567_v50, %v3568_v28 }
 0x3a5   :  { %v5325_v10 = vunpack.c.l.b16 %v14676_v14  ;;  %v5533_v21 = vrot.slane %v5324_v5, 4  ;;  %v3575_v61 = vrot.slane %v3574_v56, 2  ;;  %v3581_v36 = vmax.f32 %v3579_v62, %v3580_v6 }
 0x3a6   :  { %v14678_v23 = vpack.c.bf16 %v4459_v31, %v4459_v31  ;;  %v5326_v3 = vunpack.c.l.b16 %v14677_v42  ;;  %v3564_v40 = vmax.f32 %v3562_v44, %v3563_v8  ;;  %v3570_v19 = vrot.slane %v3569_v7, 1 }
 0x3a7   :  { %v5534_v59 = vsel %vm5362_vm6, %v5533_v21, %v17139_v58  ;;  %v5535_v12 = vrot.slane %v5325_v10, 3  ;;  %v7655_v20 = vld [vmem:[#allocation5 + $0x48] sm:$0xff]  ;;  %v3576_v16 = vmax.f32 %v3574_v56, %v3575_v61  ;;  %v3582_v35 = vrot.slane %v3581_v36, 2 }
 0x3a8   :  { %v5327_v53 = vunpack.c.l.b16 %v14678_v23  ;;  %v5537_v15 = vrot.slane %v5326_v3, 2  ;;  %15143 = vmatmul.mubr.bf16.vlgmr.msra.gmra.mrb[64].mxu0 %v7655_v20  ;;  %v3571_v11 = vmax.f32 %v3569_v7, %v3570_v19  ;;  %v17191_v34 = vsel %vm19360_vm2, %v3564_v40, -inf }
 0x3a9   :  { %v5536_v60 = vsel %vm5365_vm7, %v5535_v12, %v5534_v59  ;;  %v3577_v0 = vrot.slane %v3576_v16, 1  ;;  %v3583_v9 = vmax.f32 %v3581_v36, %v3582_v35  ;;  %v1585_v47 = vcombine.high %v16951_v63, %v16951_v63 }
 0x3aa   :  { %v5538_v58 = vsel %vm5368_vm8, %v5537_v15, %v5536_v60  ;;  %v5539_v51 = vrot.slane %v5327_v53, 1  ;;  %v17198_v30 = vsel %vm19360_vm2, %v3571_v11, -inf  ;;  %v1592_v32 = vrot.slane %v16951_v63, %v15637_v46 }
 0x3ab   :  { %v3578_v43 = vmax.f32 %v3576_v16, %v3577_v0  ;;  %v3584_v57 = vrot.slane %v3583_v9, 1  ;;  %v1599_v37 = vrot.slane %v1585_v47, %v15637_v46  ;;  %v1636_v18 = vcombine.high %v16957_v49, %v16957_v49 }
 0x3ac   :  { %v5540_v50 = vsel %vm5371_vm9, %v5539_v51, %v5538_v58  ;;  %v1600_v38 = vcombine.high %v1592_v32, %v1592_v32  ;;  %v3502_v26 = vsel %vm19361_vm1, %v1592_v32, -inf  ;;  %v1643_v17 = vrot.slane %v16957_v49, %v15637_v46 }
 0x3ad   :  { %v5595_v62 = vpack.c.b16 %v5540_v50, %v5540_v50  ;;  %v3585_v55 = vmax.f32 %v3583_v9, %v3584_v57  ;;  %v17210_v1 = vsel %vm19360_vm2, %v3578_v43, -inf  ;;  %v1601_v63 = vcombine.high %v1599_v37, %v1599_v37 }
 0x3ae   :  { %v3503_v44 = vrot.slane %v3502_v26, 4  ;;  %v3509_v28 = vsel %vm19361_vm1, %v1600_v38, -inf  ;;  %v3516_v14 = vsel %vm19361_vm1, %v1599_v37, -inf  ;;  %v1650_v5 = vrot.slane %v1636_v18, %v15637_v46 }
 0x3af   :  { %5628 = vst.msk [vmem:[#allocation2 + $0x134] sm:$0xf] %vm19359_vm0, %v5595_v62  ;;  %v17217_v56 = vsel %vm19360_vm2, %v3585_v55, -inf  ;;  %v3510_v6 = vrot.slane %v3509_v28, 4  ;;  %v3517_v49 = vrot.slane %v3516_v14, 4  ;;  %v3523_v31 = vsel %vm19361_vm1, %v1601_v63, -inf }
 0x3b0   :  { %v3504_v42 = vmax.f32 %v3502_v26, %v3503_v44  ;;  %v3524_v8 = vrot.slane %v3523_v31, 4  ;;  %v1651_v7 = vcombine.high %v1643_v17, %v1643_v17  ;;  %v1652_v10 = vcombine.high %v1650_v5, %v1650_v5 }
 0x3b1   :  { %v3511_v21 = vmax.f32 %v3509_v28, %v3510_v6  ;;  %v3518_v61 = vmax.f32 %v3516_v14, %v3517_v49  ;;  %v3586_v36 = vsel %vm19361_vm1, %v1643_v17, -inf  ;;  %v3600_v23 = vsel %vm19361_vm1, %v1650_v5, -inf }
 0x3b2   :  { %v3505_v3 = vrot.slane %v3504_v42, 2  ;;  %v3525_v40 = vmax.f32 %v3523_v31, %v3524_v8  ;;  %v3587_v19 = vrot.slane %v3586_v36, 4  ;;  %v3593_v59 = vsel %vm19361_vm1, %v1651_v7, -inf }
 0x3b3   :  { %v3512_v12 = vrot.slane %v3511_v21, 2  ;;  %v3519_v20 = vrot.slane %v3518_v61, 2  ;;  %v3594_v16 = vrot.slane %v3593_v59, 4  ;;  %v3601_v35 = vrot.slane %v3600_v23, 4 }
 0x3b4   :  { %v3506_v53 = vmax.f32 %v3504_v42, %v3505_v3  ;;  %v3526_v15 = vrot.slane %v3525_v40, 2  ;;  %v3588_v11 = vmax.f32 %v3586_v36, %v3587_v19  ;;  %v3607_v60 = vsel %vm19361_vm1, %v1652_v10, -inf }
 0x3b5   :  { %v3513_v0 = vmax.f32 %v3511_v21, %v3512_v12  ;;  %v3520_v9 = vmax.f32 %v3518_v61, %v3519_v20  ;;  %v3595_v47 = vmax.f32 %v3593_v59, %v3594_v16  ;;  %v3602_v58 = vmax.f32 %v3600_v23, %v3601_v35 }
 0x3b6   :  { %v3507_v51 = vrot.slane %v3506_v53, 1  ;;  %v3527_v32 = vmax.f32 %v3525_v40, %v3526_v15  ;;  %v3589_v43 = vrot.slane %v3588_v11, 2  ;;  %v3608_v57 = vrot.slane %v3607_v60, 4 }
 0x3b7   :  { %v3514_v37 = vrot.slane %v3513_v0, 1  ;;  %v3521_v18 = vrot.slane %v3520_v9, 1  ;;  %v3596_v50 = vrot.slane %v3595_v47, 2  ;;  %v3603_v38 = vrot.slane %v3602_v58, 2 }
 0x3b8   :  { %v3508_v26 = vmax.f32 %v3506_v53, %v3507_v51  ;;  %v3528_v17 = vrot.slane %v3527_v32, 1  ;;  %v3590_v62 = vmax.f32 %v3588_v11, %v3589_v43  ;;  %v3609_v55 = vmax.f32 %v3607_v60, %v3608_v57 }
 0x3b9   :  { %v3515_v63 = vmax.f32 %v3513_v0, %v3514_v37  ;;  %v3522_v44 = vmax.f32 %v3520_v9, %v3521_v18  ;;  %v3597_v28 = vmax.f32 %v3595_v47, %v3596_v50  ;;  %v3604_v14 = vmax.f32 %v3602_v58, %v3603_v38 }
 0x3ba   :  { %v3529_v5 = vmax.f32 %v3527_v32, %v3528_v17  ;;  %v4151_v6 = vsel %vm19360_vm2, %v3508_v26, -inf  ;;  %v3591_v49 = vrot.slane %v3590_v62, 1  ;;  %v3610_v31 = vrot.slane %v3609_v55, 2 }
 0x3bb   :  { %v4153_v42 = vmax.f32 %v4151_v6, %v17191_v34  ;;  %v4154_v8 = vsel %vm19360_vm2, %v3515_v63, -inf  ;;  %v4157_v7 = vsel %vm19360_vm2, %v3522_v44, -inf  ;;  %v3598_v10 = vrot.slane %v3597_v28, 1 }
 0x3bc   :  { %v4156_v21 = vmax.f32 %v4154_v8, %v17198_v30  ;;  %v4159_v61 = vmax.f32 %v4157_v7, %v17210_v1  ;;  %v4160_v36 = vsel %vm19360_vm2, %v3529_v5, -inf  ;;  %v3592_v23 = vmax.f32 %v3590_v62, %v3591_v49 }
 0x3bd   :  { %v4162_v3 = vmax.f32 %v4160_v36, %v17217_v56  ;;  %v4332_v40 = vadd.f32 %v17170_v24, %v4153_v42  ;;  %v3599_v19 = vmax.f32 %v3597_v28, %v3598_v10  ;;  %v3605_v59 = vrot.slane %v3604_v14, 1 }
 0x3be   :  { %v4333_v34 = vadd.f32 %v17170_v24, %v4156_v21  ;;  %v4334_v12 = vadd.f32 %v17170_v24, %v4159_v61  ;;  %v3611_v20 = vmax.f32 %v3609_v55, %v3610_v31  ;;  %v17236_v16 = vsel %vm19360_vm2, %v3592_v23, -inf }
 0x3bf   :  { %v4335_v30 = vadd.f32 %v17170_v24, %v4162_v3  ;;  %v4460_v1 = vmax.f32 %v4332_v40, 0.0  ;;  %v3606_v35 = vmax.f32 %v3604_v14, %v3605_v59  ;;  %v17240_v53 = vsel %vm19360_vm2, %v3599_v19, -inf }
 0x3c0   :  { %v4461_v56 = vmax.f32 %v4333_v34, 0.0  ;;  %v4462_v15 = vmax.f32 %v4334_v12, 0.0  ;;  %v3612_v11 = vrot.slane %v3611_v20, 1  ;;  %v1602_v60 = vcombine.high %v16959_v39, %v16959_v39 }
 0x3c1   :  { %v4463_v0 = vmax.f32 %v4335_v30, 0.0  ;;  %v14679_v9 = vpack.c.bf16 %v4460_v1, %v4460_v1  ;;  %v17245_v47 = vsel %vm19360_vm2, %v3606_v35, -inf  ;;  %v1609_v58 = vrot.slane %v16959_v39, %v15637_v46 }
 0x3c2   :  { %v14680_v51 = vpack.c.bf16 %v4461_v56, %v4461_v56  ;;  %v14681_v32 = vpack.c.bf16 %v4462_v15, %v4462_v15  ;;  %v3613_v43 = vmax.f32 %v3611_v20, %v3612_v11  ;;  %v1616_v57 = vrot.slane %v1602_v60, %v15637_v46 }
 0x3c3   :  { %v14682_v37 = vpack.c.bf16 %v4463_v0, %v4463_v0  ;;  %v5328_v18 = vunpack.c.l.b16 %v14679_v9  ;;  %v1617_v50 = vcombine.high %v1609_v58, %v1609_v58  ;;  %v3530_v38 = vsel %vm19361_vm1, %v1609_v58, -inf }
 0x3c4   :  { %v5329_v26 = vunpack.c.l.b16 %v14680_v51  ;;  %v5330_v17 = vunpack.c.l.b16 %v14681_v32  ;;  %v17252_v62 = vsel %vm19360_vm2, %v3613_v43, -inf  ;;  %v1618_v55 = vcombine.high %v1616_v57, %v1616_v57 }
 0x3c5   :  { %v5331_v63 = vunpack.c.l.b16 %v14682_v37  ;;  %v3531_v44 = vrot.slane %v3530_v38, 4  ;;  %v3537_v39 = vsel %vm19361_vm1, %v1617_v50, -inf  ;;  %v3544_v28 = vsel %vm19361_vm1, %v1616_v57, -inf }
 0x3c6   :  { %v5541_v14 = vrot.slane %v5329_v26, 7  ;;  %v5543_v5 = vrot.slane %v5330_v17, 6  ;;  %v3538_v6 = vrot.slane %v3537_v39, 4  ;;  %v3545_v49 = vrot.slane %v3544_v28, 4 }
 0x3c7   :  { %v5545_v31 = vrot.slane %v5331_v63, 5  ;;  %v3532_v42 = vmax.f32 %v3530_v38, %v3531_v44  ;;  %v3551_v8 = vsel %vm19361_vm1, %v1618_v55, -inf  ;;  %v1687_v7 = vcombine.high %v16995_v27, %v16995_v27 }
 0x3c8   :  { %v5542_v10 = vsel %vm5353_vm3, %v5541_v14, %v5328_v18  ;;  %v3539_v21 = vmax.f32 %v3537_v39, %v3538_v6  ;;  %v3546_v61 = vmax.f32 %v3544_v28, %v3545_v49  ;;  %v3552_v36 = vrot.slane %v3551_v8, 4 }
 0x3c9   :  { %v5544_v23 = vsel %vm19364_vm4, %v5543_v5, %v5542_v10  ;;  %v3533_v3 = vrot.slane %v3532_v42, 2  ;;  %v1694_v40 = vrot.slane %v16995_v27, %v15637_v46  ;;  %v1701_v19 = vrot.slane %v1687_v7, %v15637_v46 }
 0x3ca   :  { %v3540_v59 = vrot.slane %v3539_v21, 2  ;;  %v3547_v34 = vrot.slane %v3546_v61, 2  ;;  %v3553_v12 = vmax.f32 %v3551_v8, %v3552_v36  ;;  %v17265_v20 = vsel %vm19363_vm5, %v5545_v31, %v5544_v23 }
 0x3cb   :  { %v3534_v30 = vmax.f32 %v3532_v42, %v3533_v3  ;;  %v1702_v1 = vcombine.high %v1694_v40, %v1694_v40  ;;  %v1703_v35 = vcombine.high %v1701_v19, %v1701_v19  ;;  %v3670_v56 = vsel %vm19361_vm1, %v1694_v40, -inf  ;;  %v15260_v40 = vld [vmem:[#allocation2 + $0xf8] ss:$20 sps:$4 sm:$0xff]  }
 0x3cc   :  { %v3541_v15 = vmax.f32 %v3539_v21, %v3540_v59  ;;  %v3548_v11 = vmax.f32 %v3546_v61, %v3547_v34  ;;  %v3554_v60 = vrot.slane %v3553_v12, 2  ;;  %v3671_v0 = vrot.slane %v3670_v56, 4  ;;  %5980 = vrot.lane.b32.xlu1 %v15260_v40, %s15442_s5 }
 0x3cd   :  { %v3535_v9 = vrot.slane %v3534_v30, 1  ;;  %v3677_v27 = vsel %vm19361_vm1, %v1702_v1, -inf  ;;  %v3684_v58 = vsel %vm19361_vm1, %v1701_v19, -inf  ;;  %v3691_v51 = vsel %vm19361_vm1, %v1703_v35, -inf }
 0x3ce   :  { %v3542_v32 = vrot.slane %v3541_v15, 1  ;;  %v3549_v43 = vrot.slane %v3548_v11, 1  ;;  %v3555_v57 = vmax.f32 %v3553_v12, %v3554_v60  ;;  %v3672_v37 = vmax.f32 %v3670_v56, %v3671_v0 }
 0x3cf   :  { %v3536_v18 = vmax.f32 %v3534_v30, %v3535_v9  ;;  %v3678_v50 = vrot.slane %v3677_v27, 4  ;;  %v3685_v38 = vrot.slane %v3684_v58, 4  ;;  %v3692_v26 = vrot.slane %v3691_v51, 4 }
 0x3d0   :  { %v3543_v17 = vmax.f32 %v3541_v15, %v3542_v32  ;;  %v3550_v55 = vmax.f32 %v3548_v11, %v3549_v43  ;;  %v3556_v63 = vrot.slane %v3555_v57, 1  ;;  %v3673_v44 = vrot.slane %v3672_v37, 2 }
 0x3d1   :  { %v4163_v39 = vsel %vm19360_vm2, %v3536_v18, -inf  ;;  %v3679_v28 = vmax.f32 %v3677_v27, %v3678_v50  ;;  %v3686_v14 = vmax.f32 %v3684_v58, %v3685_v38  ;;  %v3693_v5 = vmax.f32 %v3691_v51, %v3692_v26  ;;  %v15261_v18 = vld [vmem:[#allocation2 + $0x120] ss:$20 sps:$4 sm:$0xff]  }
 0x3d2   :  { %v3557_v6 = vmax.f32 %v3555_v57, %v3556_v63  ;;  %v4165_v49 = vmax.f32 %v4163_v39, %v17236_v16  ;;  %v4166_v31 = vsel %vm19360_vm2, %v3543_v17, -inf  ;;  %v4169_v42 = vsel %vm19360_vm2, %v3550_v55, -inf  ;;  %5982 = vrot.lane.b32.xlu1 %v15261_v18, %s15442_s5 }
 0x3d3   :  { %v4168_v8 = vmax.f32 %v4166_v31, %v17240_v53  ;;  %v4171_v7 = vmax.f32 %v4169_v42, %v17245_v47  ;;  %v3674_v10 = vmax.f32 %v3672_v37, %v3673_v44  ;;  %v3680_v21 = vrot.slane %v3679_v28, 2 }
 0x3d4   :  { %v4172_v61 = vsel %vm19360_vm2, %v3557_v6, -inf  ;;  %v4336_v36 = vadd.f32 %v17170_v24, %v4165_v49  ;;  %v3687_v23 = vrot.slane %v3686_v14, 2  ;;  %v3694_v3 = vrot.slane %v3693_v5, 2 }
 0x3d5   :  { %v4174_v19 = vmax.f32 %v4172_v61, %v17252_v62  ;;  %v4337_v16 = vadd.f32 %v17170_v24, %v4168_v8  ;;  %v4338_v59 = vadd.f32 %v17170_v24, %v4171_v7  ;;  %v3675_v34 = vrot.slane %v3674_v10, 1 }
 0x3d6   :  { %v4464_v12 = vmax.f32 %v4336_v36, 0.0  ;;  %v3681_v53 = vmax.f32 %v3679_v28, %v3680_v21  ;;  %v3688_v30 = vmax.f32 %v3686_v14, %v3687_v23  ;;  %v3695_v47 = vmax.f32 %v3693_v5, %v3694_v3 }
 0x3d7   :  { %v4339_v1 = vadd.f32 %v17170_v24, %v4174_v19  ;;  %v4465_v35 = vmax.f32 %v4337_v16, 0.0  ;;  %v4466_v56 = vmax.f32 %v4338_v59, 0.0  ;;  %v3676_v15 = vmax.f32 %v3674_v10, %v3675_v34 }
 0x3d8   :  { %v14683_v11 = vpack.c.bf16 %v4464_v12, %v4464_v12  ;;  %v3682_v60 = vrot.slane %v3681_v53, 1  ;;  %v3689_v0 = vrot.slane %v3688_v30, 1  ;;  %v3696_v62 = vrot.slane %v3695_v47, 1 }
 0x3d9   :  { %v4467_v9 = vmax.f32 %v4339_v1, 0.0  ;;  %v14684_v27 = vpack.c.bf16 %v4465_v35, %v4465_v35  ;;  %v14685_v58 = vpack.c.bf16 %v4466_v56, %v4466_v56  ;;  %v17285_v51 = vsel %vm19360_vm2, %v3676_v15, -inf }
 0x3da   :  { %v5332_v32 = vunpack.c.l.b16 %v14683_v11  ;;  %v3683_v43 = vmax.f32 %v3681_v53, %v3682_v60  ;;  %v3690_v57 = vmax.f32 %v3688_v30, %v3689_v0  ;;  %v3697_v37 = vmax.f32 %v3695_v47, %v3696_v62 }
 0x3db   :  { %v14686_v50 = vpack.c.bf16 %v4467_v9, %v4467_v9  ;;  %v5333_v38 = vunpack.c.l.b16 %v14684_v27  ;;  %v5334_v26 = vunpack.c.l.b16 %v14685_v58  ;;  %v1653_v17 = vcombine.high %v17001_v2, %v17001_v2 }
 0x3dc   :  { %v5547_v55 = vrot.slane %v5332_v32, 4  ;;  %v17290_v63 = vsel %vm19360_vm2, %v3683_v43, -inf  ;;  %v17293_v44 = vsel %vm19360_vm2, %v3690_v57, -inf  ;;  %v17296_v39 = vsel %vm19360_vm2, %v3697_v37, -inf }
 0x3dd   :  { %v5335_v28 = vunpack.c.l.b16 %v14686_v50  ;;  %v5549_v14 = vrot.slane %v5333_v38, 3  ;;  %v5551_v5 = vrot.slane %v5334_v26, 2  ;;  %v1660_v6 = vrot.slane %v17001_v2, %v15637_v46  ;;  %v15262_v38 = vld [vmem:[%s19349_s2 + $0x40] sm:$0xff]  }
 0x3de   :  { %v5548_v49 = vsel %vm5362_vm6, %v5547_v55, %v17265_v20  ;;  %v1667_v31 = vrot.slane %v1653_v17, %v15637_v46  ;;  %v1704_v42 = vcombine.high %v17045_v4, %v17045_v4  ;;  %v1711_v8 = vrot.slane %v17045_v4, %v15637_v46  ;;  %v15263_v26 = vld [vmem:[%s19349_s2] sm:$0xff]   ;;  %14783 = vmatprep.subr.bf16.mxu1 %v15262_v38 }
 0x3df   :  { %v5550_v7 = vsel %vm5365_vm7, %v5549_v14, %v5548_v49  ;;  %v5553_v10 = vrot.slane %v5335_v28, 1  ;;  %v1668_v21 = vcombine.high %v1660_v6, %v1660_v6  ;;  %v3614_v61 = vsel %vm19361_vm1, %v1660_v6, -inf  ;;  %14784 = vmatpush3.bf16.msra.mxu1 %v15263_v26 }
 0x3e0   :  { %v5552_v36 = vsel %vm5368_vm8, %v5551_v5, %v5550_v7  ;;  %v1669_v2 = vcombine.high %v1667_v31, %v1667_v31  ;;  %v3615_v23 = vrot.slane %v3614_v61, 4  ;;  %v3628_v20 = vsel %vm19361_vm1, %v1667_v31, -inf }
 0x3e1   :  { %v5554_v3 = vsel %vm5371_vm9, %v5553_v10, %v5552_v36  ;;  %v3621_v40 = vsel %vm19361_vm1, %v1668_v21, -inf  ;;  %v3629_v19 = vrot.slane %v3628_v20, 4  ;;  %v1718_v16 = vrot.slane %v1704_v42, %v15637_v46 }
 0x3e2   :  { %v5596_v4 = vpack.c.b16 %v5554_v3, %v5554_v3  ;;  %v3616_v59 = vmax.f32 %v3614_v61, %v3615_v23  ;;  %v3622_v34 = vrot.slane %v3621_v40, 4  ;;  %v3635_v12 = vsel %vm19361_vm1, %v1669_v2, -inf }
 0x3e3   :  { %v3630_v53 = vmax.f32 %v3628_v20, %v3629_v19  ;;  %v3636_v30 = vrot.slane %v3635_v12, 4  ;;  %v1719_v47 = vcombine.high %v1711_v8, %v1711_v8  ;;  %v1720_v1 = vcombine.high %v1718_v16, %v1718_v16 }
 0x3e4   :  { %5629 = vst.msk [vmem:[#allocation2 + $0x148] sm:$0xf] %vm19359_vm0, %v5596_v4  ;;  %v3617_v35 = vrot.slane %v3616_v59, 2  ;;  %v3623_v56 = vmax.f32 %v3621_v40, %v3622_v34  ;;  %v3698_v15 = vsel %vm19361_vm1, %v1711_v8, -inf  ;;  %v3712_v11 = vsel %vm19361_vm1, %v1718_v16, -inf }
 0x3e5   :  { %v3631_v60 = vrot.slane %v3630_v53, 2  ;;  %v3637_v0 = vmax.f32 %v3635_v12, %v3636_v30  ;;  %v3699_v62 = vrot.slane %v3698_v15, 4  ;;  %v3705_v9 = vsel %vm19361_vm1, %v1719_v47, -inf }
 0x3e6   :  { %v3618_v27 = vmax.f32 %v3616_v59, %v3617_v35  ;;  %v3624_v58 = vrot.slane %v3623_v56, 2  ;;  %v3706_v32 = vrot.slane %v3705_v9, 4  ;;  %v3713_v43 = vrot.slane %v3712_v11, 4 }
 0x3e7   :  { %v3632_v57 = vmax.f32 %v3630_v53, %v3631_v60  ;;  %v3638_v37 = vrot.slane %v3637_v0, 2  ;;  %v3700_v18 = vmax.f32 %v3698_v15, %v3699_v62  ;;  %v3719_v50 = vsel %vm19361_vm1, %v1720_v1, -inf  ;;  %v4628_v62 = vld [vmem:[#allocation2 + $0xa4] sm:$0x8] }
 0x3e8   :  { %v3619_v17 = vrot.slane %v3618_v27, 1  ;;  %v3625_v55 = vmax.f32 %v3623_v56, %v3624_v58  ;;  %v3707_v28 = vmax.f32 %v3705_v9, %v3706_v32  ;;  %v3714_v14 = vmax.f32 %v3712_v11, %v3713_v43  ;;  %v6314_v9 = vld [vmem:[#allocation2 + $0x94] sm:$0xf]  ;;  %v15265_v32 = vld [vmem:[%s19349_s2 + $0x48] sm:$0xff]  }
 0x3e9   :  { %v3633_v5 = vrot.slane %v3632_v57, 1  ;;  %v3639_v6 = vmax.f32 %v3637_v0, %v3638_v37  ;;  %v3701_v49 = vrot.slane %v3700_v18, 2  ;;  %v3720_v31 = vrot.slane %v3719_v50, 4  ;;  %v4621_v0 = vld [vmem:[#allocation2 + $0x90] sm:$0x8]  ;;  %14785 = vmatprep.subr.bf16.mxu1 %v15265_v32 }
 0x3ea   :  { %v3620_v42 = vmax.f32 %v3618_v27, %v3619_v17  ;;  %v3626_v8 = vrot.slane %v3625_v55, 1  ;;  %v3708_v7 = vrot.slane %v3707_v28, 2  ;;  %v3715_v10 = vrot.slane %v3714_v14, 2  ;;  %v15267_v43 = vld [vmem:[%s19349_s2 + $0x50] sm:$0xff]  }
 0x3eb   :  { %v3634_v21 = vmax.f32 %v3632_v57, %v3633_v5  ;;  %v3640_v61 = vrot.slane %v3639_v6, 1  ;;  %v3702_v36 = vmax.f32 %v3700_v18, %v3701_v49  ;;  %v3721_v2 = vmax.f32 %v3719_v50, %v3720_v31  ;;  %v15268_v31 = vld [vmem:[%s19349_s2 + $0x10] sm:$0xff]  }
 0x3ec   :  { %v3627_v23 = vmax.f32 %v3625_v55, %v3626_v8  ;;  %v4175_v20 = vsel %vm19360_vm2, %v3620_v42, -inf  ;;  %v3709_v3 = vmax.f32 %v3707_v28, %v3708_v7  ;;  %v3716_v40 = vmax.f32 %v3714_v14, %v3715_v10  ;;  %v6316_v28 = vld [vmem:[#allocation2 + $0xa8] sm:$0xf] }
 0x3ed   :  { %v3641_v19 = vmax.f32 %v3639_v6, %v3640_v61  ;;  %v4177_v16 = vmax.f32 %v4175_v20, %v17285_v51  ;;  %v4181_v4 = vsel %vm19360_vm2, %v3634_v21, -inf  ;;  %v3703_v59 = vrot.slane %v3702_v36, 1  ;;  %v15269_v21 = vld [vmem:[%s19349_s2 + $0x58] sm:$0xff]  }
 0x3ee   :  { %v4178_v34 = vsel %vm19360_vm2, %v3627_v23, -inf  ;;  %v4183_v12 = vmax.f32 %v4181_v4, %v17293_v44  ;;  %v3710_v53 = vrot.slane %v3709_v3, 1  ;;  %v3717_v30 = vrot.slane %v3716_v40, 1  ;;  %v4625_v4 = vld [vmem:[#allocation2 + $0x98] sm:$0x1] }
 0x3ef   :  { %v4180_v47 = vmax.f32 %v4178_v34, %v17290_v63  ;;  %v4184_v1 = vsel %vm19360_vm2, %v3641_v19, -inf  ;;  %v4340_v35 = vadd.f32 %v17170_v24, %v4177_v16  ;;  %v3704_v56 = vmax.f32 %v3702_v36, %v3703_v59  ;;  %v4618_v16 = vld [vmem:[#allocation2 + $0x84] sm:$0x1] }
 0x3f0   :  { %v4186_v15 = vmax.f32 %v4184_v1, %v17296_v39  ;;  %v4342_v51 = vadd.f32 %v17170_v24, %v4183_v12  ;;  %v3711_v11 = vmax.f32 %v3709_v3, %v3710_v53  ;;  %v3718_v60 = vmax.f32 %v3716_v40, %v3717_v30  ;;  %v15266_v39 = vld [vmem:[%s19349_s2 + $0x8] sm:$0xff]   ;;  %v15270_v30 = vld [vmem:[%s19349_s2 + $0x18] sm:$0xff]  }
 0x3f1   :  { %v4341_v44 = vadd.f32 %v17170_v24, %v4180_v47  ;;  %v4468_v27 = vmax.f32 %v4340_v35, 0.0  ;;  %v3722_v58 = vrot.slane %v3721_v2, 2  ;;  %v17339_v63 = vsel %vm19360_vm2, %v3704_v56, -inf  ;;  %14786 = vmatpush3.bf16.msra.mxu1 %v15266_v39 }
 0x3f2   :  { %v4343_v57 = vadd.f32 %v17170_v24, %v4186_v15  ;;  %v4470_v37 = vmax.f32 %v4342_v51, 0.0  ;;  %v17352_v18 = vsel %vm19360_vm2, %v3711_v11, -inf  ;;  %v17355_v50 = vsel %vm19360_vm2, %v3718_v60, -inf  ;;  %14787 = vmatprep.subr.bf16.mxu1 %v15267_v43  ;;  %v15271_v15 = vld [vmem:[%s19349_s2 + $0x60] sm:$0xff]  }
 0x3f3   :  { %v4469_v38 = vmax.f32 %v4341_v44, 0.0  ;;  %v14687_v26 = vpack.c.bf16 %v4468_v27, %v4468_v27  ;;  %v3723_v17 = vmax.f32 %v3721_v2, %v3722_v58  ;;  %v4622_v55 = vsel %vm16621_vm12, 0, %v4621_v0  ;;  %v7358_v58 = vld [vmem:[#allocation2 + $0x80] sm:$0xf] }
 0x3f4   :  { %v4471_v14 = vmax.f32 %v4343_v57, 0.0  ;;  %v14689_v5 = vpack.c.bf16 %v4470_v37, %v4470_v37  ;;  %4623 = vst [vmem:[#allocation2 + $0x90] sm:$0x8] %v4622_v55  ;;  %v4629_v6 = vsel %vm16621_vm12, 0, %v4628_v62  ;;  %v6417_v49 = vshrl.u32 %v6314_v9, 16 }
 0x3f5   :  { %v14688_v42 = vpack.c.bf16 %v4469_v38, %v4469_v38  ;;  %v5336_v8 = vunpack.c.l.b16 %v14687_v26  ;;  %v3724_v7 = vrot.slane %v3723_v17, 1  ;;  %4630 = vst [vmem:[#allocation2 + $0xa4] sm:$0x8] %v4629_v6  ;;  %v6420_v10 = vshll.u32 %v6314_v9, 16  ;;  %14788 = vmatpush3.bf16.msra.mxu1 %v15268_v31  ;;  %v15272_v38 = vld [vmem:[%s19349_s2 + $0x20] sm:$0xff]  }
 0x3f6   :  { %v14690_v61 = vpack.c.bf16 %v4471_v14, %v4471_v14  ;;  %v5338_v36 = vunpack.c.l.b16 %v14689_v5  ;;  %v6419_v2 = vrot.slane %v6417_v49, 7  ;;  %v6430_v23 = vshrl.u32 %v6316_v28, 16  ;;  %14789 = vmatprep.subr.bf16.mxu1 %v15269_v21 }
 0x3f7   :  { %v5337_v20 = vunpack.c.l.b16 %v14688_v42  ;;  %v3725_v3 = vmax.f32 %v3723_v17, %v3724_v7  ;;  %v6433_v40 = vshll.u32 %v6316_v28, 16  ;;  %v1670_v19 = vcombine.high %v17113_v22, %v17113_v22 }
 0x3f8   :  { %v5339_v59 = vunpack.c.l.b16 %v14690_v61  ;;  %v5557_v34 = vrot.slane %v5338_v36, 6  ;;  %v6422_v12 = vor.u32 %v6420_v10, %v6419_v2  ;;  %v6432_v53 = vrot.slane %v6430_v23, 7  ;;  %v7360_v2 = vld [vmem:[#allocation2 + $0x94] sm:$0xf] }
 0x3f9   :  { %v5555_v47 = vrot.slane %v5337_v20, 7  ;;  %v17373_v1 = vsel %vm19360_vm2, %v3725_v3, -inf  ;;  %v1677_v35 = vrot.slane %v17113_v22, %v15637_v46  ;;  %v1684_v56 = vrot.slane %v1670_v19, %v15637_v46  ;;  %14790 = vmatpush3.bf16.msra.mxu1 %v15270_v30 }
 0x3fa   :  { %v5559_v51 = vrot.slane %v5339_v59, 5  ;;  %v6435_v11 = vor.u32 %v6433_v40, %v6432_v53  ;;  %v4619_v60 = vsel %vm16885_vm13, 0, %v4618_v16  ;;  %v4626_v0 = vsel %vm16885_vm13, 0, %v4625_v4  ;;  %14791 = vmatprep.subr.bf16.mxu1 %v15271_v15 }
 0x3fb   :  { %v5556_v62 = vsel %vm5353_vm3, %v5555_v47, %v5336_v8  ;;  %v6313_v9 = vld [vmem:[#allocation2 + $0x90] sm:$0x8]  ;;  %v1685_v44 = vcombine.high %v1677_v35, %v1677_v35  ;;  %v1686_v22 = vcombine.high %v1684_v56, %v1684_v56  ;;  %v3642_v27 = vsel %vm19361_vm1, %v1677_v35, -inf  ;;  %4620 = vst [vmem:[#allocation2 + $0x84] sm:$0x1] %v4619_v60 }
 0x3fc   :  { %4627 = vst [vmem:[#allocation2 + $0x98] sm:$0x1] %v4626_v0  ;;  %v5558_v32 = vsel %vm19364_vm4, %v5557_v34, %v5556_v62  ;;  %v6315_v39 = vld [vmem:[#allocation2 + $0xa4] sm:$0x8]  ;;  %v6412_v43 = vshrl.u32 %v6313_v9, 16  ;;  %v3643_v57 = vrot.slane %v3642_v27, 4 }
 0x3fd   :  { %v3656_v37 = vsel %vm19361_vm1, %v1684_v56, -inf  ;;  %v6425_v26 = vshrl.u32 %v6315_v39, 16  ;;  %v3649_v17 = vsel %vm19361_vm1, %v1685_v44, -inf  ;;  %v3663_v28 = vsel %vm19361_vm1, %v1686_v22, -inf  ;;  %14792 = vmatpush3.bf16.msra.mxu1 %v15272_v38 }
 0x3fe   :  { %v3657_v55 = vrot.slane %v3656_v37, 4  ;;  %v14022_v14 = vrot.slane %v6412_v43, 11  ;;  %v3644_v5 = vmax.f32 %v3642_v27, %v3643_v57  ;;  %v3650_v6 = vrot.slane %v3649_v17, 4 }
 0x3ff   :  { %v3664_v49 = vrot.slane %v3663_v28, 4  ;;  %v14023_v31 = vrot.slane %v6425_v26, 11  ;;  %v17395_v8 = vsel %vm19363_vm5, %v5559_v51, %v5558_v32  ;;  %v7439_v7 = vshrl.u32 %v7358_v58, 16 }
 0x400   :  { %v3658_v42 = vmax.f32 %v3656_v37, %v3657_v55  ;;  %v6423_v10 = vsel %vm16660_vm15, %v14022_v14, %v6422_v12  ;;  %v3645_v21 = vrot.slane %v3644_v5, 2  ;;  %v3651_v61 = vmax.f32 %v3649_v17, %v3650_v6 }
 0x401   :  { %v3665_v36 = vmax.f32 %v3663_v28, %v3664_v49  ;;  %v6436_v23 = vsel %vm16660_vm15, %v14023_v31, %v6435_v11  ;;  %v7441_v3 = vrot.slane %v7439_v7, 4  ;;  %v7442_v40 = vshll.u32 %v7358_v58, 16 }
 0x402   :  { %v3659_v20 = vrot.slane %v3658_v42, 2  ;;  %v14035_v19 = vcombine.low %v6423_v10, %v6436_v23  ;;  %v3646_v16 = vmax.f32 %v3644_v5, %v3645_v21  ;;  %v3652_v4 = vrot.slane %v3651_v61, 2  ;;  %v7359_v34 = vld [vmem:[#allocation2 + $0x84] sm:$0x1] }
 0x403   :  { %v3666_v59 = vrot.slane %v3665_v36, 2  ;;  %v7444_v30 = vrot.slane %v7442_v40, 5  ;;  %v7448_v47 = vshll.u32 %v7359_v34, 16  ;;  %v7453_v12 = vshrl.u32 %v7360_v2, 16  ;;  %v7361_v51 = vld [vmem:[#allocation2 + $0x98] sm:$0x1] }
 0x404   :  { %v3660_v53 = vmax.f32 %v3658_v42, %v3659_v20  ;;  %6571 = vrot.lane.b32.xlu0 %v14035_v19, %s15442_s5  ;;  %v3647_v35 = vrot.slane %v3646_v16, 1  ;;  %v3653_v56 = vmax.f32 %v3651_v61, %v3652_v4  ;;  %v7456_v60 = vshll.u32 %v7360_v2, 16 }
 0x405   :  { %v3667_v15 = vmax.f32 %v3665_v36, %v3666_v59  ;;  %v7445_v0 = vor.u32 %v7444_v30, %v7441_v3  ;;  %v7450_v62 = vrot.slane %v7448_v47, 5  ;;  %v7455_v9 = vrot.slane %v7453_v12, 4 }
 0x406   :  { %v3661_v11 = vrot.slane %v3660_v53, 1  ;;  %v3648_v44 = vmax.f32 %v3646_v16, %v3647_v35  ;;  %v3654_v22 = vrot.slane %v3653_v56, 1  ;;  %v7458_v58 = vrot.slane %v7456_v60, 5 }
 0x407   :  { %v3668_v27 = vrot.slane %v3667_v15, 1  ;;  %v7446_v39 = vrot.slane %v7445_v0, 4  ;;  %v7462_v43 = vshll.u32 %v7361_v51, 16  ;;  %v1755_v57 = vcombine.high %v17163_v41, %v17163_v41 }
 0x408   :  { %v3662_v32 = vmax.f32 %v3660_v53, %v3661_v11  ;;  %v3655_v37 = vmax.f32 %v3653_v56, %v3654_v22  ;;  %v4187_v26 = vsel %vm19360_vm2, %v3648_v44, -inf  ;;  %v7459_v17 = vor.u32 %v7458_v58, %v7455_v9 }
 0x409   :  { %v3669_v38 = vmax.f32 %v3667_v15, %v3668_v27  ;;  %v4189_v55 = vmax.f32 %v4187_v26, %v17339_v63  ;;  %v7451_v14 = vsel %vm16933_vm10, %v7446_v39, %v7450_v62  ;;  %v7464_v5 = vrot.slane %v7462_v43, 5  ;;  %v15273_v43 = vld [vmem:[%s19349_s2 + $0x68] sm:$0xff]  }
 0x40a   :  { %v4193_v28 = vsel %vm19360_vm2, %v3662_v32, -inf  ;;  %v4190_v6 = vsel %vm19360_vm2, %v3655_v37, -inf  ;;  %v7460_v42 = vrot.slane %v7459_v17, 4  ;;  %v1762_v63 = vrot.slane %v17163_v41, %v15637_v46  ;;  %14793 = vmatprep.subr.bf16.mxu1 %v15273_v43 }
 0x40b   :  { %v4195_v49 = vmax.f32 %v4193_v28, %v17355_v50  ;;  %v4196_v31 = vsel %vm19360_vm2, %v3669_v38, -inf  ;;  %v4192_v7 = vmax.f32 %v4190_v6, %v17352_v18  ;;  %v4344_v21 = vadd.f32 %v17170_v24, %v4189_v55 }
 0x40c   :  { %v4198_v10 = vmax.f32 %v4196_v31, %v17373_v1  ;;  %v7465_v36 = vsel %vm16933_vm10, %v7460_v42, %v7464_v5  ;;  %v1769_v2 = vrot.slane %v1755_v57, %v15637_v46  ;;  %v1721_v50 = vcombine.high %v17174_v13, %v17174_v13  ;;  %v15274_v57 = vld [vmem:[%s19349_s2 + $0x28] sm:$0xff]  }
 0x40d   :  { %v4346_v61 = vadd.f32 %v17170_v24, %v4195_v49  ;;  %v4345_v23 = vadd.f32 %v17170_v24, %v4192_v7  ;;  %v4472_v1 = vmax.f32 %v4344_v21, 0.0  ;;  %v14090_v20 = vcombine.low %v7451_v14, %v7465_v36  ;;  %v15276_v49 = vld [vmem:[%s19349_s2 + $0x70] sm:$0xff]   ;;  %14794 = vmatpush3.bf16.msra.mxu1 %v15274_v57 }
 0x40e   :  { %v4347_v18 = vadd.f32 %v17170_v24, %v4198_v10  ;;  %v1770_v40 = vcombine.high %v1762_v63, %v1762_v63  ;;  %v1771_v19 = vcombine.high %v1769_v2, %v1769_v2  ;;  %v3782_v41 = vsel %vm19361_vm1, %v1762_v63, -inf  ;;  %v15277_v10 = vld [vmem:[%s19349_s2 + $0x30] sm:$0xff]   ;;  %14795 = vmatprep.subr.bf16.mxu1 %v15276_v49 }
 0x40f   :  { %v4474_v3 = vmax.f32 %v4346_v61, 0.0  ;;  %v4473_v16 = vmax.f32 %v4345_v23, 0.0  ;;  %v14691_v59 = vpack.c.bf16 %v4472_v1, %v4472_v1  ;;  %7640 = vst.msk [vmem:[#allocation5 + $0x70] sm:$0xff] %vm19360_vm2, %v14090_v20  ;;  %v3783_v34 = vrot.slane %v3782_v41, 4 }
 0x410   :  { %v4475_v4 = vmax.f32 %v4347_v18, 0.0  ;;  %v3789_v30 = vsel %vm19361_vm1, %v1770_v40, -inf  ;;  %v3796_v47 = vsel %vm19361_vm1, %v1769_v2, -inf  ;;  %v3803_v24 = vsel %vm19361_vm1, %v1771_v19, -inf }
 0x411   :  { %v14693_v53 = vpack.c.bf16 %v4474_v3, %v4474_v3  ;;  %v14692_v12 = vpack.c.bf16 %v4473_v16, %v4473_v16  ;;  %v5340_v56 = vunpack.c.l.b16 %v14691_v59  ;;  %v3784_v15 = vmax.f32 %v3782_v41, %v3783_v34  ;;  %14796 = vmatpush3.bf16.msra.mxu1 %v15277_v10 }
 0x412   :  { %v14694_v35 = vpack.c.bf16 %v4475_v4, %v4475_v4  ;;  %v3790_v60 = vrot.slane %v3789_v30, 4  ;;  %v3797_v11 = vrot.slane %v3796_v47, 4  ;;  %v3804_v0 = vrot.slane %v3803_v24, 4 }
 0x413   :  { %v5342_v51 = vunpack.c.l.b16 %v14693_v53  ;;  %v5341_v62 = vunpack.c.l.b16 %v14692_v12  ;;  %v5561_v44 = vrot.slane %v5340_v56, 4  ;;  %v3785_v22 = vrot.slane %v3784_v15, 2 }
 0x414   :  { %v5343_v9 = vunpack.c.l.b16 %v14694_v35  ;;  %v3791_v58 = vmax.f32 %v3789_v30, %v3790_v60  ;;  %v3798_v32 = vmax.f32 %v3796_v47, %v3797_v11  ;;  %v3805_v39 = vmax.f32 %v3803_v24, %v3804_v0 }
 0x415   :  { %v5565_v27 = vrot.slane %v5342_v51, 2  ;;  %v5562_v37 = vsel %vm5362_vm6, %v5561_v44, %v17395_v8  ;;  %v5563_v38 = vrot.slane %v5341_v62, 3  ;;  %v3786_v17 = vmax.f32 %v3784_v15, %v3785_v22 }
 0x416   :  { %v5567_v26 = vrot.slane %v5343_v9, 1  ;;  %v7660_v55 = vld [vmem:[#allocation5 + $0x70] sm:$0xff]  ;;  %v3792_v28 = vrot.slane %v3791_v58, 2  ;;  %v3799_v14 = vrot.slane %v3798_v32, 2  ;;  %v3806_v5 = vrot.slane %v3805_v39, 2 }
 0x417   :  { %v1728_v6 = vrot.slane %v17174_v13, %v15637_v46  ;;  %v5564_v31 = vsel %vm5365_vm7, %v5563_v38, %v5562_v37  ;;  %15146 = vmatprep.mubr.bf16.mxu0 %v7660_v55  ;;  %v3787_v42 = vrot.slane %v3786_v17, 1  ;;  %v1735_v8 = vrot.slane %v1721_v50, %v15637_v46 }
 0x418   :  { %v1772_v7 = vcombine.high %v17184_v52, %v17184_v52  ;;  %v5566_v13 = vsel %vm5368_vm8, %v5565_v27, %v5564_v31  ;;  %v3793_v21 = vmax.f32 %v3791_v58, %v3792_v28  ;;  %v3800_v63 = vmax.f32 %v3798_v32, %v3799_v14 }
 0x419   :  { %v3807_v61 = vmax.f32 %v3805_v39, %v3806_v5  ;;  %v5568_v36 = vsel %vm5371_vm9, %v5567_v26, %v5566_v13  ;;  %v3788_v2 = vmax.f32 %v3786_v17, %v3787_v42  ;;  %v1736_v23 = vcombine.high %v1728_v6, %v1728_v6 }
 0x41a   :  { %v1737_v18 = vcombine.high %v1735_v8, %v1735_v8  ;;  %v5597_v50 = vpack.c.b16 %v5568_v36, %v5568_v36  ;;  %v3794_v1 = vrot.slane %v3793_v21, 1  ;;  %v3801_v20 = vrot.slane %v3800_v63, 1  ;;  %v15279_v36 = vld [vmem:[%s19349_s2 + $0x78] sm:$0xff]  }
 0x41b   :  { %v3808_v3 = vrot.slane %v3807_v61, 1  ;;  %v17453_v40 = vsel %vm19360_vm2, %v3788_v2, -inf  ;;  %v3726_v19 = vsel %vm19361_vm1, %v1728_v6, -inf  ;;  %v3733_v41 = vsel %vm19361_vm1, %v1736_v23, -inf  ;;  %v15280_v2 = vld [vmem:[%s19349_s2 + $0x38] sm:$0xff]   ;;  %14797 = vmatprep.subr.bf16.mxu1 %v15279_v36 }
 0x41c   :  { %v3740_v16 = vsel %vm19361_vm1, %v1735_v8, -inf  ;;  %5630 = vst.msk [vmem:[#allocation2 + $0x15c] sm:$0xf] %vm19359_vm0, %v5597_v50  ;;  %v3795_v4 = vmax.f32 %v3793_v21, %v3794_v1  ;;  %v3802_v59 = vmax.f32 %v3800_v63, %v3801_v20  ;;  %v3727_v53 = vrot.slane %v3726_v19, 4  ;;  %14798 = vmatpush3.bf16.msra.mxu1 %v15280_v2 }
 0x41d   :  { %v3809_v34 = vmax.f32 %v3807_v61, %v3808_v3  ;;  %v3734_v30 = vrot.slane %v3733_v41, 4  ;;  %v3741_v47 = vrot.slane %v3740_v16, 4  ;;  %v3747_v24 = vsel %vm19361_vm1, %v1737_v18, -inf }
 0x41e   :  { %v1779_v12 = vrot.slane %v17184_v52, %v15637_v46  ;;  %v17463_v35 = vsel %vm19360_vm2, %v3795_v4, -inf  ;;  %v17466_v56 = vsel %vm19360_vm2, %v3802_v59, -inf  ;;  %v3728_v51 = vmax.f32 %v3726_v19, %v3727_v53 }
 0x41f   :  { %v17469_v15 = vsel %vm19360_vm2, %v3809_v34, -inf  ;;  %v3735_v60 = vmax.f32 %v3733_v41, %v3734_v30  ;;  %v3742_v11 = vmax.f32 %v3740_v16, %v3741_v47  ;;  %v3748_v0 = vrot.slane %v3747_v24, 4 }
 0x420   :  { %v1786_v62 = vrot.slane %v1772_v7, %v15637_v46  ;;  %v3729_v9 = vrot.slane %v3728_v51, 2  ;;  %v1787_v44 = vcombine.high %v1779_v12, %v1779_v12  ;;  %v3810_v22 = vsel %vm19361_vm1, %v1779_v12, -inf  ;;  %v15297_v12 = vld [vmem:[#allocation2 + $0x1c] ss:$20 sps:$4 sm:$0xff]  }
 0x421   :  { %v1738_v52 = vcombine.high %v17186_v25, %v17186_v25  ;;  %v3736_v27 = vrot.slane %v3735_v60, 2  ;;  %v3743_v58 = vrot.slane %v3742_v11, 2  ;;  %v3749_v32 = vmax.f32 %v3747_v24, %v3748_v0  ;;  %6661 = vst.msk [vmem:[#allocation5 + $0x10] sm:$0xff] %vm19360_vm2, %v15297_v12 }
 0x422   :  { %v1788_v39 = vcombine.high %v1786_v62, %v1786_v62  ;;  %v3730_v43 = vmax.f32 %v3728_v51, %v3729_v9  ;;  %v3811_v57 = vrot.slane %v3810_v22, 4  ;;  %v3817_v37 = vsel %vm19361_vm1, %v1787_v44, -inf }
 0x423   :  { %v3824_v38 = vsel %vm19361_vm1, %v1786_v62, -inf  ;;  %v3737_v26 = vmax.f32 %v3735_v60, %v3736_v27  ;;  %v3744_v17 = vmax.f32 %v3742_v11, %v3743_v58  ;;  %v3750_v55 = vrot.slane %v3749_v32, 2  ;;  %v15264_v14 = vld [vmem:[#allocation2 + $0x148] ss:$20 sps:$4 sm:$0xff]   ;;  %v17495_v60 = vld [vmem:[%s19350_s3] ss:$0 sm:$0xff] }
 0x424   :  { %v3818_v28 = vrot.slane %v3817_v37, 4  ;;  %v3731_v5 = vrot.slane %v3730_v43, 1  ;;  %v3812_v6 = vmax.f32 %v3810_v22, %v3811_v57  ;;  %v3825_v49 = vrot.slane %v3824_v38, 4  ;;  %5984 = vrot.lane.b32.xlu1 %v15264_v14, %s15442_s5 }
 0x425   :  { %v3831_v31 = vsel %vm19361_vm1, %v1788_v39, -inf  ;;  %v3738_v42 = vrot.slane %v3737_v26, 1  ;;  %v3745_v8 = vrot.slane %v3744_v17, 1  ;;  %v3751_v7 = vmax.f32 %v3749_v32, %v3750_v55 }
 0x426   :  { %v3819_v10 = vmax.f32 %v3817_v37, %v3818_v28  ;;  %v3732_v13 = vmax.f32 %v3730_v43, %v3731_v5  ;;  %v3813_v21 = vrot.slane %v3812_v6, 2  ;;  %v3826_v63 = vmax.f32 %v3824_v38, %v3825_v49  ;;  %v4632_v5 = vld [vmem:[#allocation2 + $0xac] sm:$0x1] }
 0x427   :  { %v3832_v61 = vrot.slane %v3831_v31, 4  ;;  %v3739_v23 = vmax.f32 %v3737_v26, %v3738_v42  ;;  %v3746_v18 = vmax.f32 %v3744_v17, %v3745_v8  ;;  %v3752_v50 = vrot.slane %v3751_v7, 1 }
 0x428   :  { %v3820_v1 = vrot.slane %v3819_v10, 2  ;;  %v4199_v20 = vsel %vm19360_vm2, %v3732_v13, -inf  ;;  %v3814_v3 = vmax.f32 %v3812_v6, %v3813_v21  ;;  %v3827_v19 = vrot.slane %v3826_v63, 2  ;;  %v4639_v21 = vld [vmem:[#allocation2 + $0xc0] sm:$0x1] }
 0x429   :  { %v3833_v41 = vmax.f32 %v3831_v31, %v3832_v61  ;;  %v3753_v16 = vmax.f32 %v3751_v7, %v3752_v50  ;;  %v4201_v4 = vmax.f32 %v4199_v20, %v17453_v40  ;;  %v4202_v59 = vsel %vm19360_vm2, %v3739_v23, -inf  ;;  %v7362_v20 = vld [vmem:[#allocation2 + $0xa8] sm:$0xf] }
 0x42a   :  { %v4205_v34 = vsel %vm19360_vm2, %v3746_v18, -inf  ;;  %v4204_v53 = vmax.f32 %v4202_v59, %v17463_v35  ;;  %v3815_v47 = vrot.slane %v3814_v3, 1  ;;  %v3821_v24 = vmax.f32 %v3819_v10, %v3820_v1 }
 0x42b   :  { %v4207_v30 = vmax.f32 %v4205_v34, %v17466_v56  ;;  %v4208_v51 = vsel %vm19360_vm2, %v3753_v16, -inf  ;;  %v4348_v40 = vadd.f32 %v17495_v60, %v4201_v4  ;;  %v3828_v11 = vmax.f32 %v3826_v63, %v3827_v19 }
 0x42c   :  { %v3834_v0 = vrot.slane %v3833_v41, 2  ;;  %v4210_v62 = vmax.f32 %v4208_v51, %v17469_v15  ;;  %v4349_v35 = vadd.f32 %v17495_v60, %v4204_v53  ;;  %v3816_v9 = vmax.f32 %v3814_v3, %v3815_v47  ;;  %v15298_v3 = vld [vmem:[#allocation2 + $0x44] ss:$20 sps:$4 sm:$0xff]   ;;  %v7364_v53 = vld [vmem:[#allocation2 + $0xbc] sm:$0xf] }
 0x42d   :  { %v4350_v56 = vadd.f32 %v17495_v60, %v4207_v30  ;;  %v4476_v44 = vmax.f32 %v4348_v40, 0.0  ;;  %v3822_v22 = vrot.slane %v3821_v24, 1  ;;  %v3829_v27 = vrot.slane %v3828_v11, 1  ;;  %6662 = vst.msk [vmem:[#allocation5 + $0x38] sm:$0xff] %vm19360_vm2, %v15298_v3 }
 0x42e   :  { %v3835_v58 = vmax.f32 %v3833_v41, %v3834_v0  ;;  %v4351_v32 = vadd.f32 %v17495_v60, %v4210_v62  ;;  %v4477_v39 = vmax.f32 %v4349_v35, 0.0  ;;  %v17504_v57 = vsel %vm19360_vm2, %v3816_v9, -inf  ;;  %v4649_v62 = vld [vmem:[#allocation2 + $0xe0] sm:$0x8] }
 0x42f   :  { %v4478_v43 = vmax.f32 %v4350_v56, 0.0  ;;  %v14695_v37 = vpack.c.bf16 %v4476_v44, %v4476_v44  ;;  %v3823_v15 = vmax.f32 %v3821_v24, %v3822_v22  ;;  %v3830_v38 = vmax.f32 %v3828_v11, %v3829_v27 }
 0x430   :  { %v3836_v26 = vrot.slane %v3835_v58, 1  ;;  %v4479_v17 = vmax.f32 %v4351_v32, 0.0  ;;  %v14696_v55 = vpack.c.bf16 %v4477_v39, %v4477_v39  ;;  %v1745_v14 = vrot.slane %v17186_v25, %v15637_v46  ;;  %v4656_v39 = vld [vmem:[#allocation2 + $0xf4] sm:$0x8] }
 0x431   :  { %v14697_v28 = vpack.c.bf16 %v4478_v43, %v4478_v43  ;;  %v5344_v6 = vunpack.c.l.b16 %v14695_v37  ;;  %v17509_v31 = vsel %vm19360_vm2, %v3823_v15, -inf  ;;  %v17512_v42 = vsel %vm19360_vm2, %v3830_v38, -inf }
 0x432   :  { %v3837_v49 = vmax.f32 %v3835_v58, %v3836_v26  ;;  %v14698_v8 = vpack.c.bf16 %v4479_v17, %v4479_v17  ;;  %v5345_v7 = vunpack.c.l.b16 %v14696_v55  ;;  %v1752_v13 = vrot.slane %v1738_v52, %v15637_v46 }
 0x433   :  { %v5346_v10 = vunpack.c.l.b16 %v14697_v28  ;;  %v1753_v61 = vcombine.high %v1745_v14, %v1745_v14  ;;  %v3754_v36 = vsel %vm19361_vm1, %v1745_v14, -inf  ;;  %v4633_v2 = vsel %vm16885_vm13, 0, %v4632_v5  ;;  %v6318_v5 = vld [vmem:[#allocation2 + $0xe4] sm:$0xf] }
 0x434   :  { %v17519_v63 = vsel %vm19360_vm2, %v3837_v49, -inf  ;;  %v5347_v23 = vunpack.c.l.b16 %v14698_v8  ;;  %v5569_v18 = vrot.slane %v5345_v7, 7  ;;  %v1754_v1 = vcombine.high %v1752_v13, %v1752_v13  ;;  %4634 = vst [vmem:[#allocation2 + $0xac] sm:$0x1] %v4633_v2 }
 0x435   :  { %v5571_v50 = vrot.slane %v5346_v10, 6  ;;  %v3755_v19 = vrot.slane %v3754_v36, 4  ;;  %v3761_v25 = vsel %vm19361_vm1, %v1753_v61, -inf  ;;  %v3768_v52 = vsel %vm19361_vm1, %v1752_v13, -inf }
 0x436   :  { %v4640_v41 = vsel %vm16885_vm13, 0, %v4639_v21  ;;  %v5570_v16 = vsel %vm5353_vm3, %v5569_v18, %v5344_v6  ;;  %v5573_v4 = vrot.slane %v5347_v23, 5  ;;  %v3762_v59 = vrot.slane %v3761_v25, 4 }
 0x437   :  { %v3769_v34 = vrot.slane %v3768_v52, 4  ;;  %4641 = vst [vmem:[#allocation2 + $0xc0] sm:$0x1] %v4640_v41  ;;  %v5572_v30 = vsel %vm19364_vm4, %v5571_v50, %v5570_v16  ;;  %v3756_v47 = vmax.f32 %v3754_v36, %v3755_v19  ;;  %v3775_v24 = vsel %vm19361_vm1, %v1754_v1, -inf }
 0x438   :  { %v7467_v12 = vshrl.u32 %v7362_v20, 16  ;;  %v3763_v51 = vmax.f32 %v3761_v25, %v3762_v59  ;;  %v3776_v11 = vrot.slane %v3775_v24, 4  ;;  %v17533_v0 = vsel %vm19363_vm5, %v5573_v4, %v5572_v30 }
 0x439   :  { %v3770_v40 = vmax.f32 %v3768_v52, %v3769_v34  ;;  %v3757_v35 = vrot.slane %v3756_v47, 2  ;;  %v7470_v9 = vshll.u32 %v7362_v20, 16  ;;  %v7481_v44 = vshrl.u32 %v7364_v53, 16 }
 0x43a   :  { %v7469_v56 = vrot.slane %v7467_v12, 4  ;;  %v3764_v22 = vrot.slane %v3763_v51, 2  ;;  %v3777_v58 = vmax.f32 %v3775_v24, %v3776_v11  ;;  %v7484_v32 = vshll.u32 %v7364_v53, 16 }
 0x43b   :  { %v3771_v27 = vrot.slane %v3770_v40, 2  ;;  %v3758_v43 = vmax.f32 %v3756_v47, %v3757_v35  ;;  %v7363_v37 = vld [vmem:[#allocation2 + $0xac] sm:$0x1]  ;;  %v7472_v15 = vrot.slane %v7470_v9, 5  ;;  %v7483_v38 = vrot.slane %v7481_v44, 4 }
 0x43c   :  { %v4650_v26 = vsel %vm16621_vm12, 0, %v4649_v62  ;;  %v3765_v17 = vmax.f32 %v3763_v51, %v3764_v22  ;;  %v3778_v28 = vrot.slane %v3777_v58, 2  ;;  %v7476_v14 = vshll.u32 %v7363_v37, 16  ;;  %v6320_v51 = vld [vmem:[#allocation2 + $0xf8] sm:$0xf] }
 0x43d   :  { %v3772_v55 = vmax.f32 %v3770_v40, %v3771_v27  ;;  %4651 = vst [vmem:[#allocation2 + $0xe0] sm:$0x8] %v4650_v26  ;;  %v3759_v6 = vrot.slane %v3758_v43, 1  ;;  %v7473_v8 = vor.u32 %v7472_v15, %v7469_v56  ;;  %v7486_v7 = vrot.slane %v7484_v32, 5  ;;  %v4670_v26 = vld [vmem:[#allocation2 + $0x11c] sm:$0x8] }
 0x43e   :  { %v7365_v49 = vld [vmem:[#allocation2 + $0xc0] sm:$0x1]  ;;  %v4657_v10 = vsel %vm16621_vm12, 0, %v4656_v39  ;;  %v3766_v13 = vrot.slane %v3765_v17, 1  ;;  %v3779_v61 = vmax.f32 %v3777_v58, %v3778_v28  ;;  %v7478_v36 = vrot.slane %v7476_v14, 5 }
 0x43f   :  { %v3773_v21 = vrot.slane %v3772_v55, 1  ;;  %4658 = vst [vmem:[#allocation2 + $0xf4] sm:$0x8] %v4657_v10  ;;  %v3760_v2 = vmax.f32 %v3758_v43, %v3759_v6  ;;  %v7474_v23 = vrot.slane %v7473_v8, 4  ;;  %v7487_v18 = vor.u32 %v7486_v7, %v7483_v38  ;;  %v4663_v39 = vld [vmem:[#allocation2 + $0x108] sm:$0x8] }
 0x440   :  { %v7490_v50 = vshll.u32 %v7365_v49, 16  ;;  %v3767_v1 = vmax.f32 %v3765_v17, %v3766_v13  ;;  %v3780_v3 = vrot.slane %v3779_v61, 1  ;;  %v6443_v19 = vshrl.u32 %v6318_v5, 16  ;;  %v6322_v6 = vld [vmem:[#allocation2 + $0x10c] sm:$0xf] }
 0x441   :  { %v3774_v20 = vmax.f32 %v3772_v55, %v3773_v21  ;;  %v4211_v25 = vsel %vm19360_vm2, %v3760_v2, -inf  ;;  %v7479_v52 = vsel %vm16933_vm10, %v7474_v23, %v7478_v36  ;;  %v7488_v41 = vrot.slane %v7487_v18, 4  ;;  %v6324_v7 = vld [vmem:[#allocation2 + $0x120] sm:$0xf] }
 0x442   :  { %v7492_v16 = vrot.slane %v7490_v50, 5  ;;  %v3781_v4 = vmax.f32 %v3779_v61, %v3780_v3  ;;  %v4213_v59 = vmax.f32 %v4211_v25, %v17504_v57  ;;  %v4214_v34 = vsel %vm19360_vm2, %v3767_v1, -inf  ;;  %v15287_v18 = vld [vmem:[%s19349_s2 + $0xc0] sm:$0xff]   ;;  %v4667_v25 = vld [vmem:[#allocation2 + $0x110] sm:$0x1] }
 0x443   :  { %v4217_v53 = vsel %vm19360_vm2, %v3774_v20, -inf  ;;  %v4216_v30 = vmax.f32 %v4214_v34, %v17509_v31  ;;  %v6445_v40 = vrot.slane %v6443_v19, 7  ;;  %v6456_v32 = vshrl.u32 %v6320_v51, 16  ;;  %v4660_v19 = vld [vmem:[#allocation2 + $0xfc] sm:$0x1]  ;;  %14847 = vmatprep.subr.bf16.mxu1 %v15287_v18 }
 0x444   :  { %v4219_v47 = vmax.f32 %v4217_v53, %v17512_v42  ;;  %v7493_v24 = vsel %vm16933_vm10, %v7488_v41, %v7492_v16  ;;  %v6317_v12 = vld [vmem:[#allocation2 + $0xe0] sm:$0x8]  ;;  %v4220_v11 = vsel %vm19360_vm2, %v3781_v4, -inf  ;;  %v4352_v62 = vadd.f32 %v17495_v60, %v4213_v59  ;;  %v7366_v34 = vld [vmem:[#allocation2 + $0xf8] sm:$0xf] }
 0x445   :  { %v14091_v35 = vcombine.low %v7479_v52, %v7493_v24  ;;  %v6438_v57 = vshrl.u32 %v6317_v12, 16  ;;  %v4222_v56 = vmax.f32 %v4220_v11, %v17519_v63  ;;  %v4353_v9 = vadd.f32 %v17495_v60, %v4216_v30  ;;  %v15301_v63 = vld [vmem:[#allocation2 + $0x6c] ss:$20 sps:$4 sm:$0xff]  }
 0x446   :  { %v4354_v31 = vadd.f32 %v17495_v60, %v4219_v47  ;;  %v6319_v44 = vld [vmem:[#allocation2 + $0xf4] sm:$0x8]  ;;  %v6446_v42 = vshll.u32 %v6318_v5, 16  ;;  %v4480_v22 = vmax.f32 %v4352_v62, 0.0  ;;  %v6458_v28 = vrot.slane %v6456_v32, 7  ;;  %6663 = vst.msk [vmem:[#allocation5 + $0x60] sm:$0xff] %vm19360_vm2, %v15301_v63 }
 0x447   :  { %7641 = vst.msk [vmem:[#allocation5 + $0x98] sm:$0xff] %vm19360_vm2, %v14091_v35  ;;  %v14024_v27 = vrot.slane %v6438_v57, 11  ;;  %v6451_v58 = vshrl.u32 %v6319_v44, 16  ;;  %v4355_v43 = vadd.f32 %v17495_v60, %v4222_v56  ;;  %v4481_v37 = vmax.f32 %v4353_v9, 0.0  ;;  %v7368_v12 = vld [vmem:[#allocation2 + $0x10c] sm:$0xf] }
 0x448   :  { %v4482_v15 = vmax.f32 %v4354_v31, 0.0  ;;  %v6448_v38 = vor.u32 %v6446_v42, %v6445_v40  ;;  %v14699_v17 = vpack.c.bf16 %v4480_v22, %v4480_v22  ;;  %v6459_v14 = vshll.u32 %v6320_v51, 16  ;;  %v4677_v35 = vld [vmem:[#allocation2 + $0x130] sm:$0x8]  ;;  %v4684_v31 = vld [vmem:[#allocation2 + $0x144] sm:$0x8] }
 0x449   :  { %v14025_v55 = vrot.slane %v6451_v58, 11  ;;  %v4483_v5 = vmax.f32 %v4355_v43, 0.0  ;;  %v14700_v49 = vpack.c.bf16 %v4481_v37, %v4481_v37  ;;  %v4664_v60 = vsel %vm16621_vm12, 0, %v4663_v39  ;;  %v6326_v44 = vld [vmem:[#allocation2 + $0x134] sm:$0xf] }
 0x44a   :  { %v14701_v8 = vpack.c.bf16 %v4482_v15, %v4482_v15  ;;  %v5348_v10 = vunpack.c.l.b16 %v14699_v17  ;;  %v6461_v13 = vor.u32 %v6459_v14, %v6458_v28  ;;  %v4671_v21 = vsel %vm16621_vm12, 0, %v4670_v26  ;;  %4665 = vst [vmem:[#allocation2 + $0x108] sm:$0x8] %v4664_v60  ;;  %v6328_v32 = vld [vmem:[#allocation2 + $0x148] sm:$0xf] }
 0x44b   :  { %v14702_v61 = vpack.c.bf16 %v4483_v5, %v4483_v5  ;;  %v5349_v36 = vunpack.c.l.b16 %v14700_v49  ;;  %4672 = vst [vmem:[#allocation2 + $0x11c] sm:$0x8] %v4671_v21  ;;  %v6469_v23 = vshrl.u32 %v6322_v6, 16  ;;  %v6449_v1 = vsel %vm16660_vm15, %v14024_v27, %v6448_v38  ;;  %v4674_v14 = vld [vmem:[#allocation2 + $0x124] sm:$0x1] }
 0x44c   :  { %v5350_v2 = vunpack.c.l.b16 %v14701_v8  ;;  %v5575_v50 = vrot.slane %v5348_v10, 4  ;;  %v6462_v20 = vsel %vm16660_vm15, %v14025_v55, %v6461_v13  ;;  %v6482_v3 = vshrl.u32 %v6324_v7, 16 }
 0x44d   :  { %v5351_v52 = vunpack.c.l.b16 %v14702_v61  ;;  %v5577_v41 = vrot.slane %v5349_v36, 3  ;;  %v14036_v4 = vcombine.low %v6449_v1, %v6462_v20  ;;  %v6472_v59 = vshll.u32 %v6322_v6, 16  ;;  %v4681_v61 = vld [vmem:[#allocation2 + $0x138] sm:$0x1] }
 0x44e   :  { %v7665_v16 = vld [vmem:[#allocation5 + $0x98] sm:$0xff]  ;;  %v5576_v53 = vsel %vm5362_vm6, %v5575_v50, %v17533_v0  ;;  %v5579_v30 = vrot.slane %v5350_v2, 2  ;;  %v6471_v47 = vrot.slane %v6469_v23, 7  ;;  %v6484_v24 = vrot.slane %v6482_v3, 7  ;;  %v7372_v50 = vld [vmem:[#allocation2 + $0x134] sm:$0xf] }
 0x44f   :  { %15147 = vmatmul.mubr.bf16.gmra.mrb[68].mxu0 %v7665_v16  ;;  %v5578_v51 = vsel %vm5365_vm7, %v5577_v41, %v5576_v53  ;;  %v5581_v40 = vrot.slane %v5351_v52, 1  ;;  %6573 = vrot.lane.b32.xlu0 %v14036_v4, %s15442_s5  ;;  %v4661_v11 = vsel %vm16885_vm13, 0, %v4660_v19  ;;  %v4668_v62 = vsel %vm16885_vm13, 0, %v4667_v25 }
 0x450   :  { %v5580_v57 = vsel %vm5368_vm8, %v5579_v30, %v5578_v51  ;;  %v6474_v0 = vor.u32 %v6472_v59, %v6471_v47  ;;  %v6485_v56 = vshll.u32 %v6324_v7, 16  ;;  %4662 = vst [vmem:[#allocation2 + $0xfc] sm:$0x1] %v4661_v11  ;;  %4669 = vst [vmem:[#allocation2 + $0x110] sm:$0x1] %v4668_v62  ;;  %v7495_v9 = vshrl.u32 %v7366_v34, 16 }
 0x451   :  { %v5582_v42 = vsel %vm5371_vm9, %v5581_v40, %v5580_v57  ;;  %v7498_v22 = vshll.u32 %v7366_v34, 16  ;;  %v7509_v27 = vshrl.u32 %v7368_v12, 16  ;;  %v7512_v58 = vshll.u32 %v7368_v12, 16  ;;  %v6321_v43 = vld [vmem:[#allocation2 + $0x108] sm:$0x8] }
 0x452   :  { %v5598_v39 = vpack.c.b16 %v5582_v42, %v5582_v42  ;;  %v6323_v37 = vld [vmem:[#allocation2 + $0x11c] sm:$0x8]  ;;  %v6487_v15 = vor.u32 %v6485_v56, %v6484_v24  ;;  %v7497_v38 = vrot.slane %v7495_v9, 4  ;;  %v4678_v26 = vsel %vm16621_vm12, 0, %v4677_v35  ;;  %v7370_v7 = vld [vmem:[#allocation2 + $0x120] sm:$0xf] }
 0x453   :  { %v6464_v63 = vshrl.u32 %v6321_v43, 16  ;;  %v6477_v17 = vshrl.u32 %v6323_v37, 16  ;;  %v7500_v55 = vrot.slane %v7498_v22, 5  ;;  %v7511_v28 = vrot.slane %v7509_v27, 4  ;;  %4679 = vst [vmem:[#allocation2 + $0x130] sm:$0x8] %v4678_v26 }
 0x454   :  { %5631 = vst.msk [vmem:[#allocation2 + $0x170] sm:$0xf] %vm19359_vm0, %v5598_v39  ;;  %v7514_v6 = vrot.slane %v7512_v58, 5  ;;  %v4685_v5 = vsel %vm16621_vm12, 0, %v4684_v31  ;;  %v6495_v49 = vshrl.u32 %v6326_v44, 16  ;;  %v6498_v8 = vshll.u32 %v6326_v44, 16 }
 0x455   :  { %v14026_v10 = vrot.slane %v6464_v63, 11  ;;  %v14027_v13 = vrot.slane %v6477_v17, 11  ;;  %v7501_v60 = vor.u32 %v7500_v55, %v7497_v38  ;;  %4686 = vst [vmem:[#allocation2 + $0x144] sm:$0x8] %v4685_v5  ;;  %v6508_v21 = vshrl.u32 %v6328_v32, 16 }
 0x456   :  { %v7515_v36 = vor.u32 %v7514_v6, %v7511_v28  ;;  %v6497_v2 = vrot.slane %v6495_v49, 7  ;;  %v6511_v23 = vshll.u32 %v6328_v32, 16  ;;  %v4675_v18 = vsel %vm16885_vm13, 0, %v4674_v14  ;;  %v4583_v34 = vld [vmem:[#allocation2 + $0x20] sm:$0x1] }
 0x457   :  { %v6475_v1 = vsel %vm16660_vm15, %v14026_v10, %v6474_v0  ;;  %v6488_v20 = vsel %vm16660_vm15, %v14027_v13, %v6487_v15  ;;  %v7367_v3 = vld [vmem:[#allocation2 + $0xfc] sm:$0x1]  ;;  %v7369_v19 = vld [vmem:[#allocation2 + $0x110] sm:$0x1]  ;;  %v7502_v25 = vrot.slane %v7501_v60, 4  ;;  %v6510_v52 = vrot.slane %v6508_v21, 7 }
 0x458   :  { %4676 = vst [vmem:[#allocation2 + $0x124] sm:$0x1] %v4675_v18  ;;  %v14037_v41 = vcombine.low %v6475_v1, %v6488_v20  ;;  %v7504_v16 = vshll.u32 %v7367_v3, 16  ;;  %v7516_v4 = vrot.slane %v7515_v36, 4  ;;  %v7518_v59 = vshll.u32 %v7369_v19, 16 }
 0x459   :  { %v6500_v53 = vor.u32 %v6498_v8, %v6497_v2  ;;  %v6513_v30 = vor.u32 %v6511_v23, %v6510_v52  ;;  %v4682_v47 = vsel %vm16885_vm13, 0, %v4681_v61  ;;  %v7523_v24 = vshrl.u32 %v7370_v7, 16  ;;  %v6669_v12 = vld [vmem:[#allocation2 + $0x1c] sm:$0xf]  ;;  %v6671_v31 = vld [vmem:[#allocation2 + $0x30] sm:$0xf] }
 0x45a   :  { %6575 = vrot.lane.b32.xlu0 %v14037_v41, %s15442_s5  ;;  %v7506_v51 = vrot.slane %v7504_v16, 5  ;;  %v7520_v40 = vrot.slane %v7518_v59, 5  ;;  %v6325_v11 = vld [vmem:[#allocation2 + $0x130] sm:$0x8]  ;;  %4683 = vst [vmem:[#allocation2 + $0x138] sm:$0x1] %v4682_v47 }
 0x45b   :  { %v7526_v62 = vshll.u32 %v7370_v7, 16  ;;  %v7537_v35 = vshrl.u32 %v7372_v50, 16  ;;  %v6490_v57 = vshrl.u32 %v6325_v11, 16  ;;  %v7525_v0 = vrot.slane %v7523_v24, 4  ;;  %v6672_v5 = vld [vmem:[#allocation2 + $0x34] sm:$0x1] }
 0x45c   :  { %v7540_v56 = vshll.u32 %v7372_v50, 16  ;;  %v4584_v9 = vsel %vm16885_vm13, 0, %v4583_v34  ;;  %v7507_v44 = vsel %vm16933_vm10, %v7502_v25, %v7506_v51  ;;  %v7521_v42 = vsel %vm16933_vm10, %v7516_v4, %v7520_v40  ;;  %v6327_v22 = vld [vmem:[#allocation2 + $0x144] sm:$0x8]  ;;  %v6674_v20 = vld [vmem:[#allocation2 + $0x48] sm:$0x1] }
 0x45d   :  { %v7528_v27 = vrot.slane %v7526_v62, 5  ;;  %v7539_v58 = vrot.slane %v7537_v35, 4  ;;  %4585 = vst [vmem:[#allocation2 + $0x20] sm:$0x1] %v4584_v9  ;;  %v14092_v32 = vcombine.low %v7507_v44, %v7521_v42  ;;  %v14028_v39 = vrot.slane %v6490_v57, 11 }
 0x45e   :  { %v6503_v43 = vshrl.u32 %v6327_v22, 16  ;;  %v7542_v37 = vrot.slane %v7540_v56, 5  ;;  %v6702_v26 = vshrl.u32 %v6669_v12, 16  ;;  %v6705_v63 = vshll.u32 %v6669_v12, 16  ;;  %v6673_v13 = vld [vmem:[#allocation2 + $0x44] sm:$0xf] }
 0x45f   :  { %v7371_v15 = vld [vmem:[#allocation2 + $0x124] sm:$0x1]  ;;  %v7529_v38 = vor.u32 %v7528_v27, %v7525_v0  ;;  %v6716_v17 = vshrl.u32 %v6671_v31, 16  ;;  %7642 = vst.msk [vmem:[#allocation5 + $0xc0] sm:$0xff] %vm19360_vm2, %v14092_v32  ;;  %v6501_v55 = vsel %vm16660_vm15, %v14028_v39, %v6500_v53  ;;  %v6719_v2 = vshll.u32 %v6671_v31, 16 }
 0x460   :  { %v14029_v28 = vrot.slane %v6503_v43, 11  ;;  %v7532_v14 = vshll.u32 %v7371_v15, 16  ;;  %v7543_v6 = vor.u32 %v7542_v37, %v7539_v58  ;;  %v6704_v8 = vrot.slane %v6702_v26, 4  ;;  %v6675_v3 = vld [vmem:[#allocation2 + $0x58] sm:$0xf] }
 0x461   :  { %v7530_v49 = vrot.slane %v7529_v38, 4  ;;  %v6707_v7 = vrot.slane %v6705_v63, 5  ;;  %v6718_v10 = vrot.slane %v6716_v17, 4  ;;  %v7373_v21 = vld [vmem:[#allocation2 + $0x138] sm:$0x1]  ;;  %v6725_v1 = vshll.u32 %v6672_v5, 16 }
 0x462   :  { %v6514_v60 = vsel %vm16660_vm15, %v14029_v28, %v6513_v30  ;;  %v7534_v61 = vrot.slane %v7532_v14, 5  ;;  %v7544_v36 = vrot.slane %v7543_v6, 4  ;;  %v7546_v18 = vshll.u32 %v7373_v21, 16  ;;  %v6676_v47 = vld [vmem:[#allocation2 + $0x5c] sm:$0x1] }
 0x463   :  { %v14038_v23 = vcombine.low %v6501_v55, %v6514_v60  ;;  %v6708_v50 = vor.u32 %v6707_v7, %v6704_v8  ;;  %v6721_v52 = vrot.slane %v6719_v2, 5  ;;  %v6730_v41 = vshrl.u32 %v6673_v13, 16  ;;  %v6677_v0 = vld [vmem:[#allocation2 + $0x6c] sm:$0xf]  ;;  %v6678_v42 = vld [vmem:[#allocation2 + $0x70] sm:$0x1] }
 0x464   :  { %v7535_v19 = vsel %vm16933_vm10, %v7530_v49, %v7534_v61  ;;  %v6670_v25 = vld [vmem:[#allocation2 + $0x20] sm:$0x1]  ;;  %v6733_v16 = vshll.u32 %v6673_v13, 16  ;;  %v7548_v4 = vrot.slane %v7546_v18, 5  ;;  %v6727_v53 = vrot.slane %v6725_v1, 5 }
 0x465   :  { %6577 = vrot.lane.b32.xlu0 %v14038_v23, %s15442_s5  ;;  %v6709_v59 = vrot.slane %v6708_v50, 4  ;;  %v6711_v34 = vshll.u32 %v6670_v25, 16  ;;  %v6722_v30 = vor.u32 %v6721_v52, %v6718_v10  ;;  %v6732_v24 = vrot.slane %v6730_v41, 4  ;;  %v6679_v39 = vld [vmem:[#allocation2 + $0x80] sm:$0xf] }
 0x466   :  { %v6735_v12 = vrot.slane %v6733_v16, 5  ;;  %v6739_v51 = vshll.u32 %v6674_v20, 16  ;;  %v7670_v40 = vld [vmem:[#allocation5 + $0xc0] sm:$0xff]  ;;  %v7549_v11 = vsel %vm16933_vm10, %v7544_v36, %v7548_v4  ;;  %v6744_v35 = vshrl.u32 %v6675_v3, 16  ;;  %v4691_v14 = vld [vmem:[#allocation2 + $0x158] sm:$0x8] }
 0x467   :  { %v6713_v62 = vrot.slane %v6711_v34, 5  ;;  %v6747_v57 = vshll.u32 %v6675_v3, 16  ;;  %15150 = vmatprep.mubr.bf16.mxu0 %v7670_v40  ;;  %v14093_v56 = vcombine.low %v7535_v19, %v7549_v11  ;;  %v6723_v9 = vrot.slane %v6722_v30, 4  ;;  %v6680_v15 = vld [vmem:[#allocation2 + $0x84] sm:$0x1] }
 0x468   :  { %v6736_v31 = vor.u32 %v6735_v12, %v6732_v24  ;;  %v6741_v44 = vrot.slane %v6739_v51, 5  ;;  %v6746_v27 = vrot.slane %v6744_v35, 4  ;;  %v6753_v32 = vshll.u32 %v6676_v47, 16  ;;  %v4698_v6 = vld [vmem:[#allocation2 + $0x16c] sm:$0x8] }
 0x469   :  { %v6714_v22 = vsel %vm16933_vm10, %v6709_v59, %v6713_v62  ;;  %v6749_v58 = vrot.slane %v6747_v57, 5  ;;  %7643 = vst.msk [vmem:[#allocation5 + $0xe8] sm:$0xff] %vm19360_vm2, %v14093_v56  ;;  %v6728_v43 = vsel %vm16933_vm10, %v6723_v9, %v6727_v53  ;;  %v6758_v38 = vshrl.u32 %v6677_v0, 16  ;;  %v6330_v10 = vld [vmem:[#allocation2 + $0x15c] sm:$0xf] }
 0x46a   :  { %v6737_v37 = vrot.slane %v6736_v31, 4  ;;  %v6761_v26 = vshll.u32 %v6677_v0, 16  ;;  %v14048_v63 = vcombine.low %v6714_v22, %v6728_v43  ;;  %v6755_v55 = vrot.slane %v6753_v32, 5  ;;  %v6332_v36 = vld [vmem:[#allocation2 + $0x170] sm:$0xf] }
 0x46b   :  { %v6750_v17 = vor.u32 %v6749_v58, %v6746_v27  ;;  %v6767_v28 = vshll.u32 %v6678_v42, 16  ;;  %v6760_v49 = vrot.slane %v6758_v38, 4  ;;  %v6772_v7 = vshrl.u32 %v6679_v39, 16  ;;  %v6681_v1 = vld [vmem:[#allocation2 + $0x94] sm:$0xf] }
 0x46c   :  { %v6742_v5 = vsel %vm16933_vm10, %v6737_v37, %v6741_v44  ;;  %v6763_v8 = vrot.slane %v6761_v26, 5  ;;  %6949 = vrot.lane.b32.xlu1 %v14048_v63, %s15442_s5  ;;  %v6775_v21 = vshll.u32 %v6679_v39, 16  ;;  %v6781_v61 = vshll.u32 %v6680_v15, 16  ;;  %v6682_v52 = vld [vmem:[#allocation2 + $0x98] sm:$0x1] }
 0x46d   :  { %v6751_v13 = vrot.slane %v6750_v17, 4  ;;  %v6769_v60 = vrot.slane %v6767_v28, 5  ;;  %v6774_v23 = vrot.slane %v6772_v7, 4  ;;  %v4692_v18 = vsel %vm16621_vm12, 0, %v4691_v14  ;;  %v6683_v34 = vld [vmem:[#allocation2 + $0xa8] sm:$0xf] }
 0x46e   :  { %v6764_v2 = vor.u32 %v6763_v8, %v6760_v49  ;;  %v4699_v50 = vsel %vm16621_vm12, 0, %v4698_v6  ;;  %v6777_v3 = vrot.slane %v6775_v21, 5  ;;  %v6783_v19 = vrot.slane %v6781_v61, 5  ;;  %4693 = vst [vmem:[#allocation2 + $0x158] sm:$0x8] %v4692_v18 }
 0x46f   :  { %v6756_v20 = vsel %vm16933_vm10, %v6751_v13, %v6755_v55  ;;  %4700 = vst [vmem:[#allocation2 + $0x16c] sm:$0x8] %v4699_v50  ;;  %v6521_v25 = vshrl.u32 %v6330_v10, 16  ;;  %v6524_v4 = vshll.u32 %v6330_v10, 16  ;;  %v6534_v59 = vshrl.u32 %v6332_v36, 16 }
 0x470   :  { %v14049_v41 = vcombine.low %v6742_v5, %v6756_v20  ;;  %v6765_v16 = vrot.slane %v6764_v2, 4  ;;  %v4576_v53 = vld [vmem:[#allocation2 + $0xc] sm:$0x1]  ;;  %v6778_v47 = vor.u32 %v6777_v3, %v6774_v23  ;;  %v6537_v12 = vshll.u32 %v6332_v36, 16  ;;  %v15302_v40 = vld [vmem:[#allocation2 + $0x94] ss:$20 sps:$4 sm:$0xff]  }
 0x471   :  { %v7675_v30 = vld [vmem:[#allocation5 + $0xe8] sm:$0xff]  ;;  %v6523_v24 = vrot.slane %v6521_v25, 7  ;;  %v6786_v51 = vshrl.u32 %v6681_v1, 16  ;;  %v6536_v62 = vrot.slane %v6534_v59, 7  ;;  %v6789_v57 = vshll.u32 %v6681_v1, 16  ;;  %6664 = vst.msk [vmem:[#allocation5 + $0x88] sm:$0xff] %vm19360_vm2, %v15302_v40 }
 0x472   :  { %15151 = vmatmul.mubr.bf16.gmra.mrb[72].mxu0 %v7675_v30  ;;  %6951 = vrot.lane.b32.xlu1 %v14049_v41, %s15442_s5  ;;  %v6770_v11 = vsel %vm16933_vm10, %v6765_v16, %v6769_v60  ;;  %v6684_v35 = vld [vmem:[#allocation2 + $0xac] sm:$0x1]  ;;  %v6795_v0 = vshll.u32 %v6682_v52, 16  ;;  %v6002_v56 = vld [vmem:[#allocation2 + $0x8] sm:$0xf]  ;;  %v6779_v9 = vrot.slane %v6778_v47, 4 }
 0x473   :  { %v6526_v31 = vor.u32 %v6524_v4, %v6523_v24  ;;  %v6788_v44 = vrot.slane %v6786_v51, 4  ;;  %v6800_v42 = vshrl.u32 %v6683_v34, 16  ;;  %v6005_v22 = vld [vmem:[#allocation2 + $0x20] sm:$0x1]  ;;  %v6539_v27 = vor.u32 %v6537_v12, %v6536_v62  ;;  %v6004_v43 = vld [vmem:[#allocation2 + $0x1c] sm:$0xf] }
 0x474   :  { %v6791_v58 = vrot.slane %v6789_v57, 5  ;;  %v6797_v32 = vrot.slane %v6795_v0, 5  ;;  %v6803_v39 = vshll.u32 %v6683_v34, 16  ;;  %v6784_v37 = vsel %vm16933_vm10, %v6779_v9, %v6783_v19  ;;  %v15305_v63 = vld [vmem:[#allocation2 + $0xe4] ss:$20 sps:$4 sm:$0xff]  }
 0x475   :  { %v6802_v15 = vrot.slane %v6800_v42, 4  ;;  %v6809_v38 = vshll.u32 %v6684_v35, 16  ;;  %v4577_v26 = vsel %vm16885_vm13, 0, %v4576_v53  ;;  %v14050_v17 = vcombine.low %v6770_v11, %v6784_v37  ;;  %v6329_v55 = vld [vmem:[#allocation2 + $0x158] sm:$0x8]  ;;  %6665 = vst.msk [vmem:[#allocation5 + $0xb0] sm:$0xff] %vm19360_vm2, %v15305_v63 }
 0x476   :  { %v6331_v28 = vld [vmem:[#allocation2 + $0x16c] sm:$0x8]  ;;  %v6792_v14 = vor.u32 %v6791_v58, %v6788_v44  ;;  %v6805_v6 = vrot.slane %v6803_v39, 5  ;;  %4578 = vst [vmem:[#allocation2 + $0xc] sm:$0x1] %v4577_v26  ;;  %v6061_v5 = vshll.u32 %v6005_v22, 16 }
 0x477   :  { %v6516_v49 = vshrl.u32 %v6329_v55, 16  ;;  %v6529_v8 = vshrl.u32 %v6331_v28, 16  ;;  %v6811_v7 = vrot.slane %v6809_v38, 5  ;;  %v6038_v10 = vshrl.u32 %v6002_v56, 16  ;;  %v4688_v13 = vld [vmem:[#allocation2 + $0x14c] sm:$0x1]  ;;  %6953 = vrot.lane.b32.xlu1 %v14050_v17, %s15442_s5 }
 0x478   :  { %v6793_v60 = vrot.slane %v6792_v14, 4  ;;  %v6806_v21 = vor.u32 %v6805_v6, %v6802_v15  ;;  %v6063_v61 = vrot.slane %v6061_v5, 5  ;;  %v6041_v36 = vshll.u32 %v6002_v56, 16  ;;  %v4695_v2 = vld [vmem:[#allocation2 + $0x160] sm:$0x1] }
 0x479   :  { %v14030_v23 = vrot.slane %v6516_v49, 11  ;;  %v14031_v18 = vrot.slane %v6529_v8, 11  ;;  %v6040_v50 = vrot.slane %v6038_v10, 4  ;;  %v6052_v1 = vshrl.u32 %v6004_v43, 16  ;;  %v7374_v20 = vld [vmem:[#allocation2 + $0x148] sm:$0xf]  ;;  %v6566_v10 = vpop.permute.xlu0 %6565 }
 0x47a   :  { %v6798_v3 = vsel %vm16933_vm10, %v6793_v60, %v6797_v32  ;;  %v6807_v19 = vrot.slane %v6806_v21, 4  ;;  %v6043_v25 = vrot.slane %v6041_v36, 5  ;;  %v6055_v52 = vshll.u32 %v6004_v43, 16  ;;  %v7376_v34 = vld [vmem:[#allocation2 + $0x15c] sm:$0xf] }
 0x47b   :  { %v6527_v41 = vsel %vm16660_vm15, %v14030_v23, %v6526_v31  ;;  %v6540_v16 = vsel %vm16660_vm15, %v14031_v18, %v6539_v27  ;;  %v6054_v4 = vrot.slane %v6052_v1, 4  ;;  %v4689_v59 = vsel %vm16885_vm13, 0, %v4688_v13  ;;  %v4653_v12 = vld [vmem:[#allocation2 + $0xe8] sm:$0x1]  ;;  %v6685_v51 = vld [vmem:[#allocation2 + $0xe4] sm:$0xf] }
 0x47c   :  { %v14039_v53 = vcombine.low %v6527_v41, %v6540_v16  ;;  %v6812_v30 = vsel %vm16933_vm10, %v6807_v19, %v6811_v7  ;;  %v6044_v47 = vor.u32 %v6043_v25, %v6040_v50  ;;  %v6057_v24 = vrot.slane %v6055_v52, 5  ;;  %4690 = vst [vmem:[#allocation2 + $0x14c] sm:$0x1] %v4689_v59  ;;  %v6687_v44 = vld [vmem:[#allocation2 + $0xf8] sm:$0xf] }
 0x47d   :  { %v14051_v40 = vcombine.low %v6798_v3, %v6812_v30  ;;  %v6003_v11 = vld [vmem:[#allocation2 + $0xc] sm:$0x1]  ;;  %v4696_v62 = vsel %vm16885_vm13, 0, %v4695_v2  ;;  %v7551_v35 = vshrl.u32 %v7374_v20, 16  ;;  %v7554_v57 = vshll.u32 %v7374_v20, 16 }
 0x47e   :  { %6579 = vrot.lane.b32.xlu0 %v14039_v53, %s15442_s5  ;;  %v6047_v0 = vshll.u32 %v6003_v11, 16  ;;  %v6045_v56 = vrot.slane %v6044_v47, 4  ;;  %v6058_v9 = vor.u32 %v6057_v24, %v6054_v4  ;;  %4697 = vst [vmem:[#allocation2 + $0x160] sm:$0x1] %v4696_v62  ;;  %v7565_v31 = vshrl.u32 %v7376_v34, 16 }
 0x47f   :  { %6955 = vrot.lane.b32.xlu1 %v14051_v40, %s15442_s5  ;;  %v7553_v42 = vrot.slane %v7551_v35, 4  ;;  %v7556_v22 = vrot.slane %v7554_v57, 5  ;;  %v7568_v27 = vshll.u32 %v7376_v34, 16  ;;  %v4654_v58 = vsel %vm16885_vm13, 0, %v4653_v12  ;;  %v15275_v37 = vld [vmem:[#allocation2 + $0x30] ss:$20 sps:$4 sm:$0xff]  }
 0x480   :  { %v6049_v32 = vrot.slane %v6047_v0, 5  ;;  %v6059_v39 = vrot.slane %v6058_v9, 4  ;;  %v7567_v43 = vrot.slane %v7565_v31, 4  ;;  %4655 = vst [vmem:[#allocation2 + $0xe8] sm:$0x1] %v4654_v58  ;;  %v6814_v15 = vshrl.u32 %v6685_v51, 16 }
 0x481   :  { %v4568_v38 = vld [vmem:[#allocation2 + $0x4] sm:$0x8]  ;;  %v7557_v26 = vor.u32 %v7556_v22, %v7553_v42  ;;  %v7570_v63 = vrot.slane %v7568_v27, 5  ;;  %v6688_v17 = vld [vmem:[#allocation2 + $0xfc] sm:$0x1]  ;;  %v6817_v55 = vshll.u32 %v6685_v51, 16 }
 0x482   :  { %v6828_v28 = vshrl.u32 %v6687_v44, 16  ;;  %v6050_v14 = vsel %vm16933_vm10, %v6045_v56, %v6049_v32  ;;  %v6064_v6 = vsel %vm16933_vm10, %v6059_v39, %v6063_v61  ;;  %7318 = vrot.lane.b32.xlu0 %v15275_v37, %s15442_s5  ;;  %v6816_v5 = vrot.slane %v6814_v15, 4  ;;  %v5634_v8 = vld [vmem:[#allocation2 + $0x18] sm:$0x8]  ;;  %v15306_v7 = vld [vmem:[#allocation2 + $0x10c] ss:$20 sps:$4 sm:$0xff]  }
 0x483   :  { %v6831_v49 = vshll.u32 %v6687_v44, 16  ;;  %v14008_v13 = vcombine.low %v6050_v14, %v6064_v6  ;;  %v7375_v60 = vld [vmem:[#allocation2 + $0x14c] sm:$0x1]  ;;  %v7558_v21 = vrot.slane %v7557_v26, 4  ;;  %v7571_v36 = vor.u32 %v7570_v63, %v7567_v43  ;;  %v5635_v23 = vld [vmem:[#allocation2 + $0x1c] sm:$0xf] }
 0x484   :  { %v6819_v2 = vrot.slane %v6817_v55, 5  ;;  %v7560_v18 = vshll.u32 %v7375_v60, 16  ;;  %v6830_v50 = vrot.slane %v6828_v28, 4  ;;  %v6837_v20 = vshll.u32 %v6688_v17, 16  ;;  %v5633_v3 = vld [vmem:[#allocation2 + $0x8] sm:$0xf] }
 0x485   :  { %v6833_v1 = vrot.slane %v6831_v49, 5  ;;  %v15278_v19 = vld [vmem:[#allocation2 + $0x58] ss:$20 sps:$4 sm:$0xff]   ;;  %6666 = vst.msk [vmem:[#allocation5 + $0xd8] sm:$0xff] %vm19360_vm2, %v15306_v7  ;;  %6293 = vst.msk [vmem:[#allocation5 + $0x8] sm:$0xff] %vm19360_vm2, %v14008_v13  ;;  %v7572_v25 = vrot.slane %v7571_v36, 4 }
 0x486   :  { %v7377_v61 = vld [vmem:[#allocation2 + $0x160] sm:$0x1]  ;;  %v6820_v52 = vor.u32 %v6819_v2, %v6816_v5  ;;  %v4569_v41 = vsel %vm16621_vm12, 0, %v4568_v38  ;;  %v5680_v16 = vshrl.u32 %v5634_v8, 16  ;;  %vm19377_vm6 = vcmask 1048064   ;;  %7320 = vrot.lane.b32.xlu0 %v15278_v19, %s15442_s5 }
 0x487   :  { %6589 = vst.msk [vmem:[#allocation5 + $0x8] sm:$0xff] %vm19377_vm6, %v6566_v10  ;;  %v7562_v4 = vrot.slane %v7560_v18, 5  ;;  %v7574_v59 = vshll.u32 %v7377_v61, 16  ;;  %v6834_v34 = vor.u32 %v6833_v1, %v6830_v50  ;;  %v6839_v53 = vrot.slane %v6837_v20, 5  ;;  %4570 = vst [vmem:[#allocation2 + $0x4] sm:$0x8] %v4569_v41 }
 0x488   :  { %v6689_v30 = vld [vmem:[#allocation2 + $0x10c] sm:$0xf]  ;;  %v6686_v47 = vld [vmem:[#allocation2 + $0xe8] sm:$0x1]  ;;  %v6821_v24 = vrot.slane %v6820_v52, 4  ;;  %v17659_v12 = vrot.slane %v5680_v16, 11  ;;  %vm19378_vm7 = vmmov %vm19377_vm6 }
 0x489   :  { %v5685_v51 = vshrl.u32 %v5635_v23, 16  ;;  %v5688_v40 = vshll.u32 %v5635_v23, 16  ;;  %v6691_v11 = vld [vmem:[#allocation2 + $0x120] sm:$0xf]  ;;  %v7563_v62 = vsel %vm16933_vm10, %v7558_v21, %v7562_v4  ;;  %v7576_v35 = vrot.slane %v7574_v59, 5  ;;  %vm19379_vm8 = vmmov %vm19377_vm6 }
 0x48a   :  { %v6823_v57 = vshll.u32 %v6686_v47, 16  ;;  %v6835_v0 = vrot.slane %v6834_v34, 4  ;;  %v15281_v56 = vld [vmem:[#allocation2 + $0x80] ss:$20 sps:$4 sm:$0xff]   ;;  %v5672_v31 = vshrl.u32 %v5633_v3, 16  ;;  %v5675_v44 = vshll.u32 %v5633_v3, 16  ;;  %vm19380_vm9 = vmmov %vm19377_vm6 }
 0x48b   :  { %v5687_v9 = vrot.slane %v5685_v51, 7  ;;  %v6690_v42 = vld [vmem:[#allocation2 + $0x110] sm:$0x1]  ;;  %v6842_v22 = vshrl.u32 %v6689_v30, 16  ;;  %v7577_v27 = vsel %vm16933_vm10, %v7572_v25, %v7576_v35  ;;  %v6845_v39 = vshll.u32 %v6689_v30, 16  ;;  %7322 = vrot.lane.b32.xlu0 %v15281_v56, %s15442_s5  ;;  %v5971_v35 = vpop.permute.xlu0 %5970  ;;  %vm19381_vm14 = vmmov %vm19377_vm6 }
 0x48c   :  { %v6825_v58 = vrot.slane %v6823_v57, 5  ;;  %v6840_v32 = vsel %vm16933_vm10, %v6835_v0, %v6839_v53  ;;  %v4702_v43 = vld [vmem:[#allocation2 + $0x174] sm:$0x1]  ;;  %v4709_v37 = vld [vmem:[#allocation2 + $0x188] sm:$0x1]  ;;  %v14094_v15 = vcombine.low %v7563_v62, %v7577_v27  ;;  %v5674_v26 = vrot.slane %v5672_v31, 7  ;;  %vm19382_vm11 = vmmov %vm19377_vm6 }
 0x48d   :  { %v5690_v38 = vor.u32 %v5688_v40, %v5687_v9  ;;  %v6844_v63 = vrot.slane %v6842_v22, 4  ;;  %v15282_v17 = vld [vmem:[#allocation2 + $0xa8] ss:$20 sps:$4 sm:$0xff]   ;;  %v6692_v14 = vld [vmem:[#allocation2 + $0x124] sm:$0x1]  ;;  %v6847_v6 = vrot.slane %v6845_v39, 5 }
 0x48e   :  { %v15309_v55 = vld [vmem:[#allocation2 + $0x134] ss:$20 sps:$4 sm:$0xff]   ;;  %v6826_v28 = vsel %vm16933_vm10, %v6821_v24, %v6825_v58  ;;  %v6851_v5 = vshll.u32 %v6690_v42, 16  ;;  %v6856_v49 = vshrl.u32 %v6691_v11, 16  ;;  %7644 = vst.msk [vmem:[#allocation5 + $0x110] sm:$0xff] %vm19360_vm2, %v14094_v15  ;;  %v5677_v13 = vor.u32 %v5675_v44, %v5674_v26 }
 0x48f   :  { %v14052_v8 = vcombine.low %v6826_v28, %v6840_v32  ;;  %v5632_v7 = vld [vmem:[#allocation2 + $0x4] sm:$0x8]  ;;  %v5691_v10 = vsel %vm16660_vm15, %v17659_v12, %v5690_v38  ;;  %v6859_v60 = vshll.u32 %v6691_v11, 16  ;;  %v7378_v21 = vld [vmem:[#allocation2 + $0x170] sm:$0xf]  ;;  %v7647_v36 = vld [vmem:[#allocation5 + $0x8] sm:$0xff]  ;;  %v6848_v23 = vor.u32 %v6847_v6, %v6844_v63  ;;  %7324 = vrot.lane.b32.xlu0 %v15282_v17, %s15442_s5 }
 0x490   :  { %6667 = vst.msk [vmem:[#allocation5 + $0x100] sm:$0xff] %vm19360_vm2, %v15309_v55  ;;  %v5667_v2 = vshrl.u32 %v5632_v7, 16  ;;  %v6853_v18 = vrot.slane %v6851_v5, 5  ;;  %v6858_v50 = vrot.slane %v6856_v49, 4  ;;  %v7380_v1 = vld [vmem:[#allocation2 + $0x184] sm:$0xf]  ;;  %7958 = vmatprep.mubr.bf16.mxu1 %v7647_v36 }
 0x491   :  { %6957 = vrot.lane.b32.xlu1 %v14052_v8, %s15442_s5  ;;  %v6861_v20 = vrot.slane %v6859_v60, 5  ;;  %v6865_v3 = vshll.u32 %v6692_v14, 16  ;;  %v4703_v19 = vsel %vm16885_vm13, 0, %v4702_v43  ;;  %v4710_v61 = vsel %vm16885_vm13, 0, %v4709_v37  ;;  %v6693_v25 = vld [vmem:[#allocation2 + $0x134] sm:$0xf] }
 0x492   :  { %v13976_v52 = vrot.slane %v5667_v2, 11  ;;  %v6849_v41 = vrot.slane %v6848_v23, 4  ;;  %4704 = vst [vmem:[#allocation2 + $0x174] sm:$0x1] %v4703_v19  ;;  %4711 = vst [vmem:[#allocation2 + $0x188] sm:$0x1] %v4710_v61 }
 0x493   :  { %v7579_v16 = vshrl.u32 %v7378_v21, 16  ;;  %v7582_v4 = vshll.u32 %v7378_v21, 16  ;;  %v15283_v59 = vld [vmem:[#allocation2 + $0xf8] ss:$20 sps:$4 sm:$0xff]   ;;  %v6862_v34 = vor.u32 %v6861_v20, %v6858_v50  ;;  %v6867_v53 = vrot.slane %v6865_v3, 5 }
 0x494   :  { %v7593_v30 = vshrl.u32 %v7380_v1, 16  ;;  %v7596_v47 = vshll.u32 %v7380_v1, 16  ;;  %v6694_v24 = vld [vmem:[#allocation2 + $0x138] sm:$0x1]  ;;  %v5678_v12 = vsel %vm16660_vm15, %v13976_v52, %v5677_v13  ;;  %v6854_v51 = vsel %vm16933_vm10, %v6849_v41, %v6853_v18  ;;  %v6695_v62 = vld [vmem:[#allocation2 + $0x148] sm:$0xf]  ;;  %7326 = vrot.lane.b32.xlu0 %v15283_v59, %s15442_s5 }
 0x495   :  { %v7581_v40 = vrot.slane %v7579_v16, 4  ;;  %v7584_v11 = vrot.slane %v7582_v4, 5  ;;  %v13992_v57 = vcombine.low %v5678_v12, %v5691_v10  ;;  %v6863_v0 = vrot.slane %v6862_v34, 4  ;;  %v7680_v31 = vld [vmem:[#allocation5 + $0x110] sm:$0xff]  ;;  %v6697_v58 = vld [vmem:[#allocation2 + $0x15c] sm:$0xf] }
 0x496   :  { %v7595_v56 = vrot.slane %v7593_v30, 4  ;;  %v7598_v9 = vrot.slane %v7596_v47, 5  ;;  %v6870_v42 = vshrl.u32 %v6693_v25, 16  ;;  %v6873_v22 = vshll.u32 %v6693_v25, 16  ;;  %v15284_v32 = vld [vmem:[#allocation2 + $0x120] ss:$20 sps:$4 sm:$0xff]   ;;  %15154 = vmatprep.mubr.bf16.mxu0 %v7680_v31 }
 0x497   :  { %v7585_v44 = vor.u32 %v7584_v11, %v7581_v40  ;;  %v6879_v27 = vshll.u32 %v6694_v24, 16  ;;  %5906 = vst.msk [vmem:[#allocation5] sm:$0xff] %vm19360_vm2, %v13992_v57  ;;  %v6868_v39 = vsel %vm16933_vm10, %v6863_v0, %v6867_v53  ;;  %v6696_v37 = vld [vmem:[#allocation2 + $0x14c] sm:$0x1]  ;;  %v6884_v15 = vshrl.u32 %v6695_v62, 16  ;;  %v15288_v53 = vld [vmem:[%s19349_s2 + $0x80] sm:$0xff]  }
 0x498   :  { %v7599_v43 = vor.u32 %v7598_v9, %v7595_v56  ;;  %v6887_v38 = vshll.u32 %v6695_v62, 16  ;;  %v15310_v26 = vld [vmem:[#allocation2 + $0x15c] ss:$20 sps:$4 sm:$0xff]   ;;  %5994 = vst.msk [vmem:[#allocation5] sm:$0xff] %vm19378_vm7, %v5971_v35  ;;  %v14053_v63 = vcombine.low %v6854_v51, %v6868_v39  ;;  %v6872_v55 = vrot.slane %v6870_v42, 4  ;;  %7328 = vrot.lane.b32.xlu0 %v15284_v32, %s15442_s5  ;;  %v15289_v40 = vld [vmem:[%s19349_s2 + $0xc8] sm:$0xff]   ;;  %vm19384_vm7 = vmmov %vm19377_vm6 }
 0x499   :  { %v7586_v17 = vrot.slane %v7585_v44, 4  ;;  %v6875_v28 = vrot.slane %v6873_v22, 5  ;;  %v6698_v14 = vld [vmem:[#allocation2 + $0x160] sm:$0x1]  ;;  %v7379_v6 = vld [vmem:[#allocation2 + $0x174] sm:$0x1] }
 0x49a   :  { %v7381_v5 = vld [vmem:[#allocation2 + $0x188] sm:$0x1]  ;;  %v7600_v49 = vrot.slane %v7599_v43, 4  ;;  %v6881_v8 = vrot.slane %v6879_v27, 5  ;;  %6668 = vst.msk [vmem:[#allocation5 + $0x128] sm:$0xff] %vm19360_vm2, %v15310_v26  ;;  %6959 = vrot.lane.b32.xlu1 %v14053_v63, %s15442_s5  ;;  %v7588_v7 = vshll.u32 %v7379_v6, 16 }
 0x49b   :  { %v7602_v10 = vshll.u32 %v7381_v5, 16  ;;  %v6876_v13 = vor.u32 %v6875_v28, %v6872_v55  ;;  %v6886_v60 = vrot.slane %v6884_v15, 4  ;;  %v15285_v21 = vld [vmem:[#allocation2 + $0x148] ss:$20 sps:$4 sm:$0xff]   ;;  %v6889_v36 = vrot.slane %v6887_v38, 5  ;;  %v17708_v11 = vpop.f32.mrb[64].mxu0 }
 0x49c   :  { %v6893_v2 = vshll.u32 %v6696_v37, 16  ;;  %v6898_v23 = vshrl.u32 %v6697_v58, 16  ;;  %v6901_v18 = vshll.u32 %v6697_v58, 16  ;;  %v6007_v50 = vld [vmem:[#allocation2 + $0x34] sm:$0x1]  ;;  %v7590_v20 = vrot.slane %v7588_v7, 5  ;;  %7330 = vrot.lane.b32.xlu0 %v15285_v21, %s15442_s5 }
 0x49d   :  { %v6009_v1 = vld [vmem:[#allocation2 + $0x48] sm:$0x1]  ;;  %v7604_v3 = vrot.slane %v7602_v10, 5  ;;  %v6877_v19 = vrot.slane %v6876_v13, 4  ;;  %v6699_v61 = vld [vmem:[#allocation2 + $0x170] sm:$0xf]  ;;  %v6890_v41 = vor.u32 %v6889_v36, %v6886_v60 }
 0x49e   :  { %v6907_v25 = vshll.u32 %v6698_v14, 16  ;;  %v6006_v52 = vld [vmem:[#allocation2 + $0x30] sm:$0xf]  ;;  %v6895_v16 = vrot.slane %v6893_v2, 5  ;;  %v6700_v4 = vld [vmem:[#allocation2 + $0x174] sm:$0x1]  ;;  %v7591_v30 = vsel %vm16933_vm10, %v7586_v17, %v7590_v20 }
 0x49f   :  { %v6900_v59 = vrot.slane %v6898_v23, 4  ;;  %v6903_v34 = vrot.slane %v6901_v18, 5  ;;  %v7605_v47 = vsel %vm16933_vm10, %v7600_v49, %v7604_v3  ;;  %v6882_v24 = vsel %vm16933_vm10, %v6877_v19, %v6881_v8  ;;  %v15286_v51 = vld [vmem:[#allocation2 + $0x170] ss:$20 sps:$4 sm:$0xff]   ;;  %v5636_v31 = vld [vmem:[#allocation2 + $0x2c] sm:$0x8] }
 0x4a0   :  { %v17703_v12 = vrot.slane %v6907_v25, 5  ;;  %v14095_v62 = vcombine.low %v7591_v30, %v7605_v47  ;;  %v6891_v35 = vrot.slane %v6890_v41, 4  ;;  %v7646_v57 = vld [vmem:[#allocation5] sm:$0xff]  ;;  %v6912_v56 = vshrl.u32 %v6699_v61, 16  ;;  %v17710_v44 = vpop.f32.mrb[65].mxu0  ;;  %7332 = vrot.lane.b32.xlu0 %v15286_v51, %s15442_s5  ;;  %v15290_v26 = vld [vmem:[%s19349_s2 + $0x88] sm:$0xff]  }
 0x4a1   :  { %v6904_v0 = vor.u32 %v6903_v34, %v6900_v59  ;;  %v6008_v9 = vld [vmem:[#allocation2 + $0x44] sm:$0xf]  ;;  %7959 = vmatmul.mubr.bf16.vlgmr.msra.gmra.mrb[0].mxu1 %v7646_v57  ;;  %v6915_v42 = vshll.u32 %v6699_v61, 16  ;;  %v6921_v22 = vshll.u32 %v6700_v4, 16  ;;  %v6075_v27 = vshll.u32 %v6007_v50, 16  ;;  %v17713_v39 = vpop.f32.mrb[66].mxu0  ;;  %v6568_v4 = vpop.permute.xlu1 %6567 }
 0x4a2   :  { %v6089_v58 = vshll.u32 %v6009_v1, 16  ;;  %v5638_v32 = vld [vmem:[#allocation2 + $0x40] sm:$0x8]  ;;  %7645 = vst.msk [vmem:[#allocation5 + $0x138] sm:$0xff] %vm19360_vm2, %v14095_v62  ;;  %v6896_v43 = vsel %vm16933_vm10, %v6891_v35, %v6895_v16  ;;  %v6914_v15 = vrot.slane %v6912_v56, 4  ;;  %v6066_v38 = vshrl.u32 %v6006_v52, 16  ;;  %14848 = vmatpush3.bf16.msra.mxu1 %v15288_v53 }
 0x4a3   :  { %v6905_v37 = vrot.slane %v6904_v0, 4  ;;  %v17721_v63 = vpop.f32.mrb[67].mxu0  ;;  %v14054_v17 = vcombine.low %v6882_v24, %v6896_v43  ;;  %v6917_v55 = vrot.slane %v6915_v42, 5  ;;  %v6923_v28 = vrot.slane %v6921_v22, 5  ;;  %v5639_v6 = vld [vmem:[#allocation2 + $0x44] sm:$0xf]  ;;  %14849 = vmatprep.subr.bf16.mxu1 %v15289_v40 }
 0x4a4   :  { %v17723_v14 = vrot.slane %v6075_v27, 5  ;;  %v15291_v5 = vld [vmem:[%s19349_s2 + $0xd0] sm:$0xff]   ;;  %v6091_v8 = vrot.slane %v6089_v58, 5  ;;  %v6068_v7 = vrot.slane %v6066_v38, 4  ;;  %v6069_v10 = vshll.u32 %v6006_v52, 16  ;;  %v15293_v16 = vld [vmem:[%s19349_s2 + $0xd8] sm:$0xff]  }
 0x4a5   :  { %v6910_v49 = vsel %vm16933_vm10, %v6905_v37, %v17703_v12  ;;  %v5637_v13 = vld [vmem:[#allocation2 + $0x30] sm:$0xf]  ;;  %6961 = vrot.lane.b32.xlu1 %v14054_v17, %s15442_s5  ;;  %v6918_v60 = vor.u32 %v6917_v55, %v6914_v15  ;;  %v6080_v21 = vshrl.u32 %v6008_v9, 16  ;;  %v6083_v36 = vshll.u32 %v6008_v9, 16  ;;  %v5640_v23 = vld [vmem:[#allocation2 + $0x54] sm:$0x8] }
 0x4a6   :  { %v5693_v2 = vshrl.u32 %v5636_v31, 16  ;;  %v6071_v18 = vrot.slane %v6069_v10, 5  ;;  %v5706_v50 = vshrl.u32 %v5638_v32, 16  ;;  %v5711_v1 = vshrl.u32 %v5639_v6, 16  ;;  %v5641_v3 = vld [vmem:[#allocation2 + $0x58] sm:$0xf]  ;;  %14850 = vmatpush3.bf16.msra.mxu1 %v15290_v26  ;;  %v5973_v10 = vpop.permute.xlu1 %5972 }
 0x4a7   :  { %v5714_v20 = vshll.u32 %v5639_v6, 16  ;;  %v15292_v19 = vld [vmem:[%s19349_s2 + $0x90] sm:$0xff]   ;;  %v6919_v61 = vrot.slane %v6918_v60, 4  ;;  %v6082_v25 = vrot.slane %v6080_v21, 4  ;;  %v6085_v52 = vrot.slane %v6083_v36, 5  ;;  %14851 = vmatprep.subr.bf16.mxu1 %v15291_v5  ;;  %v15294_v42 = vld [vmem:[%s19349_s2 + $0x98] sm:$0xff]  }
 0x4a8   :  { %v13978_v41 = vrot.slane %v5693_v2, 11  ;;  %v6072_v59 = vor.u32 %v6071_v18, %v6068_v7  ;;  %v13979_v34 = vrot.slane %v5706_v50, 11  ;;  %v5713_v53 = vrot.slane %v5711_v1, 7  ;;  %v5642_v47 = vld [vmem:[#allocation2 + $0x68] sm:$0x8]  ;;  %v15295_v43 = vld [vmem:[%s19349_s2 + $0xe0] sm:$0xff]  }
 0x4a9   :  { %v5698_v30 = vshrl.u32 %v5637_v13, 16  ;;  %v7685_v24 = vld [vmem:[#allocation5 + $0x138] sm:$0xff]  ;;  %v6924_v12 = vsel %vm16933_vm10, %v6919_v61, %v6923_v28  ;;  %v6086_v51 = vor.u32 %v6085_v52, %v6082_v25  ;;  %v5701_v40 = vshll.u32 %v5637_v13, 16  ;;  %v5643_v62 = vld [vmem:[#allocation2 + $0x6c] sm:$0xf]  ;;  %v15296_v36 = vld [vmem:[%s19349_s2 + $0xa0] sm:$0xff]  }
 0x4aa   :  { %v5719_v35 = vshrl.u32 %v5640_v23, 16  ;;  %15155 = vmatmul.mubr.bf16.gmra.mrb[76].mxu0 %v7685_v24  ;;  %v14055_v57 = vcombine.low %v6910_v49, %v6924_v12  ;;  %v6073_v0 = vrot.slane %v6072_v59, 4  ;;  %v5716_v56 = vor.u32 %v5714_v20, %v5713_v53  ;;  %v6010_v31 = vld [vmem:[#allocation2 + $0x58] sm:$0xf]  ;;  %14852 = vmatpush3.bf16.msra.mxu1 %v15292_v19  ;;  %v6011_v17 = vld [vmem:[#allocation2 + $0x5c] sm:$0x1] }
 0x4ab   :  { %v5700_v9 = vrot.slane %v5698_v30, 7  ;;  %v6087_v22 = vrot.slane %v6086_v51, 4  ;;  %v5724_v58 = vshrl.u32 %v5641_v3, 16  ;;  %v5727_v32 = vshll.u32 %v5641_v3, 16  ;;  %14853 = vmatprep.subr.bf16.mxu1 %v15293_v16  ;;  %v6012_v49 = vld [vmem:[#allocation2 + $0x6c] sm:$0xf] }
 0x4ac   :  { %v13980_v27 = vrot.slane %v5719_v35, 11  ;;  %6963 = vrot.lane.b32.xlu1 %v14055_v57, %s15442_s5  ;;  %v6078_v37 = vsel %vm16933_vm10, %v6073_v0, %v17723_v14  ;;  %v5717_v15 = vsel %vm16660_vm15, %v13979_v34, %v5716_v56  ;;  %v5732_v26 = vshrl.u32 %v5642_v47, 16  ;;  %v6013_v14 = vld [vmem:[#allocation2 + $0x70] sm:$0x1]  ;;  %v5644_v50 = vld [vmem:[#allocation2 + $0x7c] sm:$0x8] }
 0x4ad   :  { %v5703_v38 = vor.u32 %v5701_v40, %v5700_v9  ;;  %v6092_v55 = vsel %vm16933_vm10, %v6087_v22, %v6091_v8  ;;  %v5726_v28 = vrot.slane %v5724_v58, 7  ;;  %v5737_v6 = vshrl.u32 %v5643_v62, 16  ;;  %v15299_v1 = vld [vmem:[%s19349_s2 + $0xe8] sm:$0xff]   ;;  %v5645_v25 = vld [vmem:[#allocation2 + $0x80] sm:$0xf]  ;;  %v15303_v0 = vld [vmem:[%s19349_s2 + $0xf0] sm:$0xff]   ;;  %v5975_v9 = vpop.permute.xlu1 %5974 }
 0x4ae   :  { %v5740_v5 = vshll.u32 %v5643_v62, 16  ;;  %v14009_v7 = vcombine.low %v6078_v37, %v6092_v55  ;;  %v13981_v60 = vrot.slane %v5732_v26, 11  ;;  %v6094_v21 = vshrl.u32 %v6010_v31, 16  ;;  %14854 = vmatpush3.bf16.msra.mxu1 %v15294_v42  ;;  %v5646_v34 = vld [vmem:[#allocation2 + $0x90] sm:$0x8] }
 0x4af   :  { %v5704_v13 = vsel %vm16660_vm15, %v13978_v41, %v5703_v38  ;;  %v5729_v23 = vor.u32 %v5727_v32, %v5726_v28  ;;  %v5739_v8 = vrot.slane %v5737_v6, 7  ;;  %v6097_v18 = vshll.u32 %v6010_v31, 16  ;;  %14855 = vmatprep.subr.bf16.mxu1 %v15295_v43  ;;  %v5647_v53 = vld [vmem:[#allocation2 + $0x94] sm:$0xf]  ;;  %v6014_v57 = vld [vmem:[#allocation2 + $0x80] sm:$0xf] }
 0x4b0   :  { %v13993_v2 = vcombine.low %v5704_v13, %v5717_v15  ;;  %6294 = vst.msk [vmem:[#allocation5 + $0x30] sm:$0xff] %vm19360_vm2, %v14009_v7  ;;  %v6096_v20 = vrot.slane %v6094_v21, 4  ;;  %v6103_v3 = vshll.u32 %v6011_v17, 16  ;;  %v6108_v19 = vshrl.u32 %v6012_v49, 16  ;;  %v6016_v58 = vld [vmem:[#allocation2 + $0x94] sm:$0xf] }
 0x4b1   :  { %v6111_v61 = vshll.u32 %v6012_v49, 16  ;;  %6590 = vst.msk [vmem:[#allocation5 + $0x30] sm:$0xff] %vm19379_vm8, %v6568_v4  ;;  %v5730_v52 = vsel %vm16660_vm15, %v13980_v27, %v5729_v23  ;;  %v5742_v41 = vor.u32 %v5740_v5, %v5739_v8  ;;  %v6099_v16 = vrot.slane %v6097_v18, 5  ;;  %v15300_v4 = vld [vmem:[%s19349_s2 + $0xa8] sm:$0xff]   ;;  %v6015_v27 = vld [vmem:[#allocation2 + $0x84] sm:$0x1]  ;;  %vm19385_vm8 = vmmov %vm19377_vm6 }
 0x4b2   :  { %5907 = vst.msk [vmem:[#allocation5 + $0x28] sm:$0xff] %vm19360_vm2, %v13993_v2  ;;  %v6117_v59 = vshll.u32 %v6013_v14, 16  ;;  %v6105_v30 = vrot.slane %v6103_v3, 5  ;;  %v6110_v47 = vrot.slane %v6108_v19, 4  ;;  %v5745_v12 = vshrl.u32 %v5644_v50, 16  ;;  %14856 = vmatpush3.bf16.msra.mxu1 %v15296_v36  ;;  %v15307_v8 = vld [vmem:[%s19349_s2 + $0xf8] sm:$0xff]  }
 0x4b3   :  { %5995 = vst.msk [vmem:[#allocation5 + $0x28] sm:$0xff] %vm19380_vm9, %v5973_v10  ;;  %v6113_v24 = vrot.slane %v6111_v61, 5  ;;  %v5743_v51 = vsel %vm16660_vm15, %v13981_v60, %v5742_v41  ;;  %v6100_v40 = vor.u32 %v6099_v16, %v6096_v20  ;;  %v5750_v35 = vshrl.u32 %v5645_v25, 16  ;;  %14857 = vmatprep.subr.bf16.mxu1 %v15299_v1  ;;  %v6017_v38 = vld [vmem:[#allocation2 + $0x98] sm:$0x1]  ;;  %v15304_v60 = vld [vmem:[%s19349_s2 + $0xb0] sm:$0xff]   ;;  %v6570_v1 = vpop.permute.xlu0 %6569  ;;  %vm19386_vm9 = vmmov %vm19377_vm6 }
 0x4b4   :  { %v6119_v62 = vrot.slane %v6117_v59, 5  ;;  %v13994_v56 = vcombine.low %v5730_v52, %v5743_v51  ;;  %v13982_v42 = vrot.slane %v5745_v12, 11  ;;  %v5753_v22 = vshll.u32 %v5645_v25, 16  ;;  %v4642_v6 = vld [vmem:[#allocation2 + $0xcc] sm:$0x8]  ;;  %v15308_v12 = vld [vmem:[%s19349_s2 + $0xb8] sm:$0xff]   ;;  %v5977_v51 = vpop.permute.xlu1 %5976 }
 0x4b5   :  { %v6114_v31 = vor.u32 %v6113_v24, %v6110_v47  ;;  %v6101_v32 = vrot.slane %v6100_v40, 4  ;;  %v5752_v43 = vrot.slane %v5750_v35, 7  ;;  %v5758_v37 = vshrl.u32 %v5646_v34, 16  ;;  %v17780_v13 = vld [vmem:[#allocation2 + $0xd0] sm:$0xf] }
 0x4b6   :  { %v5763_v15 = vshrl.u32 %v5647_v53, 16  ;;  %5908 = vst.msk [vmem:[#allocation5 + $0x50] sm:$0xff] %vm19360_vm2, %v13994_v56  ;;  %v5766_v17 = vshll.u32 %v5647_v53, 16  ;;  %v6122_v55 = vshrl.u32 %v6014_v57, 16  ;;  %v6125_v28 = vshll.u32 %v6014_v57, 16  ;;  %14858 = vmatpush3.bf16.msra.mxu1 %v15300_v4 }
 0x4b7   :  { %v6115_v26 = vrot.slane %v6114_v31, 4  ;;  %5996 = vst.msk [vmem:[#allocation5 + $0x50] sm:$0xff] %vm19381_vm14, %v5975_v9  ;;  %v6106_v5 = vsel %vm16933_vm10, %v6101_v32, %v6105_v30  ;;  %v5755_v49 = vor.u32 %v5753_v22, %v5752_v43  ;;  %v13983_v7 = vrot.slane %v5758_v37, 11  ;;  %14859 = vmatprep.subr.bf16.mxu1 %v15303_v0  ;;  %v5650_v61 = vld [vmem:[#allocation2 + $0xe0] sm:$0x8]  ;;  %vm19387_vm14 = vmmov %vm19377_vm6 }
 0x4b8   :  { %v5765_v10 = vrot.slane %v5763_v15, 7  ;;  %v7652_v14 = vld [vmem:[#allocation5 + $0x30] sm:$0xff]  ;;  %v6124_v36 = vrot.slane %v6122_v55, 4  ;;  %v6127_v2 = vrot.slane %v6125_v28, 5  ;;  %v6131_v23 = vshll.u32 %v6015_v27, 16 }
 0x4b9   :  { %v6120_v21 = vsel %vm16933_vm10, %v6115_v26, %v6119_v62  ;;  %7966 = vmatprep.mubr.bf16.mxu1 %v7652_v14  ;;  %v5756_v20 = vsel %vm16660_vm15, %v13982_v42, %v5755_v49  ;;  %v6136_v19 = vshrl.u32 %v6016_v58, 16  ;;  %v6139_v41 = vshll.u32 %v6016_v58, 16  ;;  %v5651_v59 = vld [vmem:[#allocation2 + $0xe4] sm:$0xf]  ;;  %v4646_v24 = vld [vmem:[#allocation2 + $0xd4] sm:$0x1] }
 0x4ba   :  { %v7651_v18 = vld [vmem:[#allocation5 + $0x28] sm:$0xff]  ;;  %v14010_v50 = vcombine.low %v6106_v5, %v6120_v21  ;;  %v5768_v3 = vor.u32 %v5766_v17, %v5765_v10  ;;  %v6128_v25 = vor.u32 %v6127_v2, %v6124_v36  ;;  %v6133_v52 = vrot.slane %v6131_v23, 5  ;;  %14860 = vmatpush3.bf16.msra.mxu1 %v15304_v60  ;;  %v6018_v35 = vld [vmem:[#allocation2 + $0xd0] sm:$0xf]  ;;  %v6020_v31 = vld [vmem:[#allocation2 + $0xe4] sm:$0xf] }
 0x4bb   :  { %7967 = vmatmul.mubr.bf16.gmra.mrb[4].mxu1 %v7651_v18  ;;  %v6145_v16 = vshll.u32 %v6017_v38, 16  ;;  %v6138_v53 = vrot.slane %v6136_v19, 4  ;;  %v4643_v30 = vsel %vm16621_vm12, 0, %v4642_v6  ;;  %v5776_v47 = vshrl.u32 %v17780_v13, 16  ;;  %14861 = vmatprep.subr.bf16.mxu1 %v15307_v8  ;;  %v6021_v32 = vld [vmem:[#allocation2 + $0xe8] sm:$0x1]  ;;  %v6572_v18 = vpop.permute.xlu0 %6571 }
 0x4bc   :  { %6295 = vst.msk [vmem:[#allocation5 + $0x58] sm:$0xff] %vm19360_vm2, %v14010_v50  ;;  %v5769_v34 = vsel %vm16660_vm15, %v13983_v7, %v5768_v3  ;;  %v6129_v40 = vrot.slane %v6128_v25, 4  ;;  %v6141_v62 = vrot.slane %v6139_v41, 5  ;;  %4644 = vst [vmem:[#allocation2 + $0xcc] sm:$0x8] %v4643_v30  ;;  %v5784_v56 = vshrl.u32 %v5650_v61, 16 }
 0x4bd   :  { %6591 = vst.msk [vmem:[#allocation5 + $0x58] sm:$0xff] %vm19382_vm11, %v6570_v1  ;;  %v13995_v4 = vcombine.low %v5756_v20, %v5769_v34  ;;  %v6147_v57 = vrot.slane %v6145_v16, 5  ;;  %v5778_v0 = vrot.slane %v5776_v47, 7  ;;  %v5789_v9 = vshrl.u32 %v5651_v59, 16  ;;  %v5652_v43 = vld [vmem:[#allocation2 + $0xf4] sm:$0x8]  ;;  %vm19388_vm11 = vmmov %vm19377_vm6 }
 0x4be   :  { %v6134_v42 = vsel %vm16933_vm10, %v6129_v40, %v6133_v52  ;;  %v6142_v22 = vor.u32 %v6141_v62, %v6138_v53  ;;  %v5779_v27 = vshll.u32 %v17780_v13, 16  ;;  %v4647_v58 = vsel %vm16885_vm13, 0, %v4646_v24  ;;  %14862 = vmatpush3.bf16.msra.mxu1 %v15308_v12  ;;  %v5653_v5 = vld [vmem:[#allocation2 + $0xf8] sm:$0xf]  ;;  %v5654_v2 = vld [vmem:[#allocation2 + $0x108] sm:$0x8]  ;;  %vm19383_vm13 = vmmov %vm19377_vm6 }
 0x4bf   :  { %5909 = vst.msk [vmem:[#allocation5 + $0x78] sm:$0xff] %vm19360_vm2, %v13995_v4  ;;  %v13985_v37 = vrot.slane %v5784_v56, 11  ;;  %v5791_v15 = vrot.slane %v5789_v9, 7  ;;  %v5792_v38 = vshll.u32 %v5651_v59, 16  ;;  %4648 = vst [vmem:[#allocation2 + $0xd4] sm:$0x1] %v4647_v58 }
 0x4c0   :  { %5997 = vst.msk [vmem:[#allocation5 + $0x78] sm:$0xff] %vm19377_vm6, %v5977_v51  ;;  %v6150_v26 = vshrl.u32 %v6018_v35, 16  ;;  %v6143_v17 = vrot.slane %v6142_v22, 4  ;;  %v6153_v55 = vshll.u32 %v6018_v35, 16  ;;  %v6164_v28 = vshrl.u32 %v6020_v31, 16  ;;  %v7656_v19 = vld [vmem:[#allocation5 + $0x50] sm:$0xff] }
 0x4c1   :  { %v6167_v6 = vshll.u32 %v6020_v31, 16  ;;  %v5794_v49 = vor.u32 %v5792_v38, %v5791_v15  ;;  %v6173_v10 = vshll.u32 %v6021_v32, 16  ;;  %v5797_v13 = vshrl.u32 %v5652_v43, 16  ;;  %v6022_v16 = vld [vmem:[#allocation2 + $0xf8] sm:$0xf]  ;;  %v5979_v31 = vpop.permute.xlu1 %5978 }
 0x4c2   :  { %v6152_v7 = vrot.slane %v6150_v26, 4  ;;  %v6148_v60 = vsel %vm16933_vm10, %v6143_v17, %v6147_v57  ;;  %v6155_v14 = vrot.slane %v6153_v55, 5  ;;  %v6166_v21 = vrot.slane %v6164_v28, 4  ;;  %v6024_v47 = vld [vmem:[#allocation2 + $0x10c] sm:$0xf] }
 0x4c3   :  { %v6169_v36 = vrot.slane %v6167_v6, 5  ;;  %v14011_v8 = vcombine.low %v6134_v42, %v6148_v60  ;;  %v5648_v50 = vld [vmem:[#allocation2 + $0xcc] sm:$0x8]  ;;  %v5781_v1 = vor.u32 %v5779_v27, %v5778_v0  ;;  %v5795_v20 = vsel %vm16660_vm15, %v13985_v37, %v5794_v49  ;;  %v6023_v56 = vld [vmem:[#allocation2 + $0xfc] sm:$0x1]  ;;  %v6574_v60 = vpop.permute.xlu0 %6573 }
 0x4c4   :  { %v7657_v23 = vld [vmem:[#allocation5 + $0x58] sm:$0xff]  ;;  %v6175_v3 = vrot.slane %v6173_v10, 5  ;;  %v5771_v61 = vshrl.u32 %v5648_v50, 16  ;;  %v6156_v25 = vor.u32 %v6155_v14, %v6152_v7  ;;  %v5802_v41 = vshrl.u32 %v5653_v5, 16  ;;  %v6025_v15 = vld [vmem:[#allocation2 + $0x110] sm:$0x1] }
 0x4c5   :  { %7974 = vmatprep.mubr.bf16.mxu1 %v7657_v23  ;;  %v6170_v52 = vor.u32 %v6169_v36, %v6166_v21  ;;  %6296 = vst.msk [vmem:[#allocation5 + $0x80] sm:$0xff] %vm19360_vm2, %v14011_v8  ;;  %v13986_v59 = vrot.slane %v5797_v13, 11  ;;  %v5805_v34 = vshll.u32 %v5653_v5, 16  ;;  %v5810_v53 = vshrl.u32 %v5654_v2, 16  ;;  %v5656_v28 = vld [vmem:[#allocation2 + $0x11c] sm:$0x8]  ;;  %v5981_v21 = vpop.permute.xlu1 %5980 }
 0x4c6   :  { %7975 = vmatmul.mubr.bf16.gmra.mrb[8].mxu1 %v7656_v19  ;;  %v5815_v30 = vshrl.u32 %v5655_v48, 16  ;;  %6592 = vst.msk [vmem:[#allocation5 + $0x80] sm:$0xff] %vm19383_vm13, %v6572_v18  ;;  %v13984_v24 = vrot.slane %v5771_v61, 11  ;;  %v6019_v12 = vld [vmem:[#allocation2 + $0xd4] sm:$0x1]  ;;  %v6157_v4 = vrot.slane %v6156_v25, 4  ;;  %vm19389_vm13 = vmmov %vm19377_vm6 }
 0x4c7   :  { %v6171_v51 = vrot.slane %v6170_v52, 4  ;;  %v5818_v40 = vshll.u32 %v5655_v48, 16  ;;  %v6159_v62 = vshll.u32 %v6019_v12, 16  ;;  %v5804_v35 = vrot.slane %v5802_v41, 7  ;;  %v5657_v10 = vld [vmem:[#allocation2 + $0x120] sm:$0xf] }
 0x4c8   :  { %v13987_v57 = vrot.slane %v5810_v53, 11  ;;  %v5817_v0 = vrot.slane %v5815_v30, 7  ;;  %v5782_v9 = vsel %vm16660_vm15, %v13984_v24, %v5781_v1  ;;  %v6178_v22 = vshrl.u32 %v6022_v16, 16  ;;  %v5658_v48 = vld [vmem:[#allocation2 + $0x130] sm:$0x8]  ;;  %v7661_v61 = vld [vmem:[#allocation5 + $0x78] sm:$0xff] }
 0x4c9   :  { %v6176_v42 = vsel %vm16933_vm10, %v6171_v51, %v6175_v3  ;;  %v6181_v27 = vshll.u32 %v6022_v16, 16  ;;  %v13996_v58 = vcombine.low %v5782_v9, %v5795_v20  ;;  %v6161_v32 = vrot.slane %v6159_v62, 5  ;;  %v5659_v23 = vld [vmem:[#allocation2 + $0x134] sm:$0xf]  ;;  %v6026_v8 = vld [vmem:[#allocation2 + $0x120] sm:$0xf] }
 0x4ca   :  { %v5807_v43 = vor.u32 %v5805_v34, %v5804_v35  ;;  %v5820_v37 = vor.u32 %v5818_v40, %v5817_v0  ;;  %v6180_v38 = vrot.slane %v6178_v22, 4  ;;  %v6187_v17 = vshll.u32 %v6023_v56, 16  ;;  %v6027_v19 = vld [vmem:[#allocation2 + $0x124] sm:$0x1]  ;;  %v6029_v56 = vld [vmem:[#allocation2 + $0x138] sm:$0x1] }
 0x4cb   :  { %v6183_v26 = vrot.slane %v6181_v27, 5  ;;  %v6192_v55 = vshrl.u32 %v6024_v47, 16  ;;  %5910 = vst.msk [vmem:[#allocation5 + $0xa0] sm:$0xff] %vm19360_vm2, %v13996_v58  ;;  %v6162_v6 = vsel %vm16933_vm10, %v6157_v4, %v6161_v32  ;;  %v6195_v7 = vshll.u32 %v6024_v47, 16  ;;  %v6028_v47 = vld [vmem:[#allocation2 + $0x134] sm:$0xf] }
 0x4cc   :  { %v5808_v5 = vsel %vm16660_vm15, %v13986_v59, %v5807_v43  ;;  %v5821_v49 = vsel %vm16660_vm15, %v13987_v57, %v5820_v37  ;;  %5998 = vst.msk [vmem:[#allocation5 + $0xa0] sm:$0xff] %vm19384_vm7, %v5979_v31  ;;  %v14012_v13 = vcombine.low %v6162_v6, %v6176_v42  ;;  %v6189_v2 = vrot.slane %v6187_v17, 5  ;;  %v5660_v43 = vld [vmem:[#allocation2 + $0x144] sm:$0x8]  ;;  %v5661_v37 = vld [vmem:[#allocation2 + $0x148] sm:$0xf]  ;;  %vm19390_vm7 = vmmov %vm19377_vm6 }
 0x4cd   :  { %v13997_v14 = vcombine.low %v5808_v5, %v5821_v49  ;;  %v6184_v36 = vor.u32 %v6183_v26, %v6180_v38  ;;  %v7662_v18 = vld [vmem:[#allocation5 + $0x80] sm:$0xff]  ;;  %v6194_v50 = vrot.slane %v6192_v55, 4  ;;  %v6197_v1 = vrot.slane %v6195_v7, 5  ;;  %v6576_v38 = vpop.permute.xlu0 %6575 }
 0x4ce   :  { %v6201_v20 = vshll.u32 %v6025_v15, 16  ;;  %v5823_v3 = vshrl.u32 %v5656_v28, 16  ;;  %7982 = vmatprep.mubr.bf16.mxu1 %v7662_v18  ;;  %6297 = vst.msk [vmem:[#allocation5 + $0xa8] sm:$0xff] %vm19360_vm2, %v14012_v13  ;;  %v5828_v52 = vshrl.u32 %v5657_v10, 16  ;;  %v5831_v41 = vshll.u32 %v5657_v10, 16 }
 0x4cf   :  { %5911 = vst.msk [vmem:[#allocation5 + $0xc8] sm:$0xff] %vm19360_vm2, %v13997_v14  ;;  %v6185_v25 = vrot.slane %v6184_v36, 4  ;;  %v5836_v16 = vshrl.u32 %v5658_v48, 16  ;;  %7983 = vmatmul.mubr.bf16.gmra.mrb[12].mxu1 %v7661_v61  ;;  %v6198_v59 = vor.u32 %v6197_v1, %v6194_v50  ;;  %v5841_v30 = vshrl.u32 %v5659_v23, 16  ;;  %v5662_v28 = vld [vmem:[#allocation2 + $0x158] sm:$0x8] }
 0x4d0   :  { %6593 = vst.msk [vmem:[#allocation5 + $0xa8] sm:$0xff] %vm19385_vm8, %v6574_v60  ;;  %v6203_v34 = vrot.slane %v6201_v20, 5  ;;  %v13988_v53 = vrot.slane %v5823_v3, 11  ;;  %v5830_v12 = vrot.slane %v5828_v52, 7  ;;  %v5844_v51 = vshll.u32 %v5659_v23, 16  ;;  %v5983_v60 = vpop.permute.xlu1 %5982  ;;  %vm19392_vm8 = vmmov %vm19377_vm6 }
 0x4d1   :  { %5999 = vst.msk [vmem:[#allocation5 + $0xc8] sm:$0xff] %vm19386_vm9, %v5981_v21  ;;  %v6190_v24 = vsel %vm16933_vm10, %v6185_v25, %v6189_v2  ;;  %v13989_v4 = vrot.slane %v5836_v16, 11  ;;  %v6199_v40 = vrot.slane %v6198_v59, 4  ;;  %v5843_v62 = vrot.slane %v5841_v30, 7  ;;  %v5663_v10 = vld [vmem:[#allocation2 + $0x15c] sm:$0xf]  ;;  %vm19393_vm9 = vmmov %vm19377_vm6 }
 0x4d2   :  { %v6206_v35 = vshrl.u32 %v6026_v8, 16  ;;  %v6209_v57 = vshll.u32 %v6026_v8, 16  ;;  %v5833_v0 = vor.u32 %v5831_v41, %v5830_v12  ;;  %v6215_v9 = vshll.u32 %v6027_v19, 16  ;;  %v6030_v2 = vld [vmem:[#allocation2 + $0x148] sm:$0xf] }
 0x4d3   :  { %v6220_v31 = vshrl.u32 %v6028_v47, 16  ;;  %v6223_v42 = vshll.u32 %v6028_v47, 16  ;;  %v6204_v22 = vsel %vm16933_vm10, %v6199_v40, %v6203_v34  ;;  %v5846_v27 = vor.u32 %v5844_v51, %v5843_v62  ;;  %v7666_v23 = vld [vmem:[#allocation5 + $0xa0] sm:$0xff]  ;;  %v6031_v20 = vld [vmem:[#allocation2 + $0x14c] sm:$0x1] }
 0x4d4   :  { %v6208_v58 = vrot.slane %v6206_v35, 4  ;;  %v6211_v32 = vrot.slane %v6209_v57, 5  ;;  %v14013_v15 = vcombine.low %v6190_v24, %v6204_v22  ;;  %v5834_v26 = vsel %vm16660_vm15, %v13988_v53, %v5833_v0  ;;  %v6032_v52 = vld [vmem:[#allocation2 + $0x15c] sm:$0xf]  ;;  %v6982_v53 = vld [vmem:[#allocation2 + $0x2c] sm:$0x8] }
 0x4d5   :  { %v6217_v17 = vrot.slane %v6215_v9, 5  ;;  %v6222_v55 = vrot.slane %v6220_v31, 4  ;;  %v5847_v6 = vsel %vm16660_vm15, %v13989_v4, %v5846_v27  ;;  %v6225_v49 = vrot.slane %v6223_v42, 5  ;;  %v6033_v24 = vld [vmem:[#allocation2 + $0x160] sm:$0x1]  ;;  %v5985_v42 = vpop.permute.xlu1 %5984 }
 0x4d6   :  { %v6212_v5 = vor.u32 %v6211_v32, %v6208_v58  ;;  %v6229_v7 = vshll.u32 %v6029_v56, 16  ;;  %6298 = vst.msk [vmem:[#allocation5 + $0xd0] sm:$0xff] %vm19360_vm2, %v14013_v15  ;;  %v13998_v13 = vcombine.low %v5834_v26, %v5847_v6  ;;  %v5849_v14 = vshrl.u32 %v5660_v43, 16  ;;  %v6983_v57 = vld [vmem:[#allocation2 + $0x30] sm:$0xf] }
 0x4d7   :  { %v7667_v48 = vld [vmem:[#allocation5 + $0xa8] sm:$0xff]  ;;  %v5854_v21 = vshrl.u32 %v5661_v37, 16  ;;  %v5857_v36 = vshll.u32 %v5661_v37, 16  ;;  %6594 = vst.msk [vmem:[#allocation5 + $0xd0] sm:$0xff] %vm19387_vm14, %v6576_v38  ;;  %v6226_v18 = vor.u32 %v6225_v49, %v6222_v55  ;;  %v5862_v1 = vshrl.u32 %v5662_v28, 16  ;;  %v6578_v56 = vpop.permute.xlu0 %6577  ;;  %vm19394_vm14 = vmmov %vm19377_vm6 }
 0x4d8   :  { %7990 = vmatprep.mubr.bf16.mxu1 %v7667_v48  ;;  %v6213_v8 = vrot.slane %v6212_v5, 4  ;;  %v6231_v50 = vrot.slane %v6229_v7, 5  ;;  %5912 = vst.msk [vmem:[#allocation5 + $0xf0] sm:$0xff] %vm19360_vm2, %v13998_v13  ;;  %v13990_v3 = vrot.slane %v5849_v14, 11  ;;  %v5867_v61 = vshrl.u32 %v5663_v10, 16  ;;  %v7671_v5 = vld [vmem:[#allocation5 + $0xc8] sm:$0xff] }
 0x4d9   :  { %7991 = vmatmul.mubr.bf16.gmra.mrb[16].mxu1 %v7666_v23  ;;  %v5856_v19 = vrot.slane %v5854_v21, 7  ;;  %v5870_v25 = vshll.u32 %v5663_v10, 16  ;;  %6000 = vst.msk [vmem:[#allocation5 + $0xf0] sm:$0xff] %vm19388_vm11, %v5983_v60  ;;  %v6227_v16 = vrot.slane %v6226_v18, 4  ;;  %v13991_v59 = vrot.slane %v5862_v1, 11  ;;  %vm19395_vm11 = vmmov %vm19377_vm6 }
 0x4da   :  { %v6218_v41 = vsel %vm16933_vm10, %v6213_v8, %v6217_v17  ;;  %v6234_v34 = vshrl.u32 %v6030_v2, 16  ;;  %v5869_v47 = vrot.slane %v5867_v61, 7  ;;  %v6237_v12 = vshll.u32 %v6030_v2, 16  ;;  %v6985_v27 = vld [vmem:[#allocation2 + $0x44] sm:$0xf] }
 0x4db   :  { %v5859_v30 = vor.u32 %v5857_v36, %v5856_v19  ;;  %v6243_v4 = vshll.u32 %v6031_v20, 16  ;;  %v6232_v51 = vsel %vm16933_vm10, %v6227_v16, %v6231_v50  ;;  %v6248_v62 = vshrl.u32 %v6032_v52, 16  ;;  %v6984_v15 = vld [vmem:[#allocation2 + $0x40] sm:$0x8]  ;;  %v6986_v6 = vld [vmem:[#allocation2 + $0x54] sm:$0x8] }
 0x4dc   :  { %v6236_v40 = vrot.slane %v6234_v34, 4  ;;  %v6251_v35 = vshll.u32 %v6032_v52, 16  ;;  %v14014_v0 = vcombine.low %v6218_v41, %v6232_v51  ;;  %v5872_v31 = vor.u32 %v5870_v25, %v5869_v47  ;;  %v6987_v13 = vld [vmem:[#allocation2 + $0x58] sm:$0xf]  ;;  %v6988_v18 = vld [vmem:[#allocation2 + $0x68] sm:$0x8] }
 0x4dd   :  { %v5860_v9 = vsel %vm16660_vm15, %v13990_v3, %v5859_v30  ;;  %v6239_v22 = vrot.slane %v6237_v12, 5  ;;  %v6245_v58 = vrot.slane %v6243_v4, 5  ;;  %v6250_v32 = vrot.slane %v6248_v62, 4  ;;  %v6989_v61 = vld [vmem:[#allocation2 + $0x6c] sm:$0xf] }
 0x4de   :  { %v6253_v43 = vrot.slane %v6251_v35, 5  ;;  %v6257_v37 = vshll.u32 %v6033_v24, 16  ;;  %v7672_v38 = vld [vmem:[#allocation5 + $0xd0] sm:$0xff]  ;;  %6299 = vst.msk [vmem:[#allocation5 + $0xf8] sm:$0xff] %vm19360_vm2, %v14014_v0  ;;  %v5873_v26 = vsel %vm16660_vm15, %v13991_v59, %v5872_v31  ;;  %v7015_v55 = vshrl.u32 %v6982_v53, 16  ;;  %v6950_v1 = vpop.permute.xlu1 %6949 }
 0x4df   :  { %v6240_v17 = vor.u32 %v6239_v22, %v6236_v40  ;;  %v7020_v28 = vshrl.u32 %v6983_v57, 16  ;;  %7998 = vmatprep.mubr.bf16.mxu1 %v7672_v38  ;;  %6595 = vst.msk [vmem:[#allocation5 + $0xf8] sm:$0xff] %vm19377_vm6, %v6578_v56  ;;  %v13999_v49 = vcombine.low %v5860_v9, %v5873_v26  ;;  %v7023_v48 = vshll.u32 %v6983_v57, 16  ;;  %v6990_v52 = vld [vmem:[#allocation2 + $0x7c] sm:$0x8] }
 0x4e0   :  { %v6254_v7 = vor.u32 %v6253_v43, %v6250_v32  ;;  %v6259_v10 = vrot.slane %v6257_v37, 5  ;;  %v14056_v14 = vrot.slane %v7015_v55, 11  ;;  %v7028_v36 = vshrl.u32 %v6984_v15, 16  ;;  %6973 = vst.msk [vmem:[#allocation5 + $0x10] sm:$0xff] %vm19390_vm7, %v6950_v1  ;;  %v6991_v53 = vld [vmem:[#allocation2 + $0x80] sm:$0xf]  ;;  %vm19397_vm7 = vmmov %vm19377_vm6 }
 0x4e1   :  { %7999 = vmatmul.mubr.bf16.gmra.mrb[20].mxu1 %v7671_v5  ;;  %v6241_v60 = vrot.slane %v6240_v17, 4  ;;  %v7022_v21 = vrot.slane %v7020_v28, 7  ;;  %5913 = vst.msk [vmem:[#allocation5 + $0x118] sm:$0xff] %vm19360_vm2, %v13999_v49  ;;  %v7033_v23 = vshrl.u32 %v6985_v27, 16  ;;  %v7036_v8 = vshll.u32 %v6985_v27, 16 }
 0x4e2   :  { %v6255_v2 = vrot.slane %v6254_v7, 4  ;;  %v7041_v50 = vshrl.u32 %v6986_v6, 16  ;;  %6001 = vst.msk [vmem:[#allocation5 + $0x118] sm:$0xff] %vm19389_vm13, %v5985_v42  ;;  %v14057_v19 = vrot.slane %v7028_v36, 11  ;;  %v7046_v25 = vshrl.u32 %v6987_v13, 16  ;;  %vm19396_vm13 = vmmov %vm19377_vm6 }
 0x4e3   :  { %v6246_v20 = vsel %vm16933_vm10, %v6241_v60, %v6245_v58  ;;  %v7025_v3 = vor.u32 %v7023_v48, %v7022_v21  ;;  %v7035_v16 = vrot.slane %v7033_v23, 7  ;;  %v7049_v34 = vshll.u32 %v6987_v13, 16  ;;  %v6992_v4 = vld [vmem:[#allocation2 + $0x90] sm:$0x8]  ;;  %v6993_v51 = vld [vmem:[#allocation2 + $0x94] sm:$0xf] }
 0x4e4   :  { %v6260_v41 = vsel %vm16933_vm10, %v6255_v2, %v6259_v10  ;;  %v14058_v59 = vrot.slane %v7041_v50, 11  ;;  %v7048_v24 = vrot.slane %v7046_v25, 7  ;;  %v7054_v12 = vshrl.u32 %v6988_v18, 16  ;;  %v4635_v0 = vld [vmem:[#allocation2 + $0xb8] sm:$0x8]  ;;  %v6952_v27 = vpop.permute.xlu1 %6951  ;;  %v7676_v58 = vld [vmem:[#allocation5 + $0xf0] sm:$0xff]  ;;  %vm19391_vm10 = vmmov %vm19377_vm6 }
 0x4e5   :  { %v14015_v30 = vcombine.low %v6246_v20, %v6260_v41  ;;  %v7026_v47 = vsel %vm16660_vm15, %v14056_v14, %v7025_v3  ;;  %v7038_v40 = vor.u32 %v7036_v8, %v7035_v16  ;;  %v7059_v62 = vshrl.u32 %v6989_v61, 16  ;;  %v6994_v22 = vld [vmem:[#allocation2 + $0xa4] sm:$0x8]  ;;  %v6995_v38 = vld [vmem:[#allocation2 + $0xa8] sm:$0xf]  ;;  %6974 = vst.msk [vmem:[#allocation5 + $0x38] sm:$0xff] %vm19391_vm10, %v6952_v27  ;;  %vm19398_vm10 = vmmov %vm19377_vm6 }
 0x4e6   :  { %v7062_v35 = vshll.u32 %v6989_v61, 16  ;;  %v7067_v57 = vshrl.u32 %v6990_v52, 16  ;;  %v7677_v56 = vld [vmem:[#allocation5 + $0xf8] sm:$0xff]  ;;  %v7051_v54 = vor.u32 %v7049_v34, %v7048_v24  ;;  %v14059_v9 = vrot.slane %v7054_v12, 11  ;;  %v6998_v13 = vld [vmem:[#allocation2 + $0xf4] sm:$0x8] }
 0x4e7   :  { %6300 = vst.msk [vmem:[#allocation5 + $0x120] sm:$0xff] %vm19360_vm2, %v14015_v30  ;;  %v7072_v31 = vshrl.u32 %v6991_v53, 16  ;;  %v7075_v42 = vshll.u32 %v6991_v53, 16  ;;  %8006 = vmatprep.mubr.bf16.mxu1 %v7677_v56  ;;  %v7039_v32 = vsel %vm16660_vm15, %v14057_v19, %v7038_v40  ;;  %v7061_v43 = vrot.slane %v7059_v62, 7  ;;  %v6997_v6 = vld [vmem:[#allocation2 + $0xbc] sm:$0xf] }
 0x4e8   :  { %v14060_v37 = vrot.slane %v7067_v57, 11  ;;  %v7080_v15 = vshrl.u32 %v6992_v4, 16  ;;  %v14072_v26 = vcombine.low %v7026_v47, %v7039_v32  ;;  %v7052_v17 = vsel %vm16660_vm15, %v14058_v59, %v7051_v54  ;;  %v6999_v5 = vld [vmem:[#allocation2 + $0xf8] sm:$0xf]  ;;  %v7000_v2 = vld [vmem:[#allocation2 + $0x108] sm:$0x8] }
 0x4e9   :  { %8007 = vmatmul.mubr.bf16.gmra.mrb[24].mxu1 %v7676_v58  ;;  %v7074_v55 = vrot.slane %v7072_v31, 7  ;;  %v7085_v28 = vshrl.u32 %v6993_v51, 16  ;;  %v7064_v49 = vor.u32 %v7062_v35, %v7061_v43  ;;  %v7088_v10 = vshll.u32 %v6993_v51, 16  ;;  %v7001_v1 = vld [vmem:[#allocation2 + $0x10c] sm:$0xf]  ;;  %v6954_v25 = vpop.permute.xlu1 %6953 }
 0x4ea   :  { %v14061_v7 = vrot.slane %v7080_v15, 11  ;;  %v4636_v48 = vsel %vm16621_vm12, 0, %v4635_v0  ;;  %7254 = vst.msk [vmem:[#allocation5 + $0x18] sm:$0xff] %vm19360_vm2, %v14072_v26  ;;  %v7093_v21 = vshrl.u32 %v6994_v22, 16  ;;  %v7098_v36 = vshrl.u32 %v6995_v38, 16 }
 0x4eb   :  { %v7077_v60 = vor.u32 %v7075_v42, %v7074_v55  ;;  %v7087_v14 = vrot.slane %v7085_v28, 7  ;;  %4637 = vst [vmem:[#allocation2 + $0xb8] sm:$0x8] %v4636_v48  ;;  %v7065_v23 = vsel %vm16660_vm15, %v14059_v9, %v7064_v49  ;;  %v7101_v8 = vshll.u32 %v6995_v38, 16  ;;  %v7002_v34 = vld [vmem:[#allocation2 + $0x11c] sm:$0x8] }
 0x4ec   :  { %v7111_v18 = vshrl.u32 %v6997_v6, 16  ;;  %v7114_v50 = vshll.u32 %v6997_v6, 16  ;;  %v14073_v20 = vcombine.low %v7052_v17, %v7065_v23  ;;  %v14062_v61 = vrot.slane %v7093_v21, 11  ;;  %6975 = vst.msk [vmem:[#allocation5 + $0x60] sm:$0xff] %vm19392_vm8, %v6954_v25  ;;  %v7003_v12 = vld [vmem:[#allocation2 + $0x120] sm:$0xf]  ;;  %vm19399_vm8 = vmmov %vm19377_vm6 }
 0x4ed   :  { %v7078_v3 = vsel %vm16660_vm15, %v14060_v37, %v7077_v60  ;;  %v7090_v19 = vor.u32 %v7088_v10, %v7087_v14  ;;  %v7100_v52 = vrot.slane %v7098_v36, 7  ;;  %v7119_v16 = vshrl.u32 %v6998_v13, 16  ;;  %v7004_v35 = vld [vmem:[#allocation2 + $0x130] sm:$0x8]  ;;  %v7005_v9 = vld [vmem:[#allocation2 + $0x134] sm:$0xf] }
 0x4ee   :  { %v7113_v41 = vrot.slane %v7111_v18, 7  ;;  %v7124_v59 = vshrl.u32 %v6999_v5, 16  ;;  %7255 = vst.msk [vmem:[#allocation5 + $0x40] sm:$0xff] %vm19360_vm2, %v14073_v20  ;;  %v7127_v30 = vshll.u32 %v6999_v5, 16  ;;  %v7132_v47 = vshrl.u32 %v7000_v2, 16 }
 0x4ef   :  { %v7091_v53 = vsel %vm16660_vm15, %v14061_v7, %v7090_v19  ;;  %v7137_v24 = vshrl.u32 %v7001_v1, 16  ;;  %v7103_v51 = vor.u32 %v7101_v8, %v7100_v52  ;;  %v14064_v62 = vrot.slane %v7119_v16, 11  ;;  %v7006_v38 = vld [vmem:[#allocation2 + $0x144] sm:$0x8]  ;;  %v7007_v26 = vld [vmem:[#allocation2 + $0x148] sm:$0xf] }
 0x4f0   :  { %v14074_v4 = vcombine.low %v7078_v3, %v7091_v53  ;;  %v7116_v40 = vor.u32 %v7114_v50, %v7113_v41  ;;  %v7126_v57 = vrot.slane %v7124_v59, 7  ;;  %v14065_v0 = vrot.slane %v7132_v47, 11  ;;  %v6580_v17 = vpop.permute.xlu0 %6579  ;;  %v7008_v49 = vld [vmem:[#allocation2 + $0x158] sm:$0x8]  ;;  %v7009_v2 = vld [vmem:[#allocation2 + $0x15c] sm:$0xf] }
 0x4f1   :  { %v7139_v56 = vrot.slane %v7137_v24, 7  ;;  %v7140_v54 = vshll.u32 %v7001_v1, 16  ;;  %v7104_v42 = vsel %vm16660_vm15, %v14062_v61, %v7103_v51  ;;  %v7145_v22 = vshrl.u32 %v7002_v34, 16  ;;  %6596 = vst.msk [vmem:[#allocation5 + $0x120] sm:$0xff] %vm19393_vm9, %v6580_v17  ;;  %v6956_v7 = vpop.permute.xlu1 %6955  ;;  %v4705_v1 = vld [vmem:[#allocation2 + $0x180] sm:$0x8]  ;;  %vm19400_vm9 = vmmov %vm19377_vm6 }
 0x4f2   :  { %7256 = vst.msk [vmem:[#allocation5 + $0x68] sm:$0xff] %vm19360_vm2, %v14074_v4  ;;  %v6996_v31 = vld [vmem:[#allocation2 + $0xb8] sm:$0x8]  ;;  %v7150_v27 = vshrl.u32 %v7003_v12, 16  ;;  %v7153_v58 = vshll.u32 %v7003_v12, 16  ;;  %v7129_v43 = vor.u32 %v7127_v30, %v7126_v57  ;;  %v7158_v15 = vshrl.u32 %v7004_v35, 16 }
 0x4f3   :  { %v7106_v32 = vshrl.u32 %v6996_v31, 16  ;;  %v7142_v37 = vor.u32 %v7140_v54, %v7139_v56  ;;  %v14066_v55 = vrot.slane %v7145_v22, 11  ;;  %v7163_v6 = vshrl.u32 %v7005_v9, 16  ;;  %6976 = vst.msk [vmem:[#allocation5 + $0x88] sm:$0xff] %vm19394_vm14, %v6956_v7  ;;  %v7011_v20 = vld [vmem:[#allocation2 + $0x170] sm:$0xf]  ;;  %vm19401_vm14 = vmmov %vm19377_vm6 }
 0x4f4   :  { %v7152_v28 = vrot.slane %v7150_v27, 7  ;;  %v7166_v5 = vshll.u32 %v7005_v9, 16  ;;  %v7130_v48 = vsel %vm16660_vm15, %v14064_v62, %v7129_v43  ;;  %v14067_v60 = vrot.slane %v7158_v15, 11  ;;  %v7319_v3 = vpop.permute.xlu0 %7318  ;;  %v7013_v34 = vld [vmem:[#allocation2 + $0x184] sm:$0xf]  ;;  %v7681_v56 = vld [vmem:[#allocation5 + $0x118] sm:$0xff] }
 0x4f5   :  { %v14063_v10 = vrot.slane %v7106_v32, 11  ;;  %v7143_v13 = vsel %vm16660_vm15, %v14065_v0, %v7142_v37  ;;  %v7165_v36 = vrot.slane %v7163_v6, 7  ;;  %v7171_v23 = vshrl.u32 %v7006_v38, 16  ;;  %7342 = vst.msk [vmem:[#allocation5 + $0x18] sm:$0xff] %vm19395_vm11, %v7319_v3  ;;  %v7010_v24 = vld [vmem:[#allocation2 + $0x16c] sm:$0x8]  ;;  %vm19402_vm11 = vmmov %vm19377_vm6 }
 0x4f6   :  { %v14076_v14 = vcombine.low %v7130_v48, %v7143_v13  ;;  %v7155_v21 = vor.u32 %v7153_v58, %v7152_v28  ;;  %v7176_v18 = vshrl.u32 %v7007_v26, 16  ;;  %v7184_v50 = vshrl.u32 %v7008_v49, 16  ;;  %v7648_v49 = vld [vmem:[#allocation5 + $0x10] sm:$0xff] }
 0x4f7   :  { %v7117_v8 = vsel %vm16660_vm15, %v14063_v10, %v7116_v40  ;;  %v7168_v61 = vor.u32 %v7166_v5, %v7165_v36  ;;  %v7179_v25 = vshll.u32 %v7007_v26, 16  ;;  %v14068_v41 = vrot.slane %v7171_v23, 11  ;;  %v7653_v36 = vld [vmem:[#allocation5 + $0x38] sm:$0xff] }
 0x4f8   :  { %v14075_v19 = vcombine.low %v7104_v42, %v7117_v8  ;;  %7258 = vst.msk [vmem:[#allocation5 + $0xb8] sm:$0xff] %vm19360_vm2, %v14076_v14  ;;  %v7156_v52 = vsel %vm16660_vm15, %v14066_v55, %v7155_v21  ;;  %v7178_v16 = vrot.slane %v7176_v18, 7  ;;  %v7189_v59 = vshrl.u32 %v7009_v2, 16  ;;  %v7321_v35 = vpop.permute.xlu0 %7320  ;;  %v7682_v57 = vld [vmem:[#allocation5 + $0x120] sm:$0xff] }
 0x4f9   :  { %v7169_v53 = vsel %vm16660_vm15, %v14067_v60, %v7168_v61  ;;  %v14069_v30 = vrot.slane %v7184_v50, 11  ;;  %v4706_v47 = vsel %vm16621_vm12, 0, %v4705_v1  ;;  %v7202_v12 = vshrl.u32 %v7011_v20, 16  ;;  %7343 = vst.msk [vmem:[#allocation5 + $0x40] sm:$0xff] %vm19377_vm6, %v7321_v35  ;;  %8014 = vmatprep.mubr.bf16.mxu1 %v7682_v57  ;;  %v7658_v18 = vld [vmem:[#allocation5 + $0x60] sm:$0xff] }
 0x4fa   :  { %7257 = vst.msk [vmem:[#allocation5 + $0x90] sm:$0xff] %vm19360_vm2, %v14075_v19  ;;  %v14077_v4 = vcombine.low %v7156_v52, %v7169_v53  ;;  %v7181_v51 = vor.u32 %v7179_v25, %v7178_v16  ;;  %v7191_v40 = vrot.slane %v7189_v59, 7  ;;  %v7192_v62 = vshll.u32 %v7009_v2, 16  ;;  %4707 = vst [vmem:[#allocation2 + $0x180] sm:$0x8] %v4706_v47  ;;  %8015 = vmatmul.mubr.bf16.gmra.mrb[28].mxu1 %v7681_v56 }
 0x4fb   :  { %v7215_v0 = vshrl.u32 %v7013_v34, 16  ;;  %v7197_v9 = vshrl.u32 %v7010_v24, 16  ;;  %v7204_v31 = vrot.slane %v7202_v12, 7  ;;  %v7205_v42 = vshll.u32 %v7011_v20, 16  ;;  %v7663_v20 = vld [vmem:[#allocation5 + $0x88] sm:$0xff] }
 0x4fc   :  { %7259 = vst.msk [vmem:[#allocation5 + $0xe0] sm:$0xff] %vm19360_vm2, %v14077_v4  ;;  %v7194_v54 = vor.u32 %v7192_v62, %v7191_v40  ;;  %v7182_v22 = vsel %vm16660_vm15, %v14068_v41, %v7181_v51  ;;  %v7218_v32 = vshll.u32 %v7013_v34, 16  ;;  %v7649_v37 = vld [vmem:[#allocation5 + $0x18] sm:$0xff] }
 0x4fd   :  { %v7217_v58 = vrot.slane %v7215_v0, 7  ;;  %v7323_v43 = vpop.permute.xlu0 %7322  ;;  %8055 = vmatprep.mubr.bf16.mxu1 %v7649_v37  ;;  %v14070_v38 = vrot.slane %v7197_v9, 11  ;;  %v7207_v26 = vor.u32 %v7205_v42, %v7204_v31  ;;  %v9275_v9 = vld [vmem:[#allocation3 + $0x1c] sm:$0x7] }
 0x4fe   :  { %v7195_v27 = vsel %vm16660_vm15, %v14069_v30, %v7194_v54  ;;  %7344 = vst.msk [vmem:[#allocation5 + $0x68] sm:$0xff] %vm19396_vm13, %v7323_v43  ;;  %vm19404_vm13 = vmmov %vm19377_vm6 }
 0x4ff   :  { %v14078_v15 = vcombine.low %v7182_v22, %v7195_v27  ;;  %v7220_v28 = vor.u32 %v7218_v32, %v7217_v58  ;;  %v7208_v7 = vsel %vm16660_vm15, %v14070_v38, %v7207_v26 }
 0x500   :  { %v7654_v48 = vld [vmem:[#allocation5 + $0x40] sm:$0xff] }
 0x501   :  { %7260 = vst.msk [vmem:[#allocation5 + $0x108] sm:$0xff] %vm19360_vm2, %v14078_v15  ;;  %v7012_v17 = vld [vmem:[#allocation2 + $0x180] sm:$0x8]  ;;  %v7325_v6 = vpop.permute.xlu0 %7324 }
 0x502   :  { %v7210_v55 = vshrl.u32 %v7012_v17, 16  ;;  %7345 = vst.msk [vmem:[#allocation5 + $0x90] sm:$0xff] %vm19397_vm7, %v7325_v6  ;;  %8056 = vmatmul.mubr.bf16.vlgmr.msra.gmra.mrb[32].mxu1 %v7648_v49  ;;  %vm9266_vm7 = vcmask 518144   ;;  %v9281_v49 = vld [vmem:[#allocation3 + $0x30] sm:$0x7] }
 0x503   :  { %v6958_v5 = vpop.permute.xlu1 %6957  ;;  %8063 = vmatprep.mubr.bf16.mxu1 %v7654_v48 }
 0x504   :  { %v14071_v10 = vrot.slane %v7210_v55, 11  ;;  %6977 = vst.msk [vmem:[#allocation5 + $0xb0] sm:$0xff] %vm19398_vm10, %v6958_v5  ;;  %vm9267_vm10 = vsmask.f32 2304 }
 0x505   :  { %v7659_v23 = vld [vmem:[#allocation5 + $0x68] sm:$0xff] }
 0x506   :  { %v7221_v13 = vsel %vm16660_vm15, %v14071_v10, %v7220_v28  ;;  %v7327_v60 = vpop.permute.xlu0 %7326  ;;  %vm19403_vm15 = vmmov %vm19377_vm6 }
 0x507   :  { %v14079_v14 = vcombine.low %v7208_v7, %v7221_v13  ;;  %7346 = vst.msk [vmem:[#allocation5 + $0xb8] sm:$0xff] %vm19399_vm8, %v7327_v60  ;;  %vm17941_vm8 = vmand %vm9266_vm7, %vm9267_vm10  ;;  %vm12305_vm10 = vsmask.f32 1284 }
 0x508   :  { %v9276_v22 = vsel %vm17941_vm8, 0, %v9275_v9  ;;  %v9282_v10 = vsel %vm17941_vm8, 0, %v9281_v49 }
 0x509   :  { %7261 = vst.msk [vmem:[#allocation5 + $0x130] sm:$0xff] %vm19360_vm2, %v14079_v14  ;;  %v7664_v50 = vld [vmem:[#allocation5 + $0x90] sm:$0xff]  ;;  %9277 = vst [vmem:[#allocation3 + $0x1c] sm:$0x7] %v9276_v22 }
 0x50a   :  { %v7329_v21 = vpop.permute.xlu0 %7328  ;;  %8064 = vmatmul.mubr.bf16.gmra.mrb[36].mxu1 %v7653_v36  ;;  %9283 = vst [vmem:[#allocation3 + $0x30] sm:$0x7] %v9282_v10 }
 0x50b   :  { %7347 = vst.msk [vmem:[#allocation5 + $0xe0] sm:$0xff] %vm19400_vm9, %v7329_v21  ;;  %8071 = vmatprep.mubr.bf16.mxu1 %v7659_v23  ;;  %v7668_v61 = vld [vmem:[#allocation5 + $0xb0] sm:$0xff]  ;;  %vm9723_vm9 = vsmask.f32 2312 }
 0x50c   :  { %v6960_v2 = vpop.permute.xlu1 %6959 }
 0x50d   :  { %6978 = vst.msk [vmem:[#allocation5 + $0xd8] sm:$0xff] %vm19401_vm14, %v6960_v2  ;;  %vm19362_vm14 = vsmask.f32 6424 }
 0x50e   :  { %v7331_v8 = vpop.permute.xlu0 %7330  ;;  %v7669_v3 = vld [vmem:[#allocation5 + $0xb8] sm:$0xff] }
 0x50f   :  { %7348 = vst.msk [vmem:[#allocation5 + $0x108] sm:$0xff] %vm19402_vm11, %v7331_v8  ;;  %vm19420_vm11 = vsmask.f32 256 }
 0x512   :  { %v7333_v33 = vpop.permute.xlu0 %7332  ;;  %8072 = vmatmul.mubr.bf16.gmra.mrb[40].mxu1 %v7658_v18  ;;  %v7674_v52 = vld [vmem:[#allocation5 + $0xe0] sm:$0xff] }
 0x513   :  { %7349 = vst.msk [vmem:[#allocation5 + $0x130] sm:$0xff] %vm19403_vm15, %v7333_v33  ;;  %8079 = vmatprep.mubr.bf16.mxu1 %v7664_v50  ;;  %vm9724_vm15 = vmor %vm19420_vm11, %vm9723_vm9  ;;  %vm12308_vm11 = vsmask.f32 3340 }
 0x514   :  { %v7673_v34 = vld [vmem:[#allocation5 + $0xd8] sm:$0xff] }
 0x516   :  { %v7679_v53 = vld [vmem:[#allocation5 + $0x108] sm:$0xff] }
 0x517   :  { %v6962_v1 = vpop.permute.xlu1 %6961 }
 0x518   :  { %6979 = vst.msk [vmem:[#allocation5 + $0x100] sm:$0xff] %vm19377_vm6, %v6962_v1  ;;  %vm19421_vm6 = vsmask.f32 4368 }
 0x51a   :  { %8080 = vmatmul.mubr.bf16.gmra.mrb[44].mxu1 %v7663_v20  ;;  %v7684_v47 = vld [vmem:[#allocation5 + $0x130] sm:$0xff] }
 0x51b   :  { %8087 = vmatprep.mubr.bf16.mxu1 %v7669_v3 }
 0x51e   :  { %v6964_v19 = vpop.permute.xlu1 %6963 }
 0x51f   :  { %6980 = vst.msk [vmem:[#allocation5 + $0x128] sm:$0xff] %vm19404_vm13, %v6964_v19  ;;  %v7678_v30 = vld [vmem:[#allocation5 + $0x100] sm:$0xff]  ;;  %vm9725_vm13 = vmor %vm9724_vm15, %vm19421_vm6  ;;  %vm19424_vm15 = vsmask.f32 256 }
 0x520   :  { %vm18539_vm7 = vmor %vm9725_vm13, %vm19362_vm14  ;;  %vm12311_vm13 = vsmask.f32 5396 }
 0x521   :  { %vm12306_vm6 = vmor %vm19424_vm15, %vm12305_vm10  ;;  %vm19426_vm10 = vsmask.f32 4368 }
 0x522   :  { %v17921_v25 = vpop.f32.mrb[68].mxu0  ;;  %8088 = vmatmul.mubr.bf16.gmra.mrb[48].mxu1 %v7668_v61  ;;  %vm12307_vm0 = vmor %vm12306_vm6, %vm9723_vm9  ;;  %vm19427_vm9 = vcmask 1043459  }
 0x523   :  { %v17923_v41 = vpop.f32.mrb[69].mxu0  ;;  %8095 = vmatprep.mubr.bf16.mxu1 %v7674_v52  ;;  %vm12309_vm14 = vmor %vm12307_vm0, %vm12308_vm11  ;;  %vm19428_vm0 = vsmask.f32 6424  ;;  %vm19431_vm11 = vcmask 517120  }
 0x524   :  { %v17925_v16 = vpop.f32.mrb[70].mxu0  ;;  %vm12310_vm15 = vmor %vm12309_vm14, %vm19426_vm10 }
 0x525   :  { %v17927_v59 = vpop.f32.mrb[71].mxu0  ;;  %vm12312_vm6 = vmor %vm12310_vm15, %vm12311_vm13 }
 0x526   :  { %v7683_v24 = vld [vmem:[#allocation5 + $0x128] sm:$0xff] }
 0x52a   :  { %8096 = vmatmul.mubr.bf16.gmra.mrb[52].mxu1 %v7673_v34  ;;  %v9287_v34 = vld [vmem:[#allocation3 + $0x44] sm:$0x7] }
 0x52b   :  { %8103 = vmatprep.mubr.bf16.mxu1 %v7679_v53 }
 0x532   :  { %8104 = vmatmul.mubr.bf16.gmra.mrb[56].mxu1 %v7678_v30  ;;  %v9288_v30 = vsel %vm17941_vm8, 0, %v9287_v34 }
 0x533   :  { %8111 = vmatprep.mubr.bf16.mxu1 %v7684_v47  ;;  %9289 = vst [vmem:[#allocation3 + $0x44] sm:$0x7] %v9288_v30 }
 0x53a   :  { %8112 = vmatmul.mubr.bf16.gmra.mrb[60].mxu1 %v7683_v24 }
 0x545   :  { %v17929_v12 = vpop.f32.mrb[72].mxu0 }
 0x546   :  { %v17931_v4 = vpop.f32.mrb[73].mxu0 }
 0x547   :  { %v17933_v51 = vpop.f32.mrb[74].mxu0 }
 0x548   :  { %v17935_v40 = vpop.f32.mrb[75].mxu0 }
 0x574   :  { %v14799_v62 = vpop.f32.mrb[0].mxu1 }
 0x575   :  { %v14800_v35 = vpop.f32.mrb[1].mxu1 }
 0x576   :  { %v17937_v57 = vadd.f32 %v14800_v35, %v14799_v62  ;;  %v14802_v0 = vpop.f32.mrb[2].mxu1 }
 0x577   :  { %v14803_v56 = vpop.f32.mrb[3].mxu1 }
 0x578   :  { %v17939_v54 = vadd.f32 %v14803_v56, %v14802_v0 }
 0x57d   :  { %v17945_v42 = vpop.f32.mrb[76].mxu0 }
 0x57e   :  { %19407 = vst [vmem:[#allocation11_spill] sm:$0xff] %v17945_v42  ;;  %v17949_v27 = vpop.f32.mrb[77].mxu0 }
 0x57f   :  { %19408 = vst [vmem:[#allocation12_spill] sm:$0xff] %v17949_v27  ;;  %v17951_v58 = vpop.f32.mrb[78].mxu0 }
 0x580   :  { %19409 = vst [vmem:[#allocation13_spill] sm:$0xff] %v17951_v58  ;;  %v17953_v32 = vpop.f32.mrb[79].mxu0 }
 0x581   :  { %19410 = vst [vmem:[#allocation14_spill] sm:$0xff] %v17953_v32 }
 0x58e   :  { %v14805_v43 = vpop.f32.mrb[4].mxu1 }
 0x58f   :  { %v14806_v37 = vpop.f32.mrb[5].mxu1 }
 0x590   :  { %v17955_v15 = vadd.f32 %v14806_v37, %v14805_v43  ;;  %v14808_v38 = vpop.f32.mrb[6].mxu1  ;;  %v9293_v43 = vld [vmem:[#allocation3 + $0x58] sm:$0x7] }
 0x591   :  { %v14809_v26 = vpop.f32.mrb[7].mxu1 }
 0x592   :  { %v17957_v17 = vadd.f32 %v14809_v26, %v14808_v38  ;;  %v9294_v26 = vsel %vm17941_vm8, 0, %v9293_v43 }
 0x593   :  { %9295 = vst [vmem:[#allocation3 + $0x58] sm:$0x7] %v9294_v26 }
 0x599   :  { %v14811_v55 = vpop.f32.mrb[8].mxu1 }
 0x59a   :  { %v14812_v28 = vpop.f32.mrb[9].mxu1 }
 0x59b   :  { %v17959_v6 = vadd.f32 %v14812_v28, %v14811_v55  ;;  %v14814_v5 = vpop.f32.mrb[10].mxu1 }
 0x59c   :  { %v14815_v7 = vpop.f32.mrb[11].mxu1 }
 0x59d   :  { %v17963_v48 = vadd.f32 %v14815_v7, %v14814_v5 }
 0x5a2   :  { %v14817_v13 = vpop.f32.mrb[12].mxu1 }
 0x5a3   :  { %v14818_v60 = vpop.f32.mrb[13].mxu1 }
 0x5a4   :  { %v17965_v14 = vadd.f32 %v14818_v60, %v14817_v13  ;;  %v14820_v21 = vpop.f32.mrb[14].mxu1 }
 0x5a5   :  { %v14821_v36 = vpop.f32.mrb[15].mxu1 }
 0x5a6   :  { %v17967_v2 = vadd.f32 %v14821_v36, %v14820_v21 }
 0x5ac   :  { %v14823_v23 = vpop.f32.mrb[16].mxu1 }
 0x5ad   :  { %v14824_v8 = vpop.f32.mrb[17].mxu1 }
 0x5ae   :  { %v17969_v33 = vadd.f32 %v14824_v8, %v14823_v23  ;;  %v14826_v18 = vpop.f32.mrb[18].mxu1 }
 0x5af   :  { %v14827_v50 = vpop.f32.mrb[19].mxu1 }
 0x5b0   :  { %v17971_v1 = vadd.f32 %v14827_v50, %v14826_v18 }
 0x5b4   :  { %v14829_v20 = vpop.f32.mrb[20].mxu1 }
 0x5b5   :  { %v14830_v3 = vpop.f32.mrb[21].mxu1 }
 0x5b6   :  { %v17973_v19 = vadd.f32 %v14830_v3, %v14829_v20  ;;  %v14832_v61 = vpop.f32.mrb[22].mxu1 }
 0x5b7   :  { %v14833_v52 = vpop.f32.mrb[23].mxu1 }
 0x5b8   :  { %v17975_v53 = vadd.f32 %v14833_v52, %v14832_v61 }
 0x5bc   :  { %v14835_v47 = vpop.f32.mrb[24].mxu1 }
 0x5bd   :  { %v14836_v24 = vpop.f32.mrb[25].mxu1 }
 0x5be   :  { %v17979_v62 = vadd.f32 %v14836_v24, %v14835_v47  ;;  %v14838_v35 = vpop.f32.mrb[26].mxu1 }
 0x5bf   :  { %v14839_v0 = vpop.f32.mrb[27].mxu1 }
 0x5c0   :  { %v17981_v56 = vadd.f32 %v14839_v0, %v14838_v35 }
 0x5cd   :  { %v14841_v9 = vpop.f32.mrb[28].mxu1 }
 0x5ce   :  { %v14842_v22 = vpop.f32.mrb[29].mxu1 }
 0x5cf   :  { %v17983_v37 = vadd.f32 %v14842_v22, %v14841_v9  ;;  %v14844_v38 = vpop.f32.mrb[30].mxu1 }
 0x5d0   :  { %v14845_v55 = vpop.f32.mrb[31].mxu1 }
 0x5d1   :  { %19411 = vst [vmem:[#allocation15_spill] sm:$0xff] %v17983_v37  ;;  %v17987_v28 = vadd.f32 %v14845_v55, %v14844_v38 }
 0x5d3   :  { %19412 = vst [vmem:[#allocation16_spill] sm:$0xff] %v17987_v28 }
 0x5d5   :  { %v14863_v5 = vpop.f32.mrb[32].mxu1 }
 0x5d6   :  { %v14864_v49 = vpop.f32.mrb[33].mxu1 }
 0x5d7   :  { %v14865_v7 = vadd.f32 %v14864_v49, %v14863_v5  ;;  %v14866_v10 = vpop.f32.mrb[34].mxu1 }
 0x5d8   :  { %v14867_v13 = vpop.f32.mrb[35].mxu1 }
 0x5d9   :  { %v8058_v60 = vadd.f32 %v14865_v7, %v17937_v57  ;;  %v14868_v21 = vadd.f32 %v14867_v13, %v14866_v10 }
 0x5db   :  { %v8155_v36 = vadd.f32 %v17710_v44, %v8058_v60  ;;  %v8061_v23 = vadd.f32 %v14868_v21, %v17939_v54 }
 0x5dd   :  { %v8233_v8 = vcombine.high %v8155_v36, %v8155_v36  ;;  %v8240_v18 = vrot.slane %v8155_v36, %v15637_v46  ;;  %v8158_v50 = vadd.f32 %v17721_v63, %v8061_v23  ;;  %v14869_v20 = vpop.f32.mrb[36].mxu1 }
 0x5de   :  { %v14870_v3 = vpop.f32.mrb[37].mxu1 }
 0x5df   :  { %v8247_v61 = vrot.slane %v8233_v8, %v15637_v46  ;;  %v8248_v52 = vcombine.high %v8240_v18, %v8240_v18  ;;  %v8569_v34 = vsel %vm19361_vm1, %v8240_v18, -inf  ;;  %v8250_v30 = vcombine.high %v8158_v50, %v8158_v50  ;;  %v17996_v47 = vpop.f32.mrb[38].mxu1 }
 0x5e0   :  { %v8570_v57 = vrot.slane %v8569_v34, 4  ;;  %v8257_v44 = vrot.slane %v8158_v50, %v15637_v46  ;;  %v14871_v24 = vadd.f32 %v14870_v3, %v14869_v20  ;;  %v17999_v54 = vpop.f32.mrb[39].mxu1 }
 0x5e1   :  { %v8249_v35 = vcombine.high %v8247_v61, %v8247_v61  ;;  %v8576_v0 = vsel %vm19361_vm1, %v8248_v52, -inf  ;;  %v8583_v63 = vsel %vm19361_vm1, %v8247_v61, -inf  ;;  %v8264_v9 = vrot.slane %v8250_v30, %v15637_v46 }
 0x5e2   :  { %v8571_v22 = vmax.f32 %v8569_v34, %v8570_v57  ;;  %v8577_v43 = vrot.slane %v8576_v0, 4  ;;  %v8584_v38 = vrot.slane %v8583_v63, 4  ;;  %v8265_v26 = vcombine.high %v8257_v44, %v8257_v44 }
 0x5e3   :  { %v8590_v55 = vsel %vm19361_vm1, %v8249_v35, -inf  ;;  %v8266_v5 = vcombine.high %v8264_v9, %v8264_v9  ;;  %v8597_v49 = vsel %vm19361_vm1, %v8257_v44, -inf  ;;  %v8611_v7 = vsel %vm19361_vm1, %v8264_v9, -inf }
 0x5e4   :  { %v8572_v10 = vrot.slane %v8571_v22, 2  ;;  %v8578_v13 = vmax.f32 %v8576_v0, %v8577_v43  ;;  %v8585_v60 = vmax.f32 %v8583_v63, %v8584_v38  ;;  %v8591_v21 = vrot.slane %v8590_v55, 4 }
 0x5e5   :  { %v8598_v36 = vrot.slane %v8597_v49, 4  ;;  %v8604_v23 = vsel %vm19361_vm1, %v8265_v26, -inf  ;;  %v8612_v8 = vrot.slane %v8611_v7, 4  ;;  %v8618_v18 = vsel %vm19361_vm1, %v8266_v5, -inf  ;;  %v14875_v50 = vpop.f32.mrb[40].mxu1 }
 0x5e6   :  { %v8573_v20 = vmax.f32 %v8571_v22, %v8572_v10  ;;  %v8579_v3 = vrot.slane %v8578_v13, 2  ;;  %v8586_v61 = vrot.slane %v8585_v60, 2  ;;  %v8592_v52 = vmax.f32 %v8590_v55, %v8591_v21  ;;  %v14876_v34 = vpop.f32.mrb[41].mxu1 }
 0x5e7   :  { %v8599_v30 = vmax.f32 %v8597_v49, %v8598_v36  ;;  %v8605_v57 = vrot.slane %v8604_v23, 4  ;;  %v8613_v44 = vmax.f32 %v8611_v7, %v8612_v8  ;;  %v8619_v35 = vrot.slane %v8618_v18, 4  ;;  %v18009_v9 = vpop.f32.mrb[42].mxu1 }
 0x5e8   :  { %v8574_v0 = vrot.slane %v8573_v20, 1  ;;  %v8580_v63 = vmax.f32 %v8578_v13, %v8579_v3  ;;  %v8587_v43 = vmax.f32 %v8585_v60, %v8586_v61  ;;  %v8593_v38 = vrot.slane %v8592_v52, 2  ;;  %v18011_v26 = vpop.f32.mrb[43].mxu1 }
 0x5e9   :  { %v8600_v45 = vrot.slane %v8599_v30, 2  ;;  %v8606_v5 = vmax.f32 %v8604_v23, %v8605_v57  ;;  %v8614_v29 = vrot.slane %v8613_v44, 2  ;;  %v8620_v22 = vmax.f32 %v8618_v18, %v8619_v35 }
 0x5ea   :  { %v8575_v10 = vmax.f32 %v8573_v20, %v8574_v0  ;;  %v8581_v58 = vrot.slane %v8580_v63, 1  ;;  %v8588_v55 = vrot.slane %v8587_v43, 1  ;;  %v8594_v21 = vmax.f32 %v8592_v52, %v8593_v38 }
 0x5eb   :  { %v8601_v49 = vmax.f32 %v8599_v30, %v8600_v45  ;;  %v8607_v36 = vrot.slane %v8606_v5, 2  ;;  %v8615_v7 = vmax.f32 %v8613_v44, %v8614_v29  ;;  %v8621_v8 = vrot.slane %v8620_v22, 2 }
 0x5ec   :  { %v8582_v42 = vmax.f32 %v8580_v63, %v8581_v58  ;;  %v8589_v28 = vmax.f32 %v8587_v43, %v8588_v55  ;;  %v8595_v37 = vrot.slane %v8594_v21, 1  ;;  %v9017_v13 = vsel %vm19360_vm2, %v8575_v10, -inf }
 0x5ed   :  { %v8602_v60 = vrot.slane %v8601_v49, 1  ;;  %v8608_v3 = vmax.f32 %v8606_v5, %v8607_v36  ;;  %v8616_v61 = vrot.slane %v8615_v7, 1  ;;  %v8622_v32 = vmax.f32 %v8620_v22, %v8621_v8  ;;  %v18014_v23 = vpop.f32.mrb[44].mxu1 }
 0x5ee   :  { %v8596_v18 = vmax.f32 %v8594_v21, %v8595_v37  ;;  %v9020_v20 = vsel %vm19360_vm2, %v8582_v42, -inf  ;;  %v9023_v52 = vsel %vm19360_vm2, %v8589_v28, -inf  ;;  %v8066_v45 = vadd.f32 %v14871_v24, %v17955_v15  ;;  %v18019_v29 = vpop.f32.mrb[45].mxu1  ;;  %v18032_v15 = vld [vmem:[%s19350_s3 + $0x1] ss:$0 sm:$0xff] }
 0x5ef   :  { %v8603_v58 = vmax.f32 %v8601_v49, %v8602_v60  ;;  %v8609_v30 = vrot.slane %v8608_v3, 1  ;;  %v8617_v57 = vmax.f32 %v8615_v7, %v8616_v61  ;;  %v8623_v44 = vrot.slane %v8622_v32, 1  ;;  %v18021_v35 = vpop.f32.mrb[46].mxu1 }
 0x5f0   :  { %v9026_v0 = vsel %vm19360_vm2, %v8596_v18, -inf  ;;  %v8163_v63 = vadd.f32 %v17708_v11, %v8066_v45  ;;  %v14874_v37 = vadd.f32 %v17999_v54, %v17996_v47  ;;  %v14877_v42 = vadd.f32 %v14876_v34, %v14875_v50  ;;  %v18027_v43 = vpop.f32.mrb[47].mxu1 }
 0x5f1   :  { %v8610_v28 = vmax.f32 %v8608_v3, %v8609_v30  ;;  %v8624_v24 = vmax.f32 %v8622_v32, %v8623_v44  ;;  %v9018_v38 = vsel %vm19360_vm2, %v8603_v58, -inf  ;;  %v9024_v5 = vsel %vm19360_vm2, %v8617_v57, -inf }
 0x5f2   :  { %v9019_v22 = vmax.f32 %v9017_v13, %v9018_v38  ;;  %v9025_v10 = vmax.f32 %v9023_v52, %v9024_v5  ;;  %v8267_v11 = vcombine.high %v8163_v63, %v8163_v63  ;;  %v8274_v55 = vrot.slane %v8163_v63, %v15637_v46 }
 0x5f3   :  { %v9021_v47 = vsel %vm19360_vm2, %v8610_v28, -inf  ;;  %v9027_v54 = vsel %vm19360_vm2, %v8624_v24, -inf  ;;  %v8069_v50 = vadd.f32 %v14874_v37, %v17957_v17  ;;  %v18041_v34 = vadd.f32 %v14877_v42, %v17959_v6 }
 0x5f4   :  { %v9022_v21 = vmax.f32 %v9020_v20, %v9021_v47  ;;  %v9028_v32 = vmax.f32 %v9026_v0, %v9027_v54  ;;  %v9117_v49 = vadd.f32 %v18032_v15, %v9019_v22  ;;  %v9119_v36 = vadd.f32 %v18032_v15, %v9025_v10 }
 0x5f5   :  { %v8281_v7 = vrot.slane %v8267_v11, %v15637_v46  ;;  %v8282_v8 = vcombine.high %v8274_v55, %v8274_v55  ;;  %v8625_v13 = vsel %vm19361_vm1, %v8274_v55, -inf  ;;  %v8166_v60 = vadd.f32 %v17713_v39, %v8069_v50  ;;  %v18048_v3 = vpop.f32.mrb[48].mxu1 }
 0x5f6   :  { %v9118_v17 = vadd.f32 %v18032_v15, %v9022_v21  ;;  %v9120_v6 = vadd.f32 %v18032_v15, %v9028_v32  ;;  %v9149_v61 = vmax.f32 %v9117_v49, 0.0  ;;  %v9151_v18 = vmax.f32 %v9119_v36, 0.0  ;;  %v18052_v20 = vpop.f32.mrb[49].mxu1 }
 0x5f7   :  { %v8283_v52 = vcombine.high %v8281_v7, %v8281_v7  ;;  %v8626_v45 = vrot.slane %v8625_v13, 4  ;;  %v8632_v58 = vsel %vm19361_vm1, %v8282_v8, -inf  ;;  %v8639_v30 = vsel %vm19361_vm1, %v8281_v7, -inf  ;;  %v18056_v57 = vpop.f32.mrb[50].mxu1 }
 0x5f8   :  { %v9150_v44 = vmax.f32 %v9118_v17, 0.0  ;;  %v9152_v39 = vmax.f32 %v9120_v6, 0.0  ;;  %v14703_v0 = vpack.c.bf16 %v9149_v61, %v9149_v61  ;;  %v14705_v63 = vpack.c.bf16 %v9151_v18, %v9151_v18  ;;  %v18058_v37 = vpop.f32.mrb[51].mxu1 }
 0x5f9   :  { %v8627_v42 = vmax.f32 %v8625_v13, %v8626_v45  ;;  %v8633_v28 = vrot.slane %v8632_v58, 4  ;;  %v8640_v24 = vrot.slane %v8639_v30, 4  ;;  %v8646_v38 = vsel %vm19361_vm1, %v8283_v52, -inf }
 0x5fa   :  { %v14704_v5 = vpack.c.bf16 %v9150_v44, %v9150_v44  ;;  %v14706_v22 = vpack.c.bf16 %v9152_v39, %v9152_v39  ;;  %v9466_v10 = vunpack.c.l.b16 %v14703_v0  ;;  %v9468_v11 = vunpack.c.l.b16 %v14705_v63 }
 0x5fb   :  { %v8628_v55 = vrot.slane %v8627_v42, 2  ;;  %v8634_v47 = vmax.f32 %v8632_v58, %v8633_v28  ;;  %v8641_v54 = vmax.f32 %v8639_v30, %v8640_v24  ;;  %v8647_v50 = vrot.slane %v8646_v38, 4 }
 0x5fc   :  { %v9467_v21 = vunpack.c.l.b16 %v14704_v5  ;;  %v9469_v32 = vunpack.c.l.b16 %v14706_v22  ;;  %v9500_v49 = vrot.slane %v9468_v11, 6  ;;  %v8284_v36 = vcombine.high %v8166_v60, %v8166_v60 }
 0x5fd   :  { %v8629_v7 = vmax.f32 %v8627_v42, %v8628_v55  ;;  %v8635_v8 = vrot.slane %v8634_v47, 2  ;;  %v8642_v17 = vrot.slane %v8641_v54, 2  ;;  %v8648_v13 = vmax.f32 %v8646_v38, %v8647_v50  ;;  %v18061_v6 = vpop.f32.mrb[52].mxu1 }
 0x5fe   :  { %v9498_v61 = vrot.slane %v9467_v21, 7  ;;  %v9502_v18 = vrot.slane %v9469_v32, 5  ;;  %v8291_v52 = vrot.slane %v8166_v60, %v15637_v46  ;;  %v8298_v45 = vrot.slane %v8284_v36, %v15637_v46  ;;  %v18065_v44 = vpop.f32.mrb[53].mxu1 }
 0x5ff   :  { %v8630_v58 = vrot.slane %v8629_v7, 1  ;;  %v8636_v30 = vmax.f32 %v8634_v47, %v8635_v8  ;;  %v8643_v39 = vmax.f32 %v8641_v54, %v8642_v17  ;;  %v8649_v0 = vrot.slane %v8648_v13, 2  ;;  %v18067_v63 = vpop.f32.mrb[54].mxu1 }
 0x600   :  { %v9499_v42 = vsel %vm5353_vm3, %v9498_v61, %v9466_v10  ;;  %v8299_v28 = vcombine.high %v8291_v52, %v8291_v52  ;;  %v8300_v24 = vcombine.high %v8298_v45, %v8298_v45  ;;  %v8653_v38 = vsel %vm19361_vm1, %v8291_v52, -inf  ;;  %v18071_v5 = vpop.f32.mrb[55].mxu1 }
 0x601   :  { %v9501_v60 = vsel %vm19364_vm4, %v9500_v49, %v9499_v42  ;;  %v8631_v22 = vmax.f32 %v8629_v7, %v8630_v58  ;;  %v8637_v11 = vrot.slane %v8636_v30, 1  ;;  %v8644_v55 = vrot.slane %v8643_v39, 1 }
 0x602   :  { %v9503_v50 = vsel %vm19363_vm5, %v9502_v18, %v9501_v60  ;;  %v8650_v47 = vmax.f32 %v8648_v13, %v8649_v0  ;;  %v8654_v54 = vrot.slane %v8653_v38, 4  ;;  %v8660_v21 = vsel %vm19361_vm1, %v8299_v28, -inf }
 0x603   :  { %v9546_v32 = vpack.c.b16 %v9503_v50, %v9503_v50  ;;  %v8638_v36 = vmax.f32 %v8636_v30, %v8637_v11  ;;  %v8645_v10 = vmax.f32 %v8643_v39, %v8644_v55  ;;  %v9029_v8 = vsel %vm19360_vm2, %v8631_v22, -inf }
 0x604   :  { %v8651_v17 = vrot.slane %v8650_v47, 1  ;;  %v8655_v61 = vmax.f32 %v8653_v38, %v8654_v54  ;;  %v8661_v52 = vrot.slane %v8660_v21, 4  ;;  %v8667_v27 = vsel %vm19361_vm1, %v8298_v45, -inf }
 0x605   :  { %9563 = vst.msk [vmem:[#allocation3 + $0x1c] sm:$0x3] %vm19361_vm1, %v9546_v32  ;;  %v9032_v49 = vsel %vm19360_vm2, %v8638_v36, -inf  ;;  %v18081_v7 = vsel %vm19360_vm2, %v8645_v10, -inf  ;;  %v8668_v13 = vrot.slane %v8667_v27, 4  ;;  %v8674_v18 = vsel %vm19361_vm1, %v8300_v24, -inf }
 0x606   :  { %v8652_v58 = vmax.f32 %v8650_v47, %v8651_v17  ;;  %v8656_v30 = vrot.slane %v8655_v61, 2  ;;  %v8662_v39 = vmax.f32 %v8660_v21, %v8661_v52  ;;  %v8675_v0 = vrot.slane %v8674_v18, 4 }
 0x607   :  { %v8669_v42 = vmax.f32 %v8667_v27, %v8668_v13  ;;  %v8171_v28 = vadd.f32 %v17923_v41, %v18041_v34  ;;  %v14880_v45 = vadd.f32 %v18011_v26, %v18009_v9  ;;  %v14883_v38 = vadd.f32 %v18019_v29, %v18014_v23 }
 0x608   :  { %v9038_v60 = vsel %vm19360_vm2, %v8652_v58, -inf  ;;  %v8657_v22 = vmax.f32 %v8655_v61, %v8656_v30  ;;  %v8663_v11 = vrot.slane %v8662_v39, 2  ;;  %v8676_v55 = vmax.f32 %v8674_v18, %v8675_v0 }
 0x609   :  { %v8670_v24 = vrot.slane %v8669_v42, 2  ;;  %v8301_v50 = vcombine.high %v8171_v28, %v8171_v28  ;;  %v8308_v47 = vrot.slane %v8171_v28, %v15637_v46  ;;  %v18093_v27 = vadd.f32 %v14880_v45, %v17963_v48  ;;  %v18103_v45 = vpop.f32.mrb[56].mxu1 }
 0x60a   :  { %v8658_v54 = vrot.slane %v8657_v22, 1  ;;  %v8664_v41 = vmax.f32 %v8662_v39, %v8663_v11  ;;  %v8677_v34 = vrot.slane %v8676_v55, 2  ;;  %v18096_v9 = vadd.f32 %v14883_v38, %v17965_v14 }
 0x60b   :  { %v8671_v26 = vmax.f32 %v8669_v42, %v8670_v24  ;;  %v8315_v23 = vrot.slane %v8301_v50, %v15637_v46  ;;  %v8316_v29 = vcombine.high %v8308_v47, %v8308_v47  ;;  %v8681_v21 = vsel %vm19361_vm1, %v8308_v47, -inf  ;;  %v18107_v24 = vpop.f32.mrb[57].mxu1 }
 0x60c   :  { %v8659_v32 = vmax.f32 %v8657_v22, %v8658_v54  ;;  %v8665_v36 = vrot.slane %v8664_v41, 1  ;;  %v8678_v10 = vmax.f32 %v8676_v55, %v8677_v34  ;;  %v8682_v17 = vrot.slane %v8681_v21, 4  ;;  %v18111_v34 = vpop.f32.mrb[58].mxu1 }
 0x60d   :  { %v8672_v61 = vrot.slane %v8671_v26, 1  ;;  %v8317_v52 = vcombine.high %v8315_v23, %v8315_v23  ;;  %v8688_v48 = vsel %vm19361_vm1, %v8316_v29, -inf  ;;  %v8695_v13 = vsel %vm19361_vm1, %v8315_v23, -inf }
 0x60e   :  { %v8666_v18 = vmax.f32 %v8664_v41, %v8665_v36  ;;  %v8679_v58 = vrot.slane %v8678_v10, 1  ;;  %v9030_v14 = vsel %vm19360_vm2, %v8659_v32, -inf  ;;  %v8683_v30 = vmax.f32 %v8681_v21, %v8682_v17  ;;  %v18115_v21 = vpop.f32.mrb[59].mxu1 }
 0x60f   :  { %v8673_v39 = vmax.f32 %v8671_v26, %v8672_v61  ;;  %v9031_v0 = vmax.f32 %v9029_v8, %v9030_v14  ;;  %v8689_v42 = vrot.slane %v8688_v48, 4  ;;  %v8696_v28 = vrot.slane %v8695_v13, 4 }
 0x610   :  { %v8680_v38 = vmax.f32 %v8678_v10, %v8679_v58  ;;  %v9033_v22 = vsel %vm19360_vm2, %v8666_v18, -inf  ;;  %v8684_v11 = vrot.slane %v8683_v30, 2  ;;  %v8702_v55 = vsel %vm19361_vm1, %v8317_v52, -inf }
 0x611   :  { %v9034_v50 = vmax.f32 %v9032_v49, %v9033_v22  ;;  %v9036_v47 = vsel %vm19360_vm2, %v8673_v39, -inf  ;;  %v9121_v54 = vadd.f32 %v18032_v15, %v9031_v0  ;;  %v8690_v41 = vmax.f32 %v8688_v48, %v8689_v42 }
 0x612   :  { %v9037_v8 = vmax.f32 %v18081_v7, %v9036_v47  ;;  %v9039_v26 = vsel %vm19360_vm2, %v8680_v38, -inf  ;;  %v8685_v23 = vmax.f32 %v8683_v30, %v8684_v11  ;;  %v8697_v29 = vmax.f32 %v8695_v13, %v8696_v28 }
 0x613   :  { %v9040_v32 = vmax.f32 %v9038_v60, %v9039_v26  ;;  %v9122_v36 = vadd.f32 %v18032_v15, %v9034_v50  ;;  %v9153_v10 = vmax.f32 %v9121_v54, 0.0  ;;  %v8691_v49 = vrot.slane %v8690_v41, 2 }
 0x614   :  { %v9123_v17 = vadd.f32 %v18032_v15, %v9037_v8  ;;  %v8686_v61 = vrot.slane %v8685_v23, 1  ;;  %v8698_v52 = vrot.slane %v8697_v29, 2  ;;  %v8703_v48 = vrot.slane %v8702_v55, 4 }
 0x615   :  { %v9124_v18 = vadd.f32 %v18032_v15, %v9040_v32  ;;  %v9154_v58 = vmax.f32 %v9122_v36, 0.0  ;;  %v14707_v7 = vpack.c.bf16 %v9153_v10, %v9153_v10  ;;  %v8692_v14 = vmax.f32 %v8690_v41, %v8691_v49 }
 0x616   :  { %v9155_v39 = vmax.f32 %v9123_v17, 0.0  ;;  %v8687_v30 = vmax.f32 %v8685_v23, %v8686_v61  ;;  %v8699_v13 = vmax.f32 %v8697_v29, %v8698_v52  ;;  %v8704_v0 = vmax.f32 %v8702_v55, %v8703_v48 }
 0x617   :  { %v9156_v42 = vmax.f32 %v9124_v18, 0.0  ;;  %v14708_v60 = vpack.c.bf16 %v9154_v58, %v9154_v58  ;;  %v9470_v28 = vunpack.c.l.b16 %v14707_v7  ;;  %v8693_v38 = vrot.slane %v8692_v14, 1 }
 0x618   :  { %v14709_v22 = vpack.c.bf16 %v9155_v39, %v9155_v39  ;;  %v8700_v11 = vrot.slane %v8699_v13, 1  ;;  %v8705_v50 = vrot.slane %v8704_v0, 2  ;;  %v18121_v47 = vsel %vm19360_vm2, %v8687_v30, -inf }
 0x619   :  { %v14710_v54 = vpack.c.bf16 %v9156_v42, %v9156_v42  ;;  %v9471_v8 = vunpack.c.l.b16 %v14708_v60  ;;  %v8694_v26 = vmax.f32 %v8692_v14, %v8693_v38  ;;  %v8174_v41 = vadd.f32 %v17927_v59, %v18093_v27 }
 0x61a   :  { %v9472_v32 = vunpack.c.l.b16 %v14709_v22  ;;  %v8701_v23 = vmax.f32 %v8699_v13, %v8700_v11  ;;  %v8706_v29 = vmax.f32 %v8704_v0, %v8705_v50  ;;  %v8179_v55 = vadd.f32 %v17921_v25, %v18096_v9 }
 0x61b   :  { %v9473_v36 = vunpack.c.l.b16 %v14710_v54  ;;  %v9504_v10 = vrot.slane %v9471_v8, 7  ;;  %v18128_v49 = vsel %vm19360_vm2, %v8694_v26, -inf  ;;  %v8318_v17 = vcombine.high %v8174_v41, %v8174_v41 }
 0x61c   :  { %v9506_v61 = vrot.slane %v9472_v32, 6  ;;  %v8707_v52 = vrot.slane %v8706_v29, 1  ;;  %v18131_v48 = vsel %vm19360_vm2, %v8701_v23, -inf  ;;  %v8325_v18 = vrot.slane %v8174_v41, %v15637_v46 }
 0x61d   :  { %v9505_v59 = vsel %vm5353_vm3, %v9504_v10, %v9470_v28  ;;  %v9508_v27 = vrot.slane %v9473_v36, 5  ;;  %v8332_v58 = vrot.slane %v8318_v17, %v15637_v46  ;;  %v8335_v7 = vcombine.high %v8179_v55, %v8179_v55 }
 0x61e   :  { %v9507_v25 = vsel %vm19364_vm4, %v9506_v61, %v9505_v59  ;;  %v8708_v9 = vmax.f32 %v8706_v29, %v8707_v52  ;;  %v8333_v14 = vcombine.high %v8325_v18, %v8325_v18  ;;  %v8709_v39 = vsel %vm19361_vm1, %v8325_v18, -inf }
 0x61f   :  { %v9509_v30 = vsel %vm19363_vm5, %v9508_v27, %v9507_v25  ;;  %v8334_v13 = vcombine.high %v8332_v58, %v8332_v58  ;;  %v8710_v0 = vrot.slane %v8709_v39, 4  ;;  %v8723_v42 = vsel %vm19361_vm1, %v8332_v58, -inf }
 0x620   :  { %v9547_v60 = vpack.c.b16 %v9509_v30, %v9509_v30  ;;  %v18141_v38 = vsel %vm19360_vm2, %v8708_v9, -inf  ;;  %v8716_v28 = vsel %vm19361_vm1, %v8333_v14, -inf  ;;  %v8724_v22 = vrot.slane %v8723_v42, 4 }
 0x621   :  { %v8711_v11 = vmax.f32 %v8709_v39, %v8710_v0  ;;  %v8717_v50 = vrot.slane %v8716_v28, 4  ;;  %v8730_v54 = vsel %vm19361_vm1, %v8334_v13, -inf  ;;  %v8342_v8 = vrot.slane %v8179_v55, %v15637_v46 }
 0x622   :  { %9564 = vst.msk [vmem:[#allocation3 + $0x30] sm:$0x3] %vm19361_vm1, %v9547_v60  ;;  %v8725_v26 = vmax.f32 %v8723_v42, %v8724_v22  ;;  %v8731_v41 = vrot.slane %v8730_v54, 4  ;;  %v8349_v32 = vrot.slane %v8335_v7, %v15637_v46  ;;  %v18150_v23 = vadd.f32 %v18027_v43, %v18021_v35 }
 0x623   :  { %v8712_v29 = vrot.slane %v8711_v11, 2  ;;  %v8718_v36 = vmax.f32 %v8716_v28, %v8717_v50  ;;  %v8350_v10 = vcombine.high %v8342_v8, %v8342_v8  ;;  %v8737_v17 = vsel %vm19361_vm1, %v8342_v8, -inf  ;;  %v18156_v8 = vpop.f32.mrb[60].mxu1 }
 0x624   :  { %v8726_v61 = vrot.slane %v8725_v26, 2  ;;  %v8732_v52 = vmax.f32 %v8730_v54, %v8731_v41  ;;  %v8351_v18 = vcombine.high %v8349_v32, %v8349_v32  ;;  %v8738_v59 = vrot.slane %v8737_v17, 4 }
 0x625   :  { %v8713_v55 = vmax.f32 %v8711_v11, %v8712_v29  ;;  %v8719_v27 = vrot.slane %v8718_v36, 2  ;;  %v8744_v58 = vsel %vm19361_vm1, %v8350_v10, -inf  ;;  %v8751_v25 = vsel %vm19361_vm1, %v8349_v32, -inf  ;;  %v18158_v10 = vpop.f32.mrb[61].mxu1 }
 0x626   :  { %v8727_v7 = vmax.f32 %v8725_v26, %v8726_v61  ;;  %v8733_v9 = vrot.slane %v8732_v52, 2  ;;  %v8739_v14 = vmax.f32 %v8737_v17, %v8738_v59  ;;  %v8745_v35 = vrot.slane %v8744_v58, 4 }
 0x627   :  { %v8714_v43 = vrot.slane %v8713_v55, 1  ;;  %v8720_v39 = vmax.f32 %v8718_v36, %v8719_v27  ;;  %v8752_v30 = vrot.slane %v8751_v25, 4  ;;  %v8758_v13 = vsel %vm19361_vm1, %v8351_v18, -inf }
 0x628   :  { %v8728_v0 = vrot.slane %v8727_v7, 1  ;;  %v8734_v42 = vmax.f32 %v8732_v52, %v8733_v9  ;;  %v8740_v60 = vrot.slane %v8739_v14, 2  ;;  %v8746_v28 = vmax.f32 %v8744_v58, %v8745_v35  ;;  %v18161_v52 = vpop.f32.mrb[62].mxu1 }
 0x629   :  { %v8715_v22 = vmax.f32 %v8713_v55, %v8714_v43  ;;  %v8721_v11 = vrot.slane %v8720_v39, 1  ;;  %v8753_v50 = vmax.f32 %v8751_v25, %v8752_v30  ;;  %v8759_v54 = vrot.slane %v8758_v13, 4  ;;  %v18165_v25 = vpop.f32.mrb[63].mxu1 }
 0x62a   :  { %v8729_v41 = vmax.f32 %v8727_v7, %v8728_v0  ;;  %v8735_v26 = vrot.slane %v8734_v42, 1  ;;  %v8741_v32 = vmax.f32 %v8739_v14, %v8740_v60  ;;  %v8747_v29 = vrot.slane %v8746_v28, 2 }
 0x62b   :  { %v8722_v36 = vmax.f32 %v8720_v39, %v8721_v11  ;;  %v9042_v17 = vsel %vm19360_vm2, %v8715_v22, -inf  ;;  %v8754_v61 = vrot.slane %v8753_v50, 2  ;;  %v8760_v18 = vmax.f32 %v8758_v13, %v8759_v54 }
 0x62c   :  { %v8736_v59 = vmax.f32 %v8734_v42, %v8735_v26  ;;  %v9043_v55 = vmax.f32 %v18121_v47, %v9042_v17  ;;  %v9048_v27 = vsel %vm19360_vm2, %v8729_v41, -inf  ;;  %v8742_v58 = vrot.slane %v8741_v32, 1 }
 0x62d   :  { %v9045_v7 = vsel %vm19360_vm2, %v8722_v36, -inf  ;;  %v9049_v9 = vmax.f32 %v18131_v48, %v9048_v27  ;;  %v8748_v14 = vmax.f32 %v8746_v28, %v8747_v29  ;;  %v8755_v35 = vmax.f32 %v8753_v50, %v8754_v61 }
 0x62e   :  { %v9046_v43 = vmax.f32 %v18128_v49, %v9045_v7  ;;  %v9051_v39 = vsel %vm19360_vm2, %v8736_v59, -inf  ;;  %v9125_v30 = vadd.f32 %v18032_v15, %v9043_v55  ;;  %v8743_v13 = vmax.f32 %v8741_v32, %v8742_v58 }
 0x62f   :  { %v9052_v47 = vmax.f32 %v18141_v38, %v9051_v39  ;;  %v9127_v0 = vadd.f32 %v18032_v15, %v9049_v9  ;;  %v8749_v42 = vrot.slane %v8748_v14, 1  ;;  %v8756_v60 = vrot.slane %v8755_v35, 1 }
 0x630   :  { %v9126_v22 = vadd.f32 %v18032_v15, %v9046_v43  ;;  %v9157_v11 = vmax.f32 %v9125_v30, 0.0  ;;  %v8761_v54 = vrot.slane %v8760_v18, 2  ;;  %v18176_v48 = vsel %vm19360_vm2, %v8743_v13, -inf }
 0x631   :  { %v9128_v49 = vadd.f32 %v18032_v15, %v9052_v47  ;;  %v9159_v28 = vmax.f32 %v9127_v0, 0.0  ;;  %v8750_v50 = vmax.f32 %v8748_v14, %v8749_v42  ;;  %v8757_v41 = vmax.f32 %v8755_v35, %v8756_v60 }
 0x632   :  { %v9158_v26 = vmax.f32 %v9126_v22, 0.0  ;;  %v14711_v32 = vpack.c.bf16 %v9157_v11, %v9157_v11  ;;  %v8762_v29 = vmax.f32 %v8760_v18, %v8761_v54  ;;  %v8085_v38 = vadd.f32 %v18150_v23, %v17967_v2 }
 0x633   :  { %v9160_v36 = vmax.f32 %v9128_v49, 0.0  ;;  %v14713_v17 = vpack.c.bf16 %v9159_v28, %v9159_v28  ;;  %v18182_v61 = vsel %vm19360_vm2, %v8750_v50, -inf  ;;  %v18185_v59 = vsel %vm19360_vm2, %v8757_v41, -inf }
 0x634   :  { %v14712_v55 = vpack.c.bf16 %v9158_v26, %v9158_v26  ;;  %v9474_v27 = vunpack.c.l.b16 %v14711_v32  ;;  %v8763_v58 = vrot.slane %v8762_v29, 1  ;;  %v8182_v7 = vadd.f32 %v17925_v16, %v8085_v38 }
 0x635   :  { %v14714_v9 = vpack.c.bf16 %v9160_v36, %v9160_v36  ;;  %v9476_v14 = vunpack.c.l.b16 %v14713_v17  ;;  %v14889_v18 = vadd.f32 %v18052_v20, %v18048_v3  ;;  %v14892_v2 = vadd.f32 %v18058_v37, %v18056_v57 }
 0x636   :  { %v9475_v23 = vunpack.c.l.b16 %v14712_v55  ;;  %v8764_v35 = vmax.f32 %v8762_v29, %v8763_v58  ;;  %v8352_v43 = vcombine.high %v8182_v7, %v8182_v7  ;;  %v8359_v39 = vrot.slane %v8182_v7, %v15637_v46 }
 0x637   :  { %v9477_v30 = vunpack.c.l.b16 %v14714_v9  ;;  %v9512_v13 = vrot.slane %v9476_v14, 6  ;;  %v8090_v47 = vadd.f32 %v14889_v18, %v17969_v33  ;;  %v8093_v0 = vadd.f32 %v14892_v2, %v17971_v1 }
 0x638   :  { %v9510_v16 = vrot.slane %v9475_v23, 7  ;;  %v18196_v42 = vsel %vm19360_vm2, %v8764_v35, -inf  ;;  %v8366_v3 = vrot.slane %v8352_v43, %v15637_v46  ;;  %v8367_v20 = vcombine.high %v8359_v39, %v8359_v39 }
 0x639   :  { %v9514_v60 = vrot.slane %v9477_v30, 5  ;;  %v8765_v57 = vsel %vm19361_vm1, %v8359_v39, -inf  ;;  %v8187_v37 = vadd.f32 %v17931_v4, %v8090_v47  ;;  %v18202_v22 = vadd.f32 %v17935_v40, %v8093_v0 }
 0x63a   :  { %v9511_v11 = vsel %vm5353_vm3, %v9510_v16, %v9474_v27  ;;  %v8368_v33 = vcombine.high %v8366_v3, %v8366_v3  ;;  %v8766_v54 = vrot.slane %v8765_v57, 4  ;;  %v8772_v1 = vsel %vm19361_vm1, %v8367_v20, -inf }
 0x63b   :  { %v9513_v49 = vsel %vm19364_vm4, %v9512_v13, %v9511_v11  ;;  %v8773_v28 = vrot.slane %v8772_v1, 4  ;;  %v8779_v50 = vsel %vm19361_vm1, %v8366_v3, -inf  ;;  %v8369_v41 = vcombine.high %v8187_v37, %v8187_v37 }
 0x63c   :  { %v9515_v26 = vsel %vm19363_vm5, %v9514_v60, %v9513_v49  ;;  %v8767_v32 = vmax.f32 %v8765_v57, %v8766_v54  ;;  %v8780_v29 = vrot.slane %v8779_v50, 4  ;;  %v8786_v4 = vsel %vm19361_vm1, %v8368_v33, -inf }
 0x63d   :  { %v9548_v40 = vpack.c.b16 %v9515_v26, %v9515_v26  ;;  %v8774_v38 = vmax.f32 %v8772_v1, %v8773_v28  ;;  %v8787_v36 = vrot.slane %v8786_v4, 4  ;;  %v8376_v17 = vrot.slane %v8187_v37, %v15637_v46 }
 0x63e   :  { %v8768_v55 = vrot.slane %v8767_v32, 2  ;;  %v8781_v27 = vmax.f32 %v8779_v50, %v8780_v29  ;;  %v8383_v58 = vrot.slane %v8369_v41, %v15637_v46  ;;  %v8386_v7 = vcombine.high %v18202_v22, %v18202_v22 }
 0x63f   :  { %9565 = vst.msk [vmem:[#allocation3 + $0x44] sm:$0x3] %vm19361_vm1, %v9548_v40  ;;  %v8775_v9 = vrot.slane %v8774_v38, 2  ;;  %v8788_v14 = vmax.f32 %v8786_v4, %v8787_v36  ;;  %v8384_v18 = vcombine.high %v8376_v17, %v8376_v17  ;;  %v8793_v2 = vsel %vm19361_vm1, %v8376_v17, -inf }
 0x640   :  { %v8769_v23 = vmax.f32 %v8767_v32, %v8768_v55  ;;  %v8782_v35 = vrot.slane %v8781_v27, 2  ;;  %v8385_v43 = vcombine.high %v8383_v58, %v8383_v58  ;;  %v8794_v39 = vrot.slane %v8793_v2, 4 }
 0x641   :  { %v8776_v30 = vmax.f32 %v8774_v38, %v8775_v9  ;;  %v8789_v13 = vrot.slane %v8788_v14, 2  ;;  %v8800_v47 = vsel %vm19361_vm1, %v8384_v18, -inf  ;;  %v8807_v0 = vsel %vm19361_vm1, %v8383_v58, -inf }
 0x642   :  { %v8770_v16 = vrot.slane %v8769_v23, 1  ;;  %v8783_v3 = vmax.f32 %v8781_v27, %v8782_v35  ;;  %v8795_v20 = vmax.f32 %v8793_v2, %v8794_v39  ;;  %v8801_v60 = vrot.slane %v8800_v47, 4 }
 0x643   :  { %v8777_v57 = vrot.slane %v8776_v30, 1  ;;  %v8790_v37 = vmax.f32 %v8788_v14, %v8789_v13  ;;  %v8808_v11 = vrot.slane %v8807_v0, 4  ;;  %v8814_v33 = vsel %vm19361_vm1, %v8385_v43, -inf }
 0x644   :  { %v8771_v54 = vmax.f32 %v8769_v23, %v8770_v16  ;;  %v8784_v1 = vrot.slane %v8783_v3, 1  ;;  %v8796_v49 = vrot.slane %v8795_v20, 2  ;;  %v8802_v28 = vmax.f32 %v8800_v47, %v8801_v60 }
 0x645   :  { %v8778_v50 = vmax.f32 %v8776_v30, %v8777_v57  ;;  %v8791_v41 = vrot.slane %v8790_v37, 1  ;;  %v8809_v26 = vmax.f32 %v8807_v0, %v8808_v11  ;;  %v8815_v32 = vrot.slane %v8814_v33, 4 }
 0x646   :  { %v8785_v29 = vmax.f32 %v8783_v3, %v8784_v1  ;;  %v9054_v4 = vsel %vm19360_vm2, %v8771_v54, -inf  ;;  %v8797_v40 = vmax.f32 %v8795_v20, %v8796_v49  ;;  %v8803_v38 = vrot.slane %v8802_v28, 2  ;;  %v9311_v54 = vld [vmem:[#allocation3 + $0x94] sm:$0x7] }
 0x647   :  { %v8792_v36 = vmax.f32 %v8790_v37, %v8791_v41  ;;  %v9055_v17 = vmax.f32 %v18176_v48, %v9054_v4  ;;  %v9057_v55 = vsel %vm19360_vm2, %v8778_v50, -inf  ;;  %v8810_v27 = vrot.slane %v8809_v26, 2 }
 0x648   :  { %v9058_v58 = vmax.f32 %v18182_v61, %v9057_v55  ;;  %v9060_v9 = vsel %vm19360_vm2, %v8785_v29, -inf  ;;  %v8798_v14 = vrot.slane %v8797_v40, 1  ;;  %v8804_v18 = vmax.f32 %v8802_v28, %v8803_v38 }
 0x649   :  { %v9061_v2 = vmax.f32 %v18185_v59, %v9060_v9  ;;  %v9063_v23 = vsel %vm19360_vm2, %v8792_v36, -inf  ;;  %v9129_v35 = vadd.f32 %v18032_v15, %v9055_v17  ;;  %v8811_v43 = vmax.f32 %v8809_v26, %v8810_v27 }
 0x64a   :  { %v9064_v39 = vmax.f32 %v18196_v42, %v9063_v23  ;;  %v9130_v48 = vadd.f32 %v18032_v15, %v9058_v58  ;;  %v8799_v30 = vmax.f32 %v8797_v40, %v8798_v14  ;;  %v8805_v13 = vrot.slane %v8804_v18, 1 }
 0x64b   :  { %v9131_v47 = vadd.f32 %v18032_v15, %v9061_v2  ;;  %v9161_v61 = vmax.f32 %v9129_v35, 0.0  ;;  %v8812_v0 = vrot.slane %v8811_v43, 1  ;;  %v8816_v16 = vmax.f32 %v8814_v33, %v8815_v32 }
 0x64c   :  { %v9132_v3 = vadd.f32 %v18032_v15, %v9064_v39  ;;  %v9162_v20 = vmax.f32 %v9130_v48, 0.0  ;;  %v8806_v59 = vmax.f32 %v8804_v18, %v8805_v13  ;;  %v18232_v60 = vsel %vm19360_vm2, %v8799_v30, -inf }
 0x64d   :  { %v9163_v57 = vmax.f32 %v9131_v47, 0.0  ;;  %v14715_v37 = vpack.c.bf16 %v9161_v61, %v9161_v61  ;;  %v8813_v11 = vmax.f32 %v8811_v43, %v8812_v0  ;;  %v8817_v42 = vrot.slane %v8816_v16, 2  ;;  %v9317_v0 = vld [vmem:[#allocation3 + $0xa8] sm:$0x7] }
 0x64e   :  { %v9164_v1 = vmax.f32 %v9132_v3, 0.0  ;;  %v14716_v49 = vpack.c.bf16 %v9162_v20, %v9162_v20  ;;  %v18235_v28 = vsel %vm19360_vm2, %v8806_v59, -inf  ;;  %v8393_v33 = vrot.slane %v18202_v22, %v15637_v46 }
 0x64f   :  { %v14717_v50 = vpack.c.bf16 %v9163_v57, %v9163_v57  ;;  %v9478_v41 = vunpack.c.l.b16 %v14715_v37  ;;  %v8818_v26 = vmax.f32 %v8816_v16, %v8817_v42  ;;  %v18240_v32 = vsel %vm19360_vm2, %v8813_v11, -inf }
 0x650   :  { %v14718_v29 = vpack.c.bf16 %v9164_v1, %v9164_v1  ;;  %v9479_v4 = vunpack.c.l.b16 %v14716_v49  ;;  %v8400_v40 = vrot.slane %v8386_v7, %v15637_v46  ;;  %v8401_v38 = vcombine.high %v8393_v33, %v8393_v33 }
 0x651   :  { %v9480_v36 = vunpack.c.l.b16 %v14717_v50  ;;  %v8819_v17 = vrot.slane %v8818_v26, 1  ;;  %v8821_v55 = vsel %vm19361_vm1, %v8393_v33, -inf  ;;  %v9312_v27 = vsel %vm17941_vm8, 0, %v9311_v54 }
 0x652   :  { %v9481_v58 = vunpack.c.l.b16 %v14718_v29  ;;  %v9516_v9 = vrot.slane %v9479_v4, 7  ;;  %v8402_v14 = vcombine.high %v8400_v40, %v8400_v40  ;;  %v8822_v18 = vrot.slane %v8821_v55, 4  ;;  %9313 = vst [vmem:[#allocation3 + $0x94] sm:$0x7] %v9312_v27 }
 0x653   :  { %v9518_v2 = vrot.slane %v9480_v36, 6  ;;  %v8820_v23 = vmax.f32 %v8818_v26, %v8819_v17  ;;  %v8828_v35 = vsel %vm19361_vm1, %v8401_v38, -inf  ;;  %v8835_v22 = vsel %vm19361_vm1, %v8400_v40, -inf }
 0x654   :  { %v9517_v7 = vsel %vm5353_vm3, %v9516_v9, %v9478_v41  ;;  %v9520_v43 = vrot.slane %v9481_v58, 5  ;;  %v8823_v39 = vmax.f32 %v8821_v55, %v8822_v18  ;;  %v8829_v48 = vrot.slane %v8828_v35, 4 }
 0x655   :  { %v9519_v30 = vsel %vm19364_vm4, %v9518_v2, %v9517_v7  ;;  %v18254_v13 = vsel %vm19360_vm2, %v8820_v23, -inf  ;;  %v8836_v47 = vrot.slane %v8835_v22, 4  ;;  %v8842_v61 = vsel %vm19361_vm1, %v8402_v14, -inf }
 0x656   :  { %v9521_v16 = vsel %vm19363_vm5, %v9520_v43, %v9519_v30  ;;  %v8824_v3 = vrot.slane %v8823_v39, 2  ;;  %v8830_v20 = vmax.f32 %v8828_v35, %v8829_v48  ;;  %v8843_v59 = vrot.slane %v8842_v61, 4 }
 0x657   :  { %v9549_v57 = vpack.c.b16 %v9521_v16, %v9521_v16  ;;  %v8837_v37 = vmax.f32 %v8835_v22, %v8836_v47  ;;  %v14895_v11 = vadd.f32 %v18065_v44, %v18061_v6  ;;  %v14898_v42 = vadd.f32 %v18071_v5, %v18067_v63 }
 0x658   :  { %v8825_v54 = vmax.f32 %v8823_v39, %v8824_v3  ;;  %v8831_v1 = vrot.slane %v8830_v20, 2  ;;  %v8844_v49 = vmax.f32 %v8842_v61, %v8843_v59  ;;  %v9318_v33 = vsel %vm17941_vm8, 0, %v9317_v0 }
 0x659   :  { %9566 = vst.msk [vmem:[#allocation3 + $0x58] sm:$0x3] %vm19361_vm1, %v9549_v57  ;;  %v8838_v50 = vrot.slane %v8837_v37, 2  ;;  %v8098_v41 = vadd.f32 %v14895_v11, %v17973_v19  ;;  %v8101_v26 = vadd.f32 %v14898_v42, %v17975_v53  ;;  %9319 = vst [vmem:[#allocation3 + $0xa8] sm:$0x7] %v9318_v33  ;;  %v14901_v6 = vadd.f32 %v18107_v24, %v18103_v45 }
 0x65a   :  { %v8826_v44 = vrot.slane %v8825_v54, 1  ;;  %v8832_v29 = vmax.f32 %v8830_v20, %v8831_v1  ;;  %v8845_v63 = vrot.slane %v8844_v49, 2  ;;  %v14904_v5 = vadd.f32 %v18115_v21, %v18111_v34 }
 0x65b   :  { %v8839_v4 = vmax.f32 %v8837_v37, %v8838_v50  ;;  %v8195_v40 = vadd.f32 %v17929_v12, %v8098_v41  ;;  %v8198_v38 = vadd.f32 %v17933_v51, %v8101_v26  ;;  %v18274_v36 = vadd.f32 %v14901_v6, %v17979_v62 }
 0x65c   :  { %v8827_v19 = vmax.f32 %v8825_v54, %v8826_v44  ;;  %v8833_v53 = vrot.slane %v8832_v29, 1  ;;  %v8846_v17 = vmax.f32 %v8844_v49, %v8845_v63  ;;  %v18277_v55 = vadd.f32 %v14904_v5, %v17981_v56 }
 0x65d   :  { %v8840_v45 = vrot.slane %v8839_v4, 1  ;;  %v8403_v24 = vcombine.high %v8195_v40, %v8195_v40  ;;  %v8410_v27 = vrot.slane %v8195_v40, %v15637_v46  ;;  %v8420_v58 = vcombine.high %v8198_v38, %v8198_v38 }
 0x65e   :  { %v8834_v34 = vmax.f32 %v8832_v29, %v8833_v53  ;;  %v8847_v21 = vrot.slane %v8846_v17, 1  ;;  %v9066_v12 = vsel %vm19360_vm2, %v8827_v19, -inf  ;;  %v18282_v51 = vrot.slane %v8198_v38, %v15637_v46 }
 0x65f   :  { %v8841_v62 = vmax.f32 %v8839_v4, %v8840_v45  ;;  %v9067_v9 = vmax.f32 %v18232_v60, %v9066_v12  ;;  %v8417_v14 = vrot.slane %v8403_v24, %v15637_v46  ;;  %v8418_v18 = vcombine.high %v8410_v27, %v8410_v27 }
 0x660   :  { %v8848_v56 = vmax.f32 %v8846_v17, %v8847_v21  ;;  %v9069_v2 = vsel %vm19360_vm2, %v8834_v34, -inf  ;;  %v8849_v23 = vsel %vm19361_vm1, %v8410_v27, -inf  ;;  %v18289_v35 = vrot.slane %v8420_v58, %v15637_v46 }
 0x661   :  { %v9070_v22 = vmax.f32 %v18235_v28, %v9069_v2  ;;  %v9072_v7 = vsel %vm19360_vm2, %v8841_v62, -inf  ;;  %v9133_v43 = vadd.f32 %v18032_v15, %v9067_v9  ;;  %v8419_v39 = vcombine.high %v8417_v14, %v8417_v14 }
 0x662   :  { %v9073_v60 = vmax.f32 %v18240_v32, %v9072_v7  ;;  %v9075_v48 = vsel %vm19360_vm2, %v8848_v56, -inf  ;;  %v8850_v30 = vrot.slane %v8849_v23, 4  ;;  %v8856_v47 = vsel %vm19361_vm1, %v8418_v18, -inf }
 0x663   :  { %v9076_v61 = vmax.f32 %v18254_v13, %v9075_v48  ;;  %v9134_v0 = vadd.f32 %v18032_v15, %v9070_v22  ;;  %v9165_v16 = vmax.f32 %v9133_v43, 0.0  ;;  %v8857_v3 = vrot.slane %v8856_v47, 4  ;;  %v15319_v43 = vld [vmem:[%s19349_s2 + $0x180] sm:$0xff]  }
 0x664   :  { %v9135_v28 = vadd.f32 %v18032_v15, %v9073_v60  ;;  %v8851_v20 = vmax.f32 %v8849_v23, %v8850_v30  ;;  %v8863_v59 = vsel %vm19361_vm1, %v8417_v14, -inf  ;;  %v8870_v57 = vsel %vm19361_vm1, %v8419_v39, -inf  ;;  %14927 = vmatprep.subr.bf16.mxu1 %v15319_v43 }
 0x665   :  { %v9136_v32 = vadd.f32 %v18032_v15, %v9076_v61  ;;  %v9166_v37 = vmax.f32 %v9134_v0, 0.0  ;;  %v14719_v11 = vpack.c.bf16 %v9165_v16, %v9165_v16  ;;  %v8858_v42 = vmax.f32 %v8856_v47, %v8857_v3  ;;  %v15321_v47 = vld [vmem:[%s19349_s2 + $0x188] sm:$0xff]  }
 0x666   :  { %v9167_v54 = vmax.f32 %v9135_v28, 0.0  ;;  %v8852_v1 = vrot.slane %v8851_v20, 2  ;;  %v8864_v49 = vrot.slane %v8863_v59, 4  ;;  %v8871_v13 = vrot.slane %v8870_v57, 4  ;;  %v9323_v28 = vld [vmem:[#allocation3 + $0xbc] sm:$0x7] }
 0x667   :  { %v9168_v33 = vmax.f32 %v9136_v32, 0.0  ;;  %v14720_v50 = vpack.c.bf16 %v9166_v37, %v9166_v37  ;;  %v9482_v41 = vunpack.c.l.b16 %v14719_v11  ;;  %v8859_v26 = vrot.slane %v8858_v42, 2  ;;  %v19413_v32 = vld [vmem:[#allocation12_spill] sm:$0xff]  ;;  %v15322_v11 = vld [vmem:[%s19349_s2 + $0x148] sm:$0xff]  }
 0x668   :  { %v14721_v6 = vpack.c.bf16 %v9167_v54, %v9167_v54  ;;  %v8853_v44 = vmax.f32 %v8851_v20, %v8852_v1  ;;  %v8865_v29 = vmax.f32 %v8863_v59, %v8864_v49  ;;  %v8872_v63 = vmax.f32 %v8870_v57, %v8871_v13  ;;  %v15328_v54 = vld [vmem:[%s19349_s2 + $0x1c0] sm:$0xff]   ;;  %v15323_v13 = vld [vmem:[%s19349_s2 + $0x190] sm:$0xff]  }
 0x669   :  { %v14722_v5 = vpack.c.bf16 %v9168_v33, %v9168_v33  ;;  %v9483_v4 = vunpack.c.l.b16 %v14720_v50  ;;  %v8860_v40 = vmax.f32 %v8858_v42, %v8859_v26  ;;  %v8435_v15 = vcombine.high %v18282_v51, %v18282_v51  ;;  %v15327_v42 = vld [vmem:[%s19349_s2 + $0x200] sm:$0xff]  }
 0x66a   :  { %v9484_v38 = vunpack.c.l.b16 %v14721_v6  ;;  %v8854_v19 = vrot.slane %v8853_v44, 1  ;;  %v8866_v53 = vrot.slane %v8865_v29, 2  ;;  %v8873_v17 = vrot.slane %v8872_v63, 2  ;;  %14955 = vmatprep.subr.bf16.mxu0 %v15327_v42  ;;  %v18383_v42 = vld [vmem:[%s19350_s3 + $0x1] ss:$0 sm:$0xff] }
 0x66b   :  { %v9485_v45 = vunpack.c.l.b16 %v14722_v5  ;;  %v9522_v24 = vrot.slane %v9483_v4, 7  ;;  %v8861_v27 = vrot.slane %v8860_v40, 1  ;;  %v8436_v58 = vcombine.high %v18289_v35, %v18289_v35  ;;  %14956 = vmatpush3.bf16.msra.mxu0 %v15328_v54 }
 0x66c   :  { %v9524_v34 = vrot.slane %v9484_v38, 6  ;;  %v8855_v21 = vmax.f32 %v8853_v44, %v8854_v19  ;;  %v8867_v12 = vmax.f32 %v8865_v29, %v8866_v53  ;;  %v8874_v62 = vmax.f32 %v8872_v63, %v8873_v17  ;;  %v19414_v29 = vld [vmem:[#allocation14_spill] sm:$0xff] }
 0x66d   :  { %v9523_v9 = vsel %vm5353_vm3, %v9522_v24, %v9482_v41  ;;  %v9526_v14 = vrot.slane %v9485_v45, 5  ;;  %v8862_v18 = vmax.f32 %v8860_v40, %v8861_v27  ;;  %v8877_v56 = vsel %vm19361_vm1, %v18282_v51, -inf  ;;  %v15320_v51 = vld [vmem:[%s19349_s2 + $0x140] sm:$0xff]   ;;  %v15324_v19 = vld [vmem:[%s19349_s2 + $0x150] sm:$0xff]   ;;  %v15325_v24 = vld [vmem:[%s19349_s2 + $0x198] sm:$0xff]  }
 0x66e   :  { %v9525_v2 = vsel %vm19364_vm4, %v9524_v34, %v9523_v9  ;;  %v8868_v23 = vrot.slane %v8867_v12, 1  ;;  %v8875_v22 = vrot.slane %v8874_v62, 1  ;;  %v18312_v7 = vsel %vm19360_vm2, %v8855_v21, -inf  ;;  %14928 = vmatpush3.bf16.msra.mxu1 %v15320_v51 }
 0x66f   :  { %v9527_v39 = vsel %vm19363_vm5, %v9526_v14, %v9525_v2  ;;  %v18319_v60 = vsel %vm19360_vm2, %v8862_v18, -inf  ;;  %v8878_v48 = vrot.slane %v8877_v56, 4  ;;  %v8884_v30 = vsel %vm19361_vm1, %v8435_v15, -inf  ;;  %14929 = vmatprep.subr.bf16.mxu1 %v15321_v47 }
 0x670   :  { %v9550_v61 = vpack.c.b16 %v9527_v39, %v9527_v39  ;;  %v8869_v0 = vmax.f32 %v8867_v12, %v8868_v23  ;;  %v8876_v16 = vmax.f32 %v8874_v62, %v8875_v22  ;;  %v8885_v3 = vrot.slane %v8884_v30, 4  ;;  %v15326_v22 = vld [vmem:[%s19349_s2 + $0x158] sm:$0xff]  }
 0x671   :  { %v8879_v20 = vmax.f32 %v8877_v56, %v8878_v48  ;;  %v8891_v59 = vsel %vm19361_vm1, %v18289_v35, -inf  ;;  %v8898_v57 = vsel %vm19361_vm1, %v8436_v58, -inf  ;;  %v8203_v37 = vadd.f32 %v19413_v32, %v18274_v36 }
 0x672   :  { %9567 = vst.msk [vmem:[#allocation3 + $0x94] sm:$0x3] %vm19361_vm1, %v9550_v61  ;;  %v18344_v35 = vsel %vm19360_vm2, %v8869_v0, -inf  ;;  %v18347_v36 = vsel %vm19360_vm2, %v8876_v16, -inf  ;;  %v8886_v1 = vmax.f32 %v8884_v30, %v8885_v3  ;;  %v8892_v49 = vrot.slane %v8891_v59, 4  ;;  %14930 = vmatpush3.bf16.msra.mxu1 %v15322_v11 }
 0x673   :  { %v8880_v33 = vrot.slane %v8879_v20, 2  ;;  %v8899_v50 = vrot.slane %v8898_v57, 4  ;;  %v8437_v41 = vcombine.high %v8203_v37, %v8203_v37  ;;  %v8444_v26 = vrot.slane %v8203_v37, %v15637_v46  ;;  %14931 = vmatprep.subr.bf16.mxu1 %v15323_v13 }
 0x674   :  { %v8887_v6 = vrot.slane %v8886_v1, 2  ;;  %v8893_v44 = vmax.f32 %v8891_v59, %v8892_v49  ;;  %v18355_v63 = vadd.f32 %v19414_v29, %v18277_v55  ;;  %v9324_v5 = vsel %vm17941_vm8, 0, %v9323_v28 }
 0x675   :  { %v8881_v4 = vmax.f32 %v8879_v20, %v8880_v33  ;;  %v8900_v40 = vmax.f32 %v8898_v57, %v8899_v50  ;;  %v8451_v15 = vrot.slane %v8437_v41, %v15637_v46  ;;  %v8452_v38 = vcombine.high %v8444_v26, %v8444_v26  ;;  %9325 = vst [vmem:[#allocation3 + $0xbc] sm:$0x7] %v9324_v5 }
 0x676   :  { %v8888_v53 = vmax.f32 %v8886_v1, %v8887_v6  ;;  %v8894_v17 = vrot.slane %v8893_v44, 2  ;;  %v8905_v55 = vsel %vm19361_vm1, %v8444_v26, -inf  ;;  %v8454_v45 = vcombine.high %v18355_v63, %v18355_v63  ;;  %14932 = vmatpush3.bf16.msra.mxu1 %v15324_v19 }
 0x677   :  { %v8882_v27 = vrot.slane %v8881_v4, 1  ;;  %v8901_v58 = vrot.slane %v8900_v40, 2  ;;  %v8453_v34 = vcombine.high %v8451_v15, %v8451_v15  ;;  %v8906_v21 = vrot.slane %v8905_v55, 4  ;;  %14933 = vmatprep.subr.bf16.mxu1 %v15325_v24 }
 0x678   :  { %v8889_v12 = vrot.slane %v8888_v53, 1  ;;  %v8895_v62 = vmax.f32 %v8893_v44, %v8894_v17  ;;  %v8912_v9 = vsel %vm19361_vm1, %v8452_v38, -inf  ;;  %v8919_v14 = vsel %vm19361_vm1, %v8451_v15, -inf }
 0x679   :  { %v8883_v18 = vmax.f32 %v8881_v4, %v8882_v27  ;;  %v8902_v56 = vmax.f32 %v8900_v40, %v8901_v58  ;;  %v8907_v2 = vmax.f32 %v8905_v55, %v8906_v21  ;;  %v8913_v23 = vrot.slane %v8912_v9, 4 }
 0x67a   :  { %v8890_v43 = vmax.f32 %v8888_v53, %v8889_v12  ;;  %v8896_v39 = vrot.slane %v8895_v62, 1  ;;  %v8920_v48 = vrot.slane %v8919_v14, 4  ;;  %v8926_v30 = vsel %vm19361_vm1, %v8453_v34, -inf  ;;  %14934 = vmatpush3.bf16.msra.mxu1 %v15326_v22 }
 0x67b   :  { %v8903_v51 = vrot.slane %v8902_v56, 1  ;;  %v9078_v47 = vsel %vm19360_vm2, %v8883_v18, -inf  ;;  %v8908_v61 = vrot.slane %v8907_v2, 2  ;;  %v8914_v0 = vmax.f32 %v8912_v9, %v8913_v23 }
 0x67c   :  { %v8897_v16 = vmax.f32 %v8895_v62, %v8896_v39  ;;  %v9079_v3 = vmax.f32 %v18312_v7, %v9078_v47  ;;  %v9081_v28 = vsel %vm19360_vm2, %v8890_v43, -inf  ;;  %v8921_v20 = vmax.f32 %v8919_v14, %v8920_v48 }
 0x67d   :  { %v8904_v59 = vmax.f32 %v8902_v56, %v8903_v51  ;;  %v9082_v57 = vmax.f32 %v18319_v60, %v9081_v28  ;;  %v8909_v32 = vmax.f32 %v8907_v2, %v8908_v61  ;;  %v8915_v37 = vrot.slane %v8914_v0, 2 }
 0x67e   :  { %v9084_v11 = vsel %vm19360_vm2, %v8897_v16, -inf  ;;  %v9137_v54 = vadd.f32 %v18383_v42, %v9079_v3  ;;  %v8922_v1 = vrot.slane %v8921_v20, 2  ;;  %v8927_v7 = vrot.slane %v8926_v30, 4 }
 0x67f   :  { %v9085_v49 = vmax.f32 %v18344_v35, %v9084_v11  ;;  %v9087_v13 = vsel %vm19360_vm2, %v8904_v59, -inf  ;;  %v9138_v60 = vadd.f32 %v18383_v42, %v9082_v57  ;;  %v8910_v33 = vrot.slane %v8909_v32, 1 }
 0x680   :  { %v9088_v50 = vmax.f32 %v18347_v36, %v9087_v13  ;;  %v9169_v41 = vmax.f32 %v9137_v54, 0.0  ;;  %v8916_v26 = vmax.f32 %v8914_v0, %v8915_v37  ;;  %v8923_v6 = vmax.f32 %v8921_v20, %v8922_v1  ;;  %v9329_v37 = vld [vmem:[#allocation3 + $0xd0] sm:$0x7] }
 0x681   :  { %v9139_v44 = vadd.f32 %v18383_v42, %v9085_v49  ;;  %v9170_v29 = vmax.f32 %v9138_v60, 0.0  ;;  %v8911_v5 = vmax.f32 %v8909_v32, %v8910_v33  ;;  %v8928_v4 = vmax.f32 %v8926_v30, %v8927_v7  ;;  %v9269_v49 = vld [vmem:[#allocation3 + $0x8] sm:$0x7]  ;;  %v18419_v13 = vld [vmem:[#allocation3 + $0x30] ss:$20 sps:$4 sm:$0x33]  }
 0x682   :  { %v9140_v40 = vadd.f32 %v18383_v42, %v9088_v50  ;;  %v14723_v15 = vpack.c.bf16 %v9169_v41, %v9169_v41  ;;  %v8917_v38 = vrot.slane %v8916_v26, 1  ;;  %v8924_v35 = vrot.slane %v8923_v6, 1 }
 0x683   :  { %v9171_v19 = vmax.f32 %v9139_v44, 0.0  ;;  %v14724_v53 = vpack.c.bf16 %v9170_v29, %v9170_v29  ;;  %v8929_v17 = vrot.slane %v8928_v4, 2  ;;  %v18393_v55 = vsel %vm19360_vm2, %v8911_v5, -inf  ;;  %v19415_v44 = vld [vmem:[#allocation15_spill] sm:$0xff] }
 0x684   :  { %v9172_v36 = vmax.f32 %v9140_v40, 0.0  ;;  %v9486_v24 = vunpack.c.l.b16 %v14723_v15  ;;  %v8918_v27 = vmax.f32 %v8916_v26, %v8917_v38  ;;  %v8925_v58 = vmax.f32 %v8923_v6, %v8924_v35  ;;  %v19416_v40 = vld [vmem:[#allocation16_spill] sm:$0xff] }
 0x685   :  { %v14725_v34 = vpack.c.bf16 %v9171_v19, %v9171_v19  ;;  %v9487_v21 = vunpack.c.l.b16 %v14724_v53  ;;  %v8930_v12 = vmax.f32 %v8928_v4, %v8929_v17  ;;  %v8461_v62 = vrot.slane %v18355_v63, %v15637_v46  ;;  %v9272_v4 = vld [vmem:[#allocation3 + $0x18] sm:$0x8] }
 0x686   :  { %v14726_v9 = vpack.c.bf16 %v9172_v36, %v9172_v36  ;;  %v18398_v14 = vsel %vm19360_vm2, %v8918_v27, -inf  ;;  %v18401_v18 = vsel %vm19360_vm2, %v8925_v58, -inf  ;;  %v8468_v56 = vrot.slane %v8454_v45, %v15637_v46  ;;  %v19419_v58 = vld [vmem:[#allocation10_spill] sm:$0xff] }
 0x687   :  { %v9488_v2 = vunpack.c.l.b16 %v14725_v34  ;;  %v9528_v23 = vrot.slane %v9487_v21, 7  ;;  %v8931_v22 = vrot.slane %v8930_v12, 1  ;;  %v8469_v43 = vcombine.high %v8461_v62, %v8461_v62 }
 0x688   :  { %v9489_v39 = vunpack.c.l.b16 %v14726_v9  ;;  %v8470_v48 = vcombine.high %v8468_v56, %v8468_v56  ;;  %v8933_v30 = vsel %vm19361_vm1, %v8461_v62, -inf  ;;  %v8947_v51 = vsel %vm19361_vm1, %v8468_v56, -inf }
 0x689   :  { %v9529_v47 = vsel %vm5353_vm3, %v9528_v23, %v9486_v24  ;;  %v9530_v61 = vrot.slane %v9488_v2, 6  ;;  %v8932_v0 = vmax.f32 %v8930_v12, %v8931_v22  ;;  %v8934_v16 = vrot.slane %v8933_v30, 4  ;;  %v19418_v24 = vld [vmem:[#allocation13_spill] sm:$0xff] }
 0x68a   :  { %v9532_v3 = vrot.slane %v9489_v39, 5  ;;  %v8940_v28 = vsel %vm19361_vm1, %v8469_v43, -inf  ;;  %v8948_v63 = vrot.slane %v8947_v51, 4  ;;  %v8954_v45 = vsel %vm19361_vm1, %v8470_v48, -inf }
 0x68b   :  { %v9531_v20 = vsel %vm19364_vm4, %v9530_v61, %v9529_v47  ;;  %v18414_v59 = vsel %vm19360_vm2, %v8932_v0, -inf  ;;  %v8935_v57 = vmax.f32 %v8933_v30, %v8934_v16  ;;  %v8941_v32 = vrot.slane %v8940_v28, 4 }
 0x68c   :  { %v9533_v11 = vsel %vm19363_vm5, %v9532_v3, %v9531_v20  ;;  %v8949_v54 = vmax.f32 %v8947_v51, %v8948_v63  ;;  %v8955_v1 = vrot.slane %v8954_v45, 4  ;;  %v14907_v7 = vadd.f32 %v18158_v10, %v18156_v8 }
 0x68d   :  { %v9551_v60 = vpack.c.b16 %v9533_v11, %v9533_v11  ;;  %v8936_v33 = vrot.slane %v8935_v57, 2  ;;  %v8942_v50 = vmax.f32 %v8940_v28, %v8941_v32  ;;  %v14910_v41 = vadd.f32 %v18165_v25, %v18161_v52  ;;  %v19417_v25 = vld [vmem:[#allocation11_spill] sm:$0xff] }
 0x68e   :  { %v8950_v26 = vrot.slane %v8949_v54, 2  ;;  %v8956_v6 = vmax.f32 %v8954_v45, %v8955_v1  ;;  %v8114_v29 = vadd.f32 %v14907_v7, %v19415_v44  ;;  %v9330_v5 = vsel %vm17941_vm8, 0, %v9329_v37 }
 0x68f   :  { %9568 = vst.msk [vmem:[#allocation3 + $0xa8] sm:$0x3] %vm19361_vm1, %v9551_v60  ;;  %v8937_v8 = vmax.f32 %v8935_v57, %v8936_v33  ;;  %v8943_v10 = vrot.slane %v8942_v50, 2  ;;  %v8117_v15 = vadd.f32 %v14910_v41, %v19416_v40  ;;  %9331 = vst [vmem:[#allocation3 + $0xd0] sm:$0x7] %v9330_v5  ;;  %v9270_v38 = vsel %vm17941_vm8, 0, %v9269_v49 }
 0x690   :  { %v8951_v35 = vmax.f32 %v8949_v54, %v8950_v26  ;;  %v8957_v52 = vrot.slane %v8956_v6, 2  ;;  %v8211_v19 = vadd.f32 %v19417_v25, %v8114_v29  ;;  %9271 = vst [vmem:[#allocation3 + $0x8] sm:$0x7] %v9270_v38  ;;  %v9901_v53 = vrot.slane %v18419_v13, %v15637_v46 }
 0x691   :  { %v8938_v17 = vrot.slane %v8937_v8, 1  ;;  %v8944_v36 = vmax.f32 %v8942_v50, %v8943_v10  ;;  %v8214_v27 = vadd.f32 %v19418_v24, %v8117_v15  ;;  %v9273_v34 = vsel %vm16621_vm12, 0, %v9272_v4 }
 0x692   :  { %v8952_v21 = vrot.slane %v8951_v35, 1  ;;  %v8958_v12 = vmax.f32 %v8956_v6, %v8957_v52  ;;  %v8471_v62 = vcombine.high %v8211_v19, %v8211_v19  ;;  %v8478_v9 = vrot.slane %v8211_v19, %v15637_v46  ;;  %9274 = vst [vmem:[#allocation3 + $0x18] sm:$0x8] %v9273_v34  ;;  %v15330_v34 = vld [vmem:[%s19349_s2 + $0x208] sm:$0xff]  }
 0x693   :  { %v8939_v56 = vmax.f32 %v8937_v8, %v8938_v17  ;;  %v8945_v2 = vrot.slane %v8944_v36, 1  ;;  %v8488_v23 = vcombine.high %v8214_v27, %v8214_v27  ;;  %v18438_v22 = vrot.slane %v8214_v27, %v15637_v46  ;;  %v15329_v27 = vld [vmem:[%s19349_s2 + $0x1a0] sm:$0xff]   ;;  %14957 = vmatprep.subr.bf16.mxu0 %v15330_v34 }
 0x694   :  { %v8953_v43 = vmax.f32 %v8951_v35, %v8952_v21  ;;  %v8959_v39 = vrot.slane %v8958_v12, 1  ;;  %v8485_v48 = vrot.slane %v8471_v62, %v15637_v46  ;;  %v8486_v30 = vcombine.high %v8478_v9, %v8478_v9  ;;  %v15331_v21 = vld [vmem:[%s19349_s2 + $0x160] sm:$0xff]   ;;  %14935 = vmatprep.subr.bf16.mxu1 %v15329_v27 }
 0x695   :  { %v8946_v51 = vmax.f32 %v8944_v36, %v8945_v2  ;;  %v9090_v47 = vsel %vm19360_vm2, %v8939_v56, -inf  ;;  %v8961_v61 = vsel %vm19361_vm1, %v8478_v9, -inf  ;;  %v18444_v0 = vrot.slane %v8488_v23, %v15637_v46  ;;  %v15332_v2 = vld [vmem:[%s19349_s2 + $0x1c8] sm:$0xff]   ;;  %v15333_v23 = vld [vmem:[%s19349_s2 + $0x210] sm:$0xff]   ;;  %14936 = vmatpush3.bf16.msra.mxu1 %v15331_v21 }
 0x696   :  { %v8960_v16 = vmax.f32 %v8958_v12, %v8959_v39  ;;  %v9091_v3 = vmax.f32 %v18393_v55, %v9090_v47  ;;  %v9096_v28 = vsel %vm19360_vm2, %v8953_v43, -inf  ;;  %v8487_v63 = vcombine.high %v8485_v48, %v8485_v48  ;;  %14958 = vmatpush3.bf16.msra.mxu0 %v15332_v2 }
 0x697   :  { %v9093_v45 = vsel %vm19360_vm2, %v8946_v51, -inf  ;;  %v9097_v20 = vmax.f32 %v18401_v18, %v9096_v28  ;;  %v8962_v57 = vrot.slane %v8961_v61, 4  ;;  %v8968_v32 = vsel %vm19361_vm1, %v8486_v30, -inf  ;;  %v15335_v51 = vld [vmem:[%s19349_s2 + $0x1a8] sm:$0xff]   ;;  %v15334_v28 = vld [vmem:[%s19349_s2 + $0x1d0] sm:$0xff]   ;;  %14959 = vmatprep.subr.bf16.mxu0 %v15333_v23 }
 0x698   :  { %v9094_v37 = vmax.f32 %v18398_v14, %v9093_v45  ;;  %v9099_v11 = vsel %vm19360_vm2, %v8960_v16, -inf  ;;  %v9141_v54 = vadd.f32 %v18383_v42, %v9091_v3  ;;  %v8969_v1 = vrot.slane %v8968_v32, 4  ;;  %14937 = vmatprep.subr.bf16.mxu1 %v15335_v51 }
 0x699   :  { %v9100_v7 = vmax.f32 %v18414_v59, %v9099_v11  ;;  %v9143_v55 = vadd.f32 %v18383_v42, %v9097_v20  ;;  %v8963_v49 = vmax.f32 %v8961_v61, %v8962_v57  ;;  %v8975_v60 = vsel %vm19361_vm1, %v8485_v48, -inf }
 0x69a   :  { %v9142_v33 = vadd.f32 %v18383_v42, %v9094_v37  ;;  %v9173_v18 = vmax.f32 %v9141_v54, 0.0  ;;  %v8970_v50 = vmax.f32 %v8968_v32, %v8969_v1  ;;  %v8976_v41 = vrot.slane %v8975_v60, 4  ;;  %v15336_v37 = vld [vmem:[%s19349_s2 + $0x218] sm:$0xff]   ;;  %14960 = vmatpush3.bf16.msra.mxu0 %v15334_v28 }
 0x69b   :  { %v9144_v26 = vadd.f32 %v18383_v42, %v9100_v7  ;;  %v9175_v14 = vmax.f32 %v9143_v55, 0.0  ;;  %v8964_v6 = vrot.slane %v8963_v49, 2  ;;  %v8982_v44 = vsel %vm19361_vm1, %v8487_v63, -inf  ;;  %v15337_v63 = vld [vmem:[%s19349_s2 + $0x168] sm:$0xff]   ;;  %14961 = vmatprep.subr.bf16.mxu0 %v15336_v37 }
 0x69c   :  { %v9174_v29 = vmax.f32 %v9142_v33, 0.0  ;;  %v14727_v5 = vpack.c.bf16 %v9173_v18, %v9173_v18  ;;  %v8971_v4 = vrot.slane %v8970_v50, 2  ;;  %v8977_v59 = vmax.f32 %v8975_v60, %v8976_v41  ;;  %v15311_v55 = vld [vmem:[#allocation3 + $0x8] ss:$20 sps:$4 sm:$0x33]   ;;  %14938 = vmatpush3.bf16.msra.mxu1 %v15337_v63 }
 0x69d   :  { %v9176_v8 = vmax.f32 %v9144_v26, 0.0  ;;  %v14729_v10 = vpack.c.bf16 %v9175_v14, %v9175_v14  ;;  %v8965_v40 = vmax.f32 %v8963_v49, %v8964_v6  ;;  %v8983_v15 = vrot.slane %v8982_v44, 4  ;;  %v9278_v18 = vld [vmem:[#allocation3 + $0x2c] sm:$0x8]  ;;  %v9284_v6 = vld [vmem:[#allocation3 + $0x40] sm:$0x8] }
 0x69e   :  { %v14728_v38 = vpack.c.bf16 %v9174_v29, %v9174_v29  ;;  %v9490_v35 = vunpack.c.l.b16 %v14727_v5  ;;  %v8972_v52 = vmax.f32 %v8970_v50, %v8971_v4  ;;  %v8978_v25 = vrot.slane %v8977_v59, 2 }
 0x69f   :  { %v14730_v19 = vpack.c.bf16 %v9176_v8, %v9176_v8  ;;  %v9492_v17 = vunpack.c.l.b16 %v14729_v10  ;;  %v8966_v36 = vrot.slane %v8965_v40, 1  ;;  %v8984_v24 = vmax.f32 %v8982_v44, %v8983_v15  ;;  %v15338_v44 = vld [vmem:[%s19349_s2 + $0x1d8] sm:$0xff]   ;;  %v15339_v8 = vld [vmem:[%s19349_s2 + $0x220] sm:$0xff]  }
 0x6a0   :  { %v9491_v12 = vunpack.c.l.b16 %v14728_v38  ;;  %v8973_v62 = vrot.slane %v8972_v52, 1  ;;  %v8979_v9 = vmax.f32 %v8977_v59, %v8978_v25  ;;  %v8503_v56 = vcombine.high %v18438_v22, %v18438_v22  ;;  %v9290_v59 = vld [vmem:[#allocation3 + $0x54] sm:$0x8]  ;;  %14962 = vmatpush3.bf16.msra.mxu0 %v15338_v44 }
 0x6a1   :  { %v9493_v43 = vunpack.c.l.b16 %v14730_v19  ;;  %v9536_v39 = vrot.slane %v9492_v17, 6  ;;  %v8967_v48 = vmax.f32 %v8965_v40, %v8966_v36  ;;  %v8985_v30 = vrot.slane %v8984_v24, 2  ;;  %14963 = vmatprep.subr.bf16.mxu0 %v15339_v8 }
 0x6a2   :  { %v9534_v47 = vrot.slane %v9491_v12, 7  ;;  %v8974_v61 = vmax.f32 %v8972_v52, %v8973_v62  ;;  %v8980_v16 = vrot.slane %v8979_v9, 1  ;;  %v8504_v3 = vcombine.high %v18444_v0, %v18444_v0  ;;  %v14282_v52 = vld.sshfl [vmem:[#allocation3 + $0x1c] sm:$0x3 pattern:$0x76325410] }
 0x6a3   :  { %v9538_v45 = vrot.slane %v9493_v43, 5  ;;  %v8986_v20 = vmax.f32 %v8984_v24, %v8985_v30  ;;  %v18489_v57 = vsel %vm19360_vm2, %v8967_v48, -inf  ;;  %v8989_v32 = vsel %vm19361_vm1, %v18438_v22, -inf  ;;  %v15340_v62 = vld [vmem:[%s19349_s2 + $0x1e0] sm:$0xff]  }
 0x6a4   :  { %v9535_v11 = vsel %vm5353_vm3, %v9534_v47, %v9490_v35  ;;  %v8981_v54 = vmax.f32 %v8979_v9, %v8980_v16  ;;  %v18498_v1 = vsel %vm19360_vm2, %v8974_v61, -inf  ;;  %v8990_v7 = vrot.slane %v8989_v32, 4  ;;  %v14281_v35 = vld.sshfl [vmem:[#allocation3 + $0x18] sm:$0x20 pattern:$0x76325410]  ;;  %14964 = vmatpush3.bf16.msra.mxu0 %v15340_v62 }
 0x6a5   :  { %v9537_v49 = vsel %vm19364_vm4, %v9536_v39, %v9535_v11  ;;  %v8987_v60 = vrot.slane %v8986_v20, 1  ;;  %v8996_v33 = vsel %vm19361_vm1, %v8503_v56, -inf  ;;  %v9003_v22 = vsel %vm19361_vm1, %v18444_v0, -inf }
 0x6a6   :  { %v9539_v50 = vsel %vm19363_vm5, %v9538_v45, %v9537_v49  ;;  %v18506_v41 = vsel %vm19360_vm2, %v8981_v54, -inf  ;;  %v8991_v26 = vmax.f32 %v8989_v32, %v8990_v7  ;;  %v8997_v14 = vrot.slane %v8996_v33, 4  ;;  %v14284_v12 = vld.sshfl [vmem:[#allocation3 + $0x30] sm:$0x3 pattern:$0x76325410] }
 0x6a7   :  { %v9552_v29 = vpack.c.b16 %v9539_v50, %v9539_v50  ;;  %v8988_v5 = vmax.f32 %v8986_v20, %v8987_v60  ;;  %v9004_v4 = vrot.slane %v9003_v22, 4  ;;  %v9010_v0 = vsel %vm19361_vm1, %v8504_v3, -inf  ;;  %v14286_v16 = vld.sshfl [vmem:[#allocation3 + $0x44] sm:$0x3 pattern:$0x76325410] }
 0x6a8   :  { %v8992_v10 = vrot.slane %v8991_v26, 2  ;;  %v8998_v40 = vmax.f32 %v8996_v33, %v8997_v14  ;;  %v9011_v15 = vrot.slane %v9010_v0, 4  ;;  %v9894_v38 = vrot.slane %v15311_v55, %v15637_v46 }
 0x6a9   :  { %9569 = vst.msk [vmem:[#allocation3 + $0xbc] sm:$0x3] %vm19361_vm1, %v9552_v29  ;;  %v18518_v25 = vsel %vm19360_vm2, %v8988_v5, -inf  ;;  %v9005_v19 = vmax.f32 %v9003_v22, %v9004_v4  ;;  %v9279_v17 = vsel %vm16621_vm12, 0, %v9278_v18  ;;  %v9285_v36 = vsel %vm16621_vm12, 0, %v9284_v6 }
 0x6aa   :  { %v8993_v24 = vmax.f32 %v8991_v26, %v8992_v10  ;;  %v8999_v27 = vrot.slane %v8998_v40, 2  ;;  %v9012_v34 = vmax.f32 %v9010_v0, %v9011_v15  ;;  %v9902_v21 = vcombine.low %v9894_v38, %v9901_v53  ;;  %9280 = vst [vmem:[#allocation3 + $0x2c] sm:$0x8] %v9279_v17  ;;  %9286 = vst [vmem:[#allocation3 + $0x40] sm:$0x8] %v9285_v36 }
 0x6ab   :  { %v9006_v9 = vrot.slane %v9005_v19, 2  ;;  %v9291_v56 = vsel %vm16621_vm12, 0, %v9290_v59  ;;  %v10204_v13 = vcombine.high %v14281_v35, %v14281_v35  ;;  %v10323_v39 = vshrl.u32 %v14282_v52, 16 }
 0x6ac   :  { %v8994_v2 = vrot.slane %v8993_v24, 1  ;;  %v9000_v23 = vmax.f32 %v8998_v40, %v8999_v27  ;;  %v9013_v43 = vrot.slane %v9012_v34, 2  ;;  %9920 = vrot.lane.b32.xlu1 %v9902_v21, %s15442_s5  ;;  %9292 = vst [vmem:[#allocation3 + $0x54] sm:$0x8] %v9291_v56  ;;  %v10326_v48 = vshll.u32 %v14282_v52, 16 }
 0x6ad   :  { %v9007_v53 = vmax.f32 %v9005_v19, %v9006_v9  ;;  %v10336_v30 = vshrl.u32 %v14284_v12, 16  ;;  %v10318_v3 = vshrl.u32 %v10204_v13, 16  ;;  %v10325_v63 = vrot.slane %v10323_v39, 7  ;;  %v15341_v39 = vld [vmem:[%s19349_s2 + $0x1b0] sm:$0xff]  }
 0x6ae   :  { %v8995_v51 = vmax.f32 %v8993_v24, %v8994_v2  ;;  %v9001_v47 = vrot.slane %v9000_v23, 1  ;;  %v9014_v61 = vmax.f32 %v9012_v34, %v9013_v43  ;;  %v10339_v20 = vshll.u32 %v14284_v12, 16  ;;  %v14288_v27 = vld.sshfl [vmem:[#allocation3 + $0x58] sm:$0x3 pattern:$0x76325410]  ;;  %14939 = vmatprep.subr.bf16.mxu1 %v15341_v39 }
 0x6af   :  { %v9008_v28 = vrot.slane %v9007_v53, 1  ;;  %v10338_v45 = vrot.slane %v10336_v30, 7  ;;  %v14297_v54 = vrot.slane %v10318_v3, 9  ;;  %v10328_v33 = vor.u32 %v10326_v48, %v10325_v63  ;;  %v15342_v48 = vld [vmem:[%s19349_s2 + $0x228] sm:$0xff]  }
 0x6b0   :  { %v9002_v32 = vmax.f32 %v9000_v23, %v9001_v47  ;;  %v9015_v37 = vrot.slane %v9014_v61, 1  ;;  %v9102_v11 = vsel %vm19360_vm2, %v8995_v51, -inf  ;;  %v10349_v6 = vshrl.u32 %v14286_v16, 16  ;;  %14965 = vmatprep.subr.bf16.mxu0 %v15342_v48  ;;  %v18624_v48 = vld [vmem:[#allocation3 + $0xa8] ss:$20 sps:$4 sm:$0x33]  }
 0x6b1   :  { %v9009_v7 = vmax.f32 %v9007_v53, %v9008_v28  ;;  %v9103_v55 = vmax.f32 %v18489_v57, %v9102_v11  ;;  %v14283_v60 = vld.sshfl [vmem:[#allocation3 + $0x2c] sm:$0x20 pattern:$0x76325410]  ;;  %v10341_v22 = vor.u32 %v10339_v20, %v10338_v45  ;;  %v18551_v10 = vsel %vm18539_vm7, %v14297_v54, %v10328_v33 }
 0x6b2   :  { %v9016_v18 = vmax.f32 %v9014_v61, %v9015_v37  ;;  %v9105_v50 = vsel %vm19360_vm2, %v9002_v32, -inf  ;;  %v14285_v26 = vld.sshfl [vmem:[#allocation3 + $0x40] sm:$0x20 pattern:$0x76325410]  ;;  %v10219_v14 = vcombine.high %v14283_v60, %v14283_v60  ;;  %v10351_v19 = vrot.slane %v10349_v6, 7 }
 0x6b3   :  { %v9106_v44 = vmax.f32 %v18498_v1, %v9105_v50  ;;  %v9108_v29 = vsel %vm19360_vm2, %v9009_v7, -inf  ;;  %v9145_v57 = vadd.f32 %v18383_v42, %v9103_v55  ;;  %v14287_v5 = vld.sshfl [vmem:[#allocation3 + $0x54] sm:$0x20 pattern:$0x76325410]  ;;  %v10234_v4 = vcombine.high %v14285_v26, %v14285_v26 }
 0x6b4   :  { %v9109_v0 = vmax.f32 %v18506_v41, %v9108_v29  ;;  %v9111_v59 = vsel %vm19360_vm2, %v9016_v18, -inf  ;;  %v10249_v8 = vcombine.high %v14287_v5, %v14287_v5  ;;  %v10331_v38 = vshrl.u32 %v10219_v14, 16  ;;  %v14306_v3 = vld.sshfl [vmem:[#allocation3 + $0x30] sm:$0x13 pattern:$0x76325410] }
 0x6b5   :  { %v9112_v40 = vmax.f32 %v18518_v25, %v9111_v59  ;;  %v9146_v15 = vadd.f32 %v18383_v42, %v9106_v44  ;;  %v9177_v1 = vmax.f32 %v9145_v57, 0.0  ;;  %v10344_v52 = vshrl.u32 %v10234_v4, 16  ;;  %v18573_v45 = vld.sshfl [vmem:[#allocation3 + $0x44] sm:$0x13 pattern:$0x76325410] }
 0x6b6   :  { %v9147_v35 = vadd.f32 %v18383_v42, %v9109_v0  ;;  %v10352_v17 = vshll.u32 %v14286_v16, 16  ;;  %v14298_v34 = vrot.slane %v10331_v38, 9  ;;  %v10357_v9 = vshrl.u32 %v10249_v8, 16 }
 0x6b7   :  { %v9148_v41 = vadd.f32 %v18383_v42, %v9112_v40  ;;  %v9178_v36 = vmax.f32 %v9146_v15, 0.0  ;;  %v14731_v24 = vpack.c.bf16 %v9177_v1, %v9177_v1  ;;  %v14299_v12 = vrot.slane %v10344_v52, 9  ;;  %v14305_v16 = vld.sshfl [vmem:[#allocation3 + $0x1c] sm:$0x13 pattern:$0x76325410] }
 0x6b8   :  { %v9179_v21 = vmax.f32 %v9147_v35, 0.0  ;;  %v10354_v62 = vor.u32 %v10352_v17, %v10351_v19  ;;  %v18559_v23 = vsel %vm18539_vm7, %v14298_v34, %v10341_v22  ;;  %v14300_v42 = vrot.slane %v10357_v9, 9  ;;  %v18575_v20 = vld.sshfl [vmem:[#allocation3 + $0x58] sm:$0x13 pattern:$0x76325410] }
 0x6b9   :  { %v9180_v25 = vmax.f32 %v9148_v41, 0.0  ;;  %v14732_v56 = vpack.c.bf16 %v9178_v36, %v9178_v36  ;;  %v9494_v2 = vunpack.c.l.b16 %v14731_v24  ;;  %v10362_v53 = vshrl.u32 %v14288_v27, 16  ;;  %v9299_v17 = vld [vmem:[#allocation3 + $0x6c] sm:$0x7] }
 0x6ba   :  { %v14733_v43 = vpack.c.bf16 %v9179_v21, %v9179_v21  ;;  %v18563_v13 = vsel %vm18539_vm7, %v14299_v12, %v10354_v62  ;;  %v10365_v47 = vshll.u32 %v14288_v27, 16  ;;  %v10421_v61 = vcombine.low %v18551_v10, %v18559_v23  ;;  %v18611_v34 = vld [vmem:[#allocation3 + $0x30] ss:$20 sps:$4 sm:$0x33]   ;;  %v9305_v21 = vld [vmem:[#allocation3 + $0x80] sm:$0x7] }
 0x6bb   :  { %v14734_v30 = vpack.c.bf16 %v9180_v25, %v9180_v25  ;;  %v9495_v51 = vunpack.c.l.b16 %v14732_v56  ;;  %v10364_v63 = vrot.slane %v10362_v53, 7  ;;  %vm10008_vm2 = vsmask.f32 1280  ;;  %v9308_v56 = vld [vmem:[#allocation3 + $0x90] sm:$0x8] }
 0x6bc   :  { %v9496_v28 = vunpack.c.l.b16 %v14733_v43  ;;  %v10429_v11 = vrot.slane %v10421_v61, %v15637_v46  ;;  %vm10009_vm1 = vsmask.f32 3336  ;;  %vm10011_vm5 = vsmask.f32 5392 }
 0x6bd   :  { %v9497_v32 = vunpack.c.l.b16 %v14734_v30  ;;  %v9540_v37 = vrot.slane %v9495_v51, 7  ;;  %v10367_v7 = vor.u32 %v10365_v47, %v10364_v63  ;;  %vm10013_vm4 = vsmask.f32 7448  ;;  %vm10010_vm14 = vmor %vm10008_vm2, %vm10009_vm1  ;;  %v9314_v30 = vld [vmem:[#allocation3 + $0xa4] sm:$0x8] }
 0x6be   :  { %v9542_v54 = vrot.slane %v9496_v28, 6  ;;  %vm19425_vm12 = vcmask 1042434   ;;  %v10540_v18 = vcombine.high %v14305_v16, %v14305_v16  ;;  %v10548_v50 = vcombine.high %v14306_v3, %v14306_v3  ;;  %vm18606_vm13 = vmor %vm10010_vm14, %vm10011_vm5  ;;  %v18628_v28 = vld.sshfl [vmem:[#allocation3 + $0x94] sm:$0x3 pattern:$0x76325410] }
 0x6bf   :  { %v9541_v55 = vsel %vm5353_vm3, %v9540_v37, %v9494_v2  ;;  %v9544_v60 = vrot.slane %v9497_v32, 5  ;;  %v18585_v22 = vsel %vm18539_vm7, %v14300_v42, %v10367_v7  ;;  %v10556_v6 = vcombine.high %v18573_v45, %v18573_v45  ;;  %vm18618_vm1 = vmor %vm18606_vm13, %vm10013_vm4  ;;  %v15354_v2 = vld [vmem:[%s19349_s2 + $0x248] sm:$0xff]  }
 0x6c0   :  { %v9543_v33 = vsel %vm19425_vm12, %v9542_v54, %v9541_v55  ;;  %v10422_v14 = vcombine.low %v18563_v13, %v18585_v22  ;;  %v10564_v44 = vcombine.high %v18575_v20, %v18575_v20  ;;  %vm18597_vm12 = vmor %vm12312_vm6, %vm19428_vm0  ;;  %v10598_v5 = vshrl.u32 %v14305_v16, 16  ;;  %v15346_v54 = vld [vmem:[%s19349_s2 + $0x1e8] sm:$0xff]  }
 0x6c1   :  { %v9545_v26 = vsel %vm19427_vm9, %v9544_v60, %v9543_v33  ;;  %v10601_v4 = vshll.u32 %v14305_v16, 16  ;;  %v10607_v0 = vshll.u32 %v10540_v18, 16  ;;  %v10612_v8 = vshrl.u32 %v14306_v3, 16  ;;  %v9326_v18 = vld [vmem:[#allocation3 + $0xcc] sm:$0x8]  ;;  %14966 = vmatpush3.bf16.msra.mxu0 %v15346_v54  ;;  %v18711_v54 = vld [vmem:[%s19349_s2 + $0x240] sm:$0xff]  }
 0x6c2   :  { %v9553_v29 = vpack.c.b16 %v9545_v26, %v9545_v26  ;;  %v10436_v59 = vrot.slane %v10422_v14, %v15637_v46  ;;  %v10615_v40 = vshll.u32 %v14306_v3, 16  ;;  %v10621_v15 = vshll.u32 %v10548_v50, 16  ;;  %v9320_v3 = vld [vmem:[#allocation3 + $0xb8] sm:$0x8]  ;;  %v15347_v26 = vld [vmem:[%s19349_s2 + $0x1b8] sm:$0xff]   ;;  %v15348_v14 = vld [vmem:[%s19349_s2 + $0x230] sm:$0xff]  }
 0x6c3   :  { %v10600_v38 = vrot.slane %v10598_v5, 6  ;;  %v10603_v35 = vrot.slane %v10601_v4, 7  ;;  %v10609_v52 = vrot.slane %v10607_v0, 7  ;;  %v10626_v19 = vshrl.u32 %v18573_v45, 16  ;;  %14967 = vmatprep.subr.bf16.mxu0 %v15348_v14 }
 0x6c4   :  { %9570 = vst.msk [vmem:[#allocation3 + $0xd0] sm:$0x3] %vm19431_vm11, %v9553_v29  ;;  %v10437_v41 = vcombine.low %v10429_v11, %v10436_v59  ;;  %v10614_v36 = vrot.slane %v10612_v8, 6  ;;  %v10617_v24 = vrot.slane %v10615_v40, 7  ;;  %v10623_v27 = vrot.slane %v10621_v15, 7  ;;  %v15349_v59 = vld [vmem:[%s19349_s2 + $0x178] sm:$0xff]  }
 0x6c5   :  { %v10604_v12 = vor.u32 %v10603_v35, %v10600_v38  ;;  %v10628_v62 = vrot.slane %v10626_v19, 6  ;;  %v10629_v9 = vshll.u32 %v18573_v45, 16  ;;  %v10635_v25 = vshll.u32 %v10556_v6, 16  ;;  %v15350_v8 = vld [vmem:[%s19349_s2 + $0x1f0] sm:$0xff]  }
 0x6c6   :  { %10455 = vrot.lane.b32.xlu0 %v10437_v41, %s15442_s5  ;;  %v10618_v43 = vor.u32 %v10617_v24, %v10614_v36  ;;  %v10640_v42 = vshrl.u32 %v18575_v20, 16  ;;  %v10643_v53 = vshll.u32 %v18575_v20, 16  ;;  %v10649_v39 = vshll.u32 %v10564_v44, 16  ;;  %v15345_v20 = vld [vmem:[%s19349_s2 + $0x170] sm:$0xff]   ;;  %14968 = vmatpush3.bf16.msra.mxu0 %v15350_v8 }
 0x6c7   :  { %v10605_v51 = vrot.slane %v10604_v12, 2  ;;  %v10631_v47 = vrot.slane %v10629_v9, 7  ;;  %v10637_v61 = vrot.slane %v10635_v25, 7  ;;  %v9300_v16 = vsel %vm17941_vm8, 0, %v9299_v17  ;;  %14940 = vmatpush3.bf16.msra.mxu1 %v15345_v20 }
 0x6c8   :  { %v10619_v63 = vrot.slane %v10618_v43, 2  ;;  %v10642_v45 = vrot.slane %v10640_v42, 6  ;;  %v10645_v32 = vrot.slane %v10643_v53, 7  ;;  %v10651_v37 = vrot.slane %v10649_v39, 7  ;;  %9301 = vst [vmem:[#allocation3 + $0x6c] sm:$0x7] %v9300_v16  ;;  %14941 = vmatprep.subr.bf16.mxu1 %v15347_v26 }
 0x6c9   :  { %v18630_v11 = vld.sshfl [vmem:[#allocation3 + $0xa8] sm:$0x3 pattern:$0x76325410]  ;;  %v18640_v7 = vsel %vm18618_vm1, %v10605_v51, %v10609_v52  ;;  %v10632_v55 = vor.u32 %v10631_v47, %v10628_v62  ;;  %v11070_v60 = vrot.slane %v18611_v34, %v15637_v46  ;;  %v9306_v33 = vsel %vm17941_vm8, 0, %v9305_v21 }
 0x6ca   :  { %v14294_v50 = vld.sshfl [vmem:[#allocation3 + $0xbc] sm:$0x3 pattern:$0x76325410]  ;;  %v18654_v6 = vsel %vm18618_vm1, %v10619_v63, %v10623_v27  ;;  %v10646_v44 = vor.u32 %v10645_v32, %v10642_v45  ;;  %9307 = vst [vmem:[#allocation3 + $0x80] sm:$0x7] %v9306_v33  ;;  %v9918_v29 = vrot.slane %v18624_v48, %v15637_v46  ;;  %vm19436_vm4 = vnez %v19419_v58 }
 0x6cb   :  { %v9309_v5 = vsel %vm19436_vm4, 0, %v9308_v56  ;;  %v18660_v4 = vld.sshfl [vmem:[#allocation3 + $0x94] sm:$0x13 pattern:$0x76325410]  ;;  %v10633_v40 = vrot.slane %v10632_v55, 2  ;;  %v10709_v15 = vcombine.low %v18640_v7, %v18654_v6  ;;  %14942 = vmatpush3.bf16.msra.mxu1 %v15349_v59 }
 0x6cc   :  { %v18662_v0 = vld.sshfl [vmem:[#allocation3 + $0xa8] sm:$0x13 pattern:$0x76325410]  ;;  %9310 = vst [vmem:[#allocation3 + $0x90] sm:$0x8] %v9309_v5  ;;  %v10572_v47 = vcombine.high %v18660_v4, %v18660_v4  ;;  %15158 = vmatprep.subr.bf16.mxu1 %v18711_v54 }
 0x6cd   :  { %v9315_v1 = vsel %vm19436_vm4, 0, %v9314_v30  ;;  %v9321_v38 = vsel %vm19436_vm4, 0, %v9320_v3  ;;  %v14296_v35 = vld.sshfl [vmem:[#allocation3 + $0xd0] sm:$0x3 pattern:$0x76325410]  ;;  %v18687_v27 = vsel %vm18618_vm1, %v10633_v40, %v10637_v61  ;;  %v10717_v21 = vrot.slane %v10709_v15, %v15637_v46 }
 0x6ce   :  { %v15351_v52 = vld [vmem:[%s19349_s2 + $0x238] sm:$0xff]   ;;  %v10647_v19 = vrot.slane %v10646_v44, 2  ;;  %9316 = vst [vmem:[#allocation3 + $0xa4] sm:$0x8] %v9315_v1  ;;  %9322 = vst [vmem:[#allocation3 + $0xb8] sm:$0x8] %v9321_v38  ;;  %v10580_v61 = vcombine.high %v18662_v0, %v18662_v0 }
 0x6cf   :  { %v9327_v17 = vsel %vm19436_vm4, 0, %v9326_v18  ;;  %v10375_v41 = vshrl.u32 %v18628_v28, 16  ;;  %v10378_v36 = vshll.u32 %v18628_v28, 16  ;;  %v10388_v12 = vshrl.u32 %v18630_v11, 16  ;;  %v15352_v53 = vld [vmem:[%s19349_s2 + $0x1f8] sm:$0xff]   ;;  %14969 = vmatprep.subr.bf16.mxu0 %v15351_v52 }
 0x6d0   :  { %v18683_v24 = vld.sshfl [vmem:[#allocation3 + $0xbc] sm:$0x13 pattern:$0x76325410]  ;;  %9328 = vst [vmem:[#allocation3 + $0xcc] sm:$0x8] %v9327_v17  ;;  %v10652_v25 = vsel %vm18618_vm1, %v10647_v19, %v10651_v37  ;;  %14970 = vmatpush3.bf16.msra.mxu0 %v15352_v53 }
 0x6d1   :  { %v10391_v62 = vshll.u32 %v18630_v11, 16  ;;  %v18692_v9 = vld.sshfl [vmem:[#allocation3 + $0xd0] sm:$0x13 pattern:$0x76325410]  ;;  %v10377_v56 = vrot.slane %v10375_v41, 7  ;;  %v10710_v39 = vcombine.low %v18687_v27, %v10652_v25  ;;  %v10588_v20 = vcombine.high %v18683_v24, %v18683_v24 }
 0x6d2   :  { %v10401_v43 = vshrl.u32 %v14294_v50, 16  ;;  %v10404_v42 = vshll.u32 %v14294_v50, 16  ;;  %v15314_v30 = vld [vmem:[#allocation3 + $0x58] ss:$20 sps:$4 sm:$0x33]   ;;  %v10390_v51 = vrot.slane %v10388_v12, 7  ;;  %v10596_v50 = vcombine.high %v18692_v9, %v18692_v9 }
 0x6d3   :  { %v10380_v16 = vor.u32 %v10378_v36, %v10377_v56  ;;  %v10414_v28 = vshrl.u32 %v14296_v35, 16  ;;  %v10417_v63 = vshll.u32 %v14296_v35, 16  ;;  %v10724_v45 = vrot.slane %v10710_v39, %v15637_v46  ;;  %v15315_v37 = vld [vmem:[#allocation3 + $0x80] ss:$20 sps:$4 sm:$0x33]   ;;  %v15399_v58 = vld [vmem:[%s19349_s2 + $0x378] sm:$0xff]  }
 0x6d4   :  { %v10403_v3 = vrot.slane %v10401_v43, 7  ;;  %v11077_v32 = vrot.slane %v15314_v30, %v15637_v46  ;;  %v10393_v11 = vor.u32 %v10391_v62, %v10390_v51  ;;  %v14289_v55 = vld.sshfl [vmem:[#allocation3 + $0x90] sm:$0x20 pattern:$0x76325410]  ;;  %v10654_v26 = vshrl.u32 %v18660_v4, 16 }
 0x6d5   :  { %v10416_v18 = vrot.slane %v10414_v28, 7  ;;  %v10725_v14 = vcombine.low %v10717_v21, %v10724_v45  ;;  %v9911_v5 = vrot.slane %v15315_v37, %v15637_v46  ;;  %v14291_v59 = vld.sshfl [vmem:[#allocation3 + $0xa4] sm:$0x20 pattern:$0x76325410]  ;;  %v10264_v8 = vcombine.high %v14289_v55, %v14289_v55 }
 0x6d6   :  { %v10406_v33 = vor.u32 %v10404_v42, %v10403_v3  ;;  %v11078_v44 = vcombine.low %v11070_v60, %v11077_v32  ;;  %v14293_v40 = vld.sshfl [vmem:[#allocation3 + $0xb8] sm:$0x20 pattern:$0x76325410]  ;;  %v10279_v15 = vcombine.high %v14291_v59, %v14291_v59  ;;  %v10656_v38 = vrot.slane %v10654_v26, 6 }
 0x6d7   :  { %v10419_v1 = vor.u32 %v10417_v63, %v10416_v18  ;;  %v10657_v35 = vshll.u32 %v18660_v4, 16  ;;  %10743 = vrot.lane.b32.xlu1 %v10725_v14, %s15442_s5  ;;  %v9919_v34 = vcombine.low %v9911_v5, %v9918_v29  ;;  %v14295_v60 = vld.sshfl [vmem:[#allocation3 + $0xcc] sm:$0x20 pattern:$0x76325410]  ;;  %v10294_v52 = vcombine.high %v14293_v40, %v14293_v40 }
 0x6d8   :  { %11096 = vrot.lane.b32.xlu0 %v11078_v44, %s15442_s5  ;;  %v10370_v19 = vshrl.u32 %v10264_v8, 16  ;;  %v10663_v17 = vshll.u32 %v10572_v47, 16  ;;  %v10309_v41 = vcombine.high %v14295_v60, %v14295_v60  ;;  %v10383_v36 = vshrl.u32 %v10279_v15, 16  ;;  %v9335_v18 = vld [vmem:[#allocation3 + $0xe4] sm:$0x7] }
 0x6d9   :  { %v10659_v21 = vrot.slane %v10657_v35, 7  ;;  %v10668_v12 = vshrl.u32 %v18662_v0, 16  ;;  %v10396_v25 = vshrl.u32 %v10294_v52, 16  ;;  %v10671_v56 = vshll.u32 %v18662_v0, 16 }
 0x6da   :  { %v14301_v62 = vrot.slane %v10370_v19, 9  ;;  %v10665_v4 = vrot.slane %v10663_v17, 7  ;;  %v14302_v43 = vrot.slane %v10383_v36, 9  ;;  %v10409_v42 = vshrl.u32 %v10309_v41, 16 }
 0x6db   :  { %v10660_v53 = vor.u32 %v10659_v21, %v10656_v38  ;;  %v10670_v39 = vrot.slane %v10668_v12, 6  ;;  %9922 = vrot.lane.b32.xlu1 %v9919_v34, %s15442_s5  ;;  %v14303_v29 = vrot.slane %v10396_v25, 9  ;;  %v10673_v30 = vrot.slane %v10671_v56, 7  ;;  %v18754_v5 = vld [vmem:[#allocation3 + $0xa8] ss:$20 sps:$4 sm:$0x33]  }
 0x6dc   :  { %v18732_v48 = vsel %vm18539_vm7, %v14301_v62, %v10380_v16  ;;  %v10677_v51 = vshll.u32 %v10580_v61, 16  ;;  %v18736_v47 = vsel %vm18539_vm7, %v14302_v43, %v10393_v11  ;;  %v14304_v3 = vrot.slane %v10409_v42, 9  ;;  %v14250_v59 = vld.sshfl [vmem:[#allocation3 + $0x8] sm:$0x3 pattern:$0x76325410] }
 0x6dd   :  { %v10661_v28 = vrot.slane %v10660_v53, 2  ;;  %v10682_v0 = vshrl.u32 %v18683_v24, 16  ;;  %v18741_v63 = vsel %vm18539_vm7, %v14303_v29, %v10406_v33  ;;  %v10438_v45 = vcombine.low %v18732_v48, %v18736_v47  ;;  %v9263_v38 = vld [vmem:[#allocation3 + $0x4] sm:$0x8] }
 0x6de   :  { %v10674_v16 = vor.u32 %v10673_v30, %v10670_v39  ;;  %v10679_v32 = vrot.slane %v10677_v51, 7  ;;  %v10420_v61 = vsel %vm18539_vm7, %v14304_v3, %v10419_v1  ;;  %v10685_v55 = vshll.u32 %v18683_v24, 16  ;;  %v14273_v60 = vld.sshfl [vmem:[#allocation3 + $0x8] sm:$0x13 pattern:$0x76325410] }
 0x6df   :  { %v18749_v37 = vsel %vm18618_vm1, %v10661_v28, %v10665_v4  ;;  %v10684_v11 = vrot.slane %v10682_v0, 6  ;;  %v10439_v26 = vcombine.low %v18741_v63, %v10420_v61  ;;  %v10446_v33 = vrot.slane %v10438_v45, %v15637_v46  ;;  %v15343_v4 = vld [vmem:[#allocation3 + $0x1c] ss:$20 sps:$4 sm:$0x33]   ;;  %v9296_v28 = vld [vmem:[#allocation3 + $0x68] sm:$0x8] }
 0x6e0   :  { %v10675_v14 = vrot.slane %v10674_v16, 2  ;;  %v10691_v44 = vshll.u32 %v10588_v20, 16  ;;  %v10687_v8 = vrot.slane %v10685_v55, 7  ;;  %v10696_v40 = vshrl.u32 %v18692_v9, 16 }
 0x6e1   :  { %v10699_v15 = vshll.u32 %v18692_v9, 16  ;;  %v10705_v1 = vshll.u32 %v10596_v50, 16  ;;  %v10453_v35 = vrot.slane %v10439_v26, %v15637_v46  ;;  %v9336_v20 = vsel %vm17941_vm8, 0, %v9335_v18  ;;  %v15344_v39 = vld [vmem:[#allocation3 + $0x44] ss:$20 sps:$4 sm:$0x33]  }
 0x6e2   :  { %v18761_v24 = vsel %vm18618_vm1, %v10675_v14, %v10679_v32  ;;  %v10693_v34 = vrot.slane %v10691_v44, 7  ;;  %v10688_v52 = vor.u32 %v10687_v8, %v10684_v11  ;;  %v10698_v19 = vrot.slane %v10696_v40, 6  ;;  %9337 = vst [vmem:[#allocation3 + $0xe4] sm:$0x7] %v9336_v20 }
 0x6e3   :  { %v10701_v17 = vrot.slane %v10699_v15, 7  ;;  %v10707_v41 = vrot.slane %v10705_v1, 7  ;;  %v10454_v36 = vcombine.low %v10446_v33, %v10453_v35  ;;  %v10726_v9 = vcombine.low %v18749_v37, %v18761_v24  ;;  %v14258_v26 = vld.sshfl [vmem:[#allocation3 + $0x80] sm:$0x3 pattern:$0x76325410] }
 0x6e4   :  { %v11087_v50 = vrot.slane %v18754_v5, %v15637_v46  ;;  %v9264_v21 = vsel %vm19436_vm4, 0, %v9263_v38  ;;  %v10689_v12 = vrot.slane %v10688_v52, 2  ;;  %v9734_v31 = vshrl.u32 %v14250_v59, 16 }
 0x6e5   :  { %v10702_v62 = vor.u32 %v10701_v17, %v10698_v19  ;;  %9265 = vst [vmem:[#allocation3 + $0x4] sm:$0x8] %v9264_v21  ;;  %v9737_v25 = vshll.u32 %v14250_v59, 16  ;;  %10457 = vrot.lane.b32.xlu0 %v10454_v36, %s15442_s5  ;;  %v10734_v56 = vrot.slane %v10726_v9, %v15637_v46  ;;  %v9833_v43 = vcombine.low %v18559_v23, %v18563_v13  ;;  %v9302_v13 = vld [vmem:[#allocation3 + $0x7c] sm:$0x8] }
 0x6e6   :  { %v9951_v42 = vcombine.high %v14273_v60, %v14273_v60  ;;  %v10016_v53 = vshrl.u32 %v14273_v60, 16  ;;  %v18777_v29 = vsel %vm18618_vm1, %v10689_v12, %v10693_v34  ;;  %v9736_v51 = vrot.slane %v9734_v31, 7  ;;  %v14320_v23 = vld.sshfl [vmem:[#allocation3 + $0x6c] sm:$0x3 pattern:$0x76325410] }
 0x6e7   :  { %v10703_v30 = vrot.slane %v10702_v62, 2  ;;  %v10019_v3 = vshll.u32 %v14273_v60, 16  ;;  %v18780_v0 = vrot.slane %v9833_v43, %v15637_v46  ;;  %v10128_v32 = vcombine.low %v18654_v6, %v18687_v27  ;;  %v14277_v36 = vld.sshfl [vmem:[#allocation3 + $0x80] sm:$0x13 pattern:$0x76325410] }
 0x6e8   :  { %v10018_v45 = vrot.slane %v10016_v53, 6  ;;  %v10025_v16 = vshll.u32 %v9951_v42, 16  ;;  %v9739_v11 = vor.u32 %v9737_v25, %v9736_v51  ;;  %v10487_v18 = vrot.slane %v15343_v4, %v15637_v46  ;;  %v9332_v43 = vld [vmem:[#allocation3 + $0xe0] sm:$0x8] }
 0x6e9   :  { %v10708_v61 = vsel %vm18618_vm1, %v10703_v30, %v10707_v41  ;;  %v10021_v55 = vrot.slane %v10019_v3, 7  ;;  %v15318_v14 = vld [vmem:[#allocation3 + $0xd0] ss:$20 sps:$4 sm:$0x33]   ;;  %v10142_v5 = vrot.slane %v10128_v32, %v15637_v46  ;;  %v10494_v59 = vrot.slane %v15344_v39, %v15637_v46 }
 0x6ea   :  { %v10727_v33 = vcombine.low %v18777_v29, %v10708_v61  ;;  %v10027_v44 = vrot.slane %v10025_v16, 7  ;;  %v9297_v6 = vsel %vm19436_vm4, 0, %v9296_v28  ;;  %v10949_v27 = vshrl.u32 %v14320_v23, 16  ;;  %v15358_v51 = vld [vmem:[#allocation3 + $0xbc] ss:$20 sps:$4 sm:$0x33]  }
 0x6eb   :  { %v10022_v8 = vor.u32 %v10021_v55, %v10018_v45  ;;  %v10952_v40 = vshll.u32 %v14320_v23, 16  ;;  %v11094_v1 = vrot.slane %v15318_v14, %v15637_v46  ;;  %v10495_v35 = vcombine.low %v10487_v18, %v10494_v59  ;;  %9298 = vst [vmem:[#allocation3 + $0x68] sm:$0x8] %v9297_v6 }
 0x6ec   :  { %v10741_v15 = vrot.slane %v10727_v33, %v15637_v46  ;;  %v14249_v38 = vld.sshfl [vmem:[#allocation3 + $0x4] sm:$0x20 pattern:$0x76325410]  ;;  %v10951_v60 = vrot.slane %v10949_v27, 7  ;;  %v9303_v52 = vsel %vm19436_vm4, 0, %v9302_v13  ;;  %v9983_v4 = vcombine.high %v14277_v36, %v14277_v36 }
 0x6ed   :  { %v9610_v34 = vcombine.high %v14249_v38, %v14249_v38  ;;  %v10023_v20 = vrot.slane %v10022_v8, 2  ;;  %v11095_v17 = vcombine.low %v11087_v50, %v11094_v1  ;;  %vm19437_vm5 = vcmask 523264   ;;  %9304 = vst [vmem:[#allocation3 + $0x7c] sm:$0x8] %v9303_v52 }
 0x6ee   :  { %v10742_v19 = vcombine.low %v10734_v56, %v10741_v15  ;;  %10515 = vst.msk [vmem:[#allocation5 + $0x10] sm:$0xff] %vm19437_vm5, %v10495_v35  ;;  %v9786_v41 = vshrl.u32 %v14258_v26, 16  ;;  %v10954_v12 = vor.u32 %v10952_v40, %v10951_v60  ;;  %v9789_v62 = vshll.u32 %v14258_v26, 16  ;;  %v15357_v56 = vld [vmem:[#allocation3 + $0x94] ss:$20 sps:$4 sm:$0x33]   ;;  %vm19438_vm8 = vmmov %vm19437_vm5 }
 0x6ef   :  { %v9729_v9 = vshrl.u32 %v9610_v34, 16  ;;  %v10028_v21 = vsel %vm18618_vm1, %v10023_v20, %v10027_v44  ;;  %11098 = vrot.lane.b32.xlu0 %v11095_v17, %s15442_s5  ;;  %v9850_v50 = vcombine.low %v18736_v47, %v18741_v63  ;;  %v10072_v53 = vshrl.u32 %v14277_v36, 16  ;;  %v14321_v3 = vld.sshfl [vmem:[#allocation3 + $0xa4] sm:$0x20 pattern:$0x76325410]  ;;  %vm19439_vm10 = vmmov %vm19437_vm5 }
 0x6f0   :  { %10745 = vrot.lane.b32.xlu1 %v10742_v19, %s15442_s5  ;;  %v10127_v31 = vcombine.low %v10028_v21, %v18640_v7  ;;  %v9788_v25 = vrot.slane %v9786_v41, 7  ;;  %v10075_v39 = vshll.u32 %v14277_v36, 16  ;;  %v10145_v30 = vcombine.low %v18761_v24, %v18777_v29  ;;  %v14323_v32 = vld.sshfl [vmem:[#allocation3 + $0xb8] sm:$0x20 pattern:$0x76325410]  ;;  %vm19440_vm15 = vmmov %vm19437_vm5 }
 0x6f1   :  { %v14265_v42 = vrot.slane %v9729_v9, 9  ;;  %v18808_v7 = vrot.slane %v9850_v50, %v15637_v46  ;;  %v10081_v16 = vshll.u32 %v9983_v4, 16  ;;  %v10074_v23 = vrot.slane %v10072_v53, 6  ;;  %vm19441_vm9 = vmmov %vm19437_vm5 }
 0x6f2   :  { %v10135_v28 = vrot.slane %v10127_v31, %v15637_v46  ;;  %v9791_v45 = vor.u32 %v9789_v62, %v9788_v25  ;;  %v14319_v63 = vld.sshfl [vmem:[#allocation3 + $0x68] sm:$0x20 pattern:$0x76325410]  ;;  %v10077_v13 = vrot.slane %v10075_v39, 7  ;;  %v10159_v61 = vrot.slane %v10145_v30, %v15637_v46  ;;  %vm19442_vm6 = vmmov %vm19437_vm5 }
 0x6f3   :  { %v9740_v47 = vsel %vm18539_vm7, %v14265_v42, %v9739_v11  ;;  %v10836_v55 = vcombine.high %v14319_v63, %v14319_v63  ;;  %v10083_v18 = vrot.slane %v10081_v16, 7  ;;  %v14325_v26 = vld.sshfl [vmem:[#allocation3 + $0xcc] sm:$0x20 pattern:$0x76325410]  ;;  %v10504_v44 = vrot.slane %v15357_v56, %v15637_v46  ;;  %vm19443_vm0 = vmmov %vm19437_vm5 }
 0x6f4   :  { %v9832_v24 = vcombine.low %v9740_v47, %v18551_v10  ;;  %v10143_v29 = vcombine.low %v10135_v28, %v10142_v5  ;;  %v14257_v33 = vld.sshfl [vmem:[#allocation3 + $0x7c] sm:$0x20 pattern:$0x76325410]  ;;  %v10078_v14 = vor.u32 %v10077_v13, %v10074_v23  ;;  %v10511_v59 = vrot.slane %v15358_v51, %v15637_v46  ;;  %vm19445_vm14 = vmmov %vm19443_vm0 }
 0x6f5   :  { %v9333_v11 = vsel %vm19436_vm4, 0, %v9332_v43  ;;  %v10944_v6 = vshrl.u32 %v10836_v55, 16  ;;  %v9670_v27 = vcombine.high %v14257_v33, %v14257_v33  ;;  %v14322_v10 = vld.sshfl [vmem:[#allocation3 + $0xa8] sm:$0x3 pattern:$0x76325410]  ;;  %v10851_v5 = vcombine.high %v14321_v3, %v14321_v3  ;;  %vm19447_vm13 = vmmov %vm19443_vm0 }
 0x6f6   :  { %v9840_v8 = vrot.slane %v9832_v24, %v15637_v46  ;;  %10163 = vst.msk [vmem:[#allocation5 + $0x8] sm:$0xff] %vm19438_vm8, %v10143_v29  ;;  %9334 = vst [vmem:[#allocation3 + $0xe0] sm:$0x8] %v9333_v11  ;;  %v10079_v40 = vrot.slane %v10078_v14, 2  ;;  %v10512_v15 = vcombine.low %v10504_v44, %v10511_v59  ;;  %v10866_v38 = vcombine.high %v14323_v32, %v14323_v32 }
 0x6f7   :  { %v14324_v1 = vld.sshfl [vmem:[#allocation3 + $0xbc] sm:$0x3 pattern:$0x76325410]  ;;  %v10881_v35 = vcombine.high %v14325_v26, %v14325_v26  ;;  %v14332_v20 = vrot.slane %v10944_v6, 9  ;;  %v9781_v60 = vshrl.u32 %v9670_v27, 16 }
 0x6f8   :  { %v9848_v34 = vcombine.low %v9840_v8, %v18780_v0  ;;  %v10957_v52 = vshrl.u32 %v10851_v5, 16  ;;  %v10084_v19 = vsel %vm18618_vm1, %v10079_v40, %v10083_v18  ;;  %10516 = vst.msk [vmem:[#allocation5 + $0x38] sm:$0xff] %vm19439_vm10, %v10512_v15  ;;  %v10962_v17 = vshrl.u32 %v14322_v10, 16 }
 0x6f9   :  { %v10965_v41 = vshll.u32 %v14322_v10, 16  ;;  %v10970_v36 = vshrl.u32 %v10866_v38, 16  ;;  %v10955_v9 = vsel %vm18539_vm7, %v14332_v20, %v10954_v12  ;;  %v14269_v21 = vrot.slane %v9781_v60, 9 }
 0x6fa   :  { %9868 = vst.msk [vmem:[#allocation5] sm:$0xff] %vm19440_vm15, %v9848_v34  ;;  %v10144_v62 = vcombine.low %v10084_v19, %v18749_v37  ;;  %v14326_v31 = vld.sshfl [vmem:[#allocation3 + $0xd0] sm:$0x3 pattern:$0x76325410]  ;;  %v14333_v25 = vrot.slane %v10957_v52, 9  ;;  %v11009_v50 = vcombine.low %v18585_v22, %v10955_v9 }
 0x6fb   :  { %v10964_v4 = vrot.slane %v10962_v17, 7  ;;  %v14334_v56 = vrot.slane %v10970_v36, 9  ;;  %v10975_v43 = vshrl.u32 %v14324_v1, 16  ;;  %v9792_v42 = vsel %vm18539_vm7, %v14269_v21, %v9791_v45 }
 0x6fc   :  { %v10152_v53 = vrot.slane %v10144_v62, %v15637_v46  ;;  %v14328_v39 = vld.sshfl [vmem:[#allocation3 + $0xe4] sm:$0x3 pattern:$0x76325410]  ;;  %v10978_v30 = vshll.u32 %v14324_v1, 16  ;;  %v10983_v51 = vshrl.u32 %v10881_v35, 16  ;;  %v11023_v12 = vrot.slane %v11009_v50, %v15637_v46 }
 0x6fd   :  { %v9849_v3 = vcombine.low %v9792_v42, %v18732_v48  ;;  %v14327_v37 = vld.sshfl [vmem:[#allocation3 + $0xe0] sm:$0x20 pattern:$0x76325410]  ;;  %v10967_v28 = vor.u32 %v10965_v41, %v10964_v4  ;;  %v10977_v16 = vrot.slane %v10975_v43, 7  ;;  %v10988_v47 = vshrl.u32 %v14326_v31, 16 }
 0x6fe   :  { %v10160_v32 = vcombine.low %v10152_v53, %v10159_v61  ;;  %v10896_v22 = vcombine.high %v14327_v37, %v14327_v37  ;;  %v14337_v63 = vld.sshfl [vmem:[#allocation3 + $0x30] sm:$0x13 pattern:$0x76325410]  ;;  %v11024_v23 = vcombine.low %v18780_v0, %v11023_v12  ;;  %v14335_v24 = vrot.slane %v10983_v51, 9 }
 0x6ff   :  { %v9857_v45 = vrot.slane %v9849_v3, %v15637_v46  ;;  %v10980_v13 = vor.u32 %v10978_v30, %v10977_v16  ;;  %v14338_v29 = vld.sshfl [vmem:[#allocation3 + $0x44] sm:$0x13 pattern:$0x76325410]  ;;  %v10990_v55 = vrot.slane %v10988_v47, 7  ;;  %v10991_v18 = vshll.u32 %v14326_v31, 16 }
 0x700   :  { %10164 = vst.msk [vmem:[#allocation5 + $0x30] sm:$0xff] %vm19441_vm9, %v10160_v32  ;;  %v10996_v26 = vshrl.u32 %v10896_v22, 16  ;;  %v11001_v48 = vshrl.u32 %v14328_v39, 16  ;;  %v10968_v33 = vsel %vm18539_vm7, %v14333_v25, %v10967_v28  ;;  %v11004_v14 = vshll.u32 %v14328_v39, 16 }
 0x701   :  { %11044 = vst.msk [vmem:[#allocation5 + $0x18] sm:$0xff] %vm19442_vm6, %v11024_v23  ;;  %v9865_v61 = vcombine.low %v9857_v45, %v18808_v7  ;;  %v10981_v0 = vsel %vm18539_vm7, %v14334_v56, %v10980_v13  ;;  %v14339_v44 = vld.sshfl [vmem:[#allocation3 + $0x58] sm:$0x13 pattern:$0x76325410]  ;;  %v10993_v59 = vor.u32 %v10991_v18, %v10990_v55  ;;  %v11127_v27 = vcombine.high %v14337_v63, %v14337_v63 }
 0x702   :  { %v14336_v11 = vrot.slane %v10996_v26, 9  ;;  %v11003_v8 = vrot.slane %v11001_v48, 7  ;;  %v11025_v6 = vcombine.low %v10968_v33, %v10981_v0  ;;  %v11135_v10 = vcombine.high %v14338_v29, %v14338_v29  ;;  %v14340_v15 = vld.sshfl [vmem:[#allocation3 + $0x6c] sm:$0x13 pattern:$0x76325410] }
 0x703   :  { %9869 = vst.msk [vmem:[#allocation5 + $0x28] sm:$0xff] %vm19443_vm0, %v9865_v61  ;;  %v11185_v5 = vshrl.u32 %v14337_v63, 16  ;;  %v10994_v7 = vsel %vm18539_vm7, %v14335_v24, %v10993_v59  ;;  %v11143_v1 = vcombine.high %v14339_v44, %v14339_v44  ;;  %v11188_v38 = vshll.u32 %v14337_v63, 16 }
 0x704   :  { %v11006_v40 = vor.u32 %v11004_v14, %v11003_v8  ;;  %v11151_v35 = vcombine.high %v14340_v15, %v14340_v15  ;;  %v11199_v20 = vshrl.u32 %v14338_v29, 16  ;;  %v11202_v60 = vshll.u32 %v14338_v29, 16  ;;  %v14341_v39 = vld.sshfl [vmem:[#allocation3 + $0xa8] sm:$0x13 pattern:$0x76325410] }
 0x705   :  { %v11187_v34 = vrot.slane %v11185_v5, 6  ;;  %v11033_v19 = vrot.slane %v11025_v6, %v15637_v46  ;;  %v11190_v17 = vrot.slane %v11188_v38, 7  ;;  %v11213_v41 = vshrl.u32 %v14339_v44, 16 }
 0x706   :  { %v11007_v52 = vsel %vm18539_vm7, %v14336_v11, %v11006_v40  ;;  %v11194_v9 = vshll.u32 %v11127_v27, 16  ;;  %v11201_v21 = vrot.slane %v11199_v20, 6  ;;  %v11204_v62 = vrot.slane %v11202_v60, 7  ;;  %vm19444_vm7 = vmmov %vm19443_vm0 }
 0x707   :  { %v11026_v36 = vcombine.low %v10994_v7, %v11007_v52  ;;  %v11191_v31 = vor.u32 %v11190_v17, %v11187_v34  ;;  %v11208_v25 = vshll.u32 %v11135_v10, 16  ;;  %v11215_v50 = vrot.slane %v11213_v41, 6  ;;  %v14342_v63 = vld.sshfl [vmem:[#allocation3 + $0xbc] sm:$0x13 pattern:$0x76325410] }
 0x708   :  { %v11216_v4 = vshll.u32 %v14339_v44, 16  ;;  %v11205_v43 = vor.u32 %v11204_v62, %v11201_v21  ;;  %v11222_v42 = vshll.u32 %v11143_v1, 16  ;;  %v11227_v53 = vshrl.u32 %v14340_v15, 16 }
 0x709   :  { %v11040_v56 = vrot.slane %v11026_v36, %v15637_v46  ;;  %v11192_v49 = vrot.slane %v11191_v31, 2  ;;  %v11230_v51 = vshll.u32 %v14340_v15, 16  ;;  %v11236_v12 = vshll.u32 %v11151_v35, 16 }
 0x70a   :  { %v11218_v30 = vrot.slane %v11216_v4, 7  ;;  %v11196_v37 = vrot.slane %v11194_v9, 7  ;;  %v11206_v28 = vrot.slane %v11205_v43, 2  ;;  %v11229_v16 = vrot.slane %v11227_v53, 6 }
 0x70b   :  { %v11041_v3 = vcombine.low %v11033_v19, %v11040_v56  ;;  %v11210_v32 = vrot.slane %v11208_v25, 7  ;;  %v11232_v47 = vrot.slane %v11230_v51, 7  ;;  %v11224_v45 = vrot.slane %v11222_v42, 7 }
 0x70c   :  { %v11219_v22 = vor.u32 %v11218_v30, %v11215_v50  ;;  %v11197_v23 = vsel %vm18618_vm1, %v11192_v49, %v11196_v37  ;;  %v11238_v13 = vrot.slane %v11236_v12, 7  ;;  %v14343_v24 = vld.sshfl [vmem:[#allocation3 + $0xd0] sm:$0x13 pattern:$0x76325410]  ;;  %v11159_v26 = vcombine.high %v14341_v39, %v14341_v39 }
 0x70d   :  { %11045 = vst.msk [vmem:[#allocation5 + $0x40] sm:$0xff] %vm19444_vm7, %v11041_v3  ;;  %v11211_v29 = vsel %vm18618_vm1, %v11206_v28, %v11210_v32  ;;  %v11233_v18 = vor.u32 %v11232_v47, %v11229_v16  ;;  %v11167_v48 = vcombine.high %v14342_v63, %v14342_v63  ;;  %v11241_v61 = vshrl.u32 %v14341_v39, 16  ;;  %v14344_v59 = vld.sshfl [vmem:[#allocation3 + $0xe4] sm:$0x13 pattern:$0x76325410] }
 0x70e   :  { %v11220_v55 = vrot.slane %v11219_v22, 2  ;;  %v11244_v33 = vshll.u32 %v14341_v39, 16  ;;  %v11255_v0 = vshrl.u32 %v14342_v63, 16  ;;  %v11175_v11 = vcombine.high %v14343_v24, %v14343_v24 }
 0x70f   :  { %v11234_v44 = vrot.slane %v11233_v18, 2  ;;  %v11258_v8 = vshll.u32 %v14342_v63, 16  ;;  %v11296_v6 = vcombine.low %v11197_v23, %v11211_v29  ;;  %v11243_v27 = vrot.slane %v11241_v61, 6  ;;  %v15355_v18 = vld [vmem:[%s19349_s2 + $0x250] sm:$0xff]   ;;  %v15356_v61 = vld [vmem:[%s19349_s2 + $0x258] sm:$0xff]  }
 0x710   :  { %v11225_v14 = vsel %vm18618_vm1, %v11220_v55, %v11224_v45  ;;  %v11246_v10 = vrot.slane %v11244_v33, 7  ;;  %v11257_v5 = vrot.slane %v11255_v0, 6  ;;  %v11183_v40 = vcombine.high %v14344_v59, %v14344_v59 }
 0x711   :  { %v11239_v7 = vsel %vm18618_vm1, %v11234_v44, %v11238_v13  ;;  %v11260_v15 = vrot.slane %v11258_v8, 7  ;;  %v11269_v1 = vshrl.u32 %v14343_v24, 16  ;;  %v11250_v35 = vshll.u32 %v11159_v26, 16  ;;  %v15360_v44 = vld [vmem:[%s19349_s2 + $0x268] sm:$0xff]   ;;  %v15362_v8 = vld [vmem:[%s19349_s2 + $0x278] sm:$0xff]  }
 0x712   :  { %v11297_v38 = vcombine.low %v11225_v14, %v11239_v7  ;;  %v11264_v34 = vshll.u32 %v11167_v48, 16  ;;  %v11272_v20 = vshll.u32 %v14343_v24, 16  ;;  %v11247_v60 = vor.u32 %v11246_v10, %v11243_v27 }
 0x713   :  { %v11261_v52 = vor.u32 %v11260_v15, %v11257_v5  ;;  %v11271_v19 = vrot.slane %v11269_v1, 6  ;;  %v11283_v17 = vshrl.u32 %v14344_v59, 16  ;;  %v11304_v41 = vrot.slane %v11296_v6, %v15637_v46 }
 0x714   :  { %v11311_v36 = vrot.slane %v11297_v38, %v15637_v46  ;;  %v11274_v9 = vrot.slane %v11272_v20, 7  ;;  %v11278_v21 = vshll.u32 %v11175_v11, 16  ;;  %v11286_v25 = vshll.u32 %v14344_v59, 16  ;;  %v15361_v59 = vld [vmem:[%s19349_s2 + $0x270] sm:$0xff]   ;;  %v12068_v20 = vld [vmem:[#allocation4 + $0x1c] sm:$0x3] }
 0x715   :  { %v11262_v62 = vrot.slane %v11261_v52, 2  ;;  %v11285_v31 = vrot.slane %v11283_v17, 6  ;;  %v11292_v50 = vshll.u32 %v11183_v40, 16  ;;  %v11248_v43 = vrot.slane %v11247_v60, 2  ;;  %v12098_v52 = vld [vmem:[#allocation4 + $0x80] sm:$0x3] }
 0x716   :  { %v11312_v4 = vcombine.low %v11304_v41, %v11311_v36  ;;  %v11275_v56 = vor.u32 %v11274_v9, %v11271_v19  ;;  %v11266_v42 = vrot.slane %v11264_v34, 7  ;;  %v11288_v53 = vrot.slane %v11286_v25, 7  ;;  %v12074_v17 = vld [vmem:[#allocation4 + $0x30] sm:$0x3]  ;;  %v12062_v36 = vld [vmem:[#allocation4 + $0x8] sm:$0x3] }
 0x717   :  { %v11252_v39 = vrot.slane %v11250_v35, 7  ;;  %v11280_v51 = vrot.slane %v11278_v21, 7  ;;  %v11294_v3 = vrot.slane %v11292_v50, 7  ;;  %vm19446_vm11 = vcmask 1048064   ;;  %v12092_v35 = vld [vmem:[#allocation4 + $0x6c] sm:$0x3] }
 0x718   :  { %11332 = vst.msk [vmem:[#allocation5 + $0x20] sm:$0xff] %vm19445_vm14, %v11312_v4  ;;  %v11276_v49 = vrot.slane %v11275_v56, 2  ;;  %v11267_v30 = vsel %vm18618_vm1, %v11262_v62, %v11266_v42  ;;  %v11289_v12 = vor.u32 %v11288_v53, %v11285_v31  ;;  %vm19448_vm5 = vmmov %vm19446_vm11  ;;  %vm19455_vm0 = vcmask 517120   ;;  %v12086_v9 = vld [vmem:[#allocation4 + $0x58] sm:$0x3] }
 0x719   :  { %v11253_v37 = vsel %vm18618_vm1, %v11248_v43, %v11252_v39  ;;  %vm18905_vm7 = vmand %vm19455_vm0, %vm10008_vm2  ;;  %v12065_v31 = vld [vmem:[#allocation4 + $0x18] sm:$0x8]  ;;  %v12071_v25 = vld [vmem:[#allocation4 + $0x2c] sm:$0x8]  ;;  %vm12314_vm2 = vsmask.f32 7452 }
 0x71a   :  { %v11281_v28 = vsel %vm18618_vm1, %v11276_v49, %v11280_v51  ;;  %v11290_v16 = vrot.slane %v11289_v12, 2  ;;  %v11313_v32 = vcombine.low %v11253_v37, %v11267_v30  ;;  %v12093_v34 = vsel %vm18905_vm7, 0, %v12092_v35  ;;  %v12089_v56 = vld [vmem:[#allocation4 + $0x68] sm:$0x8]  ;;  %v12095_v43 = vld [vmem:[#allocation4 + $0x7c] sm:$0x8]  ;;  %vm19004_vm14 = vmor %vm18597_vm12, %vm12314_vm2 }
 0x71b   :  { %12094 = vst [vmem:[#allocation4 + $0x6c] sm:$0x3] %v12093_v34  ;;  %v12069_v60 = vsel %vm18905_vm7, 0, %v12068_v20  ;;  %v12099_v19 = vsel %vm18905_vm7, 0, %v12098_v52  ;;  %v12075_v41 = vsel %vm18905_vm7, 0, %v12074_v17  ;;  %v12063_v21 = vsel %vm18905_vm7, 0, %v12062_v36  ;;  %vm19461_vm12 = vmmov %vm19455_vm0 }
 0x71c   :  { %v11295_v22 = vsel %vm18618_vm1, %v11290_v16, %v11294_v3  ;;  %v11321_v23 = vrot.slane %v11313_v32, %v15637_v46  ;;  %vm19449_vm1 = vmmov %vm19448_vm5  ;;  %12070 = vst [vmem:[#allocation4 + $0x1c] sm:$0x3] %v12069_v60  ;;  %v12087_v62 = vsel %vm18905_vm7, 0, %v12086_v9  ;;  %v12066_v50 = vsel %vm19436_vm4, 0, %v12065_v31  ;;  %v12080_v37 = vld [vmem:[#allocation4 + $0x44] sm:$0x3] }
 0x71d   :  { %v11314_v47 = vcombine.low %v11281_v28, %v11295_v22  ;;  %vm19450_vm8 = vmmov %vm19449_vm1  ;;  %12100 = vst [vmem:[#allocation4 + $0x80] sm:$0x3] %v12099_v19  ;;  %v12072_v4 = vsel %vm19436_vm4, 0, %v12071_v25  ;;  %v12090_v42 = vsel %vm19436_vm4, 0, %v12089_v56  ;;  %v12096_v53 = vsel %vm19436_vm4, 0, %v12095_v43  ;;  %v15367_v22 = vld [vmem:[%s19349_s2 + $0x2c0] sm:$0xff]  }
 0x71e   :  { %v9921_v63 = vpop.permute.xlu1 %9920  ;;  %vm19451_vm10 = vmmov %vm19449_vm1  ;;  %12076 = vst [vmem:[#allocation4 + $0x30] sm:$0x3] %v12075_v41  ;;  %v12104_v28 = vld [vmem:[#allocation4 + $0x94] sm:$0x3]  ;;  %v12081_v16 = vsel %vm18905_vm7, 0, %v12080_v37  ;;  %14993 = vmatprep.subr.bf16.mxu0 %v15367_v22  ;;  %v19458_v34 = vld [vmem:[#allocation9_spill] sm:$0xff] }
 0x71f   :  { %9926 = vst.msk [vmem:[#allocation5] sm:$0xff] %vm19446_vm11, %v9921_v63  ;;  %v11328_v45 = vrot.slane %v11314_v47, %v15637_v46  ;;  %vm19452_vm15 = vmmov %vm19449_vm1  ;;  %v11338_v7 = vld [vmem:[#allocation5 + $0x20] sm:$0xff]  ;;  %v12105_v32 = vsel %vm18905_vm7, 0, %v12104_v28  ;;  %v15369_v63 = vld [vmem:[%s19349_s2 + $0x2c8] sm:$0xff]  }
 0x720   :  { %vm19453_vm9 = vmmov %vm19449_vm1  ;;  %12064 = vst [vmem:[#allocation4 + $0x8] sm:$0x3] %v12063_v21  ;;  %v15368_v47 = vld [vmem:[%s19349_s2 + $0x280] sm:$0xff]  }
 0x721   :  { %v11329_v13 = vcombine.low %v11321_v23, %v11328_v45  ;;  %vm19454_vm6 = vmmov %vm19449_vm1  ;;  %12088 = vst [vmem:[#allocation4 + $0x58] sm:$0x3] %v12087_v62  ;;  %v15371_v23 = vld [vmem:[%s19349_s2 + $0x340] sm:$0xff]  }
 0x722   :  { %12067 = vst [vmem:[#allocation4 + $0x18] sm:$0x8] %v12066_v50  ;;  %12073 = vst [vmem:[#allocation4 + $0x2c] sm:$0x8] %v12072_v4  ;;  %v15372_v45 = vld [vmem:[%s19349_s2 + $0x300] sm:$0xff]  }
 0x723   :  { %11333 = vst.msk [vmem:[#allocation5 + $0x48] sm:$0xff] %vm19447_vm13, %v11329_v13  ;;  %12091 = vst [vmem:[#allocation4 + $0x68] sm:$0x8] %v12090_v42  ;;  %v15375_v13 = vld [vmem:[%s19349_s2 + $0x348] sm:$0xff]  }
 0x724   :  { %12097 = vst [vmem:[#allocation4 + $0x7c] sm:$0x8] %v12096_v53  ;;  %12082 = vst [vmem:[#allocation4 + $0x44] sm:$0x3] %v12081_v16 }
 0x725   :  { %12106 = vst [vmem:[#allocation4 + $0x94] sm:$0x3] %v12105_v32  ;;  %vm19463_vm11 = vmmov %vm19455_vm0 }
 0x726   :  { %v11334_v55 = vld [vmem:[#allocation5] sm:$0xff]  ;;  %vm19464_vm13 = vmmov %vm19455_vm0 }
 0x727   :  { %v14475_v50 = vld.sshfl [vmem:[#allocation4 + $0x8] sm:$0x1 pattern:$0x75316420] }
 0x728   :  { %v14479_v42 = vld.sshfl [vmem:[#allocation4 + $0x58] sm:$0x1 pattern:$0x75316420] }
 0x729   :  { %v14494_v60 = vld.sshfl [vmem:[#allocation4 + $0x18] sm:$0x20 pattern:$0x75316420] }
 0x72a   :  { %v11343_v40 = vld [vmem:[#allocation5 + $0x48] sm:$0xff]  ;;  %v12596_v9 = vcombine.high %v14494_v60, %v14494_v60 }
 0x72b   :  { %v14498_v19 = vld.sshfl [vmem:[#allocation4 + $0x68] sm:$0x20 pattern:$0x75316420] }
 0x72c   :  { %v12656_v21 = vcombine.high %v14498_v19, %v14498_v19  ;;  %v18995_v22 = vld.sshfl [vmem:[#allocation4 + $0x2c] sm:$0x20 pattern:$0x75316420] }
 0x738   :  { %v10456_v24 = vpop.permute.xlu0 %10455 }
 0x739   :  { %10461 = vst.msk [vmem:[#allocation5 + $0x8] sm:$0xff] %vm19448_vm5, %v10456_v24  ;;  %v15370_v24 = vld [vmem:[%s19349_s2 + $0x288] sm:$0xff]   ;;  %vm19465_vm5 = vmmov %vm19455_vm0 }
 0x740   :  { %v11335_v29 = vld [vmem:[#allocation5 + $0x8] sm:$0xff] }
 0x741   :  { %11616 = vmatprep.mubr.bf16.mxu1 %v11335_v29  ;;  %v15373_v29 = vld [vmem:[%s19349_s2 + $0x2d0] sm:$0xff]  }
 0x742   :  { %11617 = vmatmul.mubr.bf16.vlgmr.msra.gmra.mrb[64].mxu1 %v11334_v55  ;;  %v15379_v55 = vld [vmem:[%s19349_s2 + $0x350] sm:$0xff]  }
 0x743   :  { %15159 = vmatpush3.bf16.msra.mxu1 %v18711_v54  ;;  %v15359_v54 = vld [vmem:[%s19349_s2 + $0x260] sm:$0xff]  }
 0x744   :  { %15160 = vmatprep.subr.bf16.mxu1 %v15354_v2 }
 0x747   :  { %15161 = vmatpush3.bf16.msra.mxu1 %v15354_v2  ;;  %v15376_v2 = vld [vmem:[%s19349_s2 + $0x308] sm:$0xff]  }
 0x748   :  { %15162 = vmatprep.subr.bf16.mxu1 %v15355_v18 }
 0x749   :  { %v10744_v26 = vpop.permute.xlu1 %10743 }
 0x74a   :  { %v11097_v48 = vpop.permute.xlu0 %11096  ;;  %10749 = vst.msk [vmem:[#allocation5 + $0x10] sm:$0xff] %vm19449_vm1, %v10744_v26  ;;  %v12083_v26 = vld [vmem:[#allocation4 + $0x54] sm:$0x8]  ;;  %vm19466_vm1 = vmmov %vm19455_vm0 }
 0x74b   :  { %11102 = vst.msk [vmem:[#allocation5 + $0x18] sm:$0xff] %vm19450_vm8, %v11097_v48  ;;  %15163 = vmatpush3.bf16.msra.mxu1 %v15355_v18  ;;  %v12057_v18 = vld [vmem:[#allocation4 + $0x4] sm:$0x8]  ;;  %vm19467_vm8 = vmmov %vm19455_vm0 }
 0x74c   :  { %15164 = vmatprep.subr.bf16.mxu1 %v15356_v61  ;;  %v12058_v48 = vsel %vm19436_vm4, 0, %v12057_v18 }
 0x74d   :  { %v9923_v33 = vpop.permute.xlu1 %9922  ;;  %12059 = vst [vmem:[#allocation4 + $0x4] sm:$0x8] %v12058_v48  ;;  %v12626_v48 = vcombine.high %v18995_v22, %v18995_v22 }
 0x74e   :  { %9927 = vst.msk [vmem:[#allocation5 + $0x28] sm:$0xff] %vm19451_vm10, %v9923_v33  ;;  %v15374_v33 = vld [vmem:[%s19349_s2 + $0x290] sm:$0xff]   ;;  %vm19468_vm10 = vmmov %vm19455_vm0 }
 0x74f   :  { %15165 = vmatpush3.bf16.msra.mxu1 %v15356_v61  ;;  %v12084_v61 = vsel %vm19436_vm4, 0, %v12083_v26 }
 0x750   :  { %15166 = vmatprep.subr.bf16.mxu1 %v15359_v54  ;;  %12085 = vst [vmem:[#allocation4 + $0x54] sm:$0x8] %v12084_v61 }
 0x751   :  { %v11336_v14 = vld [vmem:[#allocation5 + $0x10] sm:$0xff] }
 0x752   :  { %v11337_v0 = vld [vmem:[#allocation5 + $0x18] sm:$0xff] }
 0x753   :  { %11665 = vmatprep.mubr.bf16.mxu0 %v11337_v0  ;;  %15167 = vmatpush3.bf16.msra.mxu1 %v15359_v54  ;;  %v15377_v54 = vld [vmem:[%s19349_s2 + $0x2d8] sm:$0xff]  }
 0x754   :  { %11666 = vmatmul.mubr.bf16.vlgmr.msra.gmra.mrb[80].mxu0 %v11336_v14  ;;  %15168 = vmatprep.subr.bf16.mxu1 %v15360_v44  ;;  %v15380_v14 = vld [vmem:[%s19349_s2 + $0x310] sm:$0xff]   ;;  %v14474_v38 = vld.sshfl [vmem:[#allocation4 + $0x4] sm:$0x20 pattern:$0x75316420] }
 0x755   :  { %v11339_v27 = vld [vmem:[#allocation5 + $0x28] sm:$0xff]  ;;  %14994 = vmatpush3.bf16.msra.mxu0 %v15368_v47  ;;  %v12192_v52 = vcombine.high %v14474_v38, %v14474_v38 }
 0x756   :  { %14995 = vmatprep.subr.bf16.mxu0 %v15369_v63 }
 0x757   :  { %v10458_v11 = vpop.permute.xlu0 %10457  ;;  %15169 = vmatpush3.bf16.msra.mxu1 %v15360_v44  ;;  %v14478_v35 = vld.sshfl [vmem:[#allocation4 + $0x54] sm:$0x20 pattern:$0x75316420] }
 0x758   :  { %10462 = vst.msk [vmem:[#allocation5 + $0x30] sm:$0xff] %vm19452_vm15, %v10458_v11  ;;  %15170 = vmatprep.subr.bf16.mxu1 %v15361_v59  ;;  %v12252_v17 = vcombine.high %v14478_v35, %v14478_v35  ;;  %vm19469_vm15 = vcmask 523264  }
 0x759   :  { %14996 = vmatpush3.bf16.msra.mxu0 %v15370_v24 }
 0x75a   :  { %14997 = vmatprep.subr.bf16.mxu0 %v15373_v29 }
 0x75b   :  { %15171 = vmatpush3.bf16.msra.mxu1 %v15361_v59 }
 0x75c   :  { %15172 = vmatprep.subr.bf16.mxu1 %v15362_v8 }
 0x75d   :  { %14998 = vmatpush3.bf16.msra.mxu0 %v15374_v33 }
 0x75e   :  { %14999 = vmatprep.subr.bf16.mxu0 %v15377_v54 }
 0x75f   :  { %v11340_v6 = vld [vmem:[#allocation5 + $0x30] sm:$0xff]  ;;  %15173 = vmatpush3.bf16.msra.mxu1 %v15362_v8 }
 0x760   :  { %11624 = vmatprep.mubr.bf16.mxu1 %v11340_v6  ;;  %15015 = vmatprep.subr.bf16.mxu1 %v15371_v23  ;;  %v15443_v6 = vmov 1966171168  }
 0x761   :  { %v11099_v5 = vpop.permute.xlu0 %11098  ;;  %11625 = vmatmul.mubr.bf16.gmra.mrb[68].mxu1 %v11339_v27  ;;  %v12194_v27 = vunpack.c.l.s4 %v15443_v6 }
 0x762   :  { %v10746_v10 = vpop.permute.xlu1 %10745  ;;  %11103 = vst.msk [vmem:[#allocation5 + $0x40] sm:$0xff] %vm19454_vm6, %v11099_v5  ;;  %15174 = vmatprep.mubr.bf16.mxu1 %v11338_v7 }
 0x763   :  { %10750 = vst.msk [vmem:[#allocation5 + $0x38] sm:$0xff] %vm19453_vm9, %v10746_v10  ;;  %v15378_v10 = vld [vmem:[%s19349_s2 + $0x298] sm:$0xff]   ;;  %vm19470_vm9 = vmmov %vm19469_vm15 }
 0x764   :  { %15000 = vmatpush3.bf16.msra.mxu0 %v15378_v10  ;;  %vm19471_vm6 = vmmov %vm19470_vm9 }
 0x769   :  { %v11342_v15 = vld [vmem:[#allocation5 + $0x40] sm:$0xff]  ;;  %15175 = vmatmul.mubr.bf16.vlgmr.msra.gmra.mrb[72].mxu1 %v11343_v40 }
 0x76a   :  { %11673 = vmatprep.mubr.bf16.mxu0 %v11342_v15  ;;  %v11341_v1 = vld [vmem:[#allocation5 + $0x38] sm:$0xff]  ;;  %15016 = vmatpush3.bf16.msra.mxu1 %v15372_v45  ;;  %v15381_v40 = vld [vmem:[%s19349_s2 + $0x2e0] sm:$0xff]  }
 0x76b   :  { %11674 = vmatmul.mubr.bf16.gmra.mrb[84].mxu0 %v11341_v1  ;;  %15017 = vmatprep.subr.bf16.mxu1 %v15375_v13  ;;  %v12195_v1 = vunpack.c.0.s8 %v12194_v27 }
 0x76c   :  { %15001 = vmatprep.subr.bf16.mxu0 %v15381_v40 }
 0x76d   :  { %v18983_v20 = vsub.s32 %v12195_v1, %v19458_v34 }
 0x76e   :  { %15018 = vmatpush3.bf16.msra.mxu1 %v15376_v2 }
 0x76f   :  { %15019 = vmatprep.subr.bf16.mxu1 %v15379_v55  ;;  %v12199_v62 = vrot.slane %v12192_v52, %v18983_v20  ;;  %v12259_v56 = vrot.slane %v12252_v17, %v18983_v20  ;;  %v12603_v53 = vrot.slane %v12596_v9, %v18983_v20  ;;  %v12274_v37 = vrot.slane %v14479_v42, %v18983_v20  ;;  %v19008_v55 = vld.sshfl [vmem:[#allocation4 + $0x7c] sm:$0x20 pattern:$0x75316420] }
 0x771   :  { %v12604_v63 = vcombine.high %v12603_v53, %v12603_v53  ;;  %v19014_v33 = vshll.u32 %v12274_v37, 16 }
 0x772   :  { %15020 = vmatpush3.bf16.msra.mxu1 %v15380_v14 }
 0x815   :  { %v14943_v39 = vpop.f32.mrb[64].mxu1 }
 0x816   :  { %v14944_v49 = vpop.f32.mrb[65].mxu1 }
 0x817   :  { %v14945_v30 = vadd.f32 %v14944_v49, %v14943_v39  ;;  %v14946_v51 = vpop.f32.mrb[66].mxu1  ;;  %v12663_v39 = vrot.slane %v12656_v21, %v18983_v20  ;;  %v12200_v49 = vcombine.high %v12199_v62, %v12199_v62 }
 0x818   :  { %v14947_v12 = vpop.f32.mrb[67].mxu1 }
 0x819   :  { %v14948_v3 = vadd.f32 %v14947_v12, %v14946_v51  ;;  %v12077_v51 = vld [vmem:[#allocation4 + $0x40] sm:$0x8]  ;;  %v12101_v12 = vld [vmem:[#allocation4 + $0x90] sm:$0x8]  ;;  %v12664_v23 = vcombine.high %v12663_v39, %v12663_v39  ;;  %v18997_v45 = vshrl.u32 %v12200_v49, 16 }
 0x81a   :  { %v12078_v28 = vsel %vm19436_vm4, 0, %v12077_v51  ;;  %v12102_v16 = vsel %vm19436_vm4, 0, %v12101_v12  ;;  %vm19462_vm4 = vmmov %vm19455_vm0 }
 0x81b   :  { %12079 = vst [vmem:[#allocation4 + $0x40] sm:$0x8] %v12078_v28  ;;  %12103 = vst [vmem:[#allocation4 + $0x90] sm:$0x8] %v12102_v16  ;;  %v19021_v6 = vshrl.u32 %v12664_v23, 16 }
 0x81c   :  { %vm19472_vm0 = vmmov %vm19471_vm6 }
 0x81d   :  { %vm19473_vm7 = vmmov %vm19472_vm0 }
 0x81e   :  { %vm19474_vm2 = vmmov %vm19472_vm0 }
 0x827   :  { %v14971_v0 = vpop.f32.mrb[80].mxu0 }
 0x828   :  { %v14972_v44 = vpop.f32.mrb[81].mxu0 }
 0x829   :  { %v14973_v59 = vadd.f32 %v14972_v44, %v14971_v0  ;;  %v14974_v11 = vpop.f32.mrb[82].mxu0 }
 0x82a   :  { %v14975_v8 = vpop.f32.mrb[83].mxu0 }
 0x82b   :  { %v14976_v5 = vadd.f32 %v14975_v8, %v14974_v11  ;;  %v11668_v7 = vadd.f32 %v14973_v59, %v14945_v30  ;;  %v12214_v30 = vrot.slane %v14475_v50, %v18983_v20  ;;  %v12686_v11 = vcombine.high %v19008_v55, %v19008_v55 }
 0x82c   :  { %v19019_v8 = vshrl.u32 %v12604_v63, 16 }
 0x82d   :  { %v11671_v15 = vadd.f32 %v14976_v5, %v14948_v3  ;;  %v12260_v3 = vcombine.high %v12259_v56, %v12259_v56  ;;  %v18999_v13 = vshll.u32 %v12214_v30, 16 }
 0x82f   :  { %v19012_v61 = vshrl.u32 %v12260_v3, 16  ;;  %v12324_v27 = vsel %vm19004_vm14, %v18997_v45, %v18999_v13  ;;  %v14520_v13 = vld.sshfl [vmem:[#allocation4 + $0x90] sm:$0x20 pattern:$0x75316420] }
 0x831   :  { %v12342_v35 = vsel %vm19004_vm14, %v19012_v61, %v19014_v33 }
 0x834   :  { %v14949_v41 = vpop.f32.mrb[68].mxu1 }
 0x835   :  { %v14950_v36 = vpop.f32.mrb[69].mxu1 }
 0x836   :  { %v14951_v31 = vadd.f32 %v14950_v36, %v14949_v41  ;;  %v14952_v25 = vpop.f32.mrb[70].mxu1 }
 0x837   :  { %v14953_v4 = vpop.f32.mrb[71].mxu1 }
 0x838   :  { %v14954_v43 = vadd.f32 %v14953_v4, %v14952_v25 }
 0x83c   :  { %v15176_v32 = vpop.f32.mrb[72].mxu1 }
 0x83d   :  { %v11716_v47 = vpop.f32.mrb[73].mxu1 }
 0x83e   :  { %v14977_v24 = vpop.f32.mrb[84].mxu0  ;;  %v11717_v29 = vadd.f32 %v11716_v47, %v11668_v7  ;;  %v15177_v2 = vpop.f32.mrb[74].mxu1 }
 0x83f   :  { %v14978_v18 = vpop.f32.mrb[85].mxu0  ;;  %v11719_v26 = vpop.f32.mrb[75].mxu1 }
 0x840   :  { %v14979_v54 = vadd.f32 %v14978_v18, %v14977_v24  ;;  %v14980_v0 = vpop.f32.mrb[86].mxu0  ;;  %v11735_v14 = vcombine.high %v11717_v29, %v11717_v29  ;;  %v11742_v57 = vrot.slane %v11717_v29, %v15637_v46  ;;  %v11720_v44 = vadd.f32 %v11719_v26, %v11671_v15 }
 0x841   :  { %v14981_v59 = vpop.f32.mrb[87].mxu0 }
 0x842   :  { %v14982_v10 = vadd.f32 %v14981_v59, %v14980_v0  ;;  %v11676_v5 = vadd.f32 %v14979_v54, %v14951_v31  ;;  %v11749_v7 = vrot.slane %v11735_v14, %v15637_v46  ;;  %v11750_v40 = vcombine.high %v11742_v57, %v11742_v57 }
 0x843   :  { %v11819_v15 = vsel %vm19461_vm12, %v11742_v57, -inf  ;;  %v11752_v1 = vcombine.high %v11720_v44, %v11720_v44  ;;  %v19030_v38 = vrot.slane %v11720_v44, %v15637_v46  ;;  %vm19475_vm12 = vmmov %vm19472_vm0 }
 0x844   :  { %v11725_v34 = vadd.f32 %v15176_v32, %v11676_v5  ;;  %v11751_v60 = vcombine.high %v11749_v7, %v11749_v7  ;;  %v11820_v52 = vrot.slane %v11819_v15, 4  ;;  %v11826_v19 = vsel %vm19462_vm4, %v11750_v40, -inf  ;;  %vm19476_vm4 = vmmov %vm19466_vm1 }
 0x845   :  { %v11827_v17 = vrot.slane %v11826_v19, 4  ;;  %v11833_v41 = vsel %vm19463_vm11, %v11749_v7, -inf  ;;  %v11679_v36 = vadd.f32 %v14982_v10, %v14954_v43  ;;  %v19039_v9 = vrot.slane %v11752_v1, %v15637_v46  ;;  %vm19477_vm11 = vmmov %vm19466_vm1 }
 0x846   :  { %v11769_v21 = vcombine.high %v11725_v34, %v11725_v34  ;;  %v11776_v62 = vrot.slane %v11725_v34, %v15637_v46  ;;  %v11821_v31 = vmax.f32 %v11819_v15, %v11820_v52  ;;  %v11834_v25 = vrot.slane %v11833_v41, 4 }
 0x847   :  { %v11828_v50 = vmax.f32 %v11826_v19, %v11827_v17  ;;  %v11840_v4 = vsel %vm19464_vm13, %v11751_v60, -inf  ;;  %v11728_v56 = vadd.f32 %v15177_v2, %v11679_v36  ;;  %v11767_v42 = vcombine.high %v19030_v38, %v19030_v38  ;;  %vm19478_vm13 = vmmov %vm19472_vm0 }
 0x848   :  { %v11783_v53 = vrot.slane %v11769_v21, %v15637_v46  ;;  %v11784_v39 = vcombine.high %v11776_v62, %v11776_v62  ;;  %v11875_v43 = vsel %vm19465_vm5, %v11776_v62, -inf  ;;  %v11822_v49 = vrot.slane %v11821_v31, 2  ;;  %vm19479_vm5 = vmmov %vm19466_vm1 }
 0x849   :  { %v11876_v30 = vrot.slane %v11875_v43, 4  ;;  %v11829_v51 = vrot.slane %v11828_v50, 2  ;;  %v11835_v12 = vmax.f32 %v11833_v41, %v11834_v25  ;;  %v11841_v3 = vrot.slane %v11840_v4, 4 }
 0x84a   :  { %v11785_v37 = vcombine.high %v11783_v53, %v11783_v53  ;;  %v11882_v28 = vsel %vm19466_vm1, %v11784_v39, -inf  ;;  %v11889_v16 = vsel %vm19467_vm8, %v11783_v53, -inf  ;;  %v11823_v32 = vmax.f32 %v11821_v31, %v11822_v49  ;;  %vm19480_vm8 = vmmov %vm19466_vm1 }
 0x84b   :  { %v11877_v47 = vmax.f32 %v11875_v43, %v11876_v30  ;;  %v11883_v63 = vrot.slane %v11882_v28, 4  ;;  %v11890_v23 = vrot.slane %v11889_v16, 4  ;;  %v11830_v24 = vmax.f32 %v11828_v50, %v11829_v51 }
 0x84c   :  { %v11896_v29 = vsel %vm19468_vm10, %v11785_v37, -inf  ;;  %v11824_v2 = vrot.slane %v11823_v32, 1  ;;  %v11836_v18 = vrot.slane %v11835_v12, 2  ;;  %v11842_v26 = vmax.f32 %v11840_v4, %v11841_v3  ;;  %v19058_v3 = vld [vmem:[%s19350_s3 + $0x2] ss:$0 sm:$0xff]  ;;  %vm19481_vm10 = vmmov %vm19466_vm1 }
 0x84d   :  { %v11878_v54 = vrot.slane %v11877_v47, 2  ;;  %v11884_v0 = vmax.f32 %v11882_v28, %v11883_v63  ;;  %v11891_v14 = vmax.f32 %v11889_v16, %v11890_v23  ;;  %v11897_v57 = vrot.slane %v11896_v29, 4 }
 0x84e   :  { %v11825_v44 = vmax.f32 %v11823_v32, %v11824_v2  ;;  %v11831_v59 = vrot.slane %v11830_v24, 1  ;;  %v11837_v10 = vmax.f32 %v11835_v12, %v11836_v18  ;;  %v11843_v5 = vrot.slane %v11842_v26, 2 }
 0x84f   :  { %v11879_v7 = vmax.f32 %v11877_v47, %v11878_v54  ;;  %v11885_v40 = vrot.slane %v11884_v0, 2  ;;  %v11892_v15 = vrot.slane %v11891_v14, 2  ;;  %v11898_v1 = vmax.f32 %v11896_v29, %v11897_v57 }
 0x850   :  { %v11832_v34 = vmax.f32 %v11830_v24, %v11831_v59  ;;  %v11838_v60 = vrot.slane %v11837_v10, 1  ;;  %v11844_v52 = vmax.f32 %v11842_v26, %v11843_v5  ;;  %v11931_v19 = vsel %vm19469_vm15, %v11825_v44, -inf  ;;  %vm19482_vm15 = vmmov %vm19472_vm0 }
 0x851   :  { %v11880_v17 = vrot.slane %v11879_v7, 1  ;;  %v11886_v41 = vmax.f32 %v11884_v0, %v11885_v40  ;;  %v11893_v36 = vmax.f32 %v11891_v14, %v11892_v15  ;;  %v11899_v21 = vrot.slane %v11898_v1, 2 }
 0x852   :  { %v11839_v62 = vmax.f32 %v11837_v10, %v11838_v60  ;;  %v11845_v31 = vrot.slane %v11844_v52, 1  ;;  %v11934_v25 = vsel %vm19470_vm9, %v11832_v34, -inf  ;;  %v11786_v50 = vcombine.high %v11728_v56, %v11728_v56  ;;  %vm19483_vm9 = vmmov %vm19472_vm0 }
 0x853   :  { %v11881_v4 = vmax.f32 %v11879_v7, %v11880_v17  ;;  %v11887_v53 = vrot.slane %v11886_v41, 1  ;;  %v11894_v39 = vrot.slane %v11893_v36, 1  ;;  %v11900_v43 = vmax.f32 %v11898_v1, %v11899_v21 }
 0x854   :  { %v11846_v49 = vmax.f32 %v11844_v52, %v11845_v31  ;;  %v11932_v30 = vsel %vm19471_vm6, %v11839_v62, -inf  ;;  %v11793_v51 = vrot.slane %v11728_v56, %v15637_v46  ;;  %v11800_v12 = vrot.slane %v11786_v50, %v15637_v46 }
 0x855   :  { %v11888_v37 = vmax.f32 %v11886_v41, %v11887_v53  ;;  %v11895_v28 = vmax.f32 %v11893_v36, %v11894_v39  ;;  %v11901_v16 = vrot.slane %v11900_v43, 1  ;;  %v11943_v32 = vsel %vm19472_vm0, %v11881_v4, -inf  ;;  %vm19485_vm0 = vmmov %vm19466_vm1 }
 0x856   :  { %v11933_v47 = vmax.f32 %v11931_v19, %v11932_v30  ;;  %v11935_v63 = vsel %vm19473_vm7, %v11846_v49, -inf  ;;  %v11801_v23 = vcombine.high %v11793_v51, %v11793_v51  ;;  %v11802_v24 = vcombine.high %v11800_v12, %v11800_v12  ;;  %vm19486_vm7 = vmmov %vm19474_vm2 }
 0x857   :  { %v11902_v29 = vmax.f32 %v11900_v43, %v11901_v16  ;;  %v11944_v56 = vsel %vm19474_vm2, %v11895_v28, -inf  ;;  %v11946_v2 = vsel %vm19475_vm12, %v11888_v37, -inf  ;;  %v11936_v18 = vmax.f32 %v11934_v25, %v11935_v63  ;;  %vm19487_vm2 = vmmov %vm19485_vm0 }
 0x858   :  { %v11945_v26 = vmax.f32 %v11943_v32, %v11944_v56  ;;  %v11959_v54 = vadd.f32 %v19058_v3, %v11933_v47  ;;  %v11903_v0 = vsel %vm19476_vm4, %v11793_v51, -inf  ;;  %v11910_v14 = vsel %vm19477_vm11, %v11801_v23, -inf  ;;  %vm19489_vm4 = vmmov %vm19486_vm7 }
 0x859   :  { %v11947_v57 = vsel %vm19478_vm13, %v11902_v29, -inf  ;;  %v11960_v44 = vadd.f32 %v19058_v3, %v11936_v18  ;;  %v11904_v59 = vrot.slane %v11903_v0, 4  ;;  %v11911_v10 = vrot.slane %v11910_v14, 4  ;;  %vm19490_vm11 = vmmov %vm19489_vm4 }
 0x85a   :  { %v11948_v5 = vmax.f32 %v11946_v2, %v11947_v57  ;;  %v11963_v7 = vadd.f32 %v19058_v3, %v11945_v26  ;;  %v11967_v40 = vmax.f32 %v11959_v54, 0.0  ;;  %v11917_v15 = vsel %vm19479_vm5, %v11800_v12, -inf  ;;  %vm19491_vm13 = vmmov %vm19489_vm4 }
 0x85b   :  { %v11968_v1 = vmax.f32 %v11960_v44, 0.0  ;;  %v11905_v34 = vmax.f32 %v11903_v0, %v11904_v59  ;;  %v11912_v60 = vmax.f32 %v11910_v14, %v11911_v10  ;;  %v11918_v52 = vrot.slane %v11917_v15, 4  ;;  %vm19492_vm5 = vmmov %vm19489_vm4 }
 0x85c   :  { %v11964_v19 = vadd.f32 %v19058_v3, %v11948_v5  ;;  %v11971_v17 = vmax.f32 %v11963_v7, 0.0  ;;  %v14735_v41 = vpack.c.bf16 %v11967_v40, %v11967_v40  ;;  %v11924_v36 = vsel %vm19466_vm1, %v11802_v24, -inf  ;;  %vm19493_vm1 = vmmov %vm19489_vm4 }
 0x85d   :  { %v14736_v21 = vpack.c.bf16 %v11968_v1, %v11968_v1  ;;  %v11906_v62 = vrot.slane %v11905_v34, 2  ;;  %v11913_v31 = vrot.slane %v11912_v60, 2  ;;  %v11919_v25 = vmax.f32 %v11917_v15, %v11918_v52 }
 0x85e   :  { %v11972_v50 = vmax.f32 %v11964_v19, 0.0  ;;  %v14739_v4 = vpack.c.bf16 %v11971_v17, %v11971_v17  ;;  %v12139_v53 = vunpack.c.l.b16 %v14735_v41  ;;  %v11925_v39 = vrot.slane %v11924_v36, 4 }
 0x85f   :  { %v12140_v43 = vunpack.c.l.b16 %v14736_v21  ;;  %v11907_v49 = vmax.f32 %v11905_v34, %v11906_v62  ;;  %v11914_v30 = vmax.f32 %v11912_v60, %v11913_v31  ;;  %v11920_v51 = vrot.slane %v11919_v25, 2  ;;  %v14486_v34 = vld.sshfl [vmem:[#allocation4 + $0x8] sm:$0x11 pattern:$0x75316420] }
 0x860   :  { %v14740_v12 = vpack.c.bf16 %v11972_v50, %v11972_v50  ;;  %v12143_v37 = vunpack.c.l.b16 %v14739_v4  ;;  %v11926_v28 = vmax.f32 %v11924_v36, %v11925_v39  ;;  %v11768_v16 = vcombine.high %v19039_v9, %v19039_v9  ;;  %v19091_v4 = vld.sshfl [vmem:[#allocation4 + $0x58] sm:$0x11 pattern:$0x75316420] }
 0x861   :  { %v12147_v32 = vrot.slane %v12140_v43, 7  ;;  %v11908_v47 = vrot.slane %v11907_v49, 1  ;;  %v11915_v63 = vrot.slane %v11914_v30, 1  ;;  %v11921_v23 = vmax.f32 %v11919_v25, %v11920_v51 }
 0x862   :  { %v12144_v24 = vunpack.c.l.b16 %v14740_v12  ;;  %v11927_v29 = vrot.slane %v11926_v28, 2  ;;  %v11847_v56 = vsel %vm19480_vm8, %v19030_v38, -inf  ;;  %v11854_v2 = vsel %vm19481_vm10, %v11767_v42, -inf }
 0x863   :  { %v12148_v18 = vsel %vm5353_vm3, %v12147_v32, %v12139_v53  ;;  %v11909_v26 = vmax.f32 %v11907_v49, %v11908_v47  ;;  %v11916_v54 = vmax.f32 %v11914_v30, %v11915_v63  ;;  %v11922_v0 = vrot.slane %v11921_v23, 1  ;;  %v15384_v32 = vld [vmem:[%s19349_s2 + $0x318] sm:$0xff]  }
 0x864   :  { %v12151_v14 = vrot.slane %v12144_v24, 7  ;;  %v12155_v57 = vpack.c.b16 %v12148_v18, %v12148_v18  ;;  %v11928_v44 = vmax.f32 %v11926_v28, %v11927_v29  ;;  %v11848_v59 = vrot.slane %v11847_v56, 4  ;;  %v15382_v28 = vld [vmem:[%s19349_s2 + $0x2a0] sm:$0xff]  }
 0x865   :  { %v11923_v10 = vmax.f32 %v11921_v23, %v11922_v0  ;;  %v11949_v5 = vsel %vm19482_vm15, %v11909_v26, -inf  ;;  %v11952_v7 = vsel %vm19483_vm9, %v11916_v54, -inf  ;;  %v11855_v40 = vrot.slane %v11854_v2, 4  ;;  %v15385_v23 = vld [vmem:[%s19349_s2 + $0x2e8] sm:$0xff]   ;;  %v15387_v24 = vld [vmem:[%s19349_s2 + $0x360] sm:$0xff]   ;;  %15002 = vmatpush3.bf16.msra.mxu0 %v15382_v28 }
 0x866   :  { %v12152_v15 = vsel %vm5353_vm3, %v12151_v14, %v12143_v37  ;;  %vm19484_vm6 = vcmask 516096   ;;  %v11929_v38 = vrot.slane %v11928_v44, 1  ;;  %v11849_v42 = vmax.f32 %v11847_v56, %v11848_v59  ;;  %v15386_v0 = vld [vmem:[%s19349_s2 + $0x2a8] sm:$0xff]   ;;  %v15388_v14 = vld [vmem:[%s19349_s2 + $0x320] sm:$0xff]   ;;  %15003 = vmatprep.subr.bf16.mxu0 %v15385_v23 }
 0x867   :  { %12165 = vst.msk [vmem:[#allocation4 + $0x1c] sm:$0x1] %vm19484_vm6, %v12155_v57  ;;  %v11861_v1 = vsel %vm19485_vm0, %v19039_v9, -inf  ;;  %v12157_v60 = vpack.c.b16 %v12152_v15, %v12152_v15  ;;  %v11950_v52 = vsel %vm19486_vm7, %v11923_v10, -inf  ;;  %v11856_v19 = vmax.f32 %v11854_v2, %v11855_v40  ;;  %vm19488_vm12 = vmmov %vm19484_vm6 }
 0x868   :  { %v11862_v17 = vrot.slane %v11861_v1, 4  ;;  %v11930_v41 = vmax.f32 %v11928_v44, %v11929_v38  ;;  %v11951_v36 = vmax.f32 %v11949_v5, %v11950_v52  ;;  %v11850_v21 = vrot.slane %v11849_v42, 2  ;;  %vm19494_vm8 = vmmov %vm19484_vm6 }
 0x869   :  { %v11868_v62 = vsel %vm19487_vm2, %v11768_v16, -inf  ;;  %12167 = vst.msk [vmem:[#allocation4 + $0x6c] sm:$0x1] %vm19488_vm12, %v12157_v60  ;;  %v11857_v31 = vrot.slane %v11856_v19, 2  ;;  %v12430_v53 = vcombine.high %v14486_v34, %v14486_v34  ;;  %v12437_v49 = vrot.slane %v14486_v34, %v18983_v20  ;;  %v15383_v16 = vld [vmem:[%s19349_s2 + $0x358] sm:$0xff]   ;;  %15004 = vmatpush3.bf16.msra.mxu0 %v15386_v0  ;;  %vm19496_vm15 = vmmov %vm19484_vm6 }
 0x86a   :  { %v11863_v25 = vmax.f32 %v11861_v1, %v11862_v17  ;;  %v11869_v50 = vrot.slane %v11868_v62, 4  ;;  %v11953_v9 = vsel %vm19489_vm4, %v11930_v41, -inf  ;;  %v11965_v39 = vadd.f32 %v19058_v3, %v11951_v36  ;;  %15021 = vmatprep.subr.bf16.mxu1 %v15383_v16  ;;  %vm19501_vm12 = vmmov %vm19487_vm2 }
 0x86b   :  { %v11851_v43 = vmax.f32 %v11849_v42, %v11850_v21  ;;  %v11954_v30 = vmax.f32 %v11952_v7, %v11953_v9  ;;  %v11858_v51 = vmax.f32 %v11856_v19, %v11857_v31  ;;  %v19112_v29 = vrot.slane %v12430_v53, %v18983_v20  ;;  %15022 = vmatpush3.bf16.msra.mxu1 %v15384_v32  ;;  %vm19502_vm4 = vmmov %vm19487_vm2 }
 0x86c   :  { %v11864_v12 = vrot.slane %v11863_v25, 2  ;;  %v11870_v37 = vmax.f32 %v11868_v62, %v11869_v50  ;;  %v11973_v47 = vmax.f32 %v11965_v39, 0.0  ;;  %v12474_v56 = vcombine.high %v19091_v4, %v19091_v4  ;;  %15023 = vmatprep.subr.bf16.mxu1 %v15387_v24 }
 0x86d   :  { %v11852_v63 = vrot.slane %v11851_v43, 1  ;;  %v11966_v2 = vadd.f32 %v19058_v3, %v11954_v30  ;;  %v11859_v18 = vrot.slane %v11858_v51, 1  ;;  %v12481_v10 = vrot.slane %v19091_v4, %v18983_v20 }
 0x86e   :  { %v11865_v26 = vmax.f32 %v11863_v25, %v11864_v12  ;;  %v11871_v54 = vrot.slane %v11870_v37, 2  ;;  %v14741_v57 = vpack.c.bf16 %v11973_v47, %v11973_v47  ;;  %v15363_v59 = vld [vmem:[#allocation4 + $0x8] ss:$20 sps:$4 sm:$0x11]   ;;  %v19125_v5 = vshrl.u32 %v12437_v49, 16 }
 0x86f   :  { %v11853_v44 = vmax.f32 %v11851_v43, %v11852_v63  ;;  %v11974_v7 = vmax.f32 %v11966_v2, 0.0  ;;  %v11860_v40 = vmax.f32 %v11858_v51, %v11859_v18  ;;  %v14495_v42 = vld.sshfl [vmem:[#allocation4 + $0x1c] sm:$0x1 pattern:$0x75316420]  ;;  %v12394_v52 = vrot.slane %v15363_v59, %v18983_v20  ;;  %15024 = vmatpush3.bf16.msra.mxu1 %v15388_v14 }
 0x870   :  { %v11866_v15 = vrot.slane %v11865_v26, 1  ;;  %v11872_v38 = vmax.f32 %v11870_v37, %v11871_v54  ;;  %v12145_v1 = vunpack.c.l.b16 %v14741_v57  ;;  %v15364_v60 = vld [vmem:[#allocation4 + $0x58] ss:$20 sps:$4 sm:$0x11]   ;;  %v12618_v19 = vrot.slane %v14495_v42, %v18983_v20 }
 0x871   :  { %v11937_v34 = vsel %vm19490_vm11, %v11853_v44, -inf  ;;  %v14742_v17 = vpack.c.bf16 %v11974_v7, %v11974_v7  ;;  %v11940_v21 = vsel %vm19491_vm13, %v11860_v40, -inf  ;;  %v14499_v62 = vld.sshfl [vmem:[#allocation4 + $0x6c] sm:$0x1 pattern:$0x75316420]  ;;  %v12401_v31 = vrot.slane %v15364_v60, %v18983_v20  ;;  %vm19503_vm11 = vmmov %vm19487_vm2 }
 0x872   :  { %v11867_v41 = vmax.f32 %v11865_v26, %v11866_v15  ;;  %v11873_v36 = vrot.slane %v11872_v38, 1  ;;  %v12678_v25 = vrot.slane %v14499_v62, %v18983_v20  ;;  %v12715_v50 = vshll.u32 %v12618_v19, 16  ;;  %v14506_v53 = vld.sshfl [vmem:[#allocation4 + $0x1c] sm:$0x11 pattern:$0x75316420]  ;;  %vm19504_vm13 = vmmov %vm19493_vm1 }
 0x873   :  { %v12488_v9 = vrot.slane %v12474_v56, %v18983_v20  ;;  %v12146_v39 = vunpack.c.l.b16 %v14742_v17  ;;  %v14508_v30 = vld.sshfl [vmem:[#allocation4 + $0x6c] sm:$0x11 pattern:$0x75316420]  ;;  %v12822_v51 = vcombine.high %v14506_v53, %v14506_v53  ;;  %v12402_v37 = vcombine.low %v12394_v52, %v12401_v31 }
 0x874   :  { %v11874_v43 = vmax.f32 %v11872_v38, %v11873_v36  ;;  %v11938_v49 = vsel %vm19492_vm5, %v11867_v41, -inf  ;;  %v19138_v28 = vsel %vm19004_vm14, %v19019_v8, %v12715_v50  ;;  %v12733_v16 = vshll.u32 %v12678_v25, 16  ;;  %v14516_v15 = vld.sshfl [vmem:[#allocation4 + $0x40] sm:$0x20 pattern:$0x75316420]  ;;  %vm19505_vm5 = vmmov %vm19493_vm1 }
 0x875   :  { %v11939_v12 = vmax.f32 %v11937_v34, %v11938_v49  ;;  %v12153_v32 = vrot.slane %v12146_v39, 7  ;;  %v12829_v63 = vrot.slane %v14506_v53, %v18983_v20  ;;  %v12836_v23 = vrot.slane %v12822_v51, %v18983_v20  ;;  %v14527_v25 = vld.sshfl [vmem:[#allocation4 + $0x44] sm:$0x11 pattern:$0x75316420] }
 0x876   :  { %v11941_v47 = vsel %vm19493_vm1, %v11874_v43, -inf  ;;  %v12409_v2 = vrot.slane %v12402_v37, %v18983_v20  ;;  %v19148_v18 = vsel %vm19004_vm14, %v19021_v6, %v12733_v16  ;;  %v12866_v26 = vcombine.high %v14508_v30, %v14508_v30  ;;  %v14517_v39 = vld.sshfl [vmem:[#allocation4 + $0x44] sm:$0x1 pattern:$0x75316420] }
 0x877   :  { %v11942_v24 = vmax.f32 %v11940_v21, %v11941_v47  ;;  %v11961_v56 = vadd.f32 %v19058_v3, %v11939_v12  ;;  %v12154_v8 = vsel %vm5353_vm3, %v12153_v32, %v12145_v1  ;;  %v12873_v54 = vrot.slane %v14508_v30, %v18983_v20  ;;  %v14529_v49 = vld.sshfl [vmem:[#allocation4 + $0x94] sm:$0x11 pattern:$0x75316420] }
 0x878   :  { %v12904_v0 = vshrl.u32 %v12829_v63, 16  ;;  %v12158_v14 = vpack.c.b16 %v12154_v8, %v12154_v8  ;;  %12410 = vrot.lane.b32.xlu1 %v12409_v2, %s15442_s5  ;;  %v12909_v59 = vshll.u32 %v12836_v23, 16  ;;  %v12693_v7 = vrot.slane %v12686_v11, %v18983_v20 }
 0x879   :  { %v11962_v57 = vadd.f32 %v19058_v3, %v11942_v24  ;;  %v11969_v44 = vmax.f32 %v11961_v56, 0.0  ;;  %v12880_v6 = vrot.slane %v12866_v26, %v18983_v20  ;;  %v12353_v40 = vcombine.low %v12342_v35, %v19148_v18 }
 0x87a   :  { %v12352_v3 = vcombine.low %v12324_v27, %v19138_v28  ;;  %12168 = vst.msk [vmem:[#allocation4 + $0x80] sm:$0x1] %vm19494_vm8, %v12158_v14  ;;  %v19174_v11 = vsel %vm19004_vm14, %v12904_v0, %v12909_v59  ;;  %v12922_v38 = vshrl.u32 %v12873_v54, 16  ;;  %v12517_v42 = vshll.u32 %v19112_v29, 16  ;;  %vm19506_vm8 = vmmov %vm19493_vm1 }
 0x87b   :  { %v11970_v55 = vmax.f32 %v11962_v57, 0.0  ;;  %v12927_v61 = vshll.u32 %v12880_v6, 16  ;;  %v12367_v33 = vrot.slane %v12353_v40, %v18983_v20  ;;  %v12530_v45 = vshrl.u32 %v12481_v10, 16 }
 0x87c   :  { %v12360_v35 = vrot.slane %v12352_v3, %v18983_v20  ;;  %v14737_v27 = vpack.c.bf16 %v11969_v44, %v11969_v44  ;;  %v12519_v34 = vsel %vm19004_vm14, %v19125_v5, %v12517_v42  ;;  %v12535_v60 = vshll.u32 %v12488_v9, 16  ;;  %v14521_v10 = vld.sshfl [vmem:[#allocation4 + $0x94] sm:$0x1 pattern:$0x75316420] }
 0x87d   :  { %v14738_v1 = vpack.c.bf16 %v11970_v55, %v11970_v55  ;;  %v19187_v29 = vsel %vm19004_vm14, %v12922_v38, %v12927_v61  ;;  %v12547_v19 = vcombine.low %v12519_v34, %v19174_v11  ;;  %v13021_v17 = vcombine.high %v14516_v15, %v14516_v15 }
 0x87e   :  { %v12368_v52 = vcombine.low %v12360_v35, %v12367_v33  ;;  %v12537_v4 = vsel %vm19004_vm14, %v12530_v45, %v12535_v60  ;;  %v13081_v36 = vcombine.high %v14520_v13, %v14520_v13  ;;  %v12633_v5 = vrot.slane %v12626_v48, %v18983_v20 }
 0x87f   :  { %v12142_v41 = vunpack.c.l.b16 %v14738_v1  ;;  %v12548_v62 = vcombine.low %v12537_v4, %v19187_v29  ;;  %v12555_v31 = vrot.slane %v12547_v19, %v18983_v20  ;;  %v12141_v50 = vunpack.c.l.b16 %v14737_v27 }
 0x880   :  { %v12375_v21 = vrot.slane %v12368_v52, %v18983_v20  ;;  %v12694_v9 = vcombine.high %v12693_v7, %v12693_v7  ;;  %v13088_v43 = vrot.slane %v13081_v36, %v18983_v20  ;;  %vm19495_vm10 = vcmask 519168  }
 0x881   :  { %v12149_v53 = vrot.slane %v12142_v41, 7  ;;  %v14501_v30 = vld.sshfl [vmem:[#allocation4 + $0x80] sm:$0x1 pattern:$0x75316420]  ;;  %v12562_v22 = vrot.slane %v12548_v62, %v18983_v20  ;;  %v13028_v48 = vrot.slane %v13021_v17, %v18983_v20  ;;  %v13103_v32 = vrot.slane %v14521_v10, %v18983_v20 }
 0x882   :  { %12377 = vst.msk [vmem:[#allocation5] sm:$0xf] %vm19495_vm10, %v12375_v21  ;;  %v12708_v12 = vrot.slane %v14501_v30, %v18983_v20  ;;  %v14509_v37 = vld.sshfl [vmem:[#allocation4 + $0x80] sm:$0x11 pattern:$0x75316420]  ;;  %v13089_v16 = vcombine.high %v13088_v43, %v13088_v43  ;;  %v13239_v24 = vcombine.high %v14527_v25, %v14527_v25  ;;  %v12634_v56 = vcombine.high %v12633_v5, %v12633_v5 }
 0x883   :  { %v12150_v51 = vsel %vm5353_vm3, %v12149_v53, %v12141_v50  ;;  %v12888_v63 = vcombine.high %v14509_v37, %v14509_v37  ;;  %v12563_v23 = vcombine.low %v12555_v31, %v12562_v22  ;;  %v12737_v2 = vshrl.u32 %v12694_v9, 16  ;;  %vm19497_vm3 = vmmov %vm19495_vm10  ;;  %v15393_v35 = vld [vmem:[#allocation4 + $0x6c] ss:$20 sps:$4 sm:$0x11]   ;;  %v15389_v5 = vld [vmem:[%s19349_s2 + $0x2f0] sm:$0xff]  }
 0x884   :  { %v12156_v47 = vpack.c.b16 %v12150_v51, %v12150_v51  ;;  %v13283_v8 = vcombine.high %v14529_v49, %v14529_v49  ;;  %v12742_v26 = vshll.u32 %v12708_v12, 16  ;;  %v13043_v14 = vrot.slane %v14517_v39, %v18983_v20  ;;  %v19220_v1 = vld [vmem:[#allocation4 + $0x80] ss:$20 sps:$4 sm:$0x11]   ;;  %15005 = vmatprep.subr.bf16.mxu0 %v15389_v5  ;;  %vm19499_vm9 = vmmov %vm19497_vm3 }
 0x885   :  { %v12902_v54 = vrot.slane %v12888_v63, %v18983_v20  ;;  %v12570_v0 = vrot.slane %v12563_v23, %v18983_v20  ;;  %v12895_v57 = vrot.slane %v14509_v37, %v18983_v20  ;;  %v13132_v44 = vshrl.u32 %v13089_v16, 16  ;;  %v15390_v21 = vld [vmem:[%s19349_s2 + $0x2b0] sm:$0xff]   ;;  %vm19500_vm6 = vmmov %vm19497_vm3 }
 0x886   :  { %12166 = vst.msk [vmem:[#allocation4 + $0x30] sm:$0x1] %vm19496_vm15, %v12156_v47  ;;  %v13137_v59 = vshll.u32 %v13103_v32, 16  ;;  %v13029_v7 = vcombine.high %v13028_v48, %v13028_v48  ;;  %v13246_v6 = vrot.slane %v14527_v25, %v18983_v20  ;;  %v13253_v40 = vrot.slane %v13239_v24, %v18983_v20  ;;  %v15391_v25 = vld [vmem:[%s19349_s2 + $0x368] sm:$0xff]   ;;  %15006 = vmatpush3.bf16.msra.mxu0 %v15390_v21  ;;  %v15395_v32 = vld [vmem:[%s19349_s2 + $0x2f8] sm:$0xff]   ;;  %v15397_v63 = vld [vmem:[%s19349_s2 + $0x370] sm:$0xff]  }
 0x887   :  { %12572 = vst.msk [vmem:[#allocation5 + $0x8] sm:$0xf] %vm19497_vm3, %v12570_v0  ;;  %v12936_v3 = vshll.u32 %v12902_v54, 16  ;;  %v13290_v15 = vrot.slane %v14529_v49, %v18983_v20  ;;  %v13297_v55 = vrot.slane %v13283_v8, %v18983_v20  ;;  %v12719_v38 = vshrl.u32 %v12634_v56, 16  ;;  %15025 = vmatprep.subr.bf16.mxu1 %v15391_v25  ;;  %v15396_v47 = vld [vmem:[%s19349_s2 + $0x2b8] sm:$0xff]   ;;  %15007 = vmatprep.subr.bf16.mxu0 %v15395_v32  ;;  %v15403_v21 = vld [vmem:[%s19349_s2 + $0x390] sm:$0xff]   ;;  %vm19507_vm10 = vmmov %vm19496_vm15 }
 0x888   :  { %v12744_v42 = vsel %vm19004_vm14, %v12737_v2, %v12742_v26  ;;  %v13119_v61 = vshll.u32 %v13043_v14, 16  ;;  %v12931_v33 = vshrl.u32 %v12895_v57, 16  ;;  %v13139_v45 = vsel %vm19004_vm14, %v13132_v44, %v13137_v59  ;;  %v15398_v26 = vld [vmem:[%s19349_s2 + $0x330] sm:$0xff]   ;;  %vm19508_vm15 = vmmov %vm19507_vm10 }
 0x889   :  { %v13326_v13 = vshrl.u32 %v13290_v15, 16  ;;  %v13331_v27 = vshll.u32 %v13297_v55, 16  ;;  %v13114_v34 = vshrl.u32 %v13029_v7, 16  ;;  %v13308_v60 = vshrl.u32 %v13246_v6, 16  ;;  %v15407_v25 = vld [vmem:[%s19349_s2 + $0x3b0] sm:$0xff]  }
 0x88a   :  { %v13313_v52 = vshll.u32 %v13253_v40, 16  ;;  %v12746_v17 = vcombine.low %v19148_v18, %v12744_v42  ;;  %v12938_v41 = vsel %vm19004_vm14, %v12931_v33, %v12936_v3  ;;  %v13141_v62 = vcombine.low %v12744_v42, %v13139_v45  ;;  %15008 = vmatpush3.bf16.msra.mxu0 %v15396_v47 }
 0x88b   :  { %v13333_v4 = vsel %vm19004_vm14, %v13326_v13, %v13331_v27  ;;  %v12796_v50 = vrot.slane %v15393_v35, %v18983_v20  ;;  %v12940_v9 = vcombine.low %v19187_v29, %v12938_v41  ;;  %v13121_v43 = vsel %vm19004_vm14, %v13114_v34, %v13119_v61  ;;  %v15394_v29 = vld [vmem:[%s19349_s2 + $0x328] sm:$0xff]  }
 0x88c   :  { %v13335_v49 = vcombine.low %v12938_v41, %v13333_v4  ;;  %v12760_v30 = vrot.slane %v12746_v17, %v18983_v20  ;;  %v13189_v51 = vrot.slane %v19220_v1, %v18983_v20  ;;  %v13155_v16 = vrot.slane %v13141_v62, %v18983_v20  ;;  %15026 = vmatpush3.bf16.msra.mxu1 %v15394_v29  ;;  %v15400_v41 = vld [vmem:[%s19349_s2 + $0x380] sm:$0xff]   ;;  %v15404_v62 = vld [vmem:[%s19349_s2 + $0x398] sm:$0xff]  }
 0x88d   :  { %v14497_v19 = vld.sshfl [vmem:[#allocation4 + $0x30] sm:$0x1 pattern:$0x75316420]  ;;  %v13315_v23 = vsel %vm19004_vm14, %v13308_v60, %v13313_v52  ;;  %v12954_v54 = vrot.slane %v12940_v9, %v18983_v20  ;;  %15027 = vmatprep.subr.bf16.mxu1 %v15397_v63  ;;  %v15444_v55 = vmov 0.0   ;;  %vm12413_vm0 = vcmask 1043968  }
 0x88e   :  { %v12648_v10 = vrot.slane %v14497_v19, %v18983_v20  ;;  %v14507_v36 = vld.sshfl [vmem:[#allocation4 + $0x30] sm:$0x11 pattern:$0x75316420]  ;;  %v13349_v14 = vrot.slane %v13335_v49, %v18983_v20  ;;  %15178 = vmatprep.subr.bf16.mxu0 %v15444_v55  ;;  %vm15445_vm7 = vmmov 0  }
 0x88f   :  { %v12844_v31 = vcombine.high %v14507_v36, %v14507_v36  ;;  %v12851_v18 = vrot.slane %v14507_v36, %v18983_v20  ;;  %v15392_v39 = vld [vmem:[#allocation4 + $0x1c] ss:$20 sps:$4 sm:$0x11]  }
 0x890   :  { %v12724_v53 = vshll.u32 %v12648_v10, 16  ;;  %v15365_v48 = vld [vmem:[#allocation4 + $0x30] ss:$20 sps:$4 sm:$0x11]   ;;  %v12789_v37 = vrot.slane %v15392_v39, %v18983_v20  ;;  %15028 = vmatpush3.bf16.msra.mxu1 %v15398_v26  ;;  %v15402_v10 = vld [vmem:[%s19349_s2 + $0x388] sm:$0xff]  }
 0x891   :  { %v12858_v22 = vrot.slane %v12844_v31, %v18983_v20  ;;  %v12913_v56 = vshrl.u32 %v12851_v18, 16  ;;  %v13182_v44 = vrot.slane %v15365_v48, %v18983_v20  ;;  %15029 = vmatprep.subr.bf16.mxu1 %v15399_v58  ;;  %v15405_v31 = vld [vmem:[%s19349_s2 + $0x3a0] sm:$0xff]   ;;  %v15406_v18 = vld [vmem:[%s19349_s2 + $0x3a8] sm:$0xff]  }
 0x892   :  { %v12726_v12 = vsel %vm19004_vm14, %v12719_v38, %v12724_v53  ;;  %v12797_v0 = vcombine.low %v12789_v37, %v12796_v50  ;;  %v15408_v50 = vld [vmem:[%s19349_s2 + $0x3b8] sm:$0xff]  }
 0x893   :  { %v12745_v24 = vcombine.low %v19138_v28, %v12726_v12  ;;  %v12918_v2 = vshll.u32 %v12858_v22, 16  ;;  %v13140_v8 = vcombine.low %v12726_v12, %v13121_v43  ;;  %v13190_v33 = vcombine.low %v13182_v44, %v13189_v51 }
 0x894   :  { %v12804_v6 = vrot.slane %v12797_v0, %v18983_v20 }
 0x895   :  { %v12753_v57 = vrot.slane %v12745_v24, %v18983_v20  ;;  %v12920_v28 = vsel %vm19004_vm14, %v12913_v56, %v12918_v2  ;;  %v13148_v59 = vrot.slane %v13140_v8, %v18983_v20  ;;  %vm19498_vm14 = vmmov %vm19497_vm3  ;;  %v13197_v34 = vrot.slane %v13190_v33, %v18983_v20 }
 0x896   :  { %v12939_v7 = vcombine.low %v19174_v11, %v12920_v28  ;;  %v13334_v40 = vcombine.low %v12920_v28, %v13315_v23  ;;  %12806 = vst.msk [vmem:[#allocation5 + $0x10] sm:$0xf] %vm19498_vm14, %v12804_v6  ;;  %v15401_v11 = vld [vmem:[%s19349_s2 + $0x338] sm:$0xff]  }
 0x897   :  { %v12761_v3 = vcombine.low %v12753_v57, %v12760_v30  ;;  %v13156_v15 = vcombine.low %v13148_v59, %v13155_v16  ;;  %15030 = vmatpush3.bf16.msra.mxu1 %v15401_v11 }
 0x898   :  { %v12947_v38 = vrot.slane %v12939_v7, %v18983_v20  ;;  %v13342_v42 = vrot.slane %v13334_v40, %v18983_v20 }
 0x899   :  { %v12768_v61 = vrot.slane %v12761_v3, %v18983_v20  ;;  %v13163_v35 = vrot.slane %v13156_v15, %v18983_v20 }
 0x89a   :  { %v12955_v45 = vcombine.low %v12947_v38, %v12954_v54  ;;  %v13350_v13 = vcombine.low %v13342_v42, %v13349_v14 }
 0x89b   :  { %12769 = vrot.lane.b32.xlu0 %v12768_v61, %s15442_s5  ;;  %13165 = vst.msk [vmem:[#allocation5 + $0x18] sm:$0xf] %vm19499_vm9, %v13163_v35 }
 0x89c   :  { %v12962_v27 = vrot.slane %v12955_v45, %v18983_v20  ;;  %v13357_v1 = vrot.slane %v13350_v13, %v18983_v20 }
 0x89e   :  { %12963 = vrot.lane.b32.xlu1 %v12962_v27, %s15442_s5  ;;  %13359 = vst.msk [vmem:[#allocation5 + $0x20] sm:$0xf] %vm19500_vm6, %v13357_v1 }
 0x89f   :  { %13198 = vrot.lane.b32.xlu0 %v13197_v34, %s15442_s5 }
 0x8a5   :  { %v13364_v53 = vld [vmem:[#allocation5 + $0x20] sm:$0xf] }
 0x8ea   :  { %v12411_v60 = vpop.permute.xlu1 %12410 }
 0x8eb   :  { %12414 = vst.msk [vmem:[#allocation5] sm:$0xf] %vm12413_vm0, %v12411_v60 }
 0x8f2   :  { %v13360_v4 = vld [vmem:[#allocation5] sm:$0xf] }
 0x90d   :  { %v12770_v52 = vpop.permute.xlu0 %12769 }
 0x90e   :  { %12772 = vst.msk [vmem:[#allocation5 + $0x8] sm:$0xf] %vm12413_vm0, %v12770_v52 }
 0x910   :  { %v12964_v19 = vpop.permute.xlu1 %12963 }
 0x911   :  { %12966 = vst.msk [vmem:[#allocation5 + $0x10] sm:$0xf] %vm12413_vm0, %v12964_v19  ;;  %v13199_v17 = vpop.permute.xlu0 %13198 }
 0x912   :  { %13201 = vst.msk [vmem:[#allocation5 + $0x18] sm:$0xf] %vm12413_vm0, %v13199_v17 }
 0x915   :  { %v13361_v20 = vld [vmem:[#allocation5 + $0x8] sm:$0xf] }
 0x916   :  { %13637 = vmatprep.mubr.bf16.mxu0 %v13361_v20 }
 0x917   :  { %13638 = vmatmul.mubr.bf16.vlgmr.msra.gmra.mrb[88].mxu0 %v13360_v4 }
 0x918   :  { %15179 = vmatpush3.bf16.msra.mxu0 %v15400_v41  ;;  %15194 = vmatprep.mubr.msk.bf16.mxu0 %vm15445_vm7, %v15444_v55  ;;  %v13362_v5 = vld [vmem:[#allocation5 + $0x10] sm:$0xf]  ;;  %v14574_v41 = vld [vmem:[%s19350_s3 + $0x3] ss:$0 sm:$0xff] }
 0x919   :  { %v13363_v36 = vld [vmem:[#allocation5 + $0x18] sm:$0xf]  ;;  %15180 = vmatprep.subr.bf16.mxu0 %v15444_v55 }
 0x91a   :  { %13677 = vmatprep.mubr.bf16.mxu1 %v13363_v36 }
 0x91b   :  { %13678 = vmatmul.mubr.bf16.vlgmr.msra.gmra.mrb[76].mxu1 %v13362_v5 }
 0x91c   :  { %15181 = vmatpush3.bf16.msra.mxu0 %v15402_v10 }
 0x91d   :  { %15182 = vmatprep.subr.bf16.mxu0 %v15444_v55 }
 0x920   :  { %15183 = vmatpush3.bf16.msra.mxu0 %v15403_v21 }
 0x921   :  { %15184 = vmatprep.subr.bf16.mxu0 %v15444_v55 }
 0x924   :  { %15185 = vmatpush3.bf16.msra.mxu0 %v15404_v62 }
 0x925   :  { %15186 = vmatprep.subr.bf16.mxu0 %v15444_v55 }
 0x928   :  { %15187 = vmatpush3.bf16.msra.mxu0 %v15405_v31 }
 0x929   :  { %15188 = vmatprep.subr.bf16.mxu0 %v15444_v55 }
 0x92c   :  { %15189 = vmatpush3.bf16.msra.mxu0 %v15406_v18 }
 0x92d   :  { %15190 = vmatprep.subr.bf16.mxu0 %v15444_v55 }
 0x930   :  { %15191 = vmatpush3.bf16.msra.mxu0 %v15407_v25 }
 0x931   :  { %15192 = vmatprep.subr.bf16.mxu0 %v15444_v55 }
 0x934   :  { %15193 = vmatpush3.bf16.msra.mxu0 %v15408_v50 }
 0x937   :  { %15195 = vmatmul.mubr.bf16.vlgmr.msra.gmra.mrb[92].mxu0 %v13364_v53 }
 0x9ea   :  { %v15009_v9 = vpop.f32.mrb[88].mxu0 }
 0x9eb   :  { %v15010_v39 = vpop.f32.mrb[89].mxu0 }
 0x9ec   :  { %v15011_v43 = vadd.f32 %v15010_v39, %v15009_v9  ;;  %v15012_v49 = vpop.f32.mrb[90].mxu0 }
 0x9ed   :  { %v15013_v30 = vpop.f32.mrb[91].mxu0 }
 0x9ee   :  { %v15031_v22 = vpop.f32.mrb[76].mxu1 }
 0x9ef   :  { %v15032_v48 = vpop.f32.mrb[77].mxu1 }
 0x9f0   :  { %v15033_v51 = vadd.f32 %v15032_v48, %v15031_v22  ;;  %v15034_v29 = vpop.f32.mrb[78].mxu1 }
 0x9f1   :  { %v15035_v12 = vpop.f32.mrb[79].mxu1 }
 0x9f2   :  { %v13680_v37 = vadd.f32 %v15033_v51, %v15011_v43 }
 0xa0a   :  { %v13719_v16 = vpop.f32.mrb[92].mxu0 }
 0xa0b   :  { %v13720_v32 = vadd.f32 %v13719_v16, %v13680_v37  ;;  %v15196_v47 = vpop.f32.mrb[93].mxu0 }
 0xa0c   :  { %v13722_v63 = vpop.f32.mrb[94].mxu0 }
 0xa0d   :  { %v13726_v23 = vcombine.high %v13720_v32, %v13720_v32  ;;  %v13733_v24 = vrot.slane %v13720_v32, %v15637_v46  ;;  %v15197_v56 = vpop.f32.mrb[95].mxu0 }
 0xa0f   :  { %v13740_v2 = vrot.slane %v13726_v23, %v15637_v46  ;;  %v13741_v8 = vcombine.high %v13733_v24, %v13733_v24  ;;  %v13747_v26 = vsel %vm19487_vm2, %v13733_v24, -inf }
 0xa10   :  { %v13748_v54 = vrot.slane %v13747_v26, 4 }
 0xa11   :  { %v13742_v0 = vcombine.high %v13740_v2, %v13740_v2  ;;  %v13754_v14 = vsel %vm19501_vm12, %v13741_v8, -inf  ;;  %v13761_v57 = vsel %vm19502_vm4, %v13740_v2, -inf }
 0xa12   :  { %v13749_v28 = vmax.f32 %v13747_v26, %v13748_v54  ;;  %v13755_v44 = vrot.slane %v13754_v14, 4  ;;  %v13762_v59 = vrot.slane %v13761_v57, 4 }
 0xa13   :  { %v13768_v7 = vsel %vm19503_vm11, %v13742_v0, -inf }
 0xa14   :  { %v13750_v6 = vrot.slane %v13749_v28, 2  ;;  %v13756_v40 = vmax.f32 %v13754_v14, %v13755_v44  ;;  %v13763_v3 = vmax.f32 %v13761_v57, %v13762_v59  ;;  %v13769_v15 = vrot.slane %v13768_v7, 4 }
 0xa16   :  { %v13751_v55 = vmax.f32 %v13749_v28, %v13750_v6  ;;  %v13757_v46 = vrot.slane %v13756_v40, 2  ;;  %v13764_v58 = vrot.slane %v13763_v3, 2  ;;  %v13770_v38 = vmax.f32 %v13768_v7, %v13769_v15 }
 0xa18   :  { %v13752_v11 = vrot.slane %v13751_v55, 1  ;;  %v13758_v42 = vmax.f32 %v13756_v40, %v13757_v46  ;;  %v13765_v61 = vmax.f32 %v13763_v3, %v13764_v58  ;;  %v13771_v33 = vrot.slane %v13770_v38, 2 }
 0xa1a   :  { %v13753_v35 = vmax.f32 %v13751_v55, %v13752_v11  ;;  %v13759_v45 = vrot.slane %v13758_v42, 1  ;;  %v13766_v13 = vrot.slane %v13765_v61, 1  ;;  %v13772_v27 = vmax.f32 %v13770_v38, %v13771_v33 }
 0xa1c   :  { %v13760_v1 = vmax.f32 %v13758_v42, %v13759_v45  ;;  %v13767_v34 = vmax.f32 %v13765_v61, %v13766_v13  ;;  %v13773_v60 = vrot.slane %v13772_v27, 1  ;;  %v13775_v19 = vsel %vm19504_vm13, %v13753_v35, -inf }
 0xa1e   :  { %v13774_v52 = vmax.f32 %v13772_v27, %v13773_v60  ;;  %v13776_v17 = vsel %vm19505_vm5, %v13760_v1, -inf  ;;  %v13778_v4 = vsel %vm19493_vm1, %v13767_v34, -inf }
 0xa1f   :  { %v13777_v20 = vmax.f32 %v13775_v19, %v13776_v17 }
 0xa20   :  { %v13779_v10 = vsel %vm19506_vm8, %v13774_v52, -inf }
 0xa21   :  { %v13780_v36 = vmax.f32 %v13778_v4, %v13779_v10  ;;  %v13785_v5 = vadd.f32 %v14574_v41, %v13777_v20 }
 0xa23   :  { %v13786_v21 = vadd.f32 %v14574_v41, %v13780_v36  ;;  %v13787_v62 = vmax.f32 %v13785_v5, 0.0 }
 0xa25   :  { %v13788_v31 = vmax.f32 %v13786_v21, 0.0  ;;  %13789 = vst.msk [vmem:[#allocation6] sm:$0x1] %vm19507_vm10, %v13787_v62 }
 0xa27   :  { %13790 = vst.msk [vmem:[#allocation6 + $0x1] sm:$0x1] %vm19508_vm15, %v13788_v31 }
 0xa28   :  { %15427 = shalt.err (!%p15424_p4)
}
 0xa29   :  { %s15428_s9 = scalar_lea.hbm %s19351_s4, 32 }
 0xa2a   :  { %p15429_p5 = scmp.ne.s32.totalorder %s19351_s4, %s15428_s9  ;;  %p15432_p6 = scmp.lt.u32.totalorder %s15428_s9, %s19351_s4 }
 0xa2c   :  { %p15434_p7 = pnand %p15432_p6, %p15429_p5 }
 0xa2e   :  { %15437 = shalt.err (!%p15434_p7)
}
 0xa2f   :  { %s15447_s14 = smov 16   ;;  %s15448_s0 = smov 1  }
 0xa30   :  { %13802 = dma.vmem_to_hbm [thread:$0]  %s13797_s6, 32, %s19351_s4, [#allocation7], %s15447_s14, %s15447_s14, %s15448_s0  }
 0xa31   :  { %15438 = dma.done.wait [#allocation7], 32  }
 0xa32   :  { %15439 = vsyncadd [#allocation7], 4294967264 }
 0xa33   :  { %13806 = vsyncpa [#allocation7], 1 }

</bundles_post_ra>
